<compile_context>
chip_gen: v5e
topology: v5e:2x2
jax: 0.10.0
libtpu: 0.0.40
codegen_flags: <defaults>
</compile_context>

<pallas_src>
import jax
import jax.numpy as jnp
from jax import lax
from jax.experimental import pallas as pl
from jax.experimental.pallas import tpu as pltpu

# ---- model / tokenizer constants (small demo sizes; real CLIP: vocab=49408, D=768) ----
MAX_TOKENS = 77          # tokenizer max_length (returned sequence length)
SEQ_PAD = 128            # internal, lane/sublane-dense sequence length
VOCAB = 512
VOCAB_TILE = 256         # vocab tile per grid step in K1
D_MODEL = 128
NUM_HEADS = 4
HEAD_DIM = D_MODEL // NUM_HEADS
MLP_DIM = 4 * D_MODEL
MLP_TILE = 128           # MLP_DIM chunk width in K2 (caps live vregs)
NUM_LAYERS = 2
LN_EPS = 1e-5
BOS_ID = 1               # real CLIP: 49406
EOS_ID = 2               # real CLIP: 49407
PAD_ID = EOS_ID          # CLIP pads with the end-of-text token
NEG_INF = -1e30


def _ln(v, g, b):
    """Pre/final LayerNorm; rsqrt goes to the EUP slot."""
    mu = jnp.mean(v, axis=-1, keepdims=True)
    c = v - mu
    var = jnp.mean(c * c, axis=-1, keepdims=True)
    return c * lax.rsqrt(var + LN_EPS) * g + b


# ---------------------------------------------------------------------------
# K1: fused tokenizer-padding + (vocab-tiled) token-embedding gather + pos emb
# ---------------------------------------------------------------------------
def _embed_kernel(len_ref, swap_ref, toks_ref, emb_ref, pos_ref, outlier_ref, out_ref):
    b = pl.program_id(0)
    v = pl.program_id(1)
    TV = emb_ref.shape[0]
    S = pos_ref.shape[0]

    n = jnp.minimum(len_ref[b], MAX_TOKENS - 2)            # content length after truncation
    toks = toks_ref[0]                                     # (S, 1) int32; row p = raw token p-1
    row = lax.broadcasted_iota(jnp.int32, (S, 1), 0)
    ids = jnp.where(row == 0, jnp.int32(BOS_ID),
          jnp.where(row <= n, toks,
          jnp.where(row == n + 1, jnp.int32(EOS_ID), jnp.int32(PAD_ID))))

    # In-kernel outlier row swap (== torch's token_embedding.weight[original_id] = outlier),
    # applied to this vocab tile only; ephemeral, the HBM table is untouched.
    vrow = lax.broadcasted_iota(jnp.int32, (TV, 1), 0) + v * TV
    emb_tile = jnp.where(vrow == swap_ref[0], outlier_ref[...], emb_ref[...])

    # partial one-hot gather over this vocab tile on the MXU: (S, TV) @ (TV, D) -> (S, D)
    col = lax.broadcasted_iota(jnp.int32, (S, TV), 1) + v * TV
    onehot = (col == ids).astype(jnp.bfloat16)
    part = jnp.dot(onehot, emb_tile, preferred_element_type=jnp.float32)

    @pl.when(v == 0)
    def _():
        out_ref[0] = pos_ref[...]
    out_ref[0] += part


def _embed_call(lens, swap, toks, emb, pos_emb, outlier_row):
    B = toks.shape[0]
    V, D = emb.shape
    S = pos_emb.shape[0]
    NV = V // VOCAB_TILE
    return pl.pallas_call(
        _embed_kernel,
        out_shape=jax.ShapeDtypeStruct((B, S, D), jnp.float32),
        grid_spec=pltpu.PrefetchScalarGridSpec(
            num_scalar_prefetch=2,                          # lengths + swap_id live in SMEM
            grid=(B, NV),
            in_specs=[
                pl.BlockSpec((1, S, 1), lambda b, v, lens, swap: (b, 0, 0)),
                pl.BlockSpec((VOCAB_TILE, D), lambda b, v, lens, swap: (v, 0)),
                pl.BlockSpec((S, D), lambda b, v, lens, swap: (0, 0)),
                pl.BlockSpec((1, D), lambda b, v, lens, swap: (0, 0)),
            ],
            out_specs=pl.BlockSpec((1, S, D), lambda b, v, lens, swap: (b, 0, 0)),
        ),
        compiler_params=pltpu.CompilerParams(
            dimension_semantics=("parallel", "arbitrary"),
            vmem_limit_bytes=32 * 1024 * 1024),
    )(lens, swap, toks, emb, pos_emb, outlier_row)


# ---------------------------------------------------------------------------
# K2: full encoder stack (pre-LN causal MHA + quick-GELU MLP) + final LayerNorm
#     grid = (B, L); activation resident in VMEM scratch across L.
# ---------------------------------------------------------------------------
def _stack_kernel(x_ref, ln1g_ref, ln1b_ref, wq_ref, bq_ref, wk_ref, bk_ref,
                  wv_ref, bv_ref, wo_ref, bo_ref, ln2g_ref, ln2b_ref,
                  w1_ref, b1_ref, w2_ref, b2_ref, lnfg_ref, lnfb_ref,
                  o_ref, x_sc):
    l = pl.program_id(1)
    S, D = x_sc.shape
    H = wq_ref.shape[1]
    F = w1_ref.shape[2]

    @pl.when(l == 0)
    def _():
        x_sc[...] = x_ref[0]

    x = x_sc[...]                                           # (S, D) f32 running activation

    # ---- causal multi-head self-attention (pre-LN) ----
    h = _ln(x, ln1g_ref[0], ln1b_ref[0])
    hb = h.astype(jnp.bfloat16)                             # bf16 only at the MXU boundary

    qi = lax.broadcasted_iota(jnp.int32, (S, S), 0)
    ki = lax.broadcasted_iota(jnp.int32, (S, S), 1)
    bias = jnp.where(ki <= qi, 0.0, NEG_INF).astype(jnp.float32)   # additive mask, once

    acc = x                                                 # residual accumulator
    for hh in range(H):                                     # static unroll, H = 4, head-major
        # wq/bq were pre-scaled by 1/sqrt(Dh) at param-build time.
        qh = jnp.dot(hb, wq_ref[0, hh], preferred_element_type=jnp.float32) + bq_ref[0, hh]
        kh = jnp.dot(hb, wk_ref[0, hh], preferred_element_type=jnp.float32) + bk_ref[0, hh]
        vh = jnp.dot(hb, wv_ref[0, hh], preferred_element_type=jnp.float32) + bv_ref[0, hh]
        s = lax.dot_general(qh.astype(jnp.bfloat16), kh.astype(jnp.bfloat16),
                            (((1,), (1,)), ((), ())),
                            preferred_element_type=jnp.float32) + bias
        s = s - jnp.max(s, axis=-1, keepdims=True)
        p = jnp.exp(s)
        p = p * pl.reciprocal(jnp.sum(p, axis=-1, keepdims=True), approx=True)
        ph = jnp.dot(p.astype(jnp.bfloat16), vh.astype(jnp.bfloat16),
                     preferred_element_type=jnp.float32)
        # accumulate this head through its own slice of wo (no lane-dim concat)
        acc = acc + jnp.dot(ph.astype(jnp.bfloat16), wo_ref[0, hh],
                            preferred_element_type=jnp.float32)
    x = acc + bo_ref[0]

    # ---- quick-GELU MLP (pre-LN), tiled over MLP_DIM ----
    h2 = _ln(x, ln2g_ref[0], ln2b_ref[0]).astype(jnp.bfloat16)
    acc = x + b2_ref[0]
    for c in range(F // MLP_TILE):                          # static unroll of F chunks
        c0 = c * MLP_TILE
        f = jnp.dot(h2, w1_ref[0, :, c0:c0 + MLP_TILE],
                    preferred_element_type=jnp.float32) + b1_ref[0, :, c0:c0 + MLP_TILE]
        f = f * pl.reciprocal(1.0 + jnp.exp(-1.702 * f), approx=True)   # x * sigmoid(1.702x)
        acc = acc + jnp.dot(f.astype(jnp.bfloat16), w2_ref[0, c0:c0 + MLP_TILE, :],
                            preferred_element_type=jnp.float32)
    x_sc[...] = acc

    @pl.when(l == pl.num_programs(1) - 1)
    def _():
        o_ref[0] = _ln(acc, lnfg_ref[...], lnfb_ref[...])


def _per_layer(shape):
    zeros = (0,) * len(shape)
    return pl.BlockSpec((1,) + tuple(shape), lambda b, l: (l,) + zeros)


def _invariant(shape):
    zeros = (0,) * len(shape)
    return pl.BlockSpec(tuple(shape), lambda b, l: zeros)


def _stack_call(h, p):
    B, S, D = h.shape
    L, H = p["wq"].shape[0], p["wq"].shape[1]
    Dh = p["wq"].shape[3]
    F = p["w1"].shape[2]
    x_spec = pl.BlockSpec((1, S, D), lambda b, l: (b, 0, 0))
    return pl.pallas_call(
        _stack_kernel,
        out_shape=jax.ShapeDtypeStruct((B, S, D), jnp.float32),
        grid=(B, L),
        in_specs=[x_spec,
                  _per_layer((1, D)), _per_layer((1, D)),               # ln1 gamma/beta
                  _per_layer((H, D, Dh)), _per_layer((H, 1, Dh)),       # wq, bq (pre-scaled)
                  _per_layer((H, D, Dh)), _per_layer((H, 1, Dh)),       # wk, bk
                  _per_layer((H, D, Dh)), _per_layer((H, 1, Dh)),       # wv, bv
                  _per_layer((H, Dh, D)), _per_layer((1, D)),           # wo, bo
                  _per_layer((1, D)), _per_layer((1, D)),               # ln2 gamma/beta
                  _per_layer((D, F)), _per_layer((1, F)),               # w1, b1
                  _per_layer((F, D)), _per_layer((1, D)),               # w2, b2
                  _invariant((1, D)), _invariant((1, D))],              # final LN gamma/beta
        out_specs=x_spec,
        scratch_shapes=[pltpu.VMEM((S, D), jnp.float32)],               # resident activation
        compiler_params=pltpu.CompilerParams(
            dimension_semantics=("parallel", "arbitrary"),
            vmem_limit_bytes=32 * 1024 * 1024),
    )(h, p["ln1_g"], p["ln1_b"], p["wq"], p["bq"], p["wk"], p["bk"],
      p["wv"], p["bv"], p["wo"], p["bo"], p["ln2_g"], p["ln2_b"],
      p["w1"], p["b1"], p["w2"], p["b2"], p["lnf_g"], p["lnf_b"])


# ---------------------------------------------------------------------------
# wrapper = FrozenCLIPEmbedder.forward (numeric part)
# ---------------------------------------------------------------------------
def frozen_clip_embedder_forward(raw_tokens, lengths, params, swap_id=None, outlier=None):
    """raw_tokens: (B, R) int32 pre-tokenized ids; lengths: (B,) int32 valid counts.
    Returns last_hidden_state (B, 77, D_MODEL) float32 (int32 ids instead of torch int64 —
    TPU Pallas has no i64)."""
    B, R = raw_tokens.shape
    R_eff = min(R, MAX_TOKENS - 2)
    raw = raw_tokens[:, :R_eff].astype(jnp.int32)
    lens = jnp.minimum(lengths.astype(jnp.int32), jnp.int32(R_eff))

    # Hoisted once: (B, SEQ_PAD, 1) buffer pre-shifted by one row so row p holds raw token p-1
    # (row 0 becomes BOS in-kernel) -> no in-kernel shift/concat/roll.
    toks = jnp.zeros((B, SEQ_PAD, 1), jnp.int32).at[:, 1:R_eff + 1, 0].set(raw)

    if swap_id is None:
        swap = jnp.full((1,), -1, jnp.int32)                # matches no vocab row -> no swap
        out_row = jnp.zeros((1, D_MODEL), jnp.bfloat16)
    else:
        swap = jnp.asarray(swap_id, jnp.int32).reshape(1)
        out_row = jnp.asarray(outlier, jnp.float32).reshape(1, D_MODEL).astype(jnp.bfloat16)

    h = _embed_call(lens, swap, toks, params["tok_emb"], params["pos_emb"], out_row)
    h = _stack_call(h, params)
    return h[:, :MAX_TOKENS, :]


# ---------------------------------------------------------------------------
# pure-JAX reference (same math: bf16 matmul inputs matched, exact divides)
# ---------------------------------------------------------------------------
def _ref_layer(x, p, l):
    h = _ln(x, p["ln1_g"][l], p["ln1_b"][l])
    hb = h.astype(jnp.bfloat16)
    S = x.shape[1]
    qi = jnp.arange(S)[:, None]
    ki = jnp.arange(S)[None, :]
    bias = jnp.where(ki <= qi, 0.0, NEG_INF).astype(jnp.float32)
    acc = x
    for hh in range(NUM_HEADS):
        q = jnp.einsum("bsd,dk->bsk", hb, p["wq"][l, hh],
                       preferred_element_type=jnp.float32) + p["bq"][l, hh]
        k = jnp.einsum("bsd,dk->bsk", hb, p["wk"][l, hh],
                       preferred_element_type=jnp.float32) + p["bk"][l, hh]
        v = jnp.einsum("bsd,dk->bsk", hb, p["wv"][l, hh],
                       preferred_element_type=jnp.float32) + p["bv"][l, hh]
        s = jnp.einsum("bqk,bmk->bqm", q.astype(jnp.bfloat16), k.astype(jnp.bfloat16),
                       preferred_element_type=jnp.float32) + bias
        s = s - jnp.max(s, axis=-1, keepdims=True)
        pr = jnp.exp(s)
        pr = pr / jnp.sum(pr, axis=-1, keepdims=True)
        hv = jnp.einsum("bqm,bmk->bqk", pr.astype(jnp.bfloat16), v.astype(jnp.bfloat16),
                        preferred_element_type=jnp.float32)
        acc = acc + jnp.einsum("bsk,kd->bsd", hv.astype(jnp.bfloat16), p["wo"][l, hh],
                               preferred_element_type=jnp.float32)
    x = acc + p["bo"][l]
    h2 = _ln(x, p["ln2_g"][l], p["ln2_b"][l]).astype(jnp.bfloat16)
    f = jnp.einsum("bsd,df->bsf", h2, p["w1"][l],
                   preferred_element_type=jnp.float32) + p["b1"][l]
    f = f / (1.0 + jnp.exp(-1.702 * f))
    return x + jnp.einsum("bsf,fd->bsd", f.astype(jnp.bfloat16), p["w2"][l],
                          preferred_element_type=jnp.float32) + p["b2"][l]


def _reference(raw_tokens, lengths, params, swap_id, outlier):
    B, R = raw_tokens.shape
    R_eff = min(R, MAX_TOKENS - 2)
    lens = jnp.minimum(lengths.astype(jnp.int32), R_eff)
    n = jnp.minimum(lens, MAX_TOKENS - 2)[:, None]
    toks = jnp.zeros((B, SEQ_PAD), jnp.int32).at[:, 1:R_eff + 1].set(
        raw_tokens[:, :R_eff].astype(jnp.int32))
    pos = jnp.arange(SEQ_PAD, dtype=jnp.int32)[None, :]
    ids = jnp.where(pos == 0, BOS_ID,
          jnp.where(pos <= n, toks,
          jnp.where(pos == n + 1, EOS_ID, PAD_ID)))
    emb = params["tok_emb"].at[swap_id].set(jnp.asarray(outlier).astype(jnp.bfloat16))
    x = emb[ids].astype(jnp.float32) + params["pos_emb"][None]
    for l in range(NUM_LAYERS):
        x = _ref_layer(x, params, l)
    x = _ln(x, params["lnf_g"], params["lnf_b"])
    return x[:, :MAX_TOKENS, :]


# ---------------------------------------------------------------------------
# deterministic parameter init (stand-in for pretrained CLIP weights), already
# in the fused/stacked/head-major layout K2 consumes.
# ---------------------------------------------------------------------------
def init_params(key):
    D, H, Dh, L, F = D_MODEL, NUM_HEADS, HEAD_DIM, NUM_LAYERS, MLP_DIM
    ks = jax.random.split(key, 2 + L)

    def nrm(k, shape, scale=0.02):
        return scale * jax.random.normal(k, shape, jnp.float32)

    qk_scale = 1.0 / (Dh ** 0.5)        # 1/sqrt(Dh) folded into wq/bq once (no in-kernel mul)

    names = ["wq", "bq", "wk", "bk", "wv", "bv", "wo", "bo", "w1", "b1", "w2", "b2"]
    stacks = {n: [] for n in names}
    for l in range(L):
        lk = jax.random.split(ks[2 + l], 12)
        wq = nrm(lk[0], (D, D)) * qk_scale
        bq = nrm(lk[1], (1, D)) * qk_scale
        wk, bk = nrm(lk[2], (D, D)), nrm(lk[3], (1, D))
        wv, bv = nrm(lk[4], (D, D)), nrm(lk[5], (1, D))
        wo, bo = nrm(lk[6], (D, D)), nrm(lk[7], (1, D))
        # head-major layouts: wq/wk/wv -> (H, D, Dh), biases -> (H, 1, Dh), wo -> (H, Dh, D)
        stacks["wq"].append(wq.reshape(D, H, Dh).transpose(1, 0, 2))
        stacks["bq"].append(bq.reshape(1, H, Dh).transpose(1, 0, 2))
        stacks["wk"].append(wk.reshape(D, H, Dh).transpose(1, 0, 2))
        stacks["bk"].append(bk.reshape(1, H, Dh).transpose(1, 0, 2))
        stacks["wv"].append(wv.reshape(D, H, Dh).transpose(1, 0, 2))
        stacks["bv"].append(bv.reshape(1, H, Dh).transpose(1, 0, 2))
        stacks["wo"].append(wo.reshape(H, Dh, D))
        stacks["bo"].append(bo)
        stacks["w1"].append(nrm(lk[8], (D, F)))
        stacks["b1"].append(nrm(lk[9], (1, F)))
        stacks["w2"].append(nrm(lk[10], (F, D)))
        stacks["b2"].append(nrm(lk[11], (1, D)))

    def stk(name, dtype):
        return jnp.stack(stacks[name], axis=0).astype(dtype)

    return {
        # weights stored bf16 (MXU-native, halves VMEM/DMA); biases & LN params stay f32
        "tok_emb": nrm(ks[0], (VOCAB, D)).astype(jnp.bfloat16),
        # TODO(synk): pretrained CLIP has only 77 learned positions; rows 77..127 must be
        # zero-padded when importing real weights (they are causally inert and sliced off).
        "pos_emb": nrm(ks[1], (SEQ_PAD, D)),
        "ln1_g": jnp.ones((L, 1, D), jnp.float32), "ln1_b": jnp.zeros((L, 1, D), jnp.float32),
        "ln2_g": jnp.ones((L, 1, D), jnp.float32), "ln2_b": jnp.zeros((L, 1, D), jnp.float32),
        "lnf_g": jnp.ones((1, D), jnp.float32), "lnf_b": jnp.zeros((1, D), jnp.float32),
        "wq": stk("wq", jnp.bfloat16), "bq": stk("bq", jnp.float32),
        "wk": stk("wk", jnp.bfloat16), "bk": stk("bk", jnp.float32),
        "wv": stk("wv", jnp.bfloat16), "bv": stk("bv", jnp.float32),
        "wo": stk("wo", jnp.bfloat16), "bo": stk("bo", jnp.float32),
        "w1": stk("w1", jnp.bfloat16), "b1": stk("b1", jnp.float32),
        "w2": stk("w2", jnp.bfloat16), "b2": stk("b2", jnp.float32),
    }


if __name__ == "__main__":
    key = jax.random.PRNGKey(0)
    k_tok, k_len, k_par, k_out = jax.random.split(key, 4)

    B, R = 2, 8
    raw_tokens = jax.random.randint(k_tok, (B, R), 3, VOCAB, dtype=jnp.int32)
    lengths = jax.random.randint(k_len, (B,), 3, R + 1, dtype=jnp.int32)
    params = init_params(k_par)

    # torch swaps token_embedding.weight[tokens[0][1]]; tokens[0][1] is the first post-BOS
    # token of the tokenized sequence, i.e. raw_tokens[0, 0] here.
    swap_id = raw_tokens[0, 0]
    outlier = 0.02 * jax.random.normal(k_out, (D_MODEL,), jnp.float32)

    fwd = jax.jit(frozen_clip_embedder_forward)
    z = fwd(raw_tokens, lengths, params, swap_id, outlier)
    z = jax.block_until_ready(z)

    ref = _reference(raw_tokens, lengths, params, swap_id, outlier)

    assert z.shape == (B, MAX_TOKENS, D_MODEL)
    assert z.dtype == jnp.float32
    assert bool(jnp.all(jnp.isfinite(z)))
    # bf16 matmul inputs are matched in the reference; remaining delta = approx EUP
    # reciprocal in softmax/quick-GELU + f32 accumulation order (~1e-3 post-LN).
    assert bool(jnp.allclose(z, ref, atol=2e-2, rtol=2e-2))
    print("KERNEL_OK")
</pallas_src>

<mosaic_0001>
module attributes {stable_mosaic.version = 11 : i64} {
  func.func @_embed_kernel(%arg0: i32, %arg1: i32, %arg2: memref<2xi32, #tpu.memory_space<smem>>, %arg3: memref<1xi32, #tpu.memory_space<smem>>, %arg4: memref<1x128x1xi32, #tpu.memory_space<vmem>>, %arg5: memref<256x128xbf16, #tpu.memory_space<vmem>>, %arg6: memref<128x128xf32, #tpu.memory_space<vmem>>, %arg7: memref<1x128xbf16, #tpu.memory_space<vmem>>, %arg8: memref<1x128x128xf32, #tpu.memory_space<vmem>>) attributes {dimension_semantics = [#tpu.dimension_semantics<parallel>, #tpu.dimension_semantics<arbitrary>], iteration_bounds = array<i64: 2, 2>, scalar_prefetch = 2 : i64, scratch_operands = 0 : i64, tpu.core_type = #tpu.core_type<tc>, window_params = [{transform_indices = @transform_0, window_bounds = array<i64: 1, 128, 1>}, {transform_indices = @transform_1, window_bounds = array<i64: 256, 128>}, {pipeline_mode = #tpu.pipeline_mode<synchronous>, transform_indices = @transform_2, window_bounds = array<i64: 128, 128>}, {pipeline_mode = #tpu.pipeline_mode<synchronous>, transform_indices = @transform_3, window_bounds = array<i64: 1, 128>}, {transform_indices = @transform_4, window_bounds = array<i64: 1, 128, 128>}]} {
    %0 = arith.index_cast %arg0 : i32 to index
    %1 = memref.load %arg2[%0] : memref<2xi32, #tpu.memory_space<smem>>
    %c75_i32 = arith.constant 75 : i32
    %2 = arith.minsi %1, %c75_i32 : i32
    %c0 = arith.constant 0 : index
    %c0_0 = arith.constant 0 : index
    %c0_1 = arith.constant 0 : index
    %3 = vector.load %arg4[%c0, %c0_0, %c0_1] : memref<1x128x1xi32, #tpu.memory_space<vmem>>, vector<1x128x1xi32>
    %4 = vector.shape_cast %3 : vector<1x128x1xi32> to vector<128x1xi32>
    %5 = tpu.iota {dimensions = array<i32: 0>} : vector<128x1xi32>
    %c0_i32 = arith.constant 0 : i32
    %6 = vector.broadcast %c0_i32 : i32 to vector<128x1xi32>
    %7 = arith.cmpi eq, %5, %6 : vector<128x1xi32>
    %8 = vector.broadcast %2 : i32 to vector<128x1xi32>
    %9 = arith.cmpi sle, %5, %8 : vector<128x1xi32>
    %c1_i32 = arith.constant 1 : i32
    %10 = arith.addi %2, %c1_i32 : i32
    %11 = vector.broadcast %10 : i32 to vector<128x1xi32>
    %12 = arith.cmpi eq, %5, %11 : vector<128x1xi32>
    %c2_i32 = arith.constant 2 : i32
    %c2_i32_2 = arith.constant 2 : i32
    %13 = vector.broadcast %c2_i32 : i32 to vector<128x1xi32>
    %14 = vector.broadcast %c2_i32_2 : i32 to vector<128x1xi32>
    %15 = arith.select %12, %13, %14 : vector<128x1xi1>, vector<128x1xi32>
    %16 = arith.select %9, %4, %15 : vector<128x1xi1>, vector<128x1xi32>
    %c1_i32_3 = arith.constant 1 : i32
    %17 = vector.broadcast %c1_i32_3 : i32 to vector<128x1xi32>
    %18 = arith.select %7, %17, %16 : vector<128x1xi1>, vector<128x1xi32>
    %19 = tpu.iota {dimensions = array<i32: 0>} : vector<256x1xi32>
    %c256_i32 = arith.constant 256 : i32
    %20 = arith.muli %arg1, %c256_i32 : i32
    %21 = vector.broadcast %20 : i32 to vector<256x1xi32>
    %22 = arith.addi %19, %21 : vector<256x1xi32>
    %c0_4 = arith.constant 0 : index
    %23 = memref.load %arg3[%c0_4] : memref<1xi32, #tpu.memory_space<smem>>
    %24 = vector.broadcast %23 : i32 to vector<256x1xi32>
    %25 = arith.cmpi eq, %22, %24 : vector<256x1xi32>
    %c0_5 = arith.constant 0 : index
    %c0_6 = arith.constant 0 : index
    %26 = vector.load %arg7[%c0_5, %c0_6] : memref<1x128xbf16, #tpu.memory_space<vmem>>, vector<1x128xbf16>
    %c0_7 = arith.constant 0 : index
    %c0_8 = arith.constant 0 : index
    %27 = vector.load %arg5[%c0_7, %c0_8] : memref<256x128xbf16, #tpu.memory_space<vmem>>, vector<256x128xbf16>
    %28 = vector.shape_cast %25 : vector<256x1xi1> to vector<256x1xi1>
    %29 = vector.broadcast %28 : vector<256x1xi1> to vector<256x128xi1>
    %30 = vector.shape_cast %26 : vector<1x128xbf16> to vector<1x128xbf16>
    %31 = vector.broadcast %30 : vector<1x128xbf16> to vector<256x128xbf16>
    %32 = arith.select %29, %31, %27 : vector<256x128xi1>, vector<256x128xbf16>
    %33 = tpu.iota {dimensions = array<i32: 1>} : vector<128x256xi32>
    %c256_i32_9 = arith.constant 256 : i32
    %34 = arith.muli %arg1, %c256_i32_9 : i32
    %35 = vector.broadcast %34 : i32 to vector<128x256xi32>
    %36 = arith.addi %33, %35 : vector<128x256xi32>
    %37 = vector.broadcast %18 : vector<128x1xi32> to vector<128x256xi32>
    %38 = arith.cmpi eq, %36, %37 : vector<128x256xi32>
    %39 = arith.extui %38 : vector<128x256xi1> to vector<128x256xi32>
    %40 = arith.sitofp %39 : vector<128x256xi32> to vector<128x256xf32>
    %41 = arith.truncf %40 : vector<128x256xf32> to vector<128x256xbf16>
    %cst = arith.constant dense<0.000000e+00> : vector<128x128xf32>
    %42 = tpu.matmul %41, %32, %cst {dimension_numbers = #tpu.dot_dimension_numbers<[1], [0], [0], [1], [0, 0, 1, 1], [], []>} : vector<128x256xbf16>, vector<256x128xbf16>, vector<128x128xf32> -> vector<128x128xf32>
    %c0_i32_10 = arith.constant 0 : i32
    %43 = arith.cmpi eq, %arg1, %c0_i32_10 : i32
    %44 = arith.extui %43 : i1 to i32
    %c0_i32_11 = arith.constant 0 : i32
    %45 = arith.cmpi ne, %44, %c0_i32_11 : i32
    scf.if %45 {
      %c0_18 = arith.constant 0 : index
      %c0_19 = arith.constant 0 : index
      %52 = vector.load %arg6[%c0_18, %c0_19] : memref<128x128xf32, #tpu.memory_space<vmem>>, vector<128x128xf32>
      %c0_20 = arith.constant 0 : index
      %c0_21 = arith.constant 0 : index
      %c0_22 = arith.constant 0 : index
      %53 = vector.load %arg8[%c0_20, %c0_21, %c0_22] : memref<1x128x128xf32, #tpu.memory_space<vmem>>, vector<1x128x128xf32>
      %54 = vector.shape_cast %53 : vector<1x128x128xf32> to vector<128x128xf32>
      %55 = vector.shape_cast %52 : vector<128x128xf32> to vector<1x128x128xf32>
      tpu.vector_store %arg8[%c0_20, %c0_21, %c0_22], %55 {strides = array<i32>} : memref<1x128x128xf32, #tpu.memory_space<vmem>>, vector<1x128x128xf32>,
    } else {
    }
    %c0_12 = arith.constant 0 : index
    %c0_13 = arith.constant 0 : index
    %c0_14 = arith.constant 0 : index
    %46 = vector.load %arg8[%c0_12, %c0_13, %c0_14] : memref<1x128x128xf32, #tpu.memory_space<vmem>>, vector<1x128x128xf32>
    %47 = vector.shape_cast %46 : vector<1x128x128xf32> to vector<128x128xf32>
    %48 = arith.addf %47, %42 : vector<128x128xf32>
    %c0_15 = arith.constant 0 : index
    %c0_16 = arith.constant 0 : index
    %c0_17 = arith.constant 0 : index
    %49 = vector.load %arg8[%c0_15, %c0_16, %c0_17] : memref<1x128x128xf32, #tpu.memory_space<vmem>>, vector<1x128x128xf32>
    %50 = vector.shape_cast %49 : vector<1x128x128xf32> to vector<128x128xf32>
    %51 = vector.shape_cast %48 : vector<128x128xf32> to vector<1x128x128xf32>
    tpu.vector_store %arg8[%c0_15, %c0_16, %c0_17], %51 {strides = array<i32>} : memref<1x128x128xf32, #tpu.memory_space<vmem>>, vector<1x128x128xf32>,
    return
  }
  func.func @transform_0(%arg0: i32, %arg1: i32, %arg2: memref<2xi32, #tpu.memory_space<smem>>, %arg3: memref<1xi32, #tpu.memory_space<smem>>) -> (i32, i32, i32) {
    %c0_i32 = arith.constant 0 : i32
    %c0_i32_0 = arith.constant 0 : i32
    %c0_i32_1 = arith.constant 0 : i32
    return %arg0, %c0_i32, %c0_i32_0 : i32, i32, i32
  }
  func.func @transform_1(%arg0: i32, %arg1: i32, %arg2: memref<2xi32, #tpu.memory_space<smem>>, %arg3: memref<1xi32, #tpu.memory_space<smem>>) -> (i32, i32) {
    %c0_i32 = arith.constant 0 : i32
    %c0_i32_0 = arith.constant 0 : i32
    return %arg1, %c0_i32 : i32, i32
  }
  func.func @transform_2(%arg0: i32, %arg1: i32, %arg2: memref<2xi32, #tpu.memory_space<smem>>, %arg3: memref<1xi32, #tpu.memory_space<smem>>) -> (i32, i32) {
    %c0_i32 = arith.constant 0 : i32
    %c0_i32_0 = arith.constant 0 : i32
    %c0_i32_1 = arith.constant 0 : i32
    return %c0_i32, %c0_i32_0 : i32, i32
  }
  func.func @transform_3(%arg0: i32, %arg1: i32, %arg2: memref<2xi32, #tpu.memory_space<smem>>, %arg3: memref<1xi32, #tpu.memory_space<smem>>) -> (i32, i32) {
    %c0_i32 = arith.constant 0 : i32
    %c0_i32_0 = arith.constant 0 : i32
    %c0_i32_1 = arith.constant 0 : i32
    return %c0_i32, %c0_i32_0 : i32, i32
  }
  func.func @transform_4(%arg0: i32, %arg1: i32, %arg2: memref<2xi32, #tpu.memory_space<smem>>, %arg3: memref<1xi32, #tpu.memory_space<smem>>) -> (i32, i32, i32) {
    %c0_i32 = arith.constant 0 : i32
    %c0_i32_0 = arith.constant 0 : i32
    %c0_i32_1 = arith.constant 0 : i32
    return %arg0, %c0_i32, %c0_i32_0 : i32, i32, i32
  }
}

module attributes {stable_mosaic.version = 11 : i64} {
  func.func @_stack_kernel(%arg0: i32, %arg1: i32, %arg2: memref<1x128x128xf32, #tpu.memory_space<vmem>>, %arg3: memref<1x1x128xf32, #tpu.memory_space<vmem>>, %arg4: memref<1x1x128xf32, #tpu.memory_space<vmem>>, %arg5: memref<1x4x128x32xbf16, #tpu.memory_space<vmem>>, %arg6: memref<1x4x1x32xf32, #tpu.memory_space<vmem>>, %arg7: memref<1x4x128x32xbf16, #tpu.memory_space<vmem>>, %arg8: memref<1x4x1x32xf32, #tpu.memory_space<vmem>>, %arg9: memref<1x4x128x32xbf16, #tpu.memory_space<vmem>>, %arg10: memref<1x4x1x32xf32, #tpu.memory_space<vmem>>, %arg11: memref<1x4x32x128xbf16, #tpu.memory_space<vmem>>, %arg12: memref<1x1x128xf32, #tpu.memory_space<vmem>>, %arg13: memref<1x1x128xf32, #tpu.memory_space<vmem>>, %arg14: memref<1x1x128xf32, #tpu.memory_space<vmem>>, %arg15: memref<1x128x512xbf16, #tpu.memory_space<vmem>>, %arg16: memref<1x1x512xf32, #tpu.memory_space<vmem>>, %arg17: memref<1x512x128xbf16, #tpu.memory_space<vmem>>, %arg18: memref<1x1x128xf32, #tpu.memory_space<vmem>>, %arg19: memref<1x128xf32, #tpu.memory_space<vmem>>, %arg20: memref<1x128xf32, #tpu.memory_space<vmem>>, %arg21: memref<1x128x128xf32, #tpu.memory_space<vmem>>, %arg22: memref<128x128xf32, #tpu.memory_space<vmem>>) attributes {dimension_semantics = [#tpu.dimension_semantics<parallel>, #tpu.dimension_semantics<arbitrary>], iteration_bounds = array<i64: 2, 2>, scalar_prefetch = 0 : i64, scratch_operands = 1 : i64, tpu.core_type = #tpu.core_type<tc>, window_params = [{transform_indices = @transform_0, window_bounds = array<i64: 1, 128, 128>}, {transform_indices = @transform_1, window_bounds = array<i64: 1, 1, 128>}, {transform_indices = @transform_2, window_bounds = array<i64: 1, 1, 128>}, {transform_indices = @transform_3, window_bounds = array<i64: 1, 4, 128, 32>}, {transform_indices = @transform_4, window_bounds = array<i64: 1, 4, 1, 32>}, {transform_indices = @transform_5, window_bounds = array<i64: 1, 4, 128, 32>}, {transform_indices = @transform_6, window_bounds = array<i64: 1, 4, 1, 32>}, {transform_indices = @transform_7, window_bounds = array<i64: 1, 4, 128, 32>}, {transform_indices = @transform_8, window_bounds = array<i64: 1, 4, 1, 32>}, {transform_indices = @transform_9, window_bounds = array<i64: 1, 4, 32, 128>}, {transform_indices = @transform_10, window_bounds = array<i64: 1, 1, 128>}, {transform_indices = @transform_11, window_bounds = array<i64: 1, 1, 128>}, {transform_indices = @transform_12, window_bounds = array<i64: 1, 1, 128>}, {transform_indices = @transform_13, window_bounds = array<i64: 1, 128, 512>}, {transform_indices = @transform_14, window_bounds = array<i64: 1, 1, 512>}, {transform_indices = @transform_15, window_bounds = array<i64: 1, 512, 128>}, {transform_indices = @transform_16, window_bounds = array<i64: 1, 1, 128>}, {pipeline_mode = #tpu.pipeline_mode<synchronous>, transform_indices = @transform_17, window_bounds = array<i64: 1, 128>}, {pipeline_mode = #tpu.pipeline_mode<synchronous>, transform_indices = @transform_18, window_bounds = array<i64: 1, 128>}, {transform_indices = @transform_19, window_bounds = array<i64: 1, 128, 128>}]} {
    %c0_i32 = arith.constant 0 : i32
    %0 = arith.cmpi eq, %arg1, %c0_i32 : i32
    %1 = arith.extui %0 : i1 to i32
    %c0_i32_0 = arith.constant 0 : i32
    %2 = arith.cmpi ne, %1, %c0_i32_0 : i32
    scf.if %2 {
      %c0_224 = arith.constant 0 : index
      %c0_225 = arith.constant 0 : index
      %c0_226 = arith.constant 0 : index
      %320 = vector.load %arg2[%c0_224, %c0_225, %c0_226] : memref<1x128x128xf32, #tpu.memory_space<vmem>>, vector<1x128x128xf32>
      %321 = vector.shape_cast %320 : vector<1x128x128xf32> to vector<128x128xf32>
      %c0_227 = arith.constant 0 : index
      %c0_228 = arith.constant 0 : index
      %322 = vector.load %arg22[%c0_227, %c0_228] : memref<128x128xf32, #tpu.memory_space<vmem>>, vector<128x128xf32>
      tpu.vector_store %arg22[%c0_227, %c0_228], %321 {strides = array<i32>} : memref<128x128xf32, #tpu.memory_space<vmem>>, vector<128x128xf32>,
    } else {
    }
    %c0 = arith.constant 0 : index
    %c0_1 = arith.constant 0 : index
    %3 = vector.load %arg22[%c0, %c0_1] : memref<128x128xf32, #tpu.memory_space<vmem>>, vector<128x128xf32>
    %c0_2 = arith.constant 0 : index
    %c0_3 = arith.constant 0 : index
    %c0_4 = arith.constant 0 : index
    %4 = vector.load %arg3[%c0_2, %c0_3, %c0_4] : memref<1x1x128xf32, #tpu.memory_space<vmem>>, vector<1x1x128xf32>
    %5 = vector.shape_cast %4 : vector<1x1x128xf32> to vector<1x128xf32>
    %c0_5 = arith.constant 0 : index
    %c0_6 = arith.constant 0 : index
    %c0_7 = arith.constant 0 : index
    %6 = vector.load %arg4[%c0_5, %c0_6, %c0_7] : memref<1x1x128xf32, #tpu.memory_space<vmem>>, vector<1x1x128xf32>
    %7 = vector.shape_cast %6 : vector<1x1x128xf32> to vector<1x128xf32>
    %cst = arith.constant dense<0.000000e+00> : vector<128xf32>
    %8 = vector.multi_reduction <add>, %3, %cst [1] : vector<128x128xf32> to vector<128xf32>
    %9 = vector.shape_cast %8 : vector<128xf32> to vector<128x1xf32>
    %cst_8 = arith.constant 1.280000e+02 : f32
    %10 = vector.broadcast %cst_8 : f32 to vector<128x1xf32>
    %11 = arith.divf %9, %10 : vector<128x1xf32>
    %12 = vector.broadcast %11 : vector<128x1xf32> to vector<128x128xf32>
    %13 = arith.subf %3, %12 : vector<128x128xf32>
    %14 = arith.mulf %13, %13 : vector<128x128xf32>
    %cst_9 = arith.constant dense<0.000000e+00> : vector<128xf32>
    %15 = vector.multi_reduction <add>, %14, %cst_9 [1] : vector<128x128xf32> to vector<128xf32>
    %16 = vector.shape_cast %15 : vector<128xf32> to vector<128x1xf32>
    %cst_10 = arith.constant 1.280000e+02 : f32
    %17 = vector.broadcast %cst_10 : f32 to vector<128x1xf32>
    %18 = arith.divf %16, %17 : vector<128x1xf32>
    %cst_11 = arith.constant 9.99999974E-6 : f32
    %19 = vector.broadcast %cst_11 : f32 to vector<128x1xf32>
    %20 = arith.addf %18, %19 : vector<128x1xf32>
    %21 = math.rsqrt %20 : vector<128x1xf32>
    %22 = vector.broadcast %21 : vector<128x1xf32> to vector<128x128xf32>
    %23 = arith.mulf %13, %22 : vector<128x128xf32>
    %24 = vector.broadcast %5 : vector<1x128xf32> to vector<128x128xf32>
    %25 = arith.mulf %23, %24 : vector<128x128xf32>
    %26 = vector.broadcast %7 : vector<1x128xf32> to vector<128x128xf32>
    %27 = arith.addf %25, %26 : vector<128x128xf32>
    %28 = arith.truncf %27 : vector<128x128xf32> to vector<128x128xbf16>
    %29 = tpu.iota {dimensions = array<i32: 0>} : vector<128x128xi32>
    %30 = tpu.iota {dimensions = array<i32: 1>} : vector<128x128xi32>
    %31 = arith.cmpi sle, %30, %29 : vector<128x128xi32>
    %cst_12 = arith.constant 0.000000e+00 : f32
    %cst_13 = arith.constant -1.000000e+30 : f32
    %32 = vector.broadcast %cst_12 : f32 to vector<128x128xf32>
    %33 = vector.broadcast %cst_13 : f32 to vector<128x128xf32>
    %34 = arith.select %31, %32, %33 : vector<128x128xi1>, vector<128x128xf32>
    %c0_14 = arith.constant 0 : index
    %c0_15 = arith.constant 0 : index
    %c0_16 = arith.constant 0 : index
    %c0_17 = arith.constant 0 : index
    %35 = vector.load %arg5[%c0_14, %c0_15, %c0_16, %c0_17] : memref<1x4x128x32xbf16, #tpu.memory_space<vmem>>, vector<1x1x128x32xbf16>
    %36 = vector.shape_cast %35 : vector<1x1x128x32xbf16> to vector<128x32xbf16>
    %cst_18 = arith.constant dense<0.000000e+00> : vector<128x32xf32>
    %37 = tpu.matmul %28, %36, %cst_18 {dimension_numbers = #tpu.dot_dimension_numbers<[1], [0], [0], [1], [0, 0, 1, 1], [], []>} : vector<128x128xbf16>, vector<128x32xbf16>, vector<128x32xf32> -> vector<128x32xf32>
    %c0_19 = arith.constant 0 : index
    %c0_20 = arith.constant 0 : index
    %c0_21 = arith.constant 0 : index
    %c0_22 = arith.constant 0 : index
    %38 = vector.load %arg6[%c0_19, %c0_20, %c0_21, %c0_22] : memref<1x4x1x32xf32, #tpu.memory_space<vmem>>, vector<1x1x1x32xf32>
    %39 = vector.shape_cast %38 : vector<1x1x1x32xf32> to vector<1x32xf32>
    %40 = vector.broadcast %39 : vector<1x32xf32> to vector<128x32xf32>
    %41 = arith.addf %37, %40 : vector<128x32xf32>
    %c0_23 = arith.constant 0 : index
    %c0_24 = arith.constant 0 : index
    %c0_25 = arith.constant 0 : index
    %c0_26 = arith.constant 0 : index
    %42 = vector.load %arg7[%c0_23, %c0_24, %c0_25, %c0_26] : memref<1x4x128x32xbf16, #tpu.memory_space<vmem>>, vector<1x1x128x32xbf16>
    %43 = vector.shape_cast %42 : vector<1x1x128x32xbf16> to vector<128x32xbf16>
    %cst_27 = arith.constant dense<0.000000e+00> : vector<128x32xf32>
    %44 = tpu.matmul %28, %43, %cst_27 {dimension_numbers = #tpu.dot_dimension_numbers<[1], [0], [0], [1], [0, 0, 1, 1], [], []>} : vector<128x128xbf16>, vector<128x32xbf16>, vector<128x32xf32> -> vector<128x32xf32>
    %c0_28 = arith.constant 0 : index
    %c0_29 = arith.constant 0 : index
    %c0_30 = arith.constant 0 : index
    %c0_31 = arith.constant 0 : index
    %45 = vector.load %arg8[%c0_28, %c0_29, %c0_30, %c0_31] : memref<1x4x1x32xf32, #tpu.memory_space<vmem>>, vector<1x1x1x32xf32>
    %46 = vector.shape_cast %45 : vector<1x1x1x32xf32> to vector<1x32xf32>
    %47 = vector.broadcast %46 : vector<1x32xf32> to vector<128x32xf32>
    %48 = arith.addf %44, %47 : vector<128x32xf32>
    %c0_32 = arith.constant 0 : index
    %c0_33 = arith.constant 0 : index
    %c0_34 = arith.constant 0 : index
    %c0_35 = arith.constant 0 : index
    %49 = vector.load %arg9[%c0_32, %c0_33, %c0_34, %c0_35] : memref<1x4x128x32xbf16, #tpu.memory_space<vmem>>, vector<1x1x128x32xbf16>
    %50 = vector.shape_cast %49 : vector<1x1x128x32xbf16> to vector<128x32xbf16>
    %cst_36 = arith.constant dense<0.000000e+00> : vector<128x32xf32>
    %51 = tpu.matmul %28, %50, %cst_36 {dimension_numbers = #tpu.dot_dimension_numbers<[1], [0], [0], [1], [0, 0, 1, 1], [], []>} : vector<128x128xbf16>, vector<128x32xbf16>, vector<128x32xf32> -> vector<128x32xf32>
    %c0_37 = arith.constant 0 : index
    %c0_38 = arith.constant 0 : index
    %c0_39 = arith.constant 0 : index
    %c0_40 = arith.constant 0 : index
    %52 = vector.load %arg10[%c0_37, %c0_38, %c0_39, %c0_40] : memref<1x4x1x32xf32, #tpu.memory_space<vmem>>, vector<1x1x1x32xf32>
    %53 = vector.shape_cast %52 : vector<1x1x1x32xf32> to vector<1x32xf32>
    %54 = vector.broadcast %53 : vector<1x32xf32> to vector<128x32xf32>
    %55 = arith.addf %51, %54 : vector<128x32xf32>
    %56 = arith.truncf %41 : vector<128x32xf32> to vector<128x32xbf16>
    %57 = arith.truncf %48 : vector<128x32xf32> to vector<128x32xbf16>
    %cst_41 = arith.constant dense<0.000000e+00> : vector<128x128xf32>
    %58 = tpu.matmul %56, %57, %cst_41 {dimension_numbers = #tpu.dot_dimension_numbers<[1], [1], [0], [0], [0, 0, 1, 0], [], []>} : vector<128x32xbf16>, vector<128x32xbf16>, vector<128x128xf32> -> vector<128x128xf32>
    %59 = arith.addf %58, %34 : vector<128x128xf32>
    %cst_42 = arith.constant dense<0xFF800000> : vector<128xf32>
    %60 = vector.multi_reduction <maximumf>, %59, %cst_42 [1] : vector<128x128xf32> to vector<128xf32>
    %61 = vector.shape_cast %60 : vector<128xf32> to vector<128x1xf32>
    %62 = vector.broadcast %61 : vector<128x1xf32> to vector<128x128xf32>
    %63 = arith.subf %59, %62 : vector<128x128xf32>
    %64 = math.exp %63 : vector<128x128xf32>
    %cst_43 = arith.constant dense<0.000000e+00> : vector<128xf32>
    %65 = vector.multi_reduction <add>, %64, %cst_43 [1] : vector<128x128xf32> to vector<128xf32>
    %66 = vector.shape_cast %65 : vector<128xf32> to vector<128x1xf32>
    %67 = tpu.reciprocal %66 {approx = true} : vector<128x1xf32> -> vector<128x1xf32>
    %68 = vector.broadcast %67 : vector<128x1xf32> to vector<128x128xf32>
    %69 = arith.mulf %64, %68 : vector<128x128xf32>
    %70 = arith.truncf %69 : vector<128x128xf32> to vector<128x128xbf16>
    %71 = arith.truncf %55 : vector<128x32xf32> to vector<128x32xbf16>
    %cst_44 = arith.constant dense<0.000000e+00> : vector<128x32xf32>
    %72 = tpu.matmul %70, %71, %cst_44 {dimension_numbers = #tpu.dot_dimension_numbers<[1], [0], [0], [1], [0, 0, 1, 1], [], []>} : vector<128x128xbf16>, vector<128x32xbf16>, vector<128x32xf32> -> vector<128x32xf32>
    %73 = arith.truncf %72 : vector<128x32xf32> to vector<128x32xbf16>
    %c0_45 = arith.constant 0 : index
    %c0_46 = arith.constant 0 : index
    %c0_47 = arith.constant 0 : index
    %c0_48 = arith.constant 0 : index
    %74 = vector.load %arg11[%c0_45, %c0_46, %c0_47, %c0_48] : memref<1x4x32x128xbf16, #tpu.memory_space<vmem>>, vector<1x1x32x128xbf16>
    %75 = vector.shape_cast %74 : vector<1x1x32x128xbf16> to vector<32x128xbf16>
    %cst_49 = arith.constant dense<0.000000e+00> : vector<128x128xf32>
    %76 = tpu.matmul %73, %75, %cst_49 {dimension_numbers = #tpu.dot_dimension_numbers<[1], [0], [0], [1], [0, 0, 1, 1], [], []>} : vector<128x32xbf16>, vector<32x128xbf16>, vector<128x128xf32> -> vector<128x128xf32>
    %77 = arith.addf %3, %76 : vector<128x128xf32>
    %c0_50 = arith.constant 0 : index
    %c1 = arith.constant 1 : index
    %c0_51 = arith.constant 0 : index
    %c0_52 = arith.constant 0 : index
    %78 = vector.load %arg5[%c0_50, %c1, %c0_51, %c0_52] : memref<1x4x128x32xbf16, #tpu.memory_space<vmem>>, vector<1x1x128x32xbf16>
    %79 = vector.shape_cast %78 : vector<1x1x128x32xbf16> to vector<128x32xbf16>
    %cst_53 = arith.constant dense<0.000000e+00> : vector<128x32xf32>
    %80 = tpu.matmul %28, %79, %cst_53 {dimension_numbers = #tpu.dot_dimension_numbers<[1], [0], [0], [1], [0, 0, 1, 1], [], []>} : vector<128x128xbf16>, vector<128x32xbf16>, vector<128x32xf32> -> vector<128x32xf32>
    %c0_54 = arith.constant 0 : index
    %c1_55 = arith.constant 1 : index
    %c0_56 = arith.constant 0 : index
    %c0_57 = arith.constant 0 : index
    %81 = vector.load %arg6[%c0_54, %c1_55, %c0_56, %c0_57] : memref<1x4x1x32xf32, #tpu.memory_space<vmem>>, vector<1x1x1x32xf32>
    %82 = vector.shape_cast %81 : vector<1x1x1x32xf32> to vector<1x32xf32>
    %83 = vector.broadcast %82 : vector<1x32xf32> to vector<128x32xf32>
    %84 = arith.addf %80, %83 : vector<128x32xf32>
    %c0_58 = arith.constant 0 : index
    %c1_59 = arith.constant 1 : index
    %c0_60 = arith.constant 0 : index
    %c0_61 = arith.constant 0 : index
    %85 = vector.load %arg7[%c0_58, %c1_59, %c0_60, %c0_61] : memref<1x4x128x32xbf16, #tpu.memory_space<vmem>>, vector<1x1x128x32xbf16>
    %86 = vector.shape_cast %85 : vector<1x1x128x32xbf16> to vector<128x32xbf16>
    %cst_62 = arith.constant dense<0.000000e+00> : vector<128x32xf32>
    %87 = tpu.matmul %28, %86, %cst_62 {dimension_numbers = #tpu.dot_dimension_numbers<[1], [0], [0], [1], [0, 0, 1, 1], [], []>} : vector<128x128xbf16>, vector<128x32xbf16>, vector<128x32xf32> -> vector<128x32xf32>
    %c0_63 = arith.constant 0 : index
    %c1_64 = arith.constant 1 : index
    %c0_65 = arith.constant 0 : index
    %c0_66 = arith.constant 0 : index
    %88 = vector.load %arg8[%c0_63, %c1_64, %c0_65, %c0_66] : memref<1x4x1x32xf32, #tpu.memory_space<vmem>>, vector<1x1x1x32xf32>
    %89 = vector.shape_cast %88 : vector<1x1x1x32xf32> to vector<1x32xf32>
    %90 = vector.broadcast %89 : vector<1x32xf32> to vector<128x32xf32>
    %91 = arith.addf %87, %90 : vector<128x32xf32>
    %c0_67 = arith.constant 0 : index
    %c1_68 = arith.constant 1 : index
    %c0_69 = arith.constant 0 : index
    %c0_70 = arith.constant 0 : index
    %92 = vector.load %arg9[%c0_67, %c1_68, %c0_69, %c0_70] : memref<1x4x128x32xbf16, #tpu.memory_space<vmem>>, vector<1x1x128x32xbf16>
    %93 = vector.shape_cast %92 : vector<1x1x128x32xbf16> to vector<128x32xbf16>
    %cst_71 = arith.constant dense<0.000000e+00> : vector<128x32xf32>
    %94 = tpu.matmul %28, %93, %cst_71 {dimension_numbers = #tpu.dot_dimension_numbers<[1], [0], [0], [1], [0, 0, 1, 1], [], []>} : vector<128x128xbf16>, vector<128x32xbf16>, vector<128x32xf32> -> vector<128x32xf32>
    %c0_72 = arith.constant 0 : index
    %c1_73 = arith.constant 1 : index
    %c0_74 = arith.constant 0 : index
    %c0_75 = arith.constant 0 : index
    %95 = vector.load %arg10[%c0_72, %c1_73, %c0_74, %c0_75] : memref<1x4x1x32xf32, #tpu.memory_space<vmem>>, vector<1x1x1x32xf32>
    %96 = vector.shape_cast %95 : vector<1x1x1x32xf32> to vector<1x32xf32>
    %97 = vector.broadcast %96 : vector<1x32xf32> to vector<128x32xf32>
    %98 = arith.addf %94, %97 : vector<128x32xf32>
    %99 = arith.truncf %84 : vector<128x32xf32> to vector<128x32xbf16>
    %100 = arith.truncf %91 : vector<128x32xf32> to vector<128x32xbf16>
    %cst_76 = arith.constant dense<0.000000e+00> : vector<128x128xf32>
    %101 = tpu.matmul %99, %100, %cst_76 {dimension_numbers = #tpu.dot_dimension_numbers<[1], [1], [0], [0], [0, 0, 1, 0], [], []>} : vector<128x32xbf16>, vector<128x32xbf16>, vector<128x128xf32> -> vector<128x128xf32>
    %102 = arith.addf %101, %34 : vector<128x128xf32>
    %cst_77 = arith.constant dense<0xFF800000> : vector<128xf32>
    %103 = vector.multi_reduction <maximumf>, %102, %cst_77 [1] : vector<128x128xf32> to vector<128xf32>
    %104 = vector.shape_cast %103 : vector<128xf32> to vector<128x1xf32>
    %105 = vector.broadcast %104 : vector<128x1xf32> to vector<128x128xf32>
    %106 = arith.subf %102, %105 : vector<128x128xf32>
    %107 = math.exp %106 : vector<128x128xf32>
    %cst_78 = arith.constant dense<0.000000e+00> : vector<128xf32>
    %108 = vector.multi_reduction <add>, %107, %cst_78 [1] : vector<128x128xf32> to vector<128xf32>
    %109 = vector.shape_cast %108 : vector<128xf32> to vector<128x1xf32>
    %110 = tpu.reciprocal %109 {approx = true} : vector<128x1xf32> -> vector<128x1xf32>
    %111 = vector.broadcast %110 : vector<128x1xf32> to vector<128x128xf32>
    %112 = arith.mulf %107, %111 : vector<128x128xf32>
    %113 = arith.truncf %112 : vector<128x128xf32> to vector<128x128xbf16>
    %114 = arith.truncf %98 : vector<128x32xf32> to vector<128x32xbf16>
    %cst_79 = arith.constant dense<0.000000e+00> : vector<128x32xf32>
    %115 = tpu.matmul %113, %114, %cst_79 {dimension_numbers = #tpu.dot_dimension_numbers<[1], [0], [0], [1], [0, 0, 1, 1], [], []>} : vector<128x128xbf16>, vector<128x32xbf16>, vector<128x32xf32> -> vector<128x32xf32>
    %116 = arith.truncf %115 : vector<128x32xf32> to vector<128x32xbf16>
    %c0_80 = arith.constant 0 : index
    %c1_81 = arith.constant 1 : index
    %c0_82 = arith.constant 0 : index
    %c0_83 = arith.constant 0 : index
    %117 = vector.load %arg11[%c0_80, %c1_81, %c0_82, %c0_83] : memref<1x4x32x128xbf16, #tpu.memory_space<vmem>>, vector<1x1x32x128xbf16>
    %118 = vector.shape_cast %117 : vector<1x1x32x128xbf16> to vector<32x128xbf16>
    %cst_84 = arith.constant dense<0.000000e+00> : vector<128x128xf32>
    %119 = tpu.matmul %116, %118, %cst_84 {dimension_numbers = #tpu.dot_dimension_numbers<[1], [0], [0], [1], [0, 0, 1, 1], [], []>} : vector<128x32xbf16>, vector<32x128xbf16>, vector<128x128xf32> -> vector<128x128xf32>
    %120 = arith.addf %77, %119 : vector<128x128xf32>
    %c0_85 = arith.constant 0 : index
    %c2 = arith.constant 2 : index
    %c0_86 = arith.constant 0 : index
    %c0_87 = arith.constant 0 : index
    %121 = vector.load %arg5[%c0_85, %c2, %c0_86, %c0_87] : memref<1x4x128x32xbf16, #tpu.memory_space<vmem>>, vector<1x1x128x32xbf16>
    %122 = vector.shape_cast %121 : vector<1x1x128x32xbf16> to vector<128x32xbf16>
    %cst_88 = arith.constant dense<0.000000e+00> : vector<128x32xf32>
    %123 = tpu.matmul %28, %122, %cst_88 {dimension_numbers = #tpu.dot_dimension_numbers<[1], [0], [0], [1], [0, 0, 1, 1], [], []>} : vector<128x128xbf16>, vector<128x32xbf16>, vector<128x32xf32> -> vector<128x32xf32>
    %c0_89 = arith.constant 0 : index
    %c2_90 = arith.constant 2 : index
    %c0_91 = arith.constant 0 : index
    %c0_92 = arith.constant 0 : index
    %124 = vector.load %arg6[%c0_89, %c2_90, %c0_91, %c0_92] : memref<1x4x1x32xf32, #tpu.memory_space<vmem>>, vector<1x1x1x32xf32>
    %125 = vector.shape_cast %124 : vector<1x1x1x32xf32> to vector<1x32xf32>
    %126 = vector.broadcast %125 : vector<1x32xf32> to vector<128x32xf32>
    %127 = arith.addf %123, %126 : vector<128x32xf32>
    %c0_93 = arith.constant 0 : index
    %c2_94 = arith.constant 2 : index
    %c0_95 = arith.constant 0 : index
    %c0_96 = arith.constant 0 : index
    %128 = vector.load %arg7[%c0_93, %c2_94, %c0_95, %c0_96] : memref<1x4x128x32xbf16, #tpu.memory_space<vmem>>, vector<1x1x128x32xbf16>
    %129 = vector.shape_cast %128 : vector<1x1x128x32xbf16> to vector<128x32xbf16>
    %cst_97 = arith.constant dense<0.000000e+00> : vector<128x32xf32>
    %130 = tpu.matmul %28, %129, %cst_97 {dimension_numbers = #tpu.dot_dimension_numbers<[1], [0], [0], [1], [0, 0, 1, 1], [], []>} : vector<128x128xbf16>, vector<128x32xbf16>, vector<128x32xf32> -> vector<128x32xf32>
    %c0_98 = arith.constant 0 : index
    %c2_99 = arith.constant 2 : index
    %c0_100 = arith.constant 0 : index
    %c0_101 = arith.constant 0 : index
    %131 = vector.load %arg8[%c0_98, %c2_99, %c0_100, %c0_101] : memref<1x4x1x32xf32, #tpu.memory_space<vmem>>, vector<1x1x1x32xf32>
    %132 = vector.shape_cast %131 : vector<1x1x1x32xf32> to vector<1x32xf32>
    %133 = vector.broadcast %132 : vector<1x32xf32> to vector<128x32xf32>
    %134 = arith.addf %130, %133 : vector<128x32xf32>
    %c0_102 = arith.constant 0 : index
    %c2_103 = arith.constant 2 : index
    %c0_104 = arith.constant 0 : index
    %c0_105 = arith.constant 0 : index
    %135 = vector.load %arg9[%c0_102, %c2_103, %c0_104, %c0_105] : memref<1x4x128x32xbf16, #tpu.memory_space<vmem>>, vector<1x1x128x32xbf16>
    %136 = vector.shape_cast %135 : vector<1x1x128x32xbf16> to vector<128x32xbf16>
    %cst_106 = arith.constant dense<0.000000e+00> : vector<128x32xf32>
    %137 = tpu.matmul %28, %136, %cst_106 {dimension_numbers = #tpu.dot_dimension_numbers<[1], [0], [0], [1], [0, 0, 1, 1], [], []>} : vector<128x128xbf16>, vector<128x32xbf16>, vector<128x32xf32> -> vector<128x32xf32>
    %c0_107 = arith.constant 0 : index
    %c2_108 = arith.constant 2 : index
    %c0_109 = arith.constant 0 : index
    %c0_110 = arith.constant 0 : index
    %138 = vector.load %arg10[%c0_107, %c2_108, %c0_109, %c0_110] : memref<1x4x1x32xf32, #tpu.memory_space<vmem>>, vector<1x1x1x32xf32>
    %139 = vector.shape_cast %138 : vector<1x1x1x32xf32> to vector<1x32xf32>
    %140 = vector.broadcast %139 : vector<1x32xf32> to vector<128x32xf32>
    %141 = arith.addf %137, %140 : vector<128x32xf32>
    %142 = arith.truncf %127 : vector<128x32xf32> to vector<128x32xbf16>
    %143 = arith.truncf %134 : vector<128x32xf32> to vector<128x32xbf16>
    %cst_111 = arith.constant dense<0.000000e+00> : vector<128x128xf32>
    %144 = tpu.matmul %142, %143, %cst_111 {dimension_numbers = #tpu.dot_dimension_numbers<[1], [1], [0], [0], [0, 0, 1, 0], [], []>} : vector<128x32xbf16>, vector<128x32xbf16>, vector<128x128xf32> -> vector<128x128xf32>
    %145 = arith.addf %144, %34 : vector<128x128xf32>
    %cst_112 = arith.constant dense<0xFF800000> : vector<128xf32>
    %146 = vector.multi_reduction <maximumf>, %145, %cst_112 [1] : vector<128x128xf32> to vector<128xf32>
    %147 = vector.shape_cast %146 : vector<128xf32> to vector<128x1xf32>
    %148 = vector.broadcast %147 : vector<128x1xf32> to vector<128x128xf32>
    %149 = arith.subf %145, %148 : vector<128x128xf32>
    %150 = math.exp %149 : vector<128x128xf32>
    %cst_113 = arith.constant dense<0.000000e+00> : vector<128xf32>
    %151 = vector.multi_reduction <add>, %150, %cst_113 [1] : vector<128x128xf32> to vector<128xf32>
    %152 = vector.shape_cast %151 : vector<128xf32> to vector<128x1xf32>
    %153 = tpu.reciprocal %152 {approx = true} : vector<128x1xf32> -> vector<128x1xf32>
    %154 = vector.broadcast %153 : vector<128x1xf32> to vector<128x128xf32>
    %155 = arith.mulf %150, %154 : vector<128x128xf32>
    %156 = arith.truncf %155 : vector<128x128xf32> to vector<128x128xbf16>
    %157 = arith.truncf %141 : vector<128x32xf32> to vector<128x32xbf16>
    %cst_114 = arith.constant dense<0.000000e+00> : vector<128x32xf32>
    %158 = tpu.matmul %156, %157, %cst_114 {dimension_numbers = #tpu.dot_dimension_numbers<[1], [0], [0], [1], [0, 0, 1, 1], [], []>} : vector<128x128xbf16>, vector<128x32xbf16>, vector<128x32xf32> -> vector<128x32xf32>
    %159 = arith.truncf %158 : vector<128x32xf32> to vector<128x32xbf16>
    %c0_115 = arith.constant 0 : index
    %c2_116 = arith.constant 2 : index
    %c0_117 = arith.constant 0 : index
    %c0_118 = arith.constant 0 : index
    %160 = vector.load %arg11[%c0_115, %c2_116, %c0_117, %c0_118] : memref<1x4x32x128xbf16, #tpu.memory_space<vmem>>, vector<1x1x32x128xbf16>
    %161 = vector.shape_cast %160 : vector<1x1x32x128xbf16> to vector<32x128xbf16>
    %cst_119 = arith.constant dense<0.000000e+00> : vector<128x128xf32>
    %162 = tpu.matmul %159, %161, %cst_119 {dimension_numbers = #tpu.dot_dimension_numbers<[1], [0], [0], [1], [0, 0, 1, 1], [], []>} : vector<128x32xbf16>, vector<32x128xbf16>, vector<128x128xf32> -> vector<128x128xf32>
    %163 = arith.addf %120, %162 : vector<128x128xf32>
    %c0_120 = arith.constant 0 : index
    %c3 = arith.constant 3 : index
    %c0_121 = arith.constant 0 : index
    %c0_122 = arith.constant 0 : index
    %164 = vector.load %arg5[%c0_120, %c3, %c0_121, %c0_122] : memref<1x4x128x32xbf16, #tpu.memory_space<vmem>>, vector<1x1x128x32xbf16>
    %165 = vector.shape_cast %164 : vector<1x1x128x32xbf16> to vector<128x32xbf16>
    %cst_123 = arith.constant dense<0.000000e+00> : vector<128x32xf32>
    %166 = tpu.matmul %28, %165, %cst_123 {dimension_numbers = #tpu.dot_dimension_numbers<[1], [0], [0], [1], [0, 0, 1, 1], [], []>} : vector<128x128xbf16>, vector<128x32xbf16>, vector<128x32xf32> -> vector<128x32xf32>
    %c0_124 = arith.constant 0 : index
    %c3_125 = arith.constant 3 : index
    %c0_126 = arith.constant 0 : index
    %c0_127 = arith.constant 0 : index
    %167 = vector.load %arg6[%c0_124, %c3_125, %c0_126, %c0_127] : memref<1x4x1x32xf32, #tpu.memory_space<vmem>>, vector<1x1x1x32xf32>
    %168 = vector.shape_cast %167 : vector<1x1x1x32xf32> to vector<1x32xf32>
    %169 = vector.broadcast %168 : vector<1x32xf32> to vector<128x32xf32>
    %170 = arith.addf %166, %169 : vector<128x32xf32>
    %c0_128 = arith.constant 0 : index
    %c3_129 = arith.constant 3 : index
    %c0_130 = arith.constant 0 : index
    %c0_131 = arith.constant 0 : index
    %171 = vector.load %arg7[%c0_128, %c3_129, %c0_130, %c0_131] : memref<1x4x128x32xbf16, #tpu.memory_space<vmem>>, vector<1x1x128x32xbf16>
    %172 = vector.shape_cast %171 : vector<1x1x128x32xbf16> to vector<128x32xbf16>
    %cst_132 = arith.constant dense<0.000000e+00> : vector<128x32xf32>
    %173 = tpu.matmul %28, %172, %cst_132 {dimension_numbers = #tpu.dot_dimension_numbers<[1], [0], [0], [1], [0, 0, 1, 1], [], []>} : vector<128x128xbf16>, vector<128x32xbf16>, vector<128x32xf32> -> vector<128x32xf32>
    %c0_133 = arith.constant 0 : index
    %c3_134 = arith.constant 3 : index
    %c0_135 = arith.constant 0 : index
    %c0_136 = arith.constant 0 : index
    %174 = vector.load %arg8[%c0_133, %c3_134, %c0_135, %c0_136] : memref<1x4x1x32xf32, #tpu.memory_space<vmem>>, vector<1x1x1x32xf32>
    %175 = vector.shape_cast %174 : vector<1x1x1x32xf32> to vector<1x32xf32>
    %176 = vector.broadcast %175 : vector<1x32xf32> to vector<128x32xf32>
    %177 = arith.addf %173, %176 : vector<128x32xf32>
    %c0_137 = arith.constant 0 : index
    %c3_138 = arith.constant 3 : index
    %c0_139 = arith.constant 0 : index
    %c0_140 = arith.constant 0 : index
    %178 = vector.load %arg9[%c0_137, %c3_138, %c0_139, %c0_140] : memref<1x4x128x32xbf16, #tpu.memory_space<vmem>>, vector<1x1x128x32xbf16>
    %179 = vector.shape_cast %178 : vector<1x1x128x32xbf16> to vector<128x32xbf16>
    %cst_141 = arith.constant dense<0.000000e+00> : vector<128x32xf32>
    %180 = tpu.matmul %28, %179, %cst_141 {dimension_numbers = #tpu.dot_dimension_numbers<[1], [0], [0], [1], [0, 0, 1, 1], [], []>} : vector<128x128xbf16>, vector<128x32xbf16>, vector<128x32xf32> -> vector<128x32xf32>
    %c0_142 = arith.constant 0 : index
    %c3_143 = arith.constant 3 : index
    %c0_144 = arith.constant 0 : index
    %c0_145 = arith.constant 0 : index
    %181 = vector.load %arg10[%c0_142, %c3_143, %c0_144, %c0_145] : memref<1x4x1x32xf32, #tpu.memory_space<vmem>>, vector<1x1x1x32xf32>
    %182 = vector.shape_cast %181 : vector<1x1x1x32xf32> to vector<1x32xf32>
    %183 = vector.broadcast %182 : vector<1x32xf32> to vector<128x32xf32>
    %184 = arith.addf %180, %183 : vector<128x32xf32>
    %185 = arith.truncf %170 : vector<128x32xf32> to vector<128x32xbf16>
    %186 = arith.truncf %177 : vector<128x32xf32> to vector<128x32xbf16>
    %cst_146 = arith.constant dense<0.000000e+00> : vector<128x128xf32>
    %187 = tpu.matmul %185, %186, %cst_146 {dimension_numbers = #tpu.dot_dimension_numbers<[1], [1], [0], [0], [0, 0, 1, 0], [], []>} : vector<128x32xbf16>, vector<128x32xbf16>, vector<128x128xf32> -> vector<128x128xf32>
    %188 = arith.addf %187, %34 : vector<128x128xf32>
    %cst_147 = arith.constant dense<0xFF800000> : vector<128xf32>
    %189 = vector.multi_reduction <maximumf>, %188, %cst_147 [1] : vector<128x128xf32> to vector<128xf32>
    %190 = vector.shape_cast %189 : vector<128xf32> to vector<128x1xf32>
    %191 = vector.broadcast %190 : vector<128x1xf32> to vector<128x128xf32>
    %192 = arith.subf %188, %191 : vector<128x128xf32>
    %193 = math.exp %192 : vector<128x128xf32>
    %cst_148 = arith.constant dense<0.000000e+00> : vector<128xf32>
    %194 = vector.multi_reduction <add>, %193, %cst_148 [1] : vector<128x128xf32> to vector<128xf32>
    %195 = vector.shape_cast %194 : vector<128xf32> to vector<128x1xf32>
    %196 = tpu.reciprocal %195 {approx = true} : vector<128x1xf32> -> vector<128x1xf32>
    %197 = vector.broadcast %196 : vector<128x1xf32> to vector<128x128xf32>
    %198 = arith.mulf %193, %197 : vector<128x128xf32>
    %199 = arith.truncf %198 : vector<128x128xf32> to vector<128x128xbf16>
    %200 = arith.truncf %184 : vector<128x32xf32> to vector<128x32xbf16>
    %cst_149 = arith.constant dense<0.000000e+00> : vector<128x32xf32>
    %201 = tpu.matmul %199, %200, %cst_149 {dimension_numbers = #tpu.dot_dimension_numbers<[1], [0], [0], [1], [0, 0, 1, 1], [], []>} : vector<128x128xbf16>, vector<128x32xbf16>, vector<128x32xf32> -> vector<128x32xf32>
    %202 = arith.truncf %201 : vector<128x32xf32> to vector<128x32xbf16>
    %c0_150 = arith.constant 0 : index
    %c3_151 = arith.constant 3 : index
    %c0_152 = arith.constant 0 : index
    %c0_153 = arith.constant 0 : index
    %203 = vector.load %arg11[%c0_150, %c3_151, %c0_152, %c0_153] : memref<1x4x32x128xbf16, #tpu.memory_space<vmem>>, vector<1x1x32x128xbf16>
    %204 = vector.shape_cast %203 : vector<1x1x32x128xbf16> to vector<32x128xbf16>
    %cst_154 = arith.constant dense<0.000000e+00> : vector<128x128xf32>
    %205 = tpu.matmul %202, %204, %cst_154 {dimension_numbers = #tpu.dot_dimension_numbers<[1], [0], [0], [1], [0, 0, 1, 1], [], []>} : vector<128x32xbf16>, vector<32x128xbf16>, vector<128x128xf32> -> vector<128x128xf32>
    %206 = arith.addf %163, %205 : vector<128x128xf32>
    %c0_155 = arith.constant 0 : index
    %c0_156 = arith.constant 0 : index
    %c0_157 = arith.constant 0 : index
    %207 = vector.load %arg12[%c0_155, %c0_156, %c0_157] : memref<1x1x128xf32, #tpu.memory_space<vmem>>, vector<1x1x128xf32>
    %208 = vector.shape_cast %207 : vector<1x1x128xf32> to vector<1x128xf32>
    %209 = vector.broadcast %208 : vector<1x128xf32> to vector<128x128xf32>
    %210 = arith.addf %206, %209 : vector<128x128xf32>
    %c0_158 = arith.constant 0 : index
    %c0_159 = arith.constant 0 : index
    %c0_160 = arith.constant 0 : index
    %211 = vector.load %arg13[%c0_158, %c0_159, %c0_160] : memref<1x1x128xf32, #tpu.memory_space<vmem>>, vector<1x1x128xf32>
    %212 = vector.shape_cast %211 : vector<1x1x128xf32> to vector<1x128xf32>
    %c0_161 = arith.constant 0 : index
    %c0_162 = arith.constant 0 : index
    %c0_163 = arith.constant 0 : index
    %213 = vector.load %arg14[%c0_161, %c0_162, %c0_163] : memref<1x1x128xf32, #tpu.memory_space<vmem>>, vector<1x1x128xf32>
    %214 = vector.shape_cast %213 : vector<1x1x128xf32> to vector<1x128xf32>
    %cst_164 = arith.constant dense<0.000000e+00> : vector<128xf32>
    %215 = vector.multi_reduction <add>, %210, %cst_164 [1] : vector<128x128xf32> to vector<128xf32>
    %216 = vector.shape_cast %215 : vector<128xf32> to vector<128x1xf32>
    %cst_165 = arith.constant 1.280000e+02 : f32
    %217 = vector.broadcast %cst_165 : f32 to vector<128x1xf32>
    %218 = arith.divf %216, %217 : vector<128x1xf32>
    %219 = vector.broadcast %218 : vector<128x1xf32> to vector<128x128xf32>
    %220 = arith.subf %210, %219 : vector<128x128xf32>
    %221 = arith.mulf %220, %220 : vector<128x128xf32>
    %cst_166 = arith.constant dense<0.000000e+00> : vector<128xf32>
    %222 = vector.multi_reduction <add>, %221, %cst_166 [1] : vector<128x128xf32> to vector<128xf32>
    %223 = vector.shape_cast %222 : vector<128xf32> to vector<128x1xf32>
    %cst_167 = arith.constant 1.280000e+02 : f32
    %224 = vector.broadcast %cst_167 : f32 to vector<128x1xf32>
    %225 = arith.divf %223, %224 : vector<128x1xf32>
    %cst_168 = arith.constant 9.99999974E-6 : f32
    %226 = vector.broadcast %cst_168 : f32 to vector<128x1xf32>
    %227 = arith.addf %225, %226 : vector<128x1xf32>
    %228 = math.rsqrt %227 : vector<128x1xf32>
    %229 = vector.broadcast %228 : vector<128x1xf32> to vector<128x128xf32>
    %230 = arith.mulf %220, %229 : vector<128x128xf32>
    %231 = vector.broadcast %212 : vector<1x128xf32> to vector<128x128xf32>
    %232 = arith.mulf %230, %231 : vector<128x128xf32>
    %233 = vector.broadcast %214 : vector<1x128xf32> to vector<128x128xf32>
    %234 = arith.addf %232, %233 : vector<128x128xf32>
    %235 = arith.truncf %234 : vector<128x128xf32> to vector<128x128xbf16>
    %c0_169 = arith.constant 0 : index
    %c0_170 = arith.constant 0 : index
    %c0_171 = arith.constant 0 : index
    %236 = vector.load %arg18[%c0_169, %c0_170, %c0_171] : memref<1x1x128xf32, #tpu.memory_space<vmem>>, vector<1x1x128xf32>
    %237 = vector.shape_cast %236 : vector<1x1x128xf32> to vector<1x128xf32>
    %238 = vector.broadcast %237 : vector<1x128xf32> to vector<128x128xf32>
    %239 = arith.addf %210, %238 : vector<128x128xf32>
    %c0_172 = arith.constant 0 : index
    %c0_173 = arith.constant 0 : index
    %c0_174 = arith.constant 0 : index
    %240 = vector.load %arg15[%c0_172, %c0_173, %c0_174] : memref<1x128x512xbf16, #tpu.memory_space<vmem>>, vector<1x128x128xbf16>
    %241 = vector.shape_cast %240 : vector<1x128x128xbf16> to vector<128x128xbf16>
    %cst_175 = arith.constant dense<0.000000e+00> : vector<128x128xf32>
    %242 = tpu.matmul %235, %241, %cst_175 {dimension_numbers = #tpu.dot_dimension_numbers<[1], [0], [0], [1], [0, 0, 1, 1], [], []>} : vector<128x128xbf16>, vector<128x128xbf16>, vector<128x128xf32> -> vector<128x128xf32>
    %c0_176 = arith.constant 0 : index
    %c0_177 = arith.constant 0 : index
    %c0_178 = arith.constant 0 : index
    %243 = vector.load %arg16[%c0_176, %c0_177, %c0_178] : memref<1x1x512xf32, #tpu.memory_space<vmem>>, vector<1x1x128xf32>
    %244 = vector.shape_cast %243 : vector<1x1x128xf32> to vector<1x128xf32>
    %245 = vector.broadcast %244 : vector<1x128xf32> to vector<128x128xf32>
    %246 = arith.addf %242, %245 : vector<128x128xf32>
    %cst_179 = arith.constant -1.702000e+00 : f32
    %247 = vector.broadcast %cst_179 : f32 to vector<128x128xf32>
    %248 = arith.mulf %247, %246 : vector<128x128xf32>
    %249 = math.exp %248 : vector<128x128xf32>
    %cst_180 = arith.constant 1.000000e+00 : f32
    %250 = vector.broadcast %cst_180 : f32 to vector<128x128xf32>
    %251 = arith.addf %250, %249 : vector<128x128xf32>
    %252 = tpu.reciprocal %251 {approx = true} : vector<128x128xf32> -> vector<128x128xf32>
    %253 = arith.mulf %246, %252 : vector<128x128xf32>
    %254 = arith.truncf %253 : vector<128x128xf32> to vector<128x128xbf16>
    %c0_181 = arith.constant 0 : index
    %c0_182 = arith.constant 0 : index
    %c0_183 = arith.constant 0 : index
    %255 = vector.load %arg17[%c0_181, %c0_182, %c0_183] : memref<1x512x128xbf16, #tpu.memory_space<vmem>>, vector<1x128x128xbf16>
    %256 = vector.shape_cast %255 : vector<1x128x128xbf16> to vector<128x128xbf16>
    %cst_184 = arith.constant dense<0.000000e+00> : vector<128x128xf32>
    %257 = tpu.matmul %254, %256, %cst_184 {dimension_numbers = #tpu.dot_dimension_numbers<[1], [0], [0], [1], [0, 0, 1, 1], [], []>} : vector<128x128xbf16>, vector<128x128xbf16>, vector<128x128xf32> -> vector<128x128xf32>
    %258 = arith.addf %239, %257 : vector<128x128xf32>
    %c0_185 = arith.constant 0 : index
    %c0_186 = arith.constant 0 : index
    %c128 = arith.constant 128 : index
    %259 = vector.load %arg15[%c0_185, %c0_186, %c128] : memref<1x128x512xbf16, #tpu.memory_space<vmem>>, vector<1x128x128xbf16>
    %260 = vector.shape_cast %259 : vector<1x128x128xbf16> to vector<128x128xbf16>
    %cst_187 = arith.constant dense<0.000000e+00> : vector<128x128xf32>
    %261 = tpu.matmul %235, %260, %cst_187 {dimension_numbers = #tpu.dot_dimension_numbers<[1], [0], [0], [1], [0, 0, 1, 1], [], []>} : vector<128x128xbf16>, vector<128x128xbf16>, vector<128x128xf32> -> vector<128x128xf32>
    %c0_188 = arith.constant 0 : index
    %c0_189 = arith.constant 0 : index
    %c128_190 = arith.constant 128 : index
    %262 = vector.load %arg16[%c0_188, %c0_189, %c128_190] : memref<1x1x512xf32, #tpu.memory_space<vmem>>, vector<1x1x128xf32>
    %263 = vector.shape_cast %262 : vector<1x1x128xf32> to vector<1x128xf32>
    %264 = vector.broadcast %263 : vector<1x128xf32> to vector<128x128xf32>
    %265 = arith.addf %261, %264 : vector<128x128xf32>
    %cst_191 = arith.constant -1.702000e+00 : f32
    %266 = vector.broadcast %cst_191 : f32 to vector<128x128xf32>
    %267 = arith.mulf %266, %265 : vector<128x128xf32>
    %268 = math.exp %267 : vector<128x128xf32>
    %cst_192 = arith.constant 1.000000e+00 : f32
    %269 = vector.broadcast %cst_192 : f32 to vector<128x128xf32>
    %270 = arith.addf %269, %268 : vector<128x128xf32>
    %271 = tpu.reciprocal %270 {approx = true} : vector<128x128xf32> -> vector<128x128xf32>
    %272 = arith.mulf %265, %271 : vector<128x128xf32>
    %273 = arith.truncf %272 : vector<128x128xf32> to vector<128x128xbf16>
    %c0_193 = arith.constant 0 : index
    %c128_194 = arith.constant 128 : index
    %c0_195 = arith.constant 0 : index
    %274 = vector.load %arg17[%c0_193, %c128_194, %c0_195] : memref<1x512x128xbf16, #tpu.memory_space<vmem>>, vector<1x128x128xbf16>
    %275 = vector.shape_cast %274 : vector<1x128x128xbf16> to vector<128x128xbf16>
    %cst_196 = arith.constant dense<0.000000e+00> : vector<128x128xf32>
    %276 = tpu.matmul %273, %275, %cst_196 {dimension_numbers = #tpu.dot_dimension_numbers<[1], [0], [0], [1], [0, 0, 1, 1], [], []>} : vector<128x128xbf16>, vector<128x128xbf16>, vector<128x128xf32> -> vector<128x128xf32>
    %277 = arith.addf %258, %276 : vector<128x128xf32>
    %c0_197 = arith.constant 0 : index
    %c0_198 = arith.constant 0 : index
    %c256 = arith.constant 256 : index
    %278 = vector.load %arg15[%c0_197, %c0_198, %c256] : memref<1x128x512xbf16, #tpu.memory_space<vmem>>, vector<1x128x128xbf16>
    %279 = vector.shape_cast %278 : vector<1x128x128xbf16> to vector<128x128xbf16>
    %cst_199 = arith.constant dense<0.000000e+00> : vector<128x128xf32>
    %280 = tpu.matmul %235, %279, %cst_199 {dimension_numbers = #tpu.dot_dimension_numbers<[1], [0], [0], [1], [0, 0, 1, 1], [], []>} : vector<128x128xbf16>, vector<128x128xbf16>, vector<128x128xf32> -> vector<128x128xf32>
    %c0_200 = arith.constant 0 : index
    %c0_201 = arith.constant 0 : index
    %c256_202 = arith.constant 256 : index
    %281 = vector.load %arg16[%c0_200, %c0_201, %c256_202] : memref<1x1x512xf32, #tpu.memory_space<vmem>>, vector<1x1x128xf32>
    %282 = vector.shape_cast %281 : vector<1x1x128xf32> to vector<1x128xf32>
    %283 = vector.broadcast %282 : vector<1x128xf32> to vector<128x128xf32>
    %284 = arith.addf %280, %283 : vector<128x128xf32>
    %cst_203 = arith.constant -1.702000e+00 : f32
    %285 = vector.broadcast %cst_203 : f32 to vector<128x128xf32>
    %286 = arith.mulf %285, %284 : vector<128x128xf32>
    %287 = math.exp %286 : vector<128x128xf32>
    %cst_204 = arith.constant 1.000000e+00 : f32
    %288 = vector.broadcast %cst_204 : f32 to vector<128x128xf32>
    %289 = arith.addf %288, %287 : vector<128x128xf32>
    %290 = tpu.reciprocal %289 {approx = true} : vector<128x128xf32> -> vector<128x128xf32>
    %291 = arith.mulf %284, %290 : vector<128x128xf32>
    %292 = arith.truncf %291 : vector<128x128xf32> to vector<128x128xbf16>
    %c0_205 = arith.constant 0 : index
    %c256_206 = arith.constant 256 : index
    %c0_207 = arith.constant 0 : index
    %293 = vector.load %arg17[%c0_205, %c256_206, %c0_207] : memref<1x512x128xbf16, #tpu.memory_space<vmem>>, vector<1x128x128xbf16>
    %294 = vector.shape_cast %293 : vector<1x128x128xbf16> to vector<128x128xbf16>
    %cst_208 = arith.constant dense<0.000000e+00> : vector<128x128xf32>
    %295 = tpu.matmul %292, %294, %cst_208 {dimension_numbers = #tpu.dot_dimension_numbers<[1], [0], [0], [1], [0, 0, 1, 1], [], []>} : vector<128x128xbf16>, vector<128x128xbf16>, vector<128x128xf32> -> vector<128x128xf32>
    %296 = arith.addf %277, %295 : vector<128x128xf32>
    %c0_209 = arith.constant 0 : index
    %c0_210 = arith.constant 0 : index
    %c384 = arith.constant 384 : index
    %297 = vector.load %arg15[%c0_209, %c0_210, %c384] : memref<1x128x512xbf16, #tpu.memory_space<vmem>>, vector<1x128x128xbf16>
    %298 = vector.shape_cast %297 : vector<1x128x128xbf16> to vector<128x128xbf16>
    %cst_211 = arith.constant dense<0.000000e+00> : vector<128x128xf32>
    %299 = tpu.matmul %235, %298, %cst_211 {dimension_numbers = #tpu.dot_dimension_numbers<[1], [0], [0], [1], [0, 0, 1, 1], [], []>} : vector<128x128xbf16>, vector<128x128xbf16>, vector<128x128xf32> -> vector<128x128xf32>
    %c0_212 = arith.constant 0 : index
    %c0_213 = arith.constant 0 : index
    %c384_214 = arith.constant 384 : index
    %300 = vector.load %arg16[%c0_212, %c0_213, %c384_214] : memref<1x1x512xf32, #tpu.memory_space<vmem>>, vector<1x1x128xf32>
    %301 = vector.shape_cast %300 : vector<1x1x128xf32> to vector<1x128xf32>
    %302 = vector.broadcast %301 : vector<1x128xf32> to vector<128x128xf32>
    %303 = arith.addf %299, %302 : vector<128x128xf32>
    %cst_215 = arith.constant -1.702000e+00 : f32
    %304 = vector.broadcast %cst_215 : f32 to vector<128x128xf32>
    %305 = arith.mulf %304, %303 : vector<128x128xf32>
    %306 = math.exp %305 : vector<128x128xf32>
    %cst_216 = arith.constant 1.000000e+00 : f32
    %307 = vector.broadcast %cst_216 : f32 to vector<128x128xf32>
    %308 = arith.addf %307, %306 : vector<128x128xf32>
    %309 = tpu.reciprocal %308 {approx = true} : vector<128x128xf32> -> vector<128x128xf32>
    %310 = arith.mulf %303, %309 : vector<128x128xf32>
    %311 = arith.truncf %310 : vector<128x128xf32> to vector<128x128xbf16>
    %c0_217 = arith.constant 0 : index
    %c384_218 = arith.constant 384 : index
    %c0_219 = arith.constant 0 : index
    %312 = vector.load %arg17[%c0_217, %c384_218, %c0_219] : memref<1x512x128xbf16, #tpu.memory_space<vmem>>, vector<1x128x128xbf16>
    %313 = vector.shape_cast %312 : vector<1x128x128xbf16> to vector<128x128xbf16>
    %cst_220 = arith.constant dense<0.000000e+00> : vector<128x128xf32>
    %314 = tpu.matmul %311, %313, %cst_220 {dimension_numbers = #tpu.dot_dimension_numbers<[1], [0], [0], [1], [0, 0, 1, 1], [], []>} : vector<128x128xbf16>, vector<128x128xbf16>, vector<128x128xf32> -> vector<128x128xf32>
    %315 = arith.addf %296, %314 : vector<128x128xf32>
    %c0_221 = arith.constant 0 : index
    %c0_222 = arith.constant 0 : index
    %316 = vector.load %arg22[%c0_221, %c0_222] : memref<128x128xf32, #tpu.memory_space<vmem>>, vector<128x128xf32>
    tpu.vector_store %arg22[%c0_221, %c0_222], %315 {strides = array<i32>} : memref<128x128xf32, #tpu.memory_space<vmem>>, vector<128x128xf32>,
    %c1_i32 = arith.constant 1 : i32
    %317 = arith.cmpi eq, %arg1, %c1_i32 : i32
    %318 = arith.extui %317 : i1 to i32
    %c0_i32_223 = arith.constant 0 : i32
    %319 = arith.cmpi ne, %318, %c0_i32_223 : i32
    scf.if %319 {
      %c0_224 = arith.constant 0 : index
      %c0_225 = arith.constant 0 : index
      %320 = vector.load %arg19[%c0_224, %c0_225] : memref<1x128xf32, #tpu.memory_space<vmem>>, vector<1x128xf32>
      %c0_226 = arith.constant 0 : index
      %c0_227 = arith.constant 0 : index
      %321 = vector.load %arg20[%c0_226, %c0_227] : memref<1x128xf32, #tpu.memory_space<vmem>>, vector<1x128xf32>
      %cst_228 = arith.constant dense<0.000000e+00> : vector<128xf32>
      %322 = vector.multi_reduction <add>, %315, %cst_228 [1] : vector<128x128xf32> to vector<128xf32>
      %323 = vector.shape_cast %322 : vector<128xf32> to vector<128x1xf32>
      %cst_229 = arith.constant 1.280000e+02 : f32
      %324 = vector.broadcast %cst_229 : f32 to vector<128x1xf32>
      %325 = arith.divf %323, %324 : vector<128x1xf32>
      %326 = vector.broadcast %325 : vector<128x1xf32> to vector<128x128xf32>
      %327 = arith.subf %315, %326 : vector<128x128xf32>
      %328 = arith.mulf %327, %327 : vector<128x128xf32>
      %cst_230 = arith.constant dense<0.000000e+00> : vector<128xf32>
      %329 = vector.multi_reduction <add>, %328, %cst_230 [1] : vector<128x128xf32> to vector<128xf32>
      %330 = vector.shape_cast %329 : vector<128xf32> to vector<128x1xf32>
      %cst_231 = arith.constant 1.280000e+02 : f32
      %331 = vector.broadcast %cst_231 : f32 to vector<128x1xf32>
      %332 = arith.divf %330, %331 : vector<128x1xf32>
      %cst_232 = arith.constant 9.99999974E-6 : f32
      %333 = vector.broadcast %cst_232 : f32 to vector<128x1xf32>
      %334 = arith.addf %332, %333 : vector<128x1xf32>
      %335 = math.rsqrt %334 : vector<128x1xf32>
      %336 = vector.broadcast %335 : vector<128x1xf32> to vector<128x128xf32>
      %337 = arith.mulf %327, %336 : vector<128x128xf32>
      %338 = vector.broadcast %320 : vector<1x128xf32> to vector<128x128xf32>
      %339 = arith.mulf %337, %338 : vector<128x128xf32>
      %340 = vector.broadcast %321 : vector<1x128xf32> to vector<128x128xf32>
      %341 = arith.addf %339, %340 : vector<128x128xf32>
      %c0_233 = arith.constant 0 : index
      %c0_234 = arith.constant 0 : index
      %c0_235 = arith.constant 0 : index
      %342 = vector.load %arg21[%c0_233, %c0_234, %c0_235] : memref<1x128x128xf32, #tpu.memory_space<vmem>>, vector<1x128x128xf32>
      %343 = vector.shape_cast %342 : vector<1x128x128xf32> to vector<128x128xf32>
      %344 = vector.shape_cast %341 : vector<128x128xf32> to vector<1x128x128xf32>
      tpu.vector_store %arg21[%c0_233, %c0_234, %c0_235], %344 {strides = array<i32>} : memref<1x128x128xf32, #tpu.memory_space<vmem>>, vector<1x128x128xf32>,
    } else {
    }
    return
  }
  func.func @transform_0(%arg0: i32, %arg1: i32) -> (i32, i32, i32) {
    %c0_i32 = arith.constant 0 : i32
    %c0_i32_0 = arith.constant 0 : i32
    %c0_i32_1 = arith.constant 0 : i32
    return %arg0, %c0_i32, %c0_i32_0 : i32, i32, i32
  }
  func.func @transform_1(%arg0: i32, %arg1: i32) -> (i32, i32, i32) {
    %c0_i32 = arith.constant 0 : i32
    %c0_i32_0 = arith.constant 0 : i32
    %c0_i32_1 = arith.constant 0 : i32
    return %arg1, %c0_i32, %c0_i32_0 : i32, i32, i32
  }
  func.func @transform_2(%arg0: i32, %arg1: i32) -> (i32, i32, i32) {
    %c0_i32 = arith.constant 0 : i32
    %c0_i32_0 = arith.constant 0 : i32
    %c0_i32_1 = arith.constant 0 : i32
    return %arg1, %c0_i32, %c0_i32_0 : i32, i32, i32
  }
  func.func @transform_3(%arg0: i32, %arg1: i32) -> (i32, i32, i32, i32) {
    %c0_i32 = arith.constant 0 : i32
    %c0_i32_0 = arith.constant 0 : i32
    %c0_i32_1 = arith.constant 0 : i32
    %c0_i32_2 = arith.constant 0 : i32
    return %arg1, %c0_i32, %c0_i32_0, %c0_i32_1 : i32, i32, i32, i32
  }
  func.func @transform_4(%arg0: i32, %arg1: i32) -> (i32, i32, i32, i32) {
    %c0_i32 = arith.constant 0 : i32
    %c0_i32_0 = arith.constant 0 : i32
    %c0_i32_1 = arith.constant 0 : i32
    %c0_i32_2 = arith.constant 0 : i32
    return %arg1, %c0_i32, %c0_i32_0, %c0_i32_1 : i32, i32, i32, i32
  }
  func.func @transform_5(%arg0: i32, %arg1: i32) -> (i32, i32, i32, i32) {
    %c0_i32 = arith.constant 0 : i32
    %c0_i32_0 = arith.constant 0 : i32
    %c0_i32_1 = arith.constant 0 : i32
    %c0_i32_2 = arith.constant 0 : i32
    return %arg1, %c0_i32, %c0_i32_0, %c0_i32_1 : i32, i32, i32, i32
  }
  func.func @transform_6(%arg0: i32, %arg1: i32) -> (i32, i32, i32, i32) {
    %c0_i32 = arith.constant 0 : i32
    %c0_i32_0 = arith.constant 0 : i32
    %c0_i32_1 = arith.constant 0 : i32
    %c0_i32_2 = arith.constant 0 : i32
    return %arg1, %c0_i32, %c0_i32_0, %c0_i32_1 : i32, i32, i32, i32
  }
  func.func @transform_7(%arg0: i32, %arg1: i32) -> (i32, i32, i32, i32) {
    %c0_i32 = arith.constant 0 : i32
    %c0_i32_0 = arith.constant 0 : i32
    %c0_i32_1 = arith.constant 0 : i32
    %c0_i32_2 = arith.constant 0 : i32
    return %arg1, %c0_i32, %c0_i32_0, %c0_i32_1 : i32, i32, i32, i32
  }
  func.func @transform_8(%arg0: i32, %arg1: i32) -> (i32, i32, i32, i32) {
    %c0_i32 = arith.constant 0 : i32
    %c0_i32_0 = arith.constant 0 : i32
    %c0_i32_1 = arith.constant 0 : i32
    %c0_i32_2 = arith.constant 0 : i32
    return %arg1, %c0_i32, %c0_i32_0, %c0_i32_1 : i32, i32, i32, i32
  }
  func.func @transform_9(%arg0: i32, %arg1: i32) -> (i32, i32, i32, i32) {
    %c0_i32 = arith.constant 0 : i32
    %c0_i32_0 = arith.constant 0 : i32
    %c0_i32_1 = arith.constant 0 : i32
    %c0_i32_2 = arith.constant 0 : i32
    return %arg1, %c0_i32, %c0_i32_0, %c0_i32_1 : i32, i32, i32, i32
  }
  func.func @transform_10(%arg0: i32, %arg1: i32) -> (i32, i32, i32) {
    %c0_i32 = arith.constant 0 : i32
    %c0_i32_0 = arith.constant 0 : i32
    %c0_i32_1 = arith.constant 0 : i32
    return %arg1, %c0_i32, %c0_i32_0 : i32, i32, i32
  }
  func.func @transform_11(%arg0: i32, %arg1: i32) -> (i32, i32, i32) {
    %c0_i32 = arith.constant 0 : i32
    %c0_i32_0 = arith.constant 0 : i32
    %c0_i32_1 = arith.constant 0 : i32
    return %arg1, %c0_i32, %c0_i32_0 : i32, i32, i32
  }
  func.func @transform_12(%arg0: i32, %arg1: i32) -> (i32, i32, i32) {
    %c0_i32 = arith.constant 0 : i32
    %c0_i32_0 = arith.constant 0 : i32
    %c0_i32_1 = arith.constant 0 : i32
    return %arg1, %c0_i32, %c0_i32_0 : i32, i32, i32
  }
  func.func @transform_13(%arg0: i32, %arg1: i32) -> (i32, i32, i32) {
    %c0_i32 = arith.constant 0 : i32
    %c0_i32_0 = arith.constant 0 : i32
    %c0_i32_1 = arith.constant 0 : i32
    return %arg1, %c0_i32, %c0_i32_0 : i32, i32, i32
  }
  func.func @transform_14(%arg0: i32, %arg1: i32) -> (i32, i32, i32) {
    %c0_i32 = arith.constant 0 : i32
    %c0_i32_0 = arith.constant 0 : i32
    %c0_i32_1 = arith.constant 0 : i32
    return %arg1, %c0_i32, %c0_i32_0 : i32, i32, i32
  }
  func.func @transform_15(%arg0: i32, %arg1: i32) -> (i32, i32, i32) {
    %c0_i32 = arith.constant 0 : i32
    %c0_i32_0 = arith.constant 0 : i32
    %c0_i32_1 = arith.constant 0 : i32
    return %arg1, %c0_i32, %c0_i32_0 : i32, i32, i32
  }
  func.func @transform_16(%arg0: i32, %arg1: i32) -> (i32, i32, i32) {
    %c0_i32 = arith.constant 0 : i32
    %c0_i32_0 = arith.constant 0 : i32
    %c0_i32_1 = arith.constant 0 : i32
    return %arg1, %c0_i32, %c0_i32_0 : i32, i32, i32
  }
  func.func @transform_17(%arg0: i32, %arg1: i32) -> (i32, i32) {
    %c0_i32 = arith.constant 0 : i32
    %c0_i32_0 = arith.constant 0 : i32
    %c0_i32_1 = arith.constant 0 : i32
    return %c0_i32, %c0_i32_0 : i32, i32
  }
  func.func @transform_18(%arg0: i32, %arg1: i32) -> (i32, i32) {
    %c0_i32 = arith.constant 0 : i32
    %c0_i32_0 = arith.constant 0 : i32
    %c0_i32_1 = arith.constant 0 : i32
    return %c0_i32, %c0_i32_0 : i32, i32
  }
  func.func @transform_19(%arg0: i32, %arg1: i32) -> (i32, i32, i32) {
    %c0_i32 = arith.constant 0 : i32
    %c0_i32_0 = arith.constant 0 : i32
    %c0_i32_1 = arith.constant 0 : i32
    return %arg0, %c0_i32, %c0_i32_0 : i32, i32, i32
  }
}

</mosaic_0001>

<bundles_post_ra>
// kernel: frozen_clip_embedder_forward.2
= control target key start
LH: loop header
LB: loop body
LE: loop exit
PB: predicated region body
PF: predicated region fallthrough
CT: control target
= control target key end

     0   :  { %s1728_s26 = smov [#allocation3]   ;;  %s2449_s0 = inlined_call_operand.vmem [shape: s32[2], index: 0, kind: input, shape index: {}]   ;;  %s2450_s1 = inlined_call_operand.<no memory space> [shape: s32[1], index: 1, kind: input, shape index: {}]   ;;  %s2451_s2 = inlined_call_operand.vmem [shape: s32[2,128,1], index: 2, kind: input, shape index: {}]   ;;  %s2452_s3 = inlined_call_operand.hbm [shape: bf16[512,128], index: 3, kind: input, shape index: {}]   ;;  %s2453_s4 = inlined_call_operand.vmem [shape: f32[128,128], index: 4, kind: input, shape index: {}]   ;;  %s2454_s5 = inlined_call_operand.vmem [shape: bf16[1,128], index: 5, kind: input, shape index: {}]   ;;  %s2455_s6 = inlined_call_operand.vmem [shape: f32[2,128,128], index: 6, kind: output, shape index: {}]  }
   0x1   :  { %s12_s23 = sshll.u32 %s2449_s0, 4  ;;  %16 = sst [smem:[#allocation4]] %s2450_s1  ;;  %s13_s23 = int_to_ptr.vmem [resolvable:$true] %s12_s23 }
   0x2   :  { %15 = dma.vmem_to_smem %s13_s23, 16, %s1728_s26, [#allocation2] }
   0x3   :  { %1690 = dma.done.wait [#allocation2], 16 }
   0x4   :  { %1691 = vsyncadd [#allocation2], 4294967280 }
   0x5   :  { %19 = sfence }
   0x6   :  { %20 = vsyncpa [#allocation6], 0 }
   0x7   :  { %22 = vsyncpa [#allocation6 + $0x1], 0  ;;  %s1774_s27 = smov 0   ;;  %s1776_s28 = smov 0  }
   0x8   :  { %s1778_s29 = smov 0   ;;  %s1780_s30 = smov 0  }
   0x9   :  { %s1782_s0 = smov 0   ;;  %s1784_s7 = smov 0  }
   0xa   :  { %s1786_s1 = smov 0   ;;  %s1788_s8 = smov 0  }
   0xb LB: > { %s1325_s9 = sadd.s32 4294967295, %s1726_s8   ;;  %s37_s10 = sadd.s32 1, %s1718_s7  ;;  %s1726_s8 = sphi %s1788_s8, %s28_s8   ;;  %s1722_s1 = sphi %s1786_s1, %s2464_s1   ;;  %s1718_s7 = sphi %s1784_s7, %s2463_s7   ;;  %s1714_s0 = sphi %s1782_s0, %s2462_s0   ;;  %s1710_s30 = sphi %s1780_s30, %s2461_s30   ;;  %s1706_s29 = sphi %s1778_s29, %s2460_s29   ;;  %s1702_s28 = sphi %s1776_s28, %s2459_s28   ;;  %s1698_s27 = sphi %s1774_s27, %s2458_s27  }
   0xc   : > { %p38_p0 = scmp.ge.s32.totalorder %s37_s10, 2  ;;  %s40_s11 = sadd.s32 1, %s1722_s1 }
   0xd   : > { %s73_s12 = sadd.s32 1, %s1706_s29  ;;  %p80_p1 = scmp.ne.s32.totalorder %s1706_s29, %s1702_s28 }
   0xe   : > { %s2466_s10 = smov (%p38_p0, %s37_s10), 0  ;;  %s2468_s11 = smov (!%p38_p0, %s40_s11), %s1722_s1 }
   0xf   : > { %s70_s13 = ssub.s32 %s1718_s7, %s2466_s10  ;;  %p81_p2 = scmp.eq.s32.totalorder %s1726_s8, 0 }
  0x10   : > { %p42_p3 = scmp.ge.s32.totalorder %s2468_s11, 2  ;;  %p71_p4 = scmp.eq.s32.totalorder %s70_s13, 0 }
  0x11   : > { %p1824_p5 = por %p81_p2, %p80_p1  ;;  %p86_p6 = scmp.ne.s32.totalorder %s1702_s28, %s1698_s27 }
  0x12   : > { %s2470_s11 = smov (%p42_p3, %s2468_s11), 0  ;;  %p87_p7 = scmp.eq.s32.totalorder %s1325_s9, 0 }
  0x13   : > { %s1832_s15 = scalar_select %p71_p4, %s1706_s29, %s73_s12  }
  0x14   : > { %p1543_p8 = scmp.lt.s32.totalorder %s1726_s8, 4  ;;  %s192_s16 = sand.u32 1, %s1706_s29  }
  0x15   : > { %p1836_p9 = por %p87_p7, %p86_p6  ;;  %s1329_s18 = sshll.u32 %s192_s16, 7 }
  0x16   : > { %s1502_s19 = sshll.u32 %s1718_s7, 7  ;;  %s196_s24 = scalar_lea.vmem [#allocation5], %s1329_s18 }
  0x17   : > { %s201_s22 = scalar_lea.hbm %s2452_s3, %s1502_s19  ;;  %s204_s25 = sshll.u32 %s196_s24, 4  ;;  %s205_s25 = int_to_ptr.vmem [resolvable:$true] %s204_s25 }
  0x18   : > { %s202_s23 = sshll.u32 %s201_s22, 4  ;;  %p1540_p10 = pnand %p1543_p8, %p1824_p5  ;;  %s203_s23 = int_to_ptr.hbm [resolvable:$true] %s202_s23 }
  0x19   : > { %p1332_p11 = scmp.ge.s32.totalorder %s1726_s8, 1  ;;  %p212_p12 = scmp.lt.s32.totalorder %s1726_s8, 5 }
  0x1a   : > { %s193_s26 = scalar_lea.sflag [#allocation6], %s192_s16  ;;  %s1729_s27 = smov 64  }
  0x1b   : > { %s1730_s9 = smov 4   ;;  %p213_p13 = pnand %p1332_p11, %p212_p12 }
  0x1c   : > { %1542 = dma.hbm_to_vmem [thread:$0]  (!%p1540_p10), %s203_s23, 2048, %s205_s25, %s193_s26, %s1729_s27, %s1729_s27, %s1730_s9  }
  0x1d   : > { %216 = sbr.rel (%p213_p13) target bundleno = 398 (0x18e), region = 36  ;;  %s218_s12 = sand.u32 (!%p213_p13), 1, %s1702_s28  }
  0x1e   : > { %s1333_s13 = sshll.u32 (!%p213_p13), %s218_s12, 7  ;;  %s219_s19 = scalar_lea.sflag (!%p213_p13), [#allocation6], %s218_s12 }
  0x1f   : > { %s1849_s20 = scalar_lea.vmem (!%p213_p13), [#allocation5], %s1333_s13 }
  0x22   : > { %1693 = dma.done.wait (%p1836_p9), %s219_s19, 2048  }
  0x23   : > { %1695 = vsyncadd (%p1836_p9), %s219_s19, 4294965248  ;;  %p253_p0 = scmp.lt.s32.totalorder %s1714_s0, 1  ;;  %v285_v0 = vlaneseq  ;;  %v1731_v1 = vmov 0   ;;  %s266_s14 = sld [smem:[#allocation3 + %s1714_s0]]  ;;  %v451_v42 = vld [vmem:[%s2454_s5] sm:$0x1] }
  0x24   : > { %1613 = vset.pattern.permute.xlu0 %v1731_v1  ;;  %1614 = vset.pattern.permute.xlu1 %v1731_v1  ;;  %s1338_s25 = sshll.u32 %s1710_s30, 8  ;;  %v549_v43 = vpack.i.b16 %v451_v42, %v451_v42  ;;  %v1961_v44 = vunpack.c.l.b16 %v1731_v1  ;;  %v1964_v45 = vunpack.c.h.b16 %v1731_v1  ;;  %v1512_v60 = vld [vmem:[%s1849_s20 + $0x38] sm:$0xff]  ;;  %p1499_p2 = scmp.ne.s32.totalorder %s1710_s30, 0 }
  0x25   : > { %s2472_s0 = smov (!%p253_p0, %s1714_s0), 1  ;;  %1615 = vset.pattern.permute.xlu2 %v1731_v1  ;;  %v1862_v2 = vshrl.u32 %v285_v0, 7  ;;  %v1907_v17 = vstv %s1338_s25 }
  0x26   : > { %s1503_s16 = sshll.u32 %s2472_s0, 7  ;;  %s1881_s0 = sld [smem:[#allocation4]]  ;;  %v1973_v49 = vperm.slane %v549_v43, 0 }
  0x27   : > { %s1867_s21 = scalar_lea.vmem %s2455_s6, %s1503_s16  ;;  %s1872_s24 = scalar_lea.vmem %s2451_s2, %s1503_s16  ;;  %v1875_v3 = vadd.s32 64, %v1862_v2  ;;  %v1878_v4 = vadd.s32 80, %v1862_v2  ;;  %vm302_vm0 = vcmp.eq.s32.totalorder %v1862_v2, 0  ;;  %v1889_v9 = vadd.s32 72, %v1862_v2 }
  0x28   : > { %v277_v5 = vld [vmem:[%s1872_s24 + $0x40] sm:$0xff]  ;;  %v279_v7 = vld [vmem:[%s1872_s24 + $0x50] sm:$0xff]  ;;  %v1899_v10 = vadd.s32 88, %v1862_v2  ;;  %v1902_v14 = vadd.s32 8, %v1862_v2  ;;  %v1905_v16 = vadd.s32 16, %v1862_v2  ;;  %v1910_v18 = vadd.s32 24, %v1862_v2 }
  0x29   : > { %p267_p1 = scmp.lt.s32.totalorder %s266_s14, 75  ;;  %v269_v6 = vld [vmem:[%s1872_s24] sm:$0xff]  ;;  %v298_v19 = vadd.s32 96, %v1862_v2  ;;  %v278_v20 = vld [vmem:[%s1872_s24 + $0x48] sm:$0xff]  ;;  %v280_v21 = vld [vmem:[%s1872_s24 + $0x58] sm:$0xff]  ;;  %v1920_v22 = vadd.s32 112, %v1862_v2 }
  0x2a   : > { %v1923_v23 = vadd.s32 120, %v1862_v2  ;;  %v270_v24 = vld [vmem:[%s1872_s24 + $0x8] sm:$0xff]  ;;  %v1929_v25 = vadd.s32 104, %v1862_v2  ;;  %v271_v27 = vld [vmem:[%s1872_s24 + $0x10] sm:$0xff]  ;;  %v272_v32 = vld [vmem:[%s1872_s24 + $0x18] sm:$0xff]  ;;  %v1950_v38 = vadd.s32 32, %v1862_v2 }
  0x2b   : > { %s2474_s14 = smov (!%p267_p1, %s266_s14), 75  ;;  %v399_v28 = vadd.s32 %v1907_v17, %v1920_v22  ;;  %v281_v33 = vld [vmem:[%s1872_s24 + $0x60] sm:$0xff]  ;;  %v397_v35 = vadd.s32 %v1907_v17, %v298_v19  ;;  %v1953_v39 = vadd.s32 40, %v1862_v2  ;;  %v381_v46 = vadd.s32 240, %v1862_v2 }
  0x2c   : > { %v1885_v8 = vstv %s2474_s14  ;;  %v1932_v26 = vstv %s1881_s0  ;;  %v400_v29 = vadd.s32 %v1907_v17, %v1923_v23  ;;  %v398_v36 = vadd.s32 %v1907_v17, %v1929_v25 }
  0x2d   : > { %vm327_vm1 = vcmp.le.s32.totalorder %v1875_v3, %v1885_v8  ;;  %vm319_vm2 = vcmp.le.s32.totalorder %v1862_v2, %v1885_v8  ;;  %vm329_vm3 = vcmp.le.s32.totalorder %v1878_v4, %v1885_v8  ;;  %vm328_vm4 = vcmp.le.s32.totalorder %v1889_v9, %v1885_v8 }
  0x2e   : > { %v343_v11 = vsel %vm327_vm1, %v277_v5, 2  ;;  %v335_v12 = vsel %vm319_vm2, %v269_v6, 2  ;;  %v345_v13 = vsel %vm329_vm3, %v279_v7, 2  ;;  %vm330_vm5 = vcmp.le.s32.totalorder %v1899_v10, %v1885_v8 }
  0x2f   : > { %918 = vperm.xlu0 %1613, %v343_v11   ;;  %v351_v15 = vsel %vm302_vm0, 1, %v335_v12  ;;  %924 = vperm.xlu2 %1615, %v345_v13   ;;  %vm320_vm6 = vcmp.le.s32.totalorder %v1902_v14, %v1885_v8  ;;  %vm321_vm7 = vcmp.le.s32.totalorder %v1905_v16, %v1885_v8  ;;  %v344_v30 = vsel %vm328_vm4, %v278_v20, 2  ;;  %v1511_v13 = vld [vmem:[%s1849_s20 + $0x30] sm:$0xff] }
  0x30   : > { %894 = vperm.xlu1 %1614, %v351_v15   ;;  %v346_v31 = vsel %vm330_vm5, %v280_v21, 2  ;;  %vm322_vm8 = vcmp.le.s32.totalorder %v1910_v18, %v1885_v8  ;;  %vm331_vm9 = vcmp.le.s32.totalorder %v298_v19, %v1885_v8  ;;  %v336_v34 = vsel %vm320_vm6, %v270_v24, 2  ;;  %v282_v21 = vld [vmem:[%s1872_s24 + $0x68] sm:$0xff] }
  0x31   : > { %v337_v37 = vsel %vm321_vm7, %v271_v27, 2  ;;  %v338_v40 = vsel %vm322_vm8, %v272_v32, 2  ;;  %v347_v41 = vsel %vm331_vm9, %v281_v33, 2  ;;  %vm433_vm10 = vcmp.eq.s32.totalorder %v399_v28, %v1932_v26  ;;  %v274_v24 = vld [vmem:[%s1872_s24 + $0x28] sm:$0xff] }
  0x32   : > { %vm434_vm11 = vcmp.eq.s32.totalorder %v400_v29, %v1932_v26  ;;  %vm566_vm12 = vmpackc.low %vm433_vm10, %vm433_vm10  ;;  %vm332_vm13 = vcmp.le.s32.totalorder %v1929_v25, %v1885_v8  ;;  %v382_v48 = vadd.s32 248, %v1862_v2  ;;  %vm431_vm15 = vcmp.eq.s32.totalorder %v397_v35, %v1932_v26  ;;  %v273_v29 = vld [vmem:[%s1872_s24 + $0x20] sm:$0xff] }
  0x33   : > { %vm567_vm14 = vmpackc.low %vm434_vm11, %vm434_vm11  ;;  %v598_v47 = vsel %vm566_vm12, 65537, %v1731_v1  ;;  %vm432_vm0 = vcmp.eq.s32.totalorder %v398_v36, %v1932_v26  ;;  %v415_v52 = vadd.s32 %v1907_v17, %v381_v46  ;;  %v379_v56 = vadd.s32 224, %v1862_v2  ;;  %v1519_v46 = vld [vmem:[%s1849_s20 + $0x70] sm:$0xff] }
  0x34   : > { %v599_v50 = vsel %vm567_vm14, 65537, %v1731_v1  ;;  %v630_v51 = vunpack.c.l.b16 %v598_v47  ;;  %vm564_vm1 = vmpackc.low %vm431_vm15, %vm431_vm15  ;;  %v416_v54 = vadd.s32 %v1907_v17, %v382_v48  ;;  %v380_v63 = vadd.s32 232, %v1862_v2  ;;  %v283_v48 = vld [vmem:[%s1872_s24 + $0x70] sm:$0xff] }
  0x35   : > { %v631_v53 = vunpack.c.l.b16 %v599_v50  ;;  %vm565_vm2 = vmpackc.low %vm432_vm0, %vm432_vm0  ;;  %v596_v55 = vsel %vm564_vm1, 65537, %v1731_v1  ;;  %vm449_vm3 = vcmp.eq.s32.totalorder %v415_v52, %v1932_v26  ;;  %v413_v7 = vadd.s32 %v1907_v17, %v379_v56  ;;  %v275_v50 = vld [vmem:[%s1872_s24 + $0x30] sm:$0xff]  ;;  %v276_v56 = vld [vmem:[%s1872_s24 + $0x38] sm:$0xff] }
  0x36   : > { %v1353_v57 = vunpack.i.l.s16 %v630_v51  ;;  %v597_v58 = vsel %vm565_vm2, 65537, %v1731_v1  ;;  %v628_v59 = vunpack.c.l.b16 %v596_v55  ;;  %vm450_vm4 = vcmp.eq.s32.totalorder %v416_v54, %v1932_v26  ;;  %vm582_vm5 = vmpackc.low %vm449_vm3, %vm449_vm3  ;;  %v284_v51 = vld [vmem:[%s1872_s24 + $0x78] sm:$0xff] }
  0x37   : > { %921 = vperm.xlu0 %1613, %v344_v30   ;;  %927 = vperm.xlu2 %1615, %v346_v31   ;;  %v1354_v61 = vunpack.i.l.s16 %v631_v53  ;;  %v629_v62 = vunpack.c.l.b16 %v597_v58  ;;  %vm583_vm7 = vmpackc.low %vm450_vm4, %vm450_vm4  ;;  %v614_v5 = vsel %vm582_vm5, 65537, %v1731_v1  ;;  %v414_v20 = vadd.s32 %v1907_v17, %v380_v63  ;;  %v1520_v30 = vld [vmem:[%s1849_s20 + $0x78] sm:$0xff] }
  0x38   : > { %897 = vperm.xlu1 %1614, %v336_v34   ;;  %vm717_vm6 = vcmp.ne.s32.totalorder %v1353_v57, %v1961_v44  ;;  %v1351_v6 = vunpack.i.l.s16 %v628_v59  ;;  %v615_v11 = vsel %vm583_vm7, 65537, %v1731_v1  ;;  %v646_v12 = vunpack.c.l.b16 %v614_v5 }
  0x39   : > { %vm718_vm8 = vcmp.ne.s32.totalorder %v1354_v61, %v1964_v45  ;;  %v1352_v15 = vunpack.i.l.s16 %v629_v62  ;;  %v647_v19 = vunpack.c.l.b16 %v615_v11  ;;  %vm447_vm11 = vcmp.eq.s32.totalorder %v413_v7, %v1932_v26 }
  0x3a   : > { %vm719_vm9 = vmpackc.low %vm718_vm8, %vm717_vm6  ;;  %vm710_vm10 = vcmp.ne.s32.totalorder %v1351_v6, %v1961_v44  ;;  %vm324_vm12 = vcmp.le.s32.totalorder %v1953_v39, %v1885_v8  ;;  %v1369_v28 = vunpack.i.l.s16 %v646_v12  ;;  %vm323_vm0 = vcmp.le.s32.totalorder %v1950_v38, %v1885_v8 }
  0x3b   : > { %v879_v27 = vsel %vm719_vm9, %v1973_v49, %v1512_v60  ;;  %vm711_vm14 = vcmp.ne.s32.totalorder %v1352_v15, %v1964_v45  ;;  %vm580_vm15 = vmpackc.low %vm447_vm11, %vm447_vm11  ;;  %v1370_v31 = vunpack.i.l.s16 %v647_v19  ;;  %vm448_vm2 = vcmp.eq.s32.totalorder %v414_v20, %v1932_v26 }
  0x3c   : > { %1521 = vmatpush.bf16.msra.mxu2 %v879_v27  ;;  %1053 = vmatpush.bf16.msra.mxu0 %v879_v27  ;;  %vm712_vm1 = vmpackc.low %vm711_vm14, %vm710_vm10  ;;  %v612_v32 = vsel %vm580_vm15, 65537, %v1731_v1  ;;  %vm773_vm3 = vcmp.ne.s32.totalorder %v1369_v28, %v1961_v44  ;;  %v348_v35 = vsel %vm332_vm13, %v282_v21, 2  ;;  %v340_v36 = vsel %vm324_vm12, %v274_v24, 2  ;;  %v1510_v24 = vld [vmem:[%s1849_s20 + $0x28] sm:$0xff] }
  0x3d   : > { %v878_v33 = vsel %vm712_vm1, %v1973_v49, %v1511_v13  ;;  %vm581_vm4 = vmpackc.low %vm448_vm2, %vm448_vm2  ;;  %v644_v34 = vunpack.c.l.b16 %v612_v32  ;;  %vm774_vm5 = vcmp.ne.s32.totalorder %v1370_v31, %v1964_v45  ;;  %vm333_vm7 = vcmp.le.s32.totalorder %v1920_v22, %v1885_v8 }
  0x3e   : > { %vm775_vm6 = vmpackc.low %vm774_vm5, %vm773_vm3  ;;  %vm334_vm10 = vcmp.le.s32.totalorder %v1923_v23, %v1885_v8  ;;  %v349_v53 = vsel %vm333_vm7, %v283_v48, 2  ;;  %v293_v22 = vadd.s32 56, %v1862_v2  ;;  %v395_v23 = vadd.s32 %v1907_v17, %v1878_v4 }
  0x3f   : > { %900 = vperm.xlu0 %1613, %v337_v37   ;;  %930 = vperm.xlu2 %1615, %v347_v41   ;;  %v613_v37 = vsel %vm581_vm4, 65537, %v1731_v1  ;;  %v2022_v41 = vadd.s32 48, %v1862_v2  ;;  %v1367_v42 = vunpack.i.l.s16 %v644_v34  ;;  %v887_v43 = vsel %vm775_vm6, %v1973_v49, %v1520_v30 }
  0x40   : > { %903 = vperm.xlu1 %1614, %v338_v40   ;;  %v339_v40 = vsel %vm323_vm0, %v273_v29, 2  ;;  %v645_v25 = vunpack.c.l.b16 %v613_v37  ;;  %1522 = vmatpush.bf16.msra.mxu2 %v878_v33  ;;  %v350_v55 = vsel %vm334_vm10, %v284_v51, 2  ;;  %vm326_vm12 = vcmp.le.s32.totalorder %v293_v22, %v1885_v8 }
  0x41   : > { %1054 = vmatpush.bf16.msra.mxu0 %v878_v33  ;;  %vm766_vm13 = vcmp.ne.s32.totalorder %v1367_v42, %v1961_v44  ;;  %1529 = vmatpush.bf16.msra.mxu3 %v887_v43  ;;  %vm325_vm8 = vcmp.le.s32.totalorder %v2022_v41, %v1885_v8  ;;  %v342_v57 = vsel %vm326_vm12, %v276_v56, 2  ;;  %v393_v58 = vadd.s32 %v1907_v17, %v1875_v3  ;;  %v1518_v33 = vld [vmem:[%s1849_s20 + $0x68] sm:$0xff]  ;;  %v1509_v42 = vld [vmem:[%s1849_s20 + $0x20] sm:$0xff] }
  0x42   : > { %v1368_v47 = vunpack.i.l.s16 %v645_v25  ;;  %1102 = vmatpush.bf16.msra.mxu1 %v887_v43  ;;  %v341_v54 = vsel %vm325_vm8, %v275_v50, 2  ;;  %v396_v59 = vadd.s32 %v1907_v17, %v1899_v10  ;;  %vm429_vm14 = vcmp.eq.s32.totalorder %v395_v23, %v1932_v26  ;;  %v1517_v50 = vld [vmem:[%s1849_s20 + $0x60] sm:$0xff] }
  0x43   : > { %v394_v60 = vadd.s32 %v1907_v17, %v1889_v9  ;;  %v377_v61 = vadd.s32 208, %v1862_v2  ;;  %v378_v8 = vadd.s32 216, %v1862_v2  ;;  %v2054_v62 = vadd.s32 %v1907_v17, %v1902_v14  ;;  %vm562_vm1 = vmpackc.low %vm429_vm14, %vm429_vm14 }
  0x44   : > { %vm767_vm9 = vcmp.ne.s32.totalorder %v1368_v47, %v1964_v45  ;;  %v2058_v4 = vadd.s32 %v1907_v17, %v1905_v16  ;;  %v2062_v3 = vadd.s32 %v1907_v17, %v1910_v18  ;;  %vm427_vm15 = vcmp.eq.s32.totalorder %v393_v58, %v1932_v26 }
  0x45   : > { %vm768_vm11 = vmpackc.low %vm767_vm9, %vm766_vm13  ;;  %v2067_v9 = vadd.s32 %v1907_v17, %v1950_v38  ;;  %v411_v10 = vadd.s32 %v1907_v17, %v377_v61  ;;  %v412_v63 = vadd.s32 %v1907_v17, %v378_v8  ;;  %v2073_v14 = vadd.s32 %v1907_v17, %v1953_v39 }
  0x46   : > { %v886_v52 = vsel %vm768_vm11, %v1973_v49, %v1519_v46  ;;  %vm430_vm0 = vcmp.eq.s32.totalorder %v396_v59, %v1932_v26  ;;  %v375_v16 = vadd.s32 192, %v1862_v2  ;;  %v376_v18 = vadd.s32 200, %v1862_v2  ;;  %vm560_vm7 = vmpackc.low %vm427_vm15, %vm427_vm15 }
  0x47   : > { %933 = vperm.xlu0 %1613, %v348_v35   ;;  %909 = vperm.xlu2 %1615, %v340_v36   ;;  %vm563_vm2 = vmpackc.low %vm430_vm0, %vm430_vm0  ;;  %v594_v5 = vsel %vm562_vm1, 65537, %v1731_v1  ;;  %vm445_vm3 = vcmp.eq.s32.totalorder %v411_v10, %v1932_v26  ;;  %vm446_vm4 = vcmp.eq.s32.totalorder %v412_v63, %v1932_v26  ;;  %vm428_vm5 = vcmp.eq.s32.totalorder %v394_v60, %v1932_v26 }
  0x48   : > { %906 = vperm.xlu1 %1614, %v339_v40   ;;  %1530 = vmatpush.bf16.msra.mxu3 %v886_v52  ;;  %v595_v38 = vsel %vm563_vm2, 65537, %v1731_v1  ;;  %v626_v39 = vunpack.c.l.b16 %v594_v5  ;;  %vm578_vm6 = vmpackc.low %vm445_vm3, %vm445_vm3  ;;  %v409_v6 = vadd.s32 %v1907_v17, %v375_v16  ;;  %v410_v7 = vadd.s32 %v1907_v17, %v376_v18  ;;  %v1508_v16 = vld [vmem:[%s1849_s20 + $0x18] sm:$0xff] }
  0x49   : > { %1103 = vmatpush.bf16.msra.mxu1 %v886_v52  ;;  %v391_v11 = vadd.s32 %v1907_v17, %v2022_v41  ;;  %v392_v12 = vadd.s32 %v1907_v17, %v293_v22  ;;  %v627_v13 = vunpack.c.l.b16 %v595_v38  ;;  %vm579_vm13 = vmpackc.low %vm446_vm4, %vm446_vm4  ;;  %v610_v15 = vsel %vm578_vm6, 65537, %v1731_v1 }
  0x4a   : > { %v1349_v19 = vunpack.i.l.s16 %v626_v39  ;;  %v611_v20 = vsel %vm579_vm13, 65537, %v1731_v1  ;;  %v642_v21 = vunpack.c.l.b16 %v610_v15  ;;  %vm443_vm8 = vcmp.eq.s32.totalorder %v409_v6, %v1932_v26  ;;  %vm561_vm9 = vmpackc.low %vm428_vm5, %vm428_vm5 }
  0x4b   : > { %v1350_v27 = vunpack.i.l.s16 %v627_v13  ;;  %v643_v28 = vunpack.c.l.b16 %v611_v20  ;;  %v592_v29 = vsel %vm560_vm7, 65537, %v1731_v1  ;;  %vm444_vm10 = vcmp.eq.s32.totalorder %v410_v7, %v1932_v26  ;;  %vm576_vm12 = vmpackc.low %vm443_vm8, %vm443_vm8  ;;  %v1516_v20 = vld [vmem:[%s1849_s20 + $0x58] sm:$0xff] }
  0x4c   : > { %vm703_vm11 = vcmp.ne.s32.totalorder %v1349_v19, %v1961_v44  ;;  %v1365_v30 = vunpack.i.l.s16 %v642_v21  ;;  %v593_v31 = vsel %vm561_vm9, 65537, %v1731_v1  ;;  %v624_v32 = vunpack.c.l.b16 %v592_v29  ;;  %vm577_vm15 = vmpackc.low %vm444_vm10, %vm444_vm10 }
  0x4d   : > { %vm704_vm14 = vcmp.ne.s32.totalorder %v1350_v27, %v1964_v45  ;;  %v1366_v34 = vunpack.i.l.s16 %v643_v28  ;;  %v625_v35 = vunpack.c.l.b16 %v593_v31  ;;  %v608_v36 = vsel %vm576_vm12, 65537, %v1731_v1  ;;  %v1507_v27 = vld [vmem:[%s1849_s20 + $0x10] sm:$0xff] }
  0x4e   : > { %vm705_vm0 = vmpackc.low %vm704_vm14, %vm703_vm11  ;;  %vm759_vm1 = vcmp.ne.s32.totalorder %v1365_v30, %v1961_v44  ;;  %v1347_v37 = vunpack.i.l.s16 %v624_v32  ;;  %v609_v40 = vsel %vm577_vm15, 65537, %v1731_v1  ;;  %v640_v41 = vunpack.c.l.b16 %v608_v36 }
  0x4f   : > { %936 = vperm.xlu0 %1613, %v349_v53   ;;  %912 = vperm.xlu2 %1615, %v341_v54   ;;  %v877_v25 = vsel %vm705_vm0, %v1973_v49, %v1510_v24  ;;  %vm760_vm2 = vcmp.ne.s32.totalorder %v1366_v34, %v1964_v45  ;;  %v1348_v43 = vunpack.i.l.s16 %v625_v35  ;;  %v641_v46 = vunpack.c.l.b16 %v609_v40 }
  0x50   : > { %939 = vperm.xlu1 %1614, %v350_v55   ;;  %1523 = vmatpush.bf16.msra.mxu2 %v877_v25  ;;  %vm761_vm3 = vmpackc.low %vm760_vm2, %vm759_vm1  ;;  %vm696_vm4 = vcmp.ne.s32.totalorder %v1347_v37, %v1961_v44  ;;  %v1363_v47 = vunpack.i.l.s16 %v640_v41  ;;  %vm425_vm5 = vcmp.eq.s32.totalorder %v391_v11, %v1932_v26  ;;  %vm426_vm6 = vcmp.eq.s32.totalorder %v392_v12, %v1932_v26 }
  0x51   : > { %1055 = vmatpush.bf16.msra.mxu0 %v877_v25  ;;  %v885_v48 = vsel %vm761_vm3, %v1973_v49, %v1518_v33  ;;  %vm697_vm13 = vcmp.ne.s32.totalorder %v1348_v43, %v1964_v45  ;;  %v1364_v51 = vunpack.i.l.s16 %v641_v46  ;;  %vm558_vm7 = vmpackc.low %vm425_vm5, %vm425_vm5  ;;  %v373_v52 = vadd.s32 176, %v1862_v2 }
  0x52   : > { %1531 = vmatpush.bf16.msra.mxu3 %v885_v48  ;;  %1104 = vmatpush.bf16.msra.mxu1 %v885_v48  ;;  %vm698_vm8 = vmpackc.low %vm697_vm13, %vm696_vm4  ;;  %vm752_vm9 = vcmp.ne.s32.totalorder %v1363_v47, %v1961_v44  ;;  %v590_v53 = vsel %vm558_vm7, 65537, %v1731_v1  ;;  %v374_v54 = vadd.s32 184, %v1862_v2  ;;  %vm423_vm10 = vcmp.eq.s32.totalorder %v2067_v9, %v1932_v26 }
  0x53   : > { %v876_v55 = vsel %vm698_vm8, %v1973_v49, %v1509_v42  ;;  %vm753_vm11 = vcmp.ne.s32.totalorder %v1364_v51, %v1964_v45  ;;  %vm559_vm12 = vmpackc.low %vm426_vm6, %vm426_vm6  ;;  %v622_v22 = vunpack.c.l.b16 %v590_v53  ;;  %v407_v56 = vadd.s32 %v1907_v17, %v373_v52  ;;  %v1506_v51 = vld [vmem:[%s1849_s20 + $0x8] sm:$0xff] }
  0x54   : > { %1524 = vmatpush.bf16.msra.mxu2 %v876_v55  ;;  %vm754_vm14 = vmpackc.low %vm753_vm11, %vm752_vm9  ;;  %v408_v23 = vadd.s32 %v1907_v17, %v374_v54  ;;  %vm424_vm15 = vcmp.eq.s32.totalorder %v2073_v14, %v1932_v26  ;;  %v371_v58 = vadd.s32 160, %v1862_v2  ;;  %v372_v10 = vadd.s32 168, %v1862_v2 }
  0x55   : > { %1056 = vmatpush.bf16.msra.mxu0 %v876_v55  ;;  %v884_v59 = vsel %vm754_vm14, %v1973_v49, %v1517_v50  ;;  %v1345_v61 = vunpack.i.l.s16 %v622_v22  ;;  %vm441_vm0 = vcmp.eq.s32.totalorder %v407_v56, %v1932_v26  ;;  %vm556_vm1 = vmpackc.low %vm423_vm10, %vm423_vm10  ;;  %v369_v33 = vadd.s32 144, %v1862_v2 }
  0x56   : > { %1532 = vmatpush.bf16.msra.mxu3 %v884_v59  ;;  %1105 = vmatpush.bf16.msra.mxu1 %v884_v59  ;;  %vm442_vm2 = vcmp.eq.s32.totalorder %v408_v23, %v1932_v26  ;;  %vm574_vm3 = vmpackc.low %vm441_vm0, %vm441_vm0  ;;  %v588_v8 = vsel %vm556_vm1, 65537, %v1731_v1  ;;  %v405_v63 = vadd.s32 %v1907_v17, %v371_v58  ;;  %v406_v6 = vadd.s32 %v1907_v17, %v372_v10 }
  0x57   : > { %915 = vperm.xlu0 %1613, %v342_v57   ;;  %v591_v57 = vsel %vm559_vm12, 65537, %v1731_v1  ;;  %vm689_vm4 = vcmp.ne.s32.totalorder %v1345_v61, %v1961_v44  ;;  %vm575_vm5 = vmpackc.low %vm442_vm2, %vm442_vm2  ;;  %v606_v9 = vsel %vm574_vm3, 65537, %v1731_v1  ;;  %v620_v5 = vunpack.c.l.b16 %v588_v8 }
  0x58   : > { %v623_v60 = vunpack.c.l.b16 %v591_v57  ;;  %v607_v38 = vsel %vm575_vm5, 65537, %v1731_v1  ;;  %v638_v39 = vunpack.c.l.b16 %v606_v9  ;;  %vm557_vm6 = vmpackc.low %vm424_vm15, %vm424_vm15  ;;  %vm439_vm13 = vcmp.eq.s32.totalorder %v405_v63, %v1932_v26  ;;  %v1505_v63 = vld [vmem:[%s1849_s20] sm:$0xff] }
  0x59   : > { %v639_v7 = vunpack.c.l.b16 %v607_v38  ;;  %v589_v11 = vsel %vm557_vm6, 65537, %v1731_v1  ;;  %v1343_v12 = vunpack.i.l.s16 %v620_v5  ;;  %vm572_vm8 = vmpackc.low %vm439_vm13, %vm439_vm13  ;;  %vm440_vm10 = vcmp.eq.s32.totalorder %v406_v6, %v1932_v26 }
  0x5a   : > { %v1346_v18 = vunpack.i.l.s16 %v623_v60  ;;  %v1361_v13 = vunpack.i.l.s16 %v638_v39  ;;  %v621_v15 = vunpack.c.l.b16 %v589_v11  ;;  %v604_v14 = vsel %vm572_vm8, 65537, %v1731_v1  ;;  %vm573_vm12 = vmpackc.low %vm440_vm10, %vm440_vm10  ;;  %v1514_v60 = vld [vmem:[%s1849_s20 + $0x48] sm:$0xff] }
  0x5b   : > { %v1362_v21 = vunpack.i.l.s16 %v639_v7  ;;  %vm682_vm11 = vcmp.ne.s32.totalorder %v1343_v12, %v1961_v44  ;;  %v636_v24 = vunpack.c.l.b16 %v604_v14  ;;  %v605_v29 = vsel %vm573_vm12, 65537, %v1731_v1  ;;  %v1513_v7 = vld [vmem:[%s1849_s20 + $0x40] sm:$0xff] }
  0x5c   : > { %vm690_vm7 = vcmp.ne.s32.totalorder %v1346_v18, %v1964_v45  ;;  %vm745_vm14 = vcmp.ne.s32.totalorder %v1361_v13, %v1961_v44  ;;  %v1344_v28 = vunpack.i.l.s16 %v621_v15  ;;  %vm421_vm15 = vcmp.eq.s32.totalorder %v2058_v4, %v1932_v26  ;;  %v1515_v4 = vld [vmem:[%s1849_s20 + $0x50] sm:$0xff] }
  0x5d   : > { %vm691_vm9 = vmpackc.low %vm690_vm7, %vm689_vm4  ;;  %vm746_vm0 = vcmp.ne.s32.totalorder %v1362_v21, %v1964_v45  ;;  %v637_v30 = vunpack.c.l.b16 %v605_v29  ;;  %v1359_v31 = vunpack.i.l.s16 %v636_v24  ;;  %vm422_vm1 = vcmp.eq.s32.totalorder %v2062_v3, %v1932_v26 }
  0x5e   : > { %v875_v19 = vsel %vm691_vm9, %v1973_v49, %v1508_v16  ;;  %vm554_vm2 = vmpackc.low %vm421_vm15, %vm421_vm15  ;;  %vm683_vm4 = vcmp.ne.s32.totalorder %v1344_v28, %v1964_v45  ;;  %v370_v34 = vadd.s32 152, %v1862_v2  ;;  %v403_v41 = vadd.s32 %v1907_v17, %v369_v33 }
  0x5f   : > { %1525 = vmatpush.bf16.msra.mxu2 %v875_v19  ;;  %1057 = vmatpush.bf16.msra.mxu0 %v875_v19  ;;  %vm747_vm3 = vmpackc.low %vm746_vm0, %vm745_vm14  ;;  %v586_v32 = vsel %vm554_vm2, 65537, %v1731_v1  ;;  %v1360_v36 = vunpack.i.l.s16 %v637_v30  ;;  %vm738_vm6 = vcmp.ne.s32.totalorder %v1359_v31, %v1961_v44  ;;  %v367_v42 = vadd.s32 128, %v1862_v2 }
  0x60   : > { %v883_v35 = vsel %vm747_vm3, %v1973_v49, %v1516_v20  ;;  %vm684_vm5 = vmpackc.low %vm683_vm4, %vm682_vm11  ;;  %v618_v37 = vunpack.c.l.b16 %v586_v32  ;;  %v404_v25 = vadd.s32 %v1907_v17, %v370_v34  ;;  %v385_v47 = vadd.s32 %v1907_v17, %v1862_v2 }
  0x61   : > { %1533 = vmatpush.bf16.msra.mxu3 %v883_v35  ;;  %1106 = vmatpush.bf16.msra.mxu1 %v883_v35  ;;  %v874_v40 = vsel %vm684_vm5, %v1973_v49, %v1507_v27  ;;  %vm555_vm13 = vmpackc.low %vm422_vm1, %vm422_vm1  ;;  %vm739_vm7 = vcmp.ne.s32.totalorder %v1360_v36, %v1964_v45  ;;  %vm437_vm9 = vcmp.eq.s32.totalorder %v403_v41, %v1932_v26  ;;  %v368_v50 = vadd.s32 136, %v1862_v2 }
  0x62   : > { %v587_v43 = vsel %vm555_vm13, 65537, %v1731_v1  ;;  %v1341_v46 = vunpack.i.l.s16 %v618_v37  ;;  %vm740_vm8 = vmpackc.low %vm739_vm7, %vm738_vm6  ;;  %vm438_vm10 = vcmp.eq.s32.totalorder %v404_v25, %v1932_v26  ;;  %vm419_vm12 = vcmp.eq.s32.totalorder %v385_v47, %v1932_v26 }
  0x63   : > { %1526 = vmatpush.bf16.msra.mxu2 %v874_v40  ;;  %1058 = vmatpush.bf16.msra.mxu0 %v874_v40  ;;  %v619_v3 = vunpack.c.l.b16 %v587_v43  ;;  %v882_v48 = vsel %vm740_vm8, %v1973_v49, %v1515_v4  ;;  %vm570_vm11 = vmpackc.low %vm437_vm9, %vm437_vm9  ;;  %vm420_vm14 = vcmp.eq.s32.totalorder %v2054_v62, %v1932_v26  ;;  %v401_v54 = vadd.s32 %v1907_v17, %v367_v42 }
  0x64   : > { %vm675_vm15 = vcmp.ne.s32.totalorder %v1341_v46, %v1961_v44  ;;  %vm571_vm0 = vmpackc.low %vm438_vm10, %vm438_vm10  ;;  %v602_v53 = vsel %vm570_vm11, 65537, %v1731_v1  ;;  %v402_v56 = vadd.s32 %v1907_v17, %v368_v50  ;;  %v889_v12 = vand.u32 127, %v285_v0 }
  0x65   : > { %1534 = vmatpush.bf16.msra.mxu3 %v882_v48  ;;  %1107 = vmatpush.bf16.msra.mxu1 %v882_v48  ;;  %v1342_v52 = vunpack.i.l.s16 %v619_v3  ;;  %v603_v55 = vsel %vm571_vm0, 65537, %v1731_v1  ;;  %v634_v22 = vunpack.c.l.b16 %v602_v53  ;;  %vm552_vm1 = vmpackc.low %vm419_vm12, %vm419_vm12  ;;  %vm435_vm5 = vcmp.eq.s32.totalorder %v401_v54, %v1932_v26 }
  0x66   : > { %v635_v2 = vunpack.c.l.b16 %v603_v55  ;;  %vm553_vm3 = vmpackc.low %vm420_vm14, %vm420_vm14  ;;  %v584_v23 = vsel %vm552_vm1, 65537, %v1731_v1  ;;  %vm436_vm7 = vcmp.eq.s32.totalorder %v402_v56, %v1932_v26  ;;  %v890_v14 = vadd.s32 128, %v889_v12 }
  0x67   : > { %vm676_vm2 = vcmp.ne.s32.totalorder %v1342_v52, %v1964_v45  ;;  %v1357_v57 = vunpack.i.l.s16 %v634_v22  ;;  %v585_v58 = vsel %vm553_vm3, 65537, %v1731_v1  ;;  %v616_v8 = vunpack.c.l.b16 %v584_v23  ;;  %vm568_vm6 = vmpackc.low %vm435_vm5, %vm435_vm5 }
  0x68   : > { %vm677_vm4 = vmpackc.low %vm676_vm2, %vm675_vm15  ;;  %v1358_v61 = vunpack.i.l.s16 %v635_v2  ;;  %v617_v10 = vunpack.c.l.b16 %v585_v58  ;;  %v600_v62 = vsel %vm568_vm6, 65537, %v1731_v1  ;;  %v2230_v19 = vadd.s32 %v889_v12, %v1907_v17 }
  0x69   : > { %v873_v59 = vsel %vm677_vm4, %v1973_v49, %v1506_v51  ;;  %vm731_vm13 = vcmp.ne.s32.totalorder %v1357_v57, %v1961_v44  ;;  %v1339_v16 = vunpack.i.l.s16 %v616_v8  ;;  %vm569_vm9 = vmpackc.low %vm436_vm7, %vm436_vm7  ;;  %v632_v9 = vunpack.c.l.b16 %v600_v62 }
  0x6a   : > { %1527 = vmatpush.bf16.msra.mxu2 %v873_v59  ;;  %1059 = vmatpush.bf16.msra.mxu0 %v873_v59  ;;  %vm732_vm8 = vcmp.ne.s32.totalorder %v1358_v61, %v1964_v45  ;;  %v1340_v18 = vunpack.i.l.s16 %v617_v10  ;;  %v601_v5 = vsel %vm569_vm9, 65537, %v1731_v1  ;;  %v2233_v20 = vadd.s32 %v890_v14, %v1907_v17 }
  0x6b   : > { %vm733_vm10 = vmpackc.low %vm732_vm8, %vm731_vm13  ;;  %vm668_vm11 = vcmp.ne.s32.totalorder %v1339_v16, %v1961_v44  ;;  %v633_v26 = vunpack.c.l.b16 %v601_v5  ;;  %v1355_v39 = vunpack.i.l.s16 %v632_v9  ;;  %v1732_v17 = vmov 1.0|1.0  }
  0x6c   : > { %v881_v38 = vsel %vm733_vm10, %v1973_v49, %v1514_v60  ;;  %vm669_vm12 = vcmp.ne.s32.totalorder %v1340_v18, %v1964_v45 }
  0x6d   : > { %1535 = vmatpush.bf16.msra.mxu3 %v881_v38  ;;  %1108 = vmatpush.bf16.msra.mxu1 %v881_v38  ;;  %vm670_vm14 = vmpackc.low %vm669_vm12, %vm668_vm11  ;;  %v1356_v11 = vunpack.i.l.s16 %v633_v26  ;;  %vm724_vm15 = vcmp.ne.s32.totalorder %v1355_v39, %v1961_v44 }
  0x6e   : > { %v872_v6 = vsel %vm670_vm14, %v1973_v49, %v1505_v63 }
  0x6f   : > { %1528 = vmatpush.bf16.msra.mxu2 %v872_v6  ;;  %1060 = vmatpush.bf16.msra.mxu0 %v872_v6  ;;  %vm725_vm0 = vcmp.ne.s32.totalorder %v1356_v11, %v1964_v45 }
  0x70   : > { %vm726_vm1 = vmpackc.low %vm725_vm0, %vm724_vm15 }
  0x71   : > { %v880_v1 = vsel %vm726_vm1, %v1973_v49, %v1513_v7 }
  0x72   : > { %1536 = vmatpush.bf16.msra.mxu3 %v880_v1  ;;  %1109 = vmatpush.bf16.msra.mxu1 %v880_v1 }
  0x89   : > { %v925_v0 = vpop.permute.xlu2 %924 }
  0x8a   : > { %vm961_vm14 = vcmp.eq.s32.totalorder %v2230_v19, %v925_v0  ;;  %vm962_vm0 = vcmp.eq.s32.totalorder %v2233_v20, %v925_v0 }
  0x91   : > { %v928_v49 = vpop.permute.xlu2 %927 }
  0x92   : > { %vm963_vm15 = vcmp.eq.s32.totalorder %v2230_v19, %v928_v49  ;;  %vm964_vm1 = vcmp.eq.s32.totalorder %v2233_v20, %v928_v49 }
  0x99   : > { %v931_v27 = vpop.permute.xlu2 %930 }
  0xa1   : > { %v919_v13 = vpop.permute.xlu0 %918  ;;  %v910_v30 = vpop.permute.xlu2 %909 }
  0xa2   : > { %v895_v15 = vpop.permute.xlu1 %894  ;;  %vm957_vm2 = vcmp.eq.s32.totalorder %v2230_v19, %v919_v13  ;;  %vm958_vm5 = vcmp.eq.s32.totalorder %v2233_v20, %v919_v13 }
  0xa3   : > { %vm941_vm8 = vcmp.eq.s32.totalorder %v2230_v19, %v895_v15  ;;  %vm942_vm10 = vcmp.eq.s32.totalorder %v2233_v20, %v895_v15 }
  0xa9   : > { %v922_v44 = vpop.permute.xlu0 %921  ;;  %v913_v34 = vpop.permute.xlu2 %912 }
  0xaa   : > { %vm959_vm3 = vcmp.eq.s32.totalorder %v2230_v19, %v922_v44  ;;  %vm960_vm4 = vcmp.eq.s32.totalorder %v2233_v20, %v922_v44  ;;  %v898_v45 = vpop.permute.xlu1 %897 }
  0xab   : > { %vm943_vm6 = vcmp.eq.s32.totalorder %v2230_v19, %v898_v45  ;;  %vm944_vm13 = vcmp.eq.s32.totalorder %v2233_v20, %v898_v45  ;;  %vm1475_vm7 = vmpackc.low %vm959_vm3, %vm957_vm2 }
  0xac   : > { %1476 = vmatmul.msk.bf16.vlgmr.msra.gmra.mxu2 %vm1475_vm7, %v1732_v17  ;;  %vm1491_vm9 = vmpackc.low %vm960_vm4, %vm958_vm5 }
  0xad   : > { %1492 = vmatmul.msk.bf16.vlgmr.msra.gmra.mxu3 %vm1491_vm9, %v1732_v17  ;;  %vm1467_vm11 = vmpackc.low %vm943_vm6, %vm941_vm8 }
  0xae   : > { %1468 = vmatmul.msk.bf16.vlgmr.msra.gmra.mxu0 %vm1467_vm11, %v1732_v17  ;;  %vm1483_vm12 = vmpackc.low %vm944_vm13, %vm942_vm10  ;;  %vm965_vm11 = vcmp.eq.s32.totalorder %v2230_v19, %v931_v27 }
  0xaf   : > { %1484 = vmatmul.msk.bf16.vlgmr.msra.gmra.mxu1 %vm1483_vm12, %v1732_v17  ;;  %vm1477_vm6 = vmpackc.low %vm963_vm15, %vm961_vm14  ;;  %vm966_vm14 = vcmp.eq.s32.totalorder %v2233_v20, %v931_v27 }
  0xb0   : > { %vm1493_vm13 = vmpackc.low %vm964_vm1, %vm962_vm0  ;;  %vm951_vm1 = vcmp.eq.s32.totalorder %v2230_v19, %v910_v30 }
  0xb1   : > { %v901_v21 = vpop.permute.xlu0 %900 }
  0xb2   : > { %v904_v24 = vpop.permute.xlu1 %903  ;;  %vm945_vm2 = vcmp.eq.s32.totalorder %v2230_v19, %v901_v21  ;;  %vm946_vm4 = vcmp.eq.s32.totalorder %v2233_v20, %v901_v21 }
  0xb3   : > { %vm947_vm3 = vcmp.eq.s32.totalorder %v2230_v19, %v904_v24  ;;  %vm948_vm5 = vcmp.eq.s32.totalorder %v2233_v20, %v904_v24 }
  0xb4   : > { %vm1469_vm7 = vmpackc.low %vm947_vm3, %vm945_vm2  ;;  %vm952_vm3 = vcmp.eq.s32.totalorder %v2233_v20, %v910_v30 }
  0xb5   : > { %vm1485_vm8 = vmpackc.low %vm948_vm5, %vm946_vm4 }
  0xb9   : > { %v934_v28 = vpop.permute.xlu0 %933 }
  0xba   : > { %v907_v29 = vpop.permute.xlu1 %906  ;;  %vm967_vm9 = vcmp.eq.s32.totalorder %v2230_v19, %v934_v28  ;;  %vm968_vm10 = vcmp.eq.s32.totalorder %v2233_v20, %v934_v28 }
  0xbb   : > { %vm949_vm12 = vcmp.eq.s32.totalorder %v2230_v19, %v907_v29  ;;  %vm950_vm15 = vcmp.eq.s32.totalorder %v2233_v20, %v907_v29  ;;  %vm1479_vm0 = vmpackc.low %vm967_vm9, %vm965_vm11 }
  0xbc   : > { %1478 = vmatmul.msk.bf16.gmra.mxu2 %vm1477_vm6, %v1732_v17  ;;  %vm1495_vm2 = vmpackc.low %vm968_vm10, %vm966_vm14 }
  0xbd   : > { %1494 = vmatmul.msk.bf16.gmra.mxu3 %vm1493_vm13, %v1732_v17  ;;  %vm1471_vm4 = vmpackc.low %vm951_vm1, %vm949_vm12  ;;  %vm953_vm12 = vcmp.eq.s32.totalorder %v2230_v19, %v913_v34 }
  0xbe   : > { %1470 = vmatmul.msk.bf16.gmra.mxu0 %vm1469_vm7, %v1732_v17  ;;  %vm1487_vm5 = vmpackc.low %vm952_vm3, %vm950_vm15  ;;  %vm954_vm15 = vcmp.eq.s32.totalorder %v2233_v20, %v913_v34 }
  0xbf   : > { %1486 = vmatmul.msk.bf16.gmra.mxu1 %vm1485_vm8, %v1732_v17 }
  0xc1   : > { %v937_v31 = vpop.permute.xlu0 %936 }
  0xc2   : > { %v940_v32 = vpop.permute.xlu1 %939  ;;  %vm969_vm6 = vcmp.eq.s32.totalorder %v2230_v19, %v937_v31  ;;  %vm970_vm7 = vcmp.eq.s32.totalorder %v2233_v20, %v937_v31 }
  0xc3   : > { %vm971_vm13 = vcmp.eq.s32.totalorder %v2230_v19, %v940_v32  ;;  %vm972_vm8 = vcmp.eq.s32.totalorder %v2233_v20, %v940_v32 }
  0xc4   : > { %vm1481_vm10 = vmpackc.low %vm971_vm13, %vm969_vm6 }
  0xc5   : > { %vm1497_vm14 = vmpackc.low %vm972_vm8, %vm970_vm7 }
  0xc9   : > { %v916_v33 = vpop.permute.xlu0 %915 }
  0xca   : > { %vm955_vm9 = vcmp.eq.s32.totalorder %v2230_v19, %v916_v33  ;;  %vm956_vm11 = vcmp.eq.s32.totalorder %v2233_v20, %v916_v33 }
  0xcb   : > { %vm1489_vm1 = vmpackc.low %vm956_vm11, %vm954_vm15 }
  0xcc   : > { %1480 = vmatmul.msk.bf16.gmra.mxu2 %vm1479_vm0, %v1732_v17  ;;  %vm1473_vm0 = vmpackc.low %vm955_vm9, %vm953_vm12 }
  0xcd   : > { %1496 = vmatmul.msk.bf16.gmra.mxu3 %vm1495_vm2, %v1732_v17 }
  0xce   : > { %1472 = vmatmul.msk.bf16.gmra.mxu0 %vm1471_vm4, %v1732_v17 }
  0xcf   : > { %1488 = vmatmul.msk.bf16.gmra.mxu1 %vm1487_vm5, %v1732_v17 }
  0xdc   : > { %1482 = vmatmul.msk.bf16.gmra.mxu2 %vm1481_vm10, %v1732_v17 }
  0xdd   : > { %1498 = vmatmul.msk.bf16.gmra.mxu3 %vm1497_vm14, %v1732_v17 }
  0xde   : > { %1474 = vmatmul.msk.bf16.gmra.mxu0 %vm1473_vm0, %v1732_v17 }
  0xdf   : > { %1490 = vmatmul.msk.bf16.gmra.mxu1 %vm1489_vm1, %v1732_v17 }
 0x12b   : > { %v1062_v35 = vpop.f32.mrf.mxu0 }
 0x12c   : > { %v1111_v4 = vpop.f32.mrf.mxu1 }
 0x12d   : > { %v2283_v36 = vadd.f32 %v1111_v4, %v1062_v35 }
 0x12f   : > { %v1082_v37 = vpop.f32.mrf.mxu2 }
 0x130   : > { %v1131_v40 = vpop.f32.mrf.mxu3 }
 0x131   : > { %v2285_v41 = vadd.f32 %v1131_v40, %v1082_v37 }
 0x133   : > { %v1064_v25 = vpop.f32.mrf.mxu0 }
 0x134   : > { %v1113_v42 = vpop.f32.mrf.mxu1 }
 0x135   : > { %v2287_v43 = vadd.f32 %v1113_v42, %v1064_v25 }
 0x137   : > { %v1084_v46 = vpop.f32.mrf.mxu2 }
 0x138   : > { %v1133_v47 = vpop.f32.mrf.mxu3 }
 0x139   : > { %v2289_v3 = vadd.f32 %v1133_v47, %v1084_v46 }
 0x13b   : > { %v1067_v48 = vpop.f32.mrf.mxu0 }
 0x13c   : > { %v1116_v50 = vpop.f32.mrf.mxu1 }
 0x13d   : > { %v2291_v51 = vadd.f32 %v1116_v50, %v1067_v48 }
 0x13f   : > { %v1087_v52 = vpop.f32.mrf.mxu2 }
 0x140   : > { %v1136_v53 = vpop.f32.mrf.mxu3 }
 0x141   : > { %v2293_v54 = vadd.f32 %v1136_v53, %v1087_v52 }
 0x143   : > { %v1069_v55 = vpop.f32.mrf.mxu0 }
 0x144   : > { %v1118_v22 = vpop.f32.mrf.mxu1 }
 0x145   : > { %v2295_v56 = vadd.f32 %v1118_v22, %v1069_v55 }
 0x147   : > { %v1089_v2 = vpop.f32.mrf.mxu2 }
 0x148   : > { %v1138_v57 = vpop.f32.mrf.mxu3 }
 0x149   : > { %v2297_v23 = vadd.f32 %v1138_v57, %v1089_v2 }
 0x14b   : > { %v1072_v58 = vpop.f32.mrf.mxu0 }
 0x14c   : > { %v1121_v59 = vpop.f32.mrf.mxu1 }
 0x14d   : > { %v2299_v60 = vadd.f32 %v1121_v59, %v1072_v58 }
 0x14f   : > { %v1092_v61 = vpop.f32.mrf.mxu2 }
 0x150   : > { %v1141_v8 = vpop.f32.mrf.mxu3 }
 0x151   : > { %v2301_v10 = vadd.f32 %v1141_v8, %v1092_v61 }
 0x153   : > { %v1074_v62 = vpop.f32.mrf.mxu0 }
 0x154   : > { %v1123_v63 = vpop.f32.mrf.mxu1 }
 0x155   : > { %v2303_v16 = vadd.f32 %v1123_v63, %v1074_v62 }
 0x157   : > { %v1094_v18 = vpop.f32.mrf.mxu2 }
 0x158   : > { %v1143_v9 = vpop.f32.mrf.mxu3 }
 0x159   : > { %v2305_v5 = vadd.f32 %v1143_v9, %v1094_v18 }
 0x15b   : > { %v1077_v38 = vpop.f32.mrf.mxu0 }
 0x15c   : > { %v1126_v26 = vpop.f32.mrf.mxu1 }
 0x15d   : > { %v2307_v39 = vadd.f32 %v1126_v26, %v1077_v38 }
 0x15f   : > { %v1097_v6 = vpop.f32.mrf.mxu2 }
 0x160   : > { %v1146_v7 = vpop.f32.mrf.mxu3 }
 0x161   : > { %v2309_v11 = vadd.f32 %v1146_v7, %v1097_v6 }
 0x163   : > { %v1079_v1 = vpop.f32.mrf.mxu0 }
 0x164   : > { %v1128_v12 = vpop.f32.mrf.mxu1 }
 0x165   : > { %v1129_v13 = vadd.f32 %v1128_v12, %v1079_v1  ;;  %1154 = sbr.rel (%p1499_p2) target bundleno = 379 (0x17b), region = 44 }
 0x167   : > { %v1099_v15 = vpop.f32.mrf.mxu2 }
 0x168   : > { %v1148_v14 = vpop.f32.mrf.mxu3 }
 0x169   : > { %v2311_v19 = vadd.f32 %v1148_v14, %v1099_v15 }
 0x16a   : > { %v1155_v20 = vld [vmem:[%s2453_s4] sm:$0xff]  ;;  %v1156_v44 = vld [vmem:[%s2453_s4 + $0x8] sm:$0xff]  ;;  %v1157_v45 = vld [vmem:[%s2453_s4 + $0x10] sm:$0xff] }
 0x16b   : > { %1171 = vst [vmem:[%s1867_s21] sm:$0xff] %v1155_v20  ;;  %v1158_v0 = vld [vmem:[%s2453_s4 + $0x18] sm:$0xff]  ;;  %v1159_v17 = vld [vmem:[%s2453_s4 + $0x20] sm:$0xff]  ;;  %v1160_v49 = vld [vmem:[%s2453_s4 + $0x28] sm:$0xff] }
 0x16c   : > { %1172 = vst [vmem:[%s1867_s21 + $0x8] sm:$0xff] %v1156_v44  ;;  %v1161_v21 = vld [vmem:[%s2453_s4 + $0x30] sm:$0xff]  ;;  %v1162_v24 = vld [vmem:[%s2453_s4 + $0x38] sm:$0xff]  ;;  %v1163_v27 = vld [vmem:[%s2453_s4 + $0x40] sm:$0xff] }
 0x16d   : > { %1173 = vst [vmem:[%s1867_s21 + $0x10] sm:$0xff] %v1157_v45  ;;  %v1164_v28 = vld [vmem:[%s2453_s4 + $0x48] sm:$0xff]  ;;  %v1165_v29 = vld [vmem:[%s2453_s4 + $0x50] sm:$0xff]  ;;  %v1166_v30 = vld [vmem:[%s2453_s4 + $0x58] sm:$0xff] }
 0x16e   : > { %1174 = vst [vmem:[%s1867_s21 + $0x18] sm:$0xff] %v1158_v0  ;;  %v1167_v31 = vld [vmem:[%s2453_s4 + $0x60] sm:$0xff]  ;;  %v1168_v32 = vld [vmem:[%s2453_s4 + $0x68] sm:$0xff]  ;;  %v1169_v33 = vld [vmem:[%s2453_s4 + $0x70] sm:$0xff] }
 0x16f   : > { %1175 = vst [vmem:[%s1867_s21 + $0x20] sm:$0xff] %v1159_v17  ;;  %v1170_v34 = vld [vmem:[%s2453_s4 + $0x78] sm:$0xff] }
 0x170   : > { %1176 = vst [vmem:[%s1867_s21 + $0x28] sm:$0xff] %v1160_v49 }
 0x171   : > { %1177 = vst [vmem:[%s1867_s21 + $0x30] sm:$0xff] %v1161_v21 }
 0x172   : > { %1178 = vst [vmem:[%s1867_s21 + $0x38] sm:$0xff] %v1162_v24 }
 0x173   : > { %1179 = vst [vmem:[%s1867_s21 + $0x40] sm:$0xff] %v1163_v27 }
 0x174   : > { %1180 = vst [vmem:[%s1867_s21 + $0x48] sm:$0xff] %v1164_v28 }
 0x175   : > { %1181 = vst [vmem:[%s1867_s21 + $0x50] sm:$0xff] %v1165_v29 }
 0x176   : > { %1182 = vst [vmem:[%s1867_s21 + $0x58] sm:$0xff] %v1166_v30 }
 0x177   : > { %1183 = vst [vmem:[%s1867_s21 + $0x60] sm:$0xff] %v1167_v31 }
 0x178   : > { %1184 = vst [vmem:[%s1867_s21 + $0x68] sm:$0xff] %v1168_v32 }
 0x179   : > { %1185 = vst [vmem:[%s1867_s21 + $0x70] sm:$0xff] %v1169_v33 }
 0x17a   : > { %1186 = vst [vmem:[%s1867_s21 + $0x78] sm:$0xff] %v1170_v34 }
 0x17b PF: > { %v1187_v35 = vld [vmem:[%s1867_s21] sm:$0xff]  ;;  %v1188_v4 = vld [vmem:[%s1867_s21 + $0x8] sm:$0xff]  ;;  %v1189_v37 = vld [vmem:[%s1867_s21 + $0x10] sm:$0xff] }
 0x17c   : > { %v1203_v40 = vadd.f32 %v1187_v35, %v2283_v36  ;;  %v1204_v25 = vadd.f32 %v1188_v4, %v2287_v43  ;;  %v1205_v42 = vadd.f32 %v1189_v37, %v2291_v51  ;;  %v1190_v46 = vld [vmem:[%s1867_s21 + $0x18] sm:$0xff]  ;;  %v1191_v47 = vld [vmem:[%s1867_s21 + $0x20] sm:$0xff]  ;;  %v1192_v48 = vld [vmem:[%s1867_s21 + $0x28] sm:$0xff] }
 0x17d   : > { %v1206_v50 = vadd.f32 %v1190_v46, %v2295_v56  ;;  %v1193_v52 = vld [vmem:[%s1867_s21 + $0x30] sm:$0xff]  ;;  %v1207_v53 = vadd.f32 %v1191_v47, %v2299_v60  ;;  %v1194_v36 = vld [vmem:[%s1867_s21 + $0x38] sm:$0xff]  ;;  %v1208_v43 = vadd.f32 %v1192_v48, %v2303_v16  ;;  %v1195_v51 = vld [vmem:[%s1867_s21 + $0x40] sm:$0xff] }
 0x17e   : > { %1219 = vst [vmem:[%s1867_s21] sm:$0xff] %v1203_v40  ;;  %v1209_v55 = vadd.f32 %v1193_v52, %v2307_v39  ;;  %v1196_v22 = vld [vmem:[%s1867_s21 + $0x48] sm:$0xff]  ;;  %v1210_v56 = vadd.f32 %v1194_v36, %v1129_v13  ;;  %v1197_v2 = vld [vmem:[%s1867_s21 + $0x50] sm:$0xff]  ;;  %v1211_v57 = vadd.f32 %v1195_v51, %v2285_v41  ;;  %v1198_v58 = vld [vmem:[%s1867_s21 + $0x58] sm:$0xff] }
 0x17f   : > { %1220 = vst [vmem:[%s1867_s21 + $0x8] sm:$0xff] %v1204_v25  ;;  %v1212_v59 = vadd.f32 %v1196_v22, %v2289_v3  ;;  %v1199_v60 = vld [vmem:[%s1867_s21 + $0x60] sm:$0xff]  ;;  %v1213_v61 = vadd.f32 %v1197_v2, %v2293_v54  ;;  %v1200_v8 = vld [vmem:[%s1867_s21 + $0x68] sm:$0xff]  ;;  %v1214_v62 = vadd.f32 %v1198_v58, %v2297_v23 }
 0x180   : > { %1221 = vst [vmem:[%s1867_s21 + $0x10] sm:$0xff] %v1205_v42  ;;  %v1201_v63 = vld [vmem:[%s1867_s21 + $0x70] sm:$0xff]  ;;  %v1215_v41 = vadd.f32 %v1199_v60, %v2301_v10  ;;  %v1216_v3 = vadd.f32 %v1200_v8, %v2305_v5 }
 0x181   : > { %1222 = vst [vmem:[%s1867_s21 + $0x18] sm:$0xff] %v1206_v50  ;;  %v1202_v16 = vld [vmem:[%s1867_s21 + $0x78] sm:$0xff]  ;;  %v1217_v18 = vadd.f32 %v1201_v63, %v2309_v11 }
 0x182   : > { %1223 = vst [vmem:[%s1867_s21 + $0x20] sm:$0xff] %v1207_v53  ;;  %v1218_v54 = vadd.f32 %v1202_v16, %v2311_v19 }
 0x183   : > { %1224 = vst [vmem:[%s1867_s21 + $0x28] sm:$0xff] %v1208_v43 }
 0x184   : > { %1225 = vst [vmem:[%s1867_s21 + $0x30] sm:$0xff] %v1209_v55 }
 0x185   : > { %1226 = vst [vmem:[%s1867_s21 + $0x38] sm:$0xff] %v1210_v56 }
 0x186   : > { %1227 = vst [vmem:[%s1867_s21 + $0x40] sm:$0xff] %v1211_v57 }
 0x187   : > { %1228 = vst [vmem:[%s1867_s21 + $0x48] sm:$0xff] %v1212_v59 }
 0x188   : > { %1229 = vst [vmem:[%s1867_s21 + $0x50] sm:$0xff] %v1213_v61 }
 0x189   : > { %1230 = vst [vmem:[%s1867_s21 + $0x58] sm:$0xff] %v1214_v62 }
 0x18a   : > { %1231 = vst [vmem:[%s1867_s21 + $0x60] sm:$0xff] %v1215_v41 }
 0x18b   : > { %1232 = vst [vmem:[%s1867_s21 + $0x68] sm:$0xff] %v1216_v3 }
 0x18c   : > { %1233 = vst [vmem:[%s1867_s21 + $0x70] sm:$0xff] %v1217_v18 }
 0x18d   : > { %1234 = vst [vmem:[%s1867_s21 + $0x78] sm:$0xff] %v1218_v54 }
 0x18e PF: > { %s28_s8 = sadd.s32 1, %s1726_s8   ;;  %s2458_s27 = smov %s1702_s28 }
 0x18f   : > { %p25_p3 = scmp.ge.s32.totalorder %s28_s8, 6   ;;  %s2459_s28 = smov %s1706_s29 }
 0x190   : > { %s2460_s29 = smov %s1832_s15  ;;  %s2461_s30 = smov %s1718_s7 }
 0x191   : > { %s2462_s0 = smov %s1722_s1  ;;  %s2463_s7 = smov %s2466_s10 }
 0x192   : > { %s2464_s1 = smov %s2470_s11  ;;  %27 = sbr.rel (!%p25_p3) target bundleno = 11 (0xb), region = 83 }
 0x197   :  { %1256 = vsyncpa [#allocation6], 1 }
 0x198   :  { %1258 = vsyncpa [#allocation6 + $0x1], 1 }

// kernel: frozen_clip_embedder_forward.3
= control target key start
LH: loop header
LB: loop body
LE: loop exit
PB: predicated region body
PF: predicated region fallthrough
CT: control target
= control target key end

     0   :  { %s8931_s30 = smov 0   ;;  %s8933_s20 = smov 0   ;;  %s12002_s0 = inlined_call_operand.vmem [shape: f32[2,128,128], index: 0, kind: input, shape index: {}]   ;;  %s12003_s1 = inlined_call_operand.vmem [shape: f32[2,1,128], index: 1, kind: input, shape index: {}]   ;;  %s12004_s2 = inlined_call_operand.vmem [shape: f32[2,1,128], index: 2, kind: input, shape index: {}]   ;;  %s12005_s3 = inlined_call_operand.vmem [shape: bf16[2,4,128,32], index: 3, kind: input, shape index: {}]   ;;  %s12006_s4 = inlined_call_operand.vmem [shape: f32[2,4,1,32], index: 4, kind: input, shape index: {}]   ;;  %s12007_s5 = inlined_call_operand.vmem [shape: bf16[2,4,128,32], index: 5, kind: input, shape index: {}]   ;;  %s12008_s6 = inlined_call_operand.vmem [shape: f32[2,4,1,32], index: 6, kind: input, shape index: {}]   ;;  %s12009_s7 = inlined_call_operand.vmem [shape: bf16[2,4,128,32], index: 7, kind: input, shape index: {}]   ;;  %s12010_s8 = inlined_call_operand.vmem [shape: f32[2,4,1,32], index: 8, kind: input, shape index: {}]   ;;  %s12011_s9 = inlined_call_operand.vmem [shape: bf16[2,4,32,128], index: 9, kind: input, shape index: {}]   ;;  %s12012_s10 = inlined_call_operand.vmem [shape: f32[2,1,128], index: 10, kind: input, shape index: {}]   ;;  %s12013_s11 = inlined_call_operand.vmem [shape: f32[2,1,128], index: 11, kind: input, shape index: {}]   ;;  %s12014_s12 = inlined_call_operand.vmem [shape: f32[2,1,128], index: 12, kind: input, shape index: {}]   ;;  %s12015_s13 = inlined_call_operand.vmem [shape: bf16[2,128,512], index: 13, kind: input, shape index: {}]   ;;  %s12016_s14 = inlined_call_operand.vmem [shape: f32[2,1,512], index: 14, kind: input, shape index: {}]   ;;  %s12017_s15 = inlined_call_operand.vmem [shape: bf16[2,512,128], index: 15, kind: input, shape index: {}]   ;;  %s12018_s16 = inlined_call_operand.vmem [shape: f32[2,1,128], index: 16, kind: input, shape index: {}]   ;;  %s12019_s17 = inlined_call_operand.vmem [shape: f32[1,128], index: 17, kind: input, shape index: {}]   ;;  %s12020_s18 = inlined_call_operand.vmem [shape: f32[1,128], index: 18, kind: input, shape index: {}]   ;;  %s12021_s19 = inlined_call_operand.vmem [shape: f32[2,128,128], index: 19, kind: output, shape index: {}]  }
   0x1   :  { %12063 = sst [smem:[#allocation41_spill]] %s12002_s0  ;;  %s8929_s0 = smov 0  }
   0x2   :  { %12064 = sst [smem:[#allocation42_spill]] %s12003_s1  ;;  %s8935_s21 = smov 0  }
   0x3   :  { %12065 = sst [smem:[#allocation43_spill]] %s12004_s2  ;;  %s8937_s1 = smov 0  }
   0x4   :  { %12066 = sst [smem:[#allocation44_spill]] %s12005_s3 }
   0x5   :  { %12067 = sst [smem:[#allocation45_spill]] %s12006_s4 }
   0x6   :  { %12068 = sst [smem:[#allocation46_spill]] %s12007_s5 }
   0x7   :  { %12069 = sst [smem:[#allocation47_spill]] %s12008_s6 }
   0x8   :  { %12070 = sst [smem:[#allocation48_spill]] %s12009_s7 }
   0x9   :  { %12071 = sst [smem:[#allocation49_spill]] %s12010_s8 }
   0xa   :  { %12072 = sst [smem:[#allocation50_spill]] %s12011_s9 }
   0xb   :  { %12073 = sst [smem:[#allocation51_spill]] %s12013_s11 }
   0xc   :  { %12074 = sst [smem:[#allocation52_spill]] %s12014_s12 }
   0xd   :  { %12075 = sst [smem:[#allocation53_spill]] %s12015_s13 }
   0xe   :  { %12076 = sst [smem:[#allocation54_spill]] %s12017_s15 }
   0xf   :  { %12077 = sst [smem:[#allocation55_spill]] %s12018_s16 }
  0x10   :  { %12078 = sst [smem:[#allocation56_spill]] %s12019_s17 }
  0x11   :  { %12079 = sst [smem:[#allocation57_spill]] %s12020_s18 }
  0x12   :  { %12080 = sst [smem:[#allocation58_spill]] %s12021_s19 }
  0x13 LB: > { %12081 = sst [smem:[#allocation3_spill]] %s8809_s0  ;;  %s38_s22 = sadd.s32 1, %s8817_s20  ;;  %s8825_s1 = sphi %s8937_s1, %s29_s1   ;;  %s8821_s21 = sphi %s8935_s21, %s12215_s21   ;;  %s8817_s20 = sphi %s8933_s20, %s12214_s20   ;;  %s8813_s30 = sphi %s8931_s30, %s12213_s30   ;;  %s8809_s0 = sphi %s8929_s0, %s12212_s0  }
  0x14   : > { %12082 = sst [smem:[#allocation4_spill]] %s8817_s20  ;;  %s41_s2 = sadd.s32 1, %s8821_s21 }
  0x15   : > { %12083 = sst [smem:[#allocation5_spill]] %s8821_s21  ;;  %p39_p0 = scmp.ge.s32.totalorder %s38_s22, 2 }
  0x16   : > { %12084 = sst [smem:[#allocation6_spill]] %s8825_s1  ;;  %p6980_p1 = scmp.ge.s32.totalorder %s8825_s1, 1 }
  0x17   : > { %p693_p2 = scmp.lt.s32.totalorder %s8825_s1, 5  ;;  %s12217_s22 = smov (%p39_p0, %s38_s22), 0 }
  0x18   : > { %12085 = sst [smem:[#allocation7_spill]] %s12217_s22  ;;  %s12219_s2 = smov (!%p39_p0, %s41_s2), %s8821_s21 }
  0x19   : > { %p694_p3 = pnand %p6980_p1, %p693_p2  ;;  %p43_p4 = scmp.ge.s32.totalorder %s12219_s2, 2 }
  0x1b   : > { %s12221_s2 = smov (%p43_p4, %s12219_s2), 0  ;;  %697 = sbr.rel (%p694_p3) target bundleno = 4949 (0x1355), region = 96 }
  0x1c   : > { %12086 = sst [smem:[#allocation8_spill]] %s12221_s2 }
  0x20   : > { %p813_p5 = scmp.lt.s32.totalorder %s8813_s30, 1  ;;  %p818_p6 = scmp.lt.s32.totalorder %s8809_s0, 1 }
  0x21   : > { %s12087_s26 = sld [smem:[#allocation41_spill]] }
  0x22   : > { %s12223_s30 = smov (!%p813_p5, %s8813_s30), 1  ;;  %s12091_s16 = sld [smem:[#allocation44_spill]] }
  0x23   : > { %s8963_s23 = scalar_select %p818_p6, %s8809_s0, 1 }
  0x24   : > { %s7906_s24 = sshll.u32 %s12223_s30, 7  ;;  %s12092_s4 = sld [smem:[#allocation45_spill]] }
  0x25   : > { %s7907_s17 = sshll.u32 %s8963_s23, 8  ;;  %s6985_s15 = sshll.u32 %s8963_s23, 2 }
  0x26   : > { %s12093_s5 = sld [smem:[#allocation46_spill]]  ;;  %s7910_s3 = sshll.u32 %s8963_s23, 6 }
  0x27   : > { %s8968_s27 = scalar_lea.vmem %s12087_s26, %s7906_s24  ;;  %s12094_s6 = sld [smem:[#allocation47_spill]] }
  0x28   : > { %12088 = sst [smem:[#allocation9_spill]] %s8968_s27  ;;  %s8982_s30 = scalar_lea.vmem %s12091_s16, %s7907_s17 }
  0x29   : > { %s12095_s7 = sld [smem:[#allocation48_spill]] }
  0x2a   : > { %s8988_s26 = scalar_lea.vmem %s12092_s4, %s6985_s15  ;;  %s12096_s8 = sld [smem:[#allocation49_spill]] }
  0x2b   : > { %s12097_s9 = sld [smem:[#allocation50_spill]]  ;;  %s9040_s4 = scalar_lea.vmem %s12016_s14, %s6985_s15 }
  0x2c   : > { %s8993_s2 = scalar_lea.vmem %s12093_s5, %s7907_s17  ;;  %s12098_s11 = sld [smem:[#allocation51_spill]] }
  0x2d   : > { %s8998_s1 = scalar_lea.vmem %s12094_s6, %s6985_s15  ;;  %s12099_s12 = sld [smem:[#allocation52_spill]] }
  0x2e   : > { %s12101_s13 = sld [smem:[#allocation53_spill]] }
  0x2f   : > { %s9003_s16 = scalar_lea.vmem %s12095_s7, %s7907_s17  ;;  %s12102_s5 = sld [smem:[#allocation54_spill]] }
  0x30   : > { %s9008_s25 = scalar_lea.vmem %s12096_s8, %s6985_s15  ;;  %s12103_s7 = sld [smem:[#allocation55_spill]] }
  0x31   : > { %s9014_s28 = scalar_lea.vmem %s12097_s9, %s7910_s3  ;;  %s12104_s8 = sld [smem:[#allocation58_spill]] }
  0x32   : > { %s9024_s19 = scalar_lea.vmem %s12098_s11, %s8963_s23 }
  0x33   : > { %s9030_s18 = scalar_lea.vmem %s12099_s12, %s8963_s23 }
  0x34   : > { %12100 = sst [smem:[#allocation10_spill]] %s9030_s18  ;;  %s9035_s22 = scalar_lea.vmem %s12101_s13, %s7907_s17 }
  0x35   : > { %s9045_s6 = scalar_lea.vmem %s12102_s5, %s7907_s17  ;;  %s12105_s13 = sld [smem:[#allocation3_spill]] }
  0x36   : > { %s9051_s0 = scalar_lea.vmem %s12103_s7, %s8963_s23 }
  0x37   : > { %s9056_s29 = scalar_lea.vmem %s12104_s8, %s7906_s24 }
  0x3b   : > { %p7001_p7 = scmp.ne.s32.totalorder %s12105_s13, 0 }
  0x3c   : > { %s12106_s15 = sld [smem:[#allocation9_spill]] (!%p7001_p7) }
  0x3d   : > { %891 = sbr.rel (%p7001_p7) target bundleno = 83 (0x53), region = 100 }
  0x42   : > { %v892_v0 = vld [vmem:[%s12106_s15] sm:$0xff]  ;;  %v893_v1 = vld [vmem:[%s12106_s15 + $0x8] sm:$0xff]  ;;  %v894_v2 = vld [vmem:[%s12106_s15 + $0x10] sm:$0xff] }
  0x43   : > { %908 = vst [vmem:[#allocation2 + $0x30] sm:$0xff] %v892_v0  ;;  %v895_v3 = vld [vmem:[%s12106_s15 + $0x18] sm:$0xff]  ;;  %v896_v4 = vld [vmem:[%s12106_s15 + $0x20] sm:$0xff]  ;;  %v897_v5 = vld [vmem:[%s12106_s15 + $0x28] sm:$0xff] }
  0x44   : > { %909 = vst [vmem:[#allocation2] sm:$0xff] %v893_v1  ;;  %v898_v6 = vld [vmem:[%s12106_s15 + $0x30] sm:$0xff]  ;;  %v899_v7 = vld [vmem:[%s12106_s15 + $0x38] sm:$0xff]  ;;  %v900_v8 = vld [vmem:[%s12106_s15 + $0x40] sm:$0xff] }
  0x45   : > { %910 = vst [vmem:[#allocation2 + $0x58] sm:$0xff] %v894_v2  ;;  %v901_v9 = vld [vmem:[%s12106_s15 + $0x48] sm:$0xff]  ;;  %v902_v10 = vld [vmem:[%s12106_s15 + $0x50] sm:$0xff]  ;;  %v903_v11 = vld [vmem:[%s12106_s15 + $0x58] sm:$0xff] }
  0x46   : > { %911 = vst [vmem:[#allocation2 + $0x18] sm:$0xff] %v895_v3  ;;  %v904_v12 = vld [vmem:[%s12106_s15 + $0x60] sm:$0xff]  ;;  %v905_v13 = vld [vmem:[%s12106_s15 + $0x68] sm:$0xff]  ;;  %v906_v14 = vld [vmem:[%s12106_s15 + $0x70] sm:$0xff] }
  0x47   : > { %912 = vst [vmem:[#allocation2 + $0x50] sm:$0xff] %v896_v4  ;;  %v907_v15 = vld [vmem:[%s12106_s15 + $0x78] sm:$0xff] }
  0x48   : > { %913 = vst [vmem:[#allocation2 + $0x68] sm:$0xff] %v897_v5 }
  0x49   : > { %914 = vst [vmem:[#allocation2 + $0x8] sm:$0xff] %v898_v6 }
  0x4a   : > { %915 = vst [vmem:[#allocation2 + $0x48] sm:$0xff] %v899_v7 }
  0x4b   : > { %916 = vst [vmem:[#allocation2 + $0x40] sm:$0xff] %v900_v8 }
  0x4c   : > { %917 = vst [vmem:[#allocation2 + $0x20] sm:$0xff] %v901_v9 }
  0x4d   : > { %918 = vst [vmem:[#allocation2 + $0x10] sm:$0xff] %v902_v10 }
  0x4e   : > { %919 = vst [vmem:[#allocation2 + $0x38] sm:$0xff] %v903_v11 }
  0x4f   : > { %920 = vst [vmem:[#allocation2 + $0x60] sm:$0xff] %v904_v12 }
  0x50   : > { %921 = vst [vmem:[#allocation2 + $0x70] sm:$0xff] %v905_v13 }
  0x51   : > { %922 = vst [vmem:[#allocation2 + $0x78] sm:$0xff] %v906_v14 }
  0x52   : > { %923 = vst [vmem:[#allocation2 + $0x28] sm:$0xff] %v907_v15 }
  0x53 PF: > { %v926_v16 = vld [vmem:[#allocation2 + $0x58] sm:$0xff]  ;;  %v924_v17 = vld [vmem:[#allocation2 + $0x30] sm:$0xff]  ;;  %v925_v20 = vld [vmem:[#allocation2] sm:$0xff]  ;;  %v8827_v23 = vmov 128.0   ;;  %s12110_s12 = sld [smem:[#allocation42_spill]] }
  0x54   : > { %946 = vadd.xlane.f32.xlu1 %v926_v16  ;;  %942 = vadd.xlane.f32.xlu0 %v924_v17  ;;  %v928_v18 = vld [vmem:[#allocation2 + $0x50] sm:$0xff]  ;;  %v927_v19 = vld [vmem:[#allocation2 + $0x18] sm:$0xff]  ;;  %v929_v21 = vld [vmem:[#allocation2 + $0x68] sm:$0xff]  ;;  %8154 = vrcp.f32 %v8827_v23  ;;  %s12112_s21 = sld [smem:[#allocation43_spill]] }
  0x55   : > { %950 = vadd.xlane.f32.xlu2 %v928_v18  ;;  %v930_v22 = vld [vmem:[#allocation2 + $0x8] sm:$0xff]  ;;  %v9104_v52 = vld [vmem:[#allocation2 + $0x40] sm:$0xff]  ;;  %v9114_v58 = vld [vmem:[#allocation2 + $0x38] sm:$0xff] }
  0x56   : > { %v9090_v44 = vld [vmem:[#allocation2 + $0x48] sm:$0xff]  ;;  %v9116_v59 = vld [vmem:[#allocation2 + $0x20] sm:$0xff]  ;;  %v9126_v63 = vld [vmem:[#allocation2 + $0x10] sm:$0xff] }
  0x57   : > { %v9124_v62 = vld [vmem:[#allocation2 + $0x60] sm:$0xff]  ;;  %v9130_v0 = vld [vmem:[#allocation2 + $0x70] sm:$0xff]  ;;  %v7921_v2 = vld [vmem:[%s8982_s30 + $0x38] sm:$0xff] }
  0x58   : > { %v9133_v1 = vld [vmem:[#allocation2 + $0x78] sm:$0xff]  ;;  %1434 = vmatpush.bf16.msra.mxu0 %v7921_v2  ;;  %v7920_v5 = vld [vmem:[%s8982_s30 + $0x30] sm:$0xff]  ;;  %v7919_v8 = vld [vmem:[%s8982_s30 + $0x28] sm:$0xff] }
  0x59   : > { %v7929_v3 = vld [vmem:[%s8993_s2 + $0x38] sm:$0xff]  ;;  %v7928_v6 = vld [vmem:[%s8993_s2 + $0x30] sm:$0xff]  ;;  %v7927_v9 = vld [vmem:[%s8993_s2 + $0x28] sm:$0xff]  ;;  %s12111_s13 = scalar_lea.vmem %s12110_s12, %s8963_s23 }
  0x5a   : > { %v8155_v24 = vpop.eup %8154  ;;  %v7937_v4 = vld [vmem:[%s9003_s16 + $0x38] sm:$0xff]  ;;  %1551 = vmatpush.bf16.msra.mxu1 %v7929_v3  ;;  %v7936_v7 = vld [vmem:[%s9003_s16 + $0x30] sm:$0xff]  ;;  %v7935_v10 = vld [vmem:[%s9003_s16 + $0x28] sm:$0xff]  ;;  %s12113_s18 = scalar_lea.vmem %s12112_s21, %s8963_s23 }
  0x5b   : > { %v975_v25 = vmul.f32 128.0, %v8155_v24  ;;  %vm979_vm0 = vweird.f32 %v8155_v24  ;;  %1668 = vmatpush.bf16.msra.mxu2 %v7937_v4  ;;  %v7918_v11 = vld [vmem:[%s8982_s30 + $0x20] sm:$0xff]  ;;  %v7917_v14 = vld [vmem:[%s8982_s30 + $0x18] sm:$0xff] }
  0x5c   : > { %948 = vadd.xlane.f32.xlu1 %v927_v19  ;;  %944 = vadd.xlane.f32.xlu0 %v925_v20  ;;  %v7926_v12 = vld [vmem:[%s8993_s2 + $0x20] sm:$0xff]  ;;  %v7925_v15 = vld [vmem:[%s8993_s2 + $0x18] sm:$0xff] }
  0x5d   : > { %952 = vadd.xlane.f32.xlu2 %v929_v21  ;;  %v976_v26 = vsub.f32 1.0, %v975_v25  ;;  %1435 = vmatpush.bf16.msra.mxu0 %v7920_v5  ;;  %v7934_v13 = vld [vmem:[%s9003_s16 + $0x20] sm:$0xff] }
  0x5e   : > { %1552 = vmatpush.bf16.msra.mxu1 %v7928_v6 }
  0x5f   : > { %v977_v27 = vmul.f32 %v8155_v24, %v976_v26  ;;  %1669 = vmatpush.bf16.msra.mxu2 %v7936_v7  ;;  %v7914_v26 = vld [vmem:[%s8982_s30] sm:$0xff] }
  0x61   : > { %v978_v28 = vadd.f32 %v8155_v24, %v977_v27  ;;  %1436 = vmatpush.bf16.msra.mxu0 %v7919_v8  ;;  %v7922_v27 = vld [vmem:[%s8993_s2] sm:$0xff] }
  0x62   : > { %1553 = vmatpush.bf16.msra.mxu1 %v7927_v9 }
  0x63   : > { %v9075_v29 = vsel %vm979_vm0, %v8155_v24, %v978_v28  ;;  %1670 = vmatpush.bf16.msra.mxu2 %v7935_v10  ;;  %v7931_v24 = vld [vmem:[%s9003_s16 + $0x8] sm:$0xff]  ;;  %v7930_v28 = vld [vmem:[%s9003_s16] sm:$0xff] }
  0x64   : > { %12107 = vst [vmem:[#allocation11_spill] sm:$0xff] %v9075_v29 }
  0x65   : > { %954 = vadd.xlane.f32.xlu2 %v930_v22  ;;  %1437 = vmatpush.bf16.msra.mxu0 %v7918_v11 }
  0x66   : > { %1554 = vmatpush.bf16.msra.mxu1 %v7926_v12 }
  0x67   : > { %1671 = vmatpush.bf16.msra.mxu2 %v7934_v13 }
  0x69   : > { %1438 = vmatpush.bf16.msra.mxu0 %v7917_v14 }
  0x6a   : > { %1555 = vmatpush.bf16.msra.mxu1 %v7925_v15 }
  0xc7   : > { %v947_v30 = vpop.xlane.xlu1 %946  ;;  %v943_v31 = vpop.xlane.xlu0 %942 }
  0xc8   : > { %v981_v32 = vmul.f32 %v9075_v29, %v943_v31  ;;  %v951_v34 = vpop.xlane.xlu2 %950  ;;  %v983_v43 = vmul.f32 %v9075_v29, %v947_v30 }
  0xc9   : > { %v985_v42 = vmul.f32 %v9075_v29, %v951_v34 }
  0xca   : > { %v9078_v33 = vsub.f32 %v924_v17, %v981_v32  ;;  %v9099_v49 = vsub.f32 %v926_v16, %v983_v43  ;;  %v7933_v16 = vld [vmem:[%s9003_s16 + $0x18] sm:$0xff]  ;;  %v7916_v17 = vld [vmem:[%s8982_s30 + $0x10] sm:$0xff] }
  0xcb   : > { %v9097_v48 = vsub.f32 %v928_v18, %v985_v42  ;;  %1672 = vmatpush.bf16.msra.mxu2 %v7933_v16  ;;  %v7924_v18 = vld [vmem:[%s8993_s2 + $0x10] sm:$0xff]  ;;  %1439 = vmatpush.bf16.msra.mxu0 %v7916_v17 }
  0xcc   : > { %v1013_v35 = vmul.f32 %v9078_v33, %v9078_v33  ;;  %v1015_v53 = vmul.f32 %v9099_v49, %v9099_v49  ;;  %1556 = vmatpush.bf16.msra.mxu1 %v7924_v18 }
  0xcd   : > { %v1017_v50 = vmul.f32 %v9097_v48, %v9097_v48 }
  0xce   : > { %1029 = vadd.xlane.f32.xlu0 %v1013_v35 }
  0xcf   : > { %v949_v36 = vpop.xlane.xlu1 %948  ;;  %v945_v37 = vpop.xlane.xlu0 %944 }
  0xd0   : > { %v984_v38 = vmul.f32 %v9075_v29, %v949_v36  ;;  %v982_v39 = vmul.f32 %v9075_v29, %v945_v37  ;;  %v953_v47 = vpop.xlane.xlu2 %952 }
  0xd1   : > { %v986_v51 = vmul.f32 %v9075_v29, %v953_v47 }
  0xd2   : > { %v9084_v40 = vsub.f32 %v927_v19, %v984_v38  ;;  %v9086_v41 = vsub.f32 %v925_v20, %v982_v39  ;;  %v7932_v19 = vld [vmem:[%s9003_s16 + $0x10] sm:$0xff] }
  0xd3   : > { %v9109_v54 = vsub.f32 %v929_v21, %v986_v51  ;;  %1673 = vmatpush.bf16.msra.mxu2 %v7932_v19  ;;  %v7915_v21 = vld [vmem:[%s8982_s30 + $0x8] sm:$0xff] }
  0xd4   : > { %v1016_v45 = vmul.f32 %v9084_v40, %v9084_v40  ;;  %v1014_v46 = vmul.f32 %v9086_v41, %v9086_v41  ;;  %1440 = vmatpush.bf16.msra.mxu0 %v7915_v21 }
  0xd5   : > { %v1018_v56 = vmul.f32 %v9109_v54, %v9109_v54 }
  0xd6   : > { %1035 = vadd.xlane.f32.xlu2 %v1016_v45  ;;  %956 = vadd.xlane.f32.xlu0 %v9090_v44 }
  0xd7   : > { %1031 = vadd.xlane.f32.xlu1 %v1014_v46  ;;  %1674 = vmatpush.bf16.msra.mxu2 %v7931_v24  ;;  %v9209_v24 = vld [vmem:[%s12111_s13] ss:$0 sm:$0xff] }
  0xd8   : > { %v955_v55 = vpop.xlane.xlu2 %954  ;;  %1441 = vmatpush.bf16.msra.mxu0 %v7914_v26 }
  0xd9   : > { %v987_v57 = vmul.f32 %v9075_v29, %v955_v55 }
  0xdb   : > { %v9119_v60 = vsub.f32 %v930_v22, %v987_v57  ;;  %v7923_v22 = vld [vmem:[%s8993_s2 + $0x8] sm:$0xff]  ;;  %1675 = vmatpush.bf16.msra.mxu2 %v7930_v28 }
  0xdc   : > { %1557 = vmatpush.bf16.msra.mxu1 %v7923_v22 }
  0xdd   : > { %v1019_v61 = vmul.f32 %v9119_v60, %v9119_v60 }
  0xde   : > { %1037 = vadd.xlane.f32.xlu2 %v1017_v50  ;;  %958 = vadd.xlane.f32.xlu0 %v9104_v52 }
  0xdf   : > { %1033 = vadd.xlane.f32.xlu1 %v1015_v53 }
  0xe0   : > { %1558 = vmatpush.bf16.msra.mxu1 %v7922_v27 }
  0xe6   : > { %964 = vadd.xlane.f32.xlu2 %v9114_v58  ;;  %1039 = vadd.xlane.f32.xlu0 %v1018_v56 }
  0xe7   : > { %960 = vadd.xlane.f32.xlu1 %v9116_v59 }
  0xee   : > { %966 = vadd.xlane.f32.xlu2 %v9124_v62  ;;  %1041 = vadd.xlane.f32.xlu0 %v1019_v61 }
  0xef   : > { %962 = vadd.xlane.f32.xlu1 %v9126_v63 }
  0xf6   : > { %968 = vadd.xlane.f32.xlu0 %v9130_v0 }
  0xfe   : > { %970 = vadd.xlane.f32.xlu0 %v9133_v1 }
 0x141   : > { %v1030_v20 = vpop.xlane.xlu0 %1029 }
 0x142   : > { %v1061_v23 = vmul.f32 %v1030_v20, %v9075_v29 }
 0x144   : > { %v1077_v25 = vadd.f32 1e-05, %v1061_v23 }
 0x146   : > { %8156 = vrsqrt.f32 %v1077_v25  ;;  %vm1099_vm2 = vweird.f32 %v1077_v25 }
 0x149   : > { %v1036_v30 = vpop.xlane.xlu2 %1035  ;;  %v957_v31 = vpop.xlane.xlu0 %956 }
 0x14a   : > { %v1064_v32 = vmul.f32 %v1036_v30, %v9075_v29  ;;  %v1032_v34 = vpop.xlane.xlu1 %1031  ;;  %v988_v35 = vmul.f32 %v9075_v29, %v957_v31  ;;  %v9222_v31 = vld [vmem:[#allocation2 + $0x28] sm:$0xff] }
 0x14b   : > { %v1062_v36 = vmul.f32 %v1032_v34, %v9075_v29 }
 0x14c   : > { %v8157_v37 = vpop.eup %8156  ;;  %v9164_v38 = vadd.f32 1e-05, %v1064_v32  ;;  %v9167_v39 = vsub.f32 %v9090_v44, %v988_v35 }
 0x14d   : > { %v1094_v42 = vmul.f32 %v8157_v37, %v1077_v25  ;;  %v1078_v43 = vadd.f32 1e-05, %v1062_v36  ;;  %vm1100_vm1 = vweird.f32 %v8157_v37 }
 0x14e   : > { %8158 = vrsqrt.f32 %v9164_v38  ;;  %v1020_v45 = vmul.f32 %v9167_v39, %v9167_v39  ;;  %vm9185_vm3 = vmor %vm1099_vm2, %vm1100_vm1  ;;  %vm1129_vm9 = vweird.f32 %v9164_v38 }
 0x14f   : > { %v1095_v46 = vmul.f32 %v8157_v37, %v1094_v42  ;;  %8160 = vrsqrt.f32 %v1078_v43  ;;  %vm1109_vm4 = vweird.f32 %v1078_v43 }
 0x150   : > { %1043 = vadd.xlane.f32.xlu1 %v1020_v45 }
 0x151   : > { %v1096_v47 = vmul.f32 0.5, %v1095_v46  ;;  %v1038_v50 = vpop.xlane.xlu2 %1037  ;;  %v959_v51 = vpop.xlane.xlu0 %958 }
 0x152   : > { %v1034_v53 = vpop.xlane.xlu1 %1033  ;;  %v989_v55 = vmul.f32 %v9075_v29, %v959_v51  ;;  %v1065_v4 = vmul.f32 %v1038_v50, %v9075_v29 }
 0x153   : > { %v1097_v56 = vsub.f32 1.5, %v1096_v47  ;;  %v1063_v44 = vmul.f32 %v1034_v53, %v9075_v29 }
 0x154   : > { %v9174_v57 = vpop.eup %8158  ;;  %v9177_v61 = vsub.f32 %v9104_v52, %v989_v55  ;;  %v9193_v11 = vadd.f32 1e-05, %v1065_v4 }
 0x155   : > { %v8161_v2 = vpop.eup %8160  ;;  %v1098_v3 = vmul.f32 %v8157_v37, %v1097_v56  ;;  %v9180_v5 = vadd.f32 1e-05, %v1063_v44  ;;  %v1124_v6 = vmul.f32 %v9174_v57, %v9164_v38  ;;  %vm1130_vm10 = vweird.f32 %v9174_v57 }
 0x156   : > { %v1104_v7 = vmul.f32 %v8161_v2, %v1078_v43  ;;  %v1021_v9 = vmul.f32 %v9177_v61, %v9177_v61  ;;  %vm1110_vm5 = vweird.f32 %v8161_v2  ;;  %vm9265_vm12 = vmor %vm1129_vm9, %vm1130_vm10  ;;  %vm1139_vm15 = vweird.f32 %v9193_v11 }
 0x157   : > { %8162 = vrsqrt.f32 %v9180_v5  ;;  %v1102_v10 = vsel %vm9185_vm3, %v8157_v37, %v1098_v3  ;;  %v1125_v14 = vmul.f32 %v9174_v57, %v1124_v6  ;;  %vm1111_vm6 = vmor %vm1109_vm4, %vm1110_vm5  ;;  %vm1119_vm7 = vweird.f32 %v9180_v5 }
 0x158   : > { %v1105_v52 = vmul.f32 %v8161_v2, %v1104_v7  ;;  %1045 = vadd.xlane.f32.xlu1 %v1021_v9  ;;  %v1253_v25 = vmul.f32 %v1102_v10, %v9078_v33  ;;  %8164 = vrsqrt.f32 %v9193_v11 }
 0x159   : > { %v965_v12 = vpop.xlane.xlu2 %964  ;;  %v1040_v13 = vpop.xlane.xlu0 %1039 }
 0x15a   : > { %v1106_v15 = vmul.f32 0.5, %v1105_v52  ;;  %v992_v16 = vmul.f32 %v9075_v29, %v965_v12  ;;  %v961_v17 = vpop.xlane.xlu1 %960  ;;  %v1066_v18 = vmul.f32 %v1040_v13, %v9075_v29  ;;  %v1272_v35 = vmul.f32 %v9209_v24, %v1253_v25 }
 0x15b   : > { %v990_v19 = vmul.f32 %v9075_v29, %v961_v17 }
 0x15c   : > { %v1107_v20 = vsub.f32 1.5, %v1106_v15  ;;  %v9199_v21 = vadd.f32 1e-05, %v1066_v18  ;;  %v9202_v22 = vsub.f32 %v9114_v58, %v992_v16  ;;  %v1126_v58 = vmul.f32 0.5, %v1125_v14 }
 0x15d   : > { %v8163_v23 = vpop.eup %8162  ;;  %v9216_v26 = vsub.f32 %v9116_v59, %v990_v19  ;;  %v9231_v59 = vld [vmem:[%s12113_s18] ss:$0 sm:$0xff] }
 0x15e   : > { %v1108_v27 = vmul.f32 %v8161_v2, %v1107_v20  ;;  %v1114_v28 = vmul.f32 %v8163_v23, %v9180_v5  ;;  %8166 = vrsqrt.f32 %v9199_v21  ;;  %v1024_v30 = vmul.f32 %v9202_v22, %v9202_v22  ;;  %v9240_v50 = vpop.eup %8164 }
 0x15f   : > { %v1022_v34 = vmul.f32 %v9216_v26, %v9216_v26  ;;  %v1127_v43 = vsub.f32 1.5, %v1126_v58  ;;  %vm1120_vm8 = vweird.f32 %v8163_v23  ;;  %v1291_v44 = vadd.f32 %v9231_v59, %v1272_v35 }
 0x160   : > { %v1112_v33 = vsel %vm1111_vm6, %v8161_v2, %v1108_v27  ;;  %v1115_v32 = vmul.f32 %v8163_v23, %v1114_v28  ;;  %1051 = vadd.xlane.f32.xlu0 %v1024_v30  ;;  %972 = vadd.xlane.f32.xlu1 %v9222_v31  ;;  %vm9254_vm11 = vmor %vm1119_vm7, %vm1120_vm8  ;;  %v1134_v6 = vmul.f32 %v9240_v50, %v9193_v11  ;;  %vm1149_vm13 = vweird.f32 %v9199_v21 }
 0x161   : > { %v1254_v36 = vmul.f32 %v1112_v33, %v9086_v41  ;;  %v967_v37 = vpop.xlane.xlu2 %966  ;;  %v9236_v42 = vpop.xlane.xlu0 %1041  ;;  %1047 = vadd.xlane.f32.xlu2 %v1022_v34  ;;  %v1128_v38 = vmul.f32 %v9174_v57, %v1127_v43  ;;  %vm1140_vm0 = vweird.f32 %v9240_v50 }
 0x162   : > { %v1116_v45 = vmul.f32 0.5, %v1115_v32  ;;  %v993_v46 = vmul.f32 %v9075_v29, %v967_v37  ;;  %v963_v47 = vpop.xlane.xlu1 %962  ;;  %v1135_v14 = vmul.f32 %v9240_v50, %v1134_v6  ;;  %vm1141_vm2 = vmor %vm1139_vm15, %vm1140_vm0 }
 0x163   : > { %v1273_v51 = vmul.f32 %v9209_v24, %v1254_v36  ;;  %v991_v41 = vmul.f32 %v9075_v29, %v963_v47  ;;  %v1132_v13 = vsel %vm9265_vm12, %v9174_v57, %v1128_v38 }
 0x164   : > { %v8167_v53 = vpop.eup %8166  ;;  %v1117_v55 = vsub.f32 1.5, %v1116_v45  ;;  %v9247_v56 = vsub.f32 %v9124_v62, %v993_v46  ;;  %v1256_v19 = vmul.f32 %v1132_v13, %v9084_v40  ;;  %v1136_v20 = vmul.f32 0.5, %v1135_v14 }
 0x165   : > { %v1292_v2 = vadd.f32 %v9231_v59, %v1273_v51  ;;  %v1144_v4 = vmul.f32 %v8167_v53, %v9199_v21  ;;  %v9263_v7 = vsub.f32 %v9126_v63, %v991_v41  ;;  %vm1150_vm14 = vweird.f32 %v8167_v53 }
 0x166   : > { %v1118_v62 = vmul.f32 %v8163_v23, %v1117_v55  ;;  %v1025_v52 = vmul.f32 %v9247_v56, %v9247_v56  ;;  %v1275_v58 = vmul.f32 %v9209_v24, %v1256_v19  ;;  %v1137_v28 = vsub.f32 1.5, %v1136_v20  ;;  %vm1151_vm1 = vmor %vm1149_vm13, %vm1150_vm14 }
 0x167   : > { %v9269_v5 = vpack.c.bf16 %v1292_v2, %v1291_v44  ;;  %v1145_v10 = vmul.f32 %v8167_v53, %v1144_v4  ;;  %v1023_v12 = vmul.f32 %v9263_v7, %v9263_v7 }
 0x168   : > { %v1122_v9 = vsel %vm9254_vm11, %v8163_v23, %v1118_v62  ;;  %1053 = vadd.xlane.f32.xlu1 %v1025_v52  ;;  %v1294_v33 = vadd.f32 %v9231_v59, %v1275_v58  ;;  %v1138_v32 = vmul.f32 %v9240_v50, %v1137_v28 }
 0x169   : > { %1442 = vmatmul.bf16.vlgmr.msra.gmra.mxu0 %v9269_v5  ;;  %1559 = vmatmul.bf16.vlgmr.msra.gmra.mxu1 %v9269_v5  ;;  %v969_v63 = vpop.xlane.xlu0 %968  ;;  %v1255_v16 = vmul.f32 %v1122_v9, %v9099_v49  ;;  %v1146_v17 = vmul.f32 0.5, %v1145_v10 }
 0x16a   : > { %1049 = vadd.xlane.f32.xlu2 %v1023_v12  ;;  %1676 = vmatmul.bf16.vlgmr.msra.gmra.mxu2 %v9269_v5  ;;  %v994_v15 = vmul.f32 %v9075_v29, %v969_v63 }
 0x16b   : > { %v1274_v23 = vmul.f32 %v9209_v24, %v1255_v16  ;;  %v1147_v25 = vsub.f32 1.5, %v1146_v17 }
 0x16c   : > { %v9287_v18 = vsub.f32 %v9130_v0, %v994_v15 }
 0x16d   : > { %v1293_v0 = vadd.f32 %v9231_v59, %v1274_v23  ;;  %v1148_v40 = vmul.f32 %v8167_v53, %v1147_v25 }
 0x16e   : > { %v1026_v57 = vmul.f32 %v9287_v18, %v9287_v18 }
 0x16f   : > { %v9306_v34 = vpack.c.bf16 %v1294_v33, %v1293_v0  ;;  %v1152_v35 = vsel %vm1151_vm1, %v8167_v53, %v1148_v40 }
 0x170   : > { %v1258_v11 = vmul.f32 %v1152_v35, %v9109_v54  ;;  %v1067_v54 = vmul.f32 %v9236_v42, %v9075_v29 }
 0x171   : > { %v971_v27 = vpop.xlane.xlu0 %970 }
 0x172   : > { %1055 = vadd.xlane.f32.xlu2 %v1026_v57  ;;  %v995_v49 = vmul.f32 %v9075_v29, %v971_v27  ;;  %v1277_v37 = vmul.f32 %v9209_v24, %v1258_v11 }
 0x174   : > { %v9300_v30 = vsub.f32 %v9133_v1, %v995_v49  ;;  %v1142_v1 = vsel %vm1141_vm2, %v9240_v50, %v1138_v32  ;;  %v1296_v45 = vadd.f32 %v9231_v59, %v1277_v37 }
 0x175   : > { %v1257_v36 = vmul.f32 %v1142_v1, %v9097_v48  ;;  %v1083_v48 = vadd.f32 1e-05, %v1067_v54 }
 0x176   : > { %v1027_v21 = vmul.f32 %v9300_v30, %v9300_v30 }
 0x177   : > { %v1276_v43 = vmul.f32 %v9209_v24, %v1257_v36  ;;  %8168 = vrsqrt.f32 %v1083_v48  ;;  %vm1159_vm3 = vweird.f32 %v1083_v48 }
 0x178   : > { %1057 = vadd.xlane.f32.xlu0 %v1027_v21 }
 0x179   : > { %1447 = vmatmul.bf16.gmra.mxu0 %v9306_v34  ;;  %1564 = vmatmul.bf16.gmra.mxu1 %v9306_v34  ;;  %v1295_v46 = vadd.f32 %v9231_v59, %v1276_v43 }
 0x17a   : > { %1681 = vmatmul.bf16.gmra.mxu2 %v9306_v34 }
 0x17b   : > { %v9318_v47 = vpack.c.bf16 %v1296_v45, %v1295_v46 }
 0x17d   : > { %v8169_v50 = vpop.eup %8168 }
 0x17e   : > { %v1154_v51 = vmul.f32 %v8169_v50, %v1083_v48  ;;  %vm1160_vm4 = vweird.f32 %v8169_v50 }
 0x17f   : > { %vm1161_vm5 = vmor %vm1159_vm3, %vm1160_vm4 }
 0x180   : > { %v1155_v41 = vmul.f32 %v8169_v50, %v1154_v51 }
 0x182   : > { %v1156_v2 = vmul.f32 0.5, %v1155_v41 }
 0x184   : > { %v1157_v3 = vsub.f32 1.5, %v1156_v2 }
 0x186   : > { %v1158_v62 = vmul.f32 %v8169_v50, %v1157_v3 }
 0x188   : > { %v1162_v9 = vsel %vm1161_vm5, %v8169_v50, %v1158_v62 }
 0x189   : > { %1452 = vmatmul.bf16.gmra.mxu0 %v9318_v47  ;;  %1569 = vmatmul.bf16.gmra.mxu1 %v9318_v47  ;;  %v1259_v16 = vmul.f32 %v1162_v9, %v9119_v60 }
 0x18a   : > { %1686 = vmatmul.bf16.gmra.mxu2 %v9318_v47 }
 0x18b   : > { %v1278_v60 = vmul.f32 %v9209_v24, %v1259_v16 }
 0x1c3   : > { %v1044_v53 = vpop.xlane.xlu1 %1043 }
 0x1c4   : > { %v1068_v55 = vmul.f32 %v1044_v53, %v9075_v29 }
 0x1c6   : > { %v1084_v44 = vadd.f32 1e-05, %v1068_v55 }
 0x1c8   : > { %8170 = vrsqrt.f32 %v1084_v44  ;;  %vm1169_vm7 = vweird.f32 %v1084_v44 }
 0x1cb   : > { %v1046_v4 = vpop.xlane.xlu1 %1045 }
 0x1cc   : > { %v1069_v6 = vmul.f32 %v1046_v4, %v9075_v29 }
 0x1ce   : > { %v8171_v38 = vpop.eup %8170  ;;  %v1085_v8 = vadd.f32 1e-05, %v1069_v6 }
 0x1cf   : > { %v1164_v42 = vmul.f32 %v8171_v38, %v1084_v44  ;;  %vm1170_vm6 = vweird.f32 %v8171_v38 }
 0x1d0   : > { %8172 = vrsqrt.f32 %v1085_v8  ;;  %vm1171_vm8 = vmor %vm1169_vm7, %vm1170_vm6  ;;  %vm1179_vm10 = vweird.f32 %v1085_v8 }
 0x1d1   : > { %v1165_v52 = vmul.f32 %v8171_v38, %v1164_v42 }
 0x1d3   : > { %v1166_v10 = vmul.f32 0.5, %v1165_v52  ;;  %v1052_v12 = vpop.xlane.xlu0 %1051  ;;  %v973_v14 = vpop.xlane.xlu1 %972 }
 0x1d4   : > { %v1048_v13 = vpop.xlane.xlu2 %1047  ;;  %v1072_v15 = vmul.f32 %v1052_v12, %v9075_v29  ;;  %v996_v19 = vmul.f32 %v9075_v29, %v973_v14 }
 0x1d5   : > { %v1167_v63 = vsub.f32 1.5, %v1166_v10  ;;  %v1070_v17 = vmul.f32 %v1048_v13, %v9075_v29 }
 0x1d6   : > { %v9331_v57 = vadd.f32 1e-05, %v1072_v15  ;;  %v8173_v23 = vpop.eup %8172  ;;  %v9334_v58 = vsub.f32 %v9222_v31, %v996_v19  ;;  %v1297_v31 = vadd.f32 %v9231_v59, %v1278_v60 }
 0x1d7   : > { %v1168_v20 = vmul.f32 %v8171_v38, %v1167_v63  ;;  %v1086_v25 = vadd.f32 1e-05, %v1070_v17  ;;  %v1174_v28 = vmul.f32 %v8173_v23, %v1085_v8  ;;  %vm1180_vm9 = vweird.f32 %v8173_v23 }
 0x1d8   : > { %8174 = vrsqrt.f32 %v9331_v57  ;;  %v1028_v40 = vmul.f32 %v9334_v58, %v9334_v58  ;;  %vm1181_vm11 = vmor %vm1179_vm10, %vm1180_vm9  ;;  %vm1209_vm1 = vweird.f32 %v9331_v57 }
 0x1d9   : > { %v1172_v27 = vsel %vm1171_vm8, %v8171_v38, %v1168_v20  ;;  %8176 = vrsqrt.f32 %v1086_v25  ;;  %v1175_v0 = vmul.f32 %v8173_v23, %v1174_v28  ;;  %vm1189_vm12 = vweird.f32 %v1086_v25 }
 0x1da   : > { %v1260_v49 = vmul.f32 %v1172_v27, %v9167_v39  ;;  %1059 = vadd.xlane.f32.xlu1 %v1028_v40 }
 0x1db   : > { %v1176_v32 = vmul.f32 0.5, %v1175_v0  ;;  %v1054_v11 = vpop.xlane.xlu1 %1053 }
 0x1dc   : > { %v1279_v33 = vmul.f32 %v9209_v24, %v1260_v49  ;;  %v1073_v46 = vmul.f32 %v1054_v11, %v9075_v29 }
 0x1dd   : > { %v1050_v21 = vpop.xlane.xlu2 %1049  ;;  %v1177_v39 = vsub.f32 1.5, %v1176_v32 }
 0x1de   : > { %v1298_v35 = vadd.f32 %v9231_v59, %v1279_v33  ;;  %v1071_v1 = vmul.f32 %v1050_v21, %v9075_v29  ;;  %v9345_v36 = vpop.eup %8174  ;;  %v9355_v41 = vadd.f32 1e-05, %v1073_v46 }
 0x1df   : > { %v8177_v37 = vpop.eup %8176  ;;  %v1178_v54 = vmul.f32 %v8173_v23, %v1177_v39  ;;  %v1204_v50 = vmul.f32 %v9345_v36, %v9331_v57  ;;  %vm1210_vm2 = vweird.f32 %v9345_v36 }
 0x1e0   : > { %v9347_v43 = vpack.c.bf16 %v1298_v35, %v1297_v31  ;;  %v1087_v45 = vadd.f32 1e-05, %v1071_v1  ;;  %v1184_v48 = vmul.f32 %v8177_v37, %v1086_v25  ;;  %vm1190_vm13 = vweird.f32 %v8177_v37  ;;  %vm1211_vm4 = vmor %vm1209_vm1, %vm1210_vm2 }
 0x1e1   : > { %v1182_v53 = vsel %vm1181_vm11, %v8173_v23, %v1178_v54  ;;  %v1205_v44 = vmul.f32 %v9345_v36, %v1204_v50  ;;  %vm1191_vm14 = vmor %vm1189_vm12, %vm1190_vm13  ;;  %vm1219_vm7 = vweird.f32 %v9355_v41  ;;  %vm1733_vm1 = vcmask 261120  }
 0x1e2   : > { %8178 = vrsqrt.f32 %v1087_v45  ;;  %1457 = vmatmul.bf16.gmra.mxu0 %v9347_v43  ;;  %1574 = vmatmul.bf16.gmra.mxu1 %v9347_v43  ;;  %v1185_v51 = vmul.f32 %v8177_v37, %v1184_v48  ;;  %v1261_v6 = vmul.f32 %v1182_v53, %v9177_v61  ;;  %vm1199_vm15 = vweird.f32 %v1087_v45 }
 0x1e3   : > { %1691 = vmatmul.bf16.gmra.mxu2 %v9347_v43  ;;  %8180 = vrsqrt.f32 %v9355_v41  ;;  %v1206_v8 = vmul.f32 0.5, %v1205_v44  ;;  %v7947_v44 = vld [vmem:[%s8982_s30 + $0x78] sm:$0xff] }
 0x1e4   : > { %v1186_v55 = vmul.f32 0.5, %v1185_v51  ;;  %v1280_v12 = vmul.f32 %v9209_v24, %v1261_v6  ;;  %2223 = vmatpush.bf16.msrb.mxu2 %v7947_v44  ;;  %v7944_v6 = vld [vmem:[%s8982_s30 + $0x60] sm:$0xff] }
 0x1e5   : > { %v1056_v2 = vpop.xlane.xlu2 %1055  ;;  %v1207_v13 = vsub.f32 1.5, %v1206_v8 }
 0x1e6   : > { %v1074_v3 = vmul.f32 %v1056_v2, %v9075_v29  ;;  %v1187_v4 = vsub.f32 1.5, %v1186_v55  ;;  %v1299_v19 = vadd.f32 %v9231_v59, %v1280_v12 }
 0x1e8   : > { %v8179_v38 = vpop.eup %8178  ;;  %v1090_v62 = vadd.f32 1e-05, %v1074_v3  ;;  %v1188_v42 = vmul.f32 %v8177_v37, %v1187_v4  ;;  %v7946_v3 = vld [vmem:[%s8982_s30 + $0x70] sm:$0xff]  ;;  %v7945_v4 = vld [vmem:[%s8982_s30 + $0x68] sm:$0xff] }
 0x1e9   : > { %v1194_v52 = vmul.f32 %v8179_v38, %v1087_v45  ;;  %vm1200_vm0 = vweird.f32 %v8179_v38  ;;  %v8181_v15 = vpop.eup %8180  ;;  %2224 = vmatpush.bf16.msrb.mxu2 %v7946_v3 }
 0x1ea   : > { %8182 = vrsqrt.f32 %v1090_v62  ;;  %v1192_v9 = vsel %vm1191_vm14, %v8177_v37, %v1188_v42  ;;  %vm1201_vm3 = vmor %vm1199_vm15, %vm1200_vm0  ;;  %v1214_v25 = vmul.f32 %v8181_v15, %v9355_v41  ;;  %vm1229_vm5 = vweird.f32 %v1090_v62  ;;  %v7943_v42 = vld [vmem:[%s8982_s30 + $0x58] sm:$0xff] }
 0x1eb   : > { %v1195_v10 = vmul.f32 %v8179_v38, %v1194_v52  ;;  %v1262_v63 = vmul.f32 %v1192_v9, %v9216_v26  ;;  %v1208_v26 = vmul.f32 %v9345_v36, %v1207_v13  ;;  %vm1220_vm8 = vweird.f32 %v8181_v15  ;;  %v7941_v13 = vld [vmem:[%s8982_s30 + $0x48] sm:$0xff] }
 0x1ec   : > { %v1215_v0 = vmul.f32 %v8181_v15, %v1214_v25  ;;  %vm1221_vm10 = vmor %vm1219_vm7, %vm1220_vm8 }
 0x1ed   : > { %v1196_v14 = vmul.f32 0.5, %v1195_v10  ;;  %v1281_v61 = vmul.f32 %v9209_v24, %v1262_v63  ;;  %v1212_v49 = vsel %vm1211_vm4, %v9345_v36, %v1208_v26  ;;  %2225 = vmatpush.bf16.msrb.mxu2 %v7945_v4  ;;  %v7942_v10 = vld [vmem:[%s8982_s30 + $0x50] sm:$0xff] }
 0x1ee   : > { %v1264_v32 = vmul.f32 %v1212_v49, %v9202_v22  ;;  %v1216_v21 = vmul.f32 0.5, %v1215_v0 }
 0x1ef   : > { %v1197_v16 = vsub.f32 1.5, %v1196_v14  ;;  %v1300_v20 = vadd.f32 %v9231_v59, %v1281_v61  ;;  %v7940_v61 = vld [vmem:[%s8982_s30 + $0x40] sm:$0xff] }
 0x1f0   : > { %v8183_v17 = vpop.eup %8182  ;;  %v1283_v1 = vmul.f32 %v9209_v24, %v1264_v32  ;;  %v1217_v11 = vsub.f32 1.5, %v1216_v21 }
 0x1f1   : > { %v1198_v23 = vmul.f32 %v8179_v38, %v1197_v16  ;;  %v1224_v27 = vmul.f32 %v8183_v17, %v1090_v62  ;;  %v9370_v28 = vpack.c.bf16 %v1300_v20, %v1299_v19  ;;  %vm1230_vm6 = vweird.f32 %v8183_v17  ;;  %2226 = vmatpush.bf16.msrb.mxu2 %v7944_v6 }
 0x1f2   : > { %vm1231_vm9 = vmor %vm1229_vm5, %vm1230_vm6  ;;  %v1218_v37 = vmul.f32 %v8181_v15, %v1217_v11 }
 0x1f3   : > { %v1202_v60 = vsel %vm1201_vm3, %v8179_v38, %v1198_v23  ;;  %v1225_v57 = vmul.f32 %v8183_v17, %v1224_v27  ;;  %1462 = vmatmul.bf16.gmra.mxu0 %v9370_v28  ;;  %1579 = vmatmul.bf16.gmra.mxu1 %v9370_v28  ;;  %v9410_v27 = vpop.f32.mrf.mxu1 }
 0x1f4   : > { %1696 = vmatmul.bf16.gmra.mxu2 %v9370_v28  ;;  %v1263_v40 = vmul.f32 %v1202_v60, %v9263_v7  ;;  %v1302_v7 = vadd.f32 %v9231_v59, %v1283_v1  ;;  %v1222_v46 = vsel %vm1221_vm10, %v8181_v15, %v1218_v37 }
 0x1f5   : > { %v1226_v33 = vmul.f32 0.5, %v1225_v57  ;;  %v1265_v48 = vmul.f32 %v1222_v46, %v9247_v56  ;;  %v1058_v56 = vpop.xlane.xlu0 %1057  ;;  %2227 = vmatpush.bf16.msrb.mxu2 %v7943_v42 }
 0x1f6   : > { %v1282_v31 = vmul.f32 %v9209_v24, %v1263_v40 }
 0x1f7   : > { %v1227_v35 = vsub.f32 1.5, %v1226_v33  ;;  %v1284_v51 = vmul.f32 %v9209_v24, %v1265_v48  ;;  %v9415_v33 = vpop.f32.mrf.mxu2 }
 0x1f8   : > { %v1301_v39 = vadd.f32 %v9231_v59, %v1282_v31 }
 0x1f9   : > { %v1228_v36 = vmul.f32 %v8183_v17, %v1227_v35  ;;  %v1303_v53 = vadd.f32 %v9231_v59, %v1284_v51  ;;  %2228 = vmatpush.bf16.msrb.mxu2 %v7942_v10 }
 0x1fa   : > { %v9383_v22 = vpack.c.bf16 %v1302_v7, %v1301_v39 }
 0x1fb   : > { %v1232_v45 = vsel %vm1231_vm9, %v8183_v17, %v1228_v36 }
 0x1fc   : > { %v1266_v54 = vmul.f32 %v1232_v45, %v9287_v18  ;;  %v1075_v18 = vmul.f32 %v1058_v56, %v9075_v29 }
 0x1fd   : > { %2229 = vmatpush.bf16.msrb.mxu2 %v7941_v13  ;;  %v8136_v13 = vld [vmem:[%s9008_s25] ss:$0 sm:$0xff] }
 0x1fe   : > { %v1285_v50 = vmul.f32 %v9209_v24, %v1266_v54  ;;  %v1091_v2 = vadd.f32 1e-05, %v1075_v18 }
 0x1ff   : > { %v9426_v35 = vpop.f32.mrf.mxu2 }
 0x200   : > { %v1304_v41 = vadd.f32 %v9231_v59, %v1285_v50  ;;  %8184 = vrsqrt.f32 %v1091_v2  ;;  %vm1239_vm11 = vweird.f32 %v1091_v2 }
 0x201   : > { %2230 = vmatpush.bf16.msrb.mxu2 %v7940_v61 }
 0x202   : > { %v9394_v55 = vpack.c.bf16 %v1304_v41, %v1303_v53 }
 0x203   : > { %1467 = vmatmul.bf16.gmra.mxu0 %v9383_v22  ;;  %1584 = vmatmul.bf16.gmra.mxu1 %v9383_v22 }
 0x204   : > { %1701 = vmatmul.bf16.gmra.mxu2 %v9383_v22 }
 0x206   : > { %v8185_v38 = vpop.eup %8184 }
 0x207   : > { %v1234_v62 = vmul.f32 %v8185_v38, %v1091_v2  ;;  %vm1240_vm12 = vweird.f32 %v8185_v38 }
 0x208   : > { %vm1241_vm13 = vmor %vm1239_vm11, %vm1240_vm12 }
 0x209   : > { %v1235_v8 = vmul.f32 %v8185_v38, %v1234_v62  ;;  %v9457_v62 = vld [vmem:[%s8998_s1] ss:$0 sm:$0xff] }
 0x20b   : > { %v1236_v63 = vmul.f32 0.5, %v1235_v8 }
 0x20d   : > { %v1237_v14 = vsub.f32 1.5, %v1236_v63 }
 0x20f   : > { %v1238_v16 = vmul.f32 %v8185_v38, %v1237_v14 }
 0x211   : > { %v1242_v20 = vsel %vm1241_vm13, %v8185_v38, %v1238_v16 }
 0x212   : > { %v1267_v25 = vmul.f32 %v1242_v20, %v9300_v30  ;;  %v9421_v30 = vpop.f32.mrf.mxu1 }
 0x213   : > { %1472 = vmatmul.bf16.gmra.mxu0 %v9394_v55  ;;  %1589 = vmatmul.bf16.gmra.mxu1 %v9394_v55 }
 0x214   : > { %1706 = vmatmul.bf16.gmra.mxu2 %v9394_v55  ;;  %v1286_v49 = vmul.f32 %v9209_v24, %v1267_v25 }
 0x216   : > { %v1305_v32 = vadd.f32 %v9231_v59, %v1286_v49 }
 0x24d   : > { %v1060_v52 = vpop.xlane.xlu1 %1059 }
 0x24e   : > { %v1076_v9 = vmul.f32 %v1060_v52, %v9075_v29 }
 0x250   : > { %v1092_v12 = vadd.f32 1e-05, %v1076_v9 }
 0x252   : > { %8186 = vrsqrt.f32 %v1092_v12  ;;  %vm1249_vm15 = vweird.f32 %v1092_v12 }
 0x258   : > { %v8187_v15 = vpop.eup %8186 }
 0x259   : > { %v1244_v17 = vmul.f32 %v8187_v15, %v1092_v12  ;;  %vm1250_vm14 = vweird.f32 %v8187_v15 }
 0x25a   : > { %vm1251_vm0 = vmor %vm1249_vm15, %vm1250_vm14 }
 0x25b   : > { %v1245_v19 = vmul.f32 %v8187_v15, %v1244_v17 }
 0x25d   : > { %v1246_v26 = vmul.f32 0.5, %v1245_v19 }
 0x25f   : > { %v1247_v23 = vsub.f32 1.5, %v1246_v26 }
 0x261   : > { %v1248_v60 = vmul.f32 %v8187_v15, %v1247_v23 }
 0x263   : > { %v1252_v57 = vsel %vm1251_vm0, %v8187_v15, %v1248_v60 }
 0x264   : > { %v1268_v0 = vmul.f32 %v1252_v57, %v9334_v58  ;;  %v9428_v58 = vpop.f32.mrf.mxu1 }
 0x266   : > { %v1287_v40 = vmul.f32 %v9209_v24, %v1268_v0  ;;  %v9430_v24 = vpop.f32.mrf.mxu2 }
 0x268   : > { %v1306_v21 = vadd.f32 %v9231_v59, %v1287_v40 }
 0x26a   : > { %v9419_v31 = vpack.c.bf16 %v1306_v21, %v1305_v32 }
 0x26c   : > { %1477 = vmatmul.bf16.gmra.mxu0 %v9419_v31  ;;  %1594 = vmatmul.bf16.gmra.mxu1 %v9419_v31  ;;  %v9433_v1 = vpop.f32.mrf.mxu1 }
 0x26d   : > { %1711 = vmatmul.bf16.gmra.mxu2 %v9419_v31 }
 0x26e   : > { %v9435_v59 = vpop.f32.mrf.mxu2 }
 0x274   : > { %v9437_v11 = vpop.f32.mrf.mxu1 }
 0x276   : > { %v9440_v39 = vpop.f32.mrf.mxu2 }
 0x27c   : > { %v9442_v36 = vpop.f32.mrf.mxu1 }
 0x27d   : > { %2231 = vmatmul.bf16.vlgmr.msrb.gmra.mxu2 %v9269_v5 }
 0x27e   : > { %v9444_v7 = vpop.f32.mrf.mxu2 }
 0x284   : > { %v9446_v37 = vpop.f32.mrf.mxu1 }
 0x286   : > { %v1692_v45 = vpop.f32.mrf.mxu2 }
 0x28c   : > { %v9449_v46 = vpop.f32.mrf.mxu1 }
 0x28d   : > { %2236 = vmatmul.bf16.gmra.mxu2 %v9306_v34 }
 0x28e   : > { %v1694_v54 = vpop.f32.mrf.mxu2 }
 0x294   : > { %v1580_v48 = vpop.f32.mrf.mxu1 }
 0x296   : > { %v1697_v50 = vpop.f32.mrf.mxu2 }
 0x29c   : > { %v1582_v51 = vpop.f32.mrf.mxu1 }
 0x29d   : > { %2241 = vmatmul.bf16.gmra.mxu2 %v9318_v47 }
 0x29e   : > { %v1699_v41 = vpop.f32.mrf.mxu2 }
 0x29f   : > { %v1700_v32 = vadd.f32 %v8136_v13, %v1699_v41  ;;  %v1688_v41 = vadd.f32 %v8136_v13, %v9440_v39 }
 0x2a4   : > { %v1585_v53 = vpop.f32.mrf.mxu1 }
 0x2a5   : > { %v1586_v49 = vadd.f32 %v9457_v62, %v1585_v53  ;;  %v1443_v53 = vpop.f32.mrf.mxu0 }
 0x2a6   : > { %v1702_v56 = vpop.f32.mrf.mxu2 }
 0x2a7   : > { %v1703_v0 = vadd.f32 %v8136_v13, %v1702_v56  ;;  %v1690_v56 = vadd.f32 %v8136_v13, %v9444_v7 }
 0x2ac   : > { %v1587_v18 = vpop.f32.mrf.mxu1 }
 0x2ad   : > { %2246 = vmatmul.bf16.gmra.mxu2 %v9347_v43  ;;  %v1588_v23 = vadd.f32 %v9457_v62, %v1587_v18 }
 0x2ae   : > { %v1704_v44 = vpop.f32.mrf.mxu2 }
 0x2af   : > { %v1705_v60 = vadd.f32 %v8136_v13, %v1704_v44  ;;  %v1730_v40 = vpack.c.bf16 %v1588_v23, %v1586_v49  ;;  %v1581_v44 = vadd.f32 %v9457_v62, %v1580_v48  ;;  %v1683_v48 = vadd.f32 %v8136_v13, %v9430_v24 }
 0x2b0   : > { %v1571_v24 = vadd.f32 %v9457_v62, %v9437_v11  ;;  %v1561_v11 = vadd.f32 %v9457_v62, %v9410_v27 }
 0x2b1   : > { %v1988_v21 = vpack.c.bf16 %v1705_v60, %v1703_v0 }
 0x2b4   : > { %v1590_v2 = vpop.f32.mrf.mxu1 }
 0x2b5   : > { %v1591_v14 = vadd.f32 %v9457_v62, %v1590_v2  ;;  %v1698_v2 = vadd.f32 %v8136_v13, %v1697_v50  ;;  %v1578_v50 = vadd.f32 %v9457_v62, %v9449_v46  ;;  %v1573_v46 = vadd.f32 %v9457_v62, %v9442_v36 }
 0x2b6   : > { %v1707_v3 = vpop.f32.mrf.mxu2  ;;  %v1566_v36 = vadd.f32 %v9457_v62, %v9428_v58 }
 0x2b7   : > { %v1708_v26 = vadd.f32 %v8136_v13, %v1707_v3  ;;  %v1774_v3 = vsel %vm1733_vm1, %v1730_v40, 0  ;;  %v1987_v18 = vpack.c.bf16 %v1700_v32, %v1698_v2 }
 0x2bc   : > { %v1592_v4 = vpop.f32.mrf.mxu1 }
 0x2bd   : > { %2251 = vmatmul.bf16.gmra.mxu2 %v9370_v28  ;;  %v1593_v12 = vadd.f32 %v9457_v62, %v1592_v4  ;;  %v1583_v4 = vadd.f32 %v9457_v62, %v1582_v51 }
 0x2be   : > { %v1709_v38 = vpop.f32.mrf.mxu2 }
 0x2bf   : > { %v1731_v17 = vpack.c.bf16 %v1593_v12, %v1591_v14  ;;  %v1710_v19 = vadd.f32 %v8136_v13, %v1709_v38  ;;  %v1695_v38 = vadd.f32 %v8136_v13, %v1694_v54  ;;  %v1685_v54 = vadd.f32 %v8136_v13, %v9435_v59  ;;  %v1445_v12 = vpop.f32.mrf.mxu0 }
 0x2c1   : > { %v1777_v25 = vsel %vm1733_vm1, %v1731_v17, 0  ;;  %v1989_v57 = vpack.c.bf16 %v1710_v19, %v1708_v26  ;;  %v1984_v39 = vpack.c.bf16 %v1685_v54, %v1683_v48  ;;  %v7950_v48 = vld [vmem:[%s8993_s2 + $0x50] sm:$0xff] }
 0x2cd   : > { %2256 = vmatmul.bf16.gmra.mxu2 %v9383_v22 }
 0x2dd   : > { %2261 = vmatmul.bf16.gmra.mxu2 %v9394_v55 }
 0x2e9   : > { %v1595_v6 = vpop.f32.mrf.mxu1 }
 0x2ea   : > { %v1596_v52 = vadd.f32 %v9457_v62, %v1595_v6  ;;  %v1693_v6 = vadd.f32 %v8136_v13, %v1692_v45  ;;  %v1576_v45 = vadd.f32 %v9457_v62, %v9446_v37  ;;  %v1727_v37 = vpack.c.bf16 %v1573_v46, %v1571_v24 }
 0x2ec   : > { %v1728_v7 = vpack.c.bf16 %v1578_v50, %v1576_v45  ;;  %v7952_v50 = vld [vmem:[%s8993_s2 + $0x60] sm:$0xff]  ;;  %v7951_v45 = vld [vmem:[%s8993_s2 + $0x58] sm:$0xff] }
 0x2ed   : > { %2266 = vmatmul.bf16.gmra.mxu2 %v9419_v31 }
 0x2ee   : > { %v1768_v59 = vsel %vm1733_vm1, %v1728_v7, 0 }
 0x2f0   : > { %v1712_v42 = vpop.f32.mrf.mxu2 }
 0x2f1   : > { %v1597_v8 = vpop.f32.mrf.mxu1  ;;  %v1713_v61 = vadd.f32 %v8136_v13, %v1712_v42  ;;  %v1729_v42 = vpack.c.bf16 %v1583_v4, %v1581_v44 }
 0x2f2   : > { %v1598_v9 = vadd.f32 %v9457_v62, %v1597_v8  ;;  %v1986_v8 = vpack.c.bf16 %v1695_v38, %v1693_v6 }
 0x2f3   : > { %v1771_v51 = vsel %vm1733_vm1, %v1729_v42, 0  ;;  %v7955_v42 = vld [vmem:[%s8993_s2 + $0x78] sm:$0xff] }
 0x2f4   : > { %v1732_v10 = vpack.c.bf16 %v1598_v9, %v1596_v52  ;;  %v1985_v52 = vpack.c.bf16 %v1690_v56, %v1688_v41  ;;  %v1680_v9 = vadd.f32 %v8136_v13, %v9426_v35  ;;  %v1568_v35 = vadd.f32 %v9457_v62, %v9433_v1  ;;  %v8134_v1 = vld [vmem:[%s8988_s26] ss:$0 sm:$0xff]  ;;  %v7954_v56 = vld [vmem:[%s8993_s2 + $0x70] sm:$0xff] }
 0x2f5   : > { %v1444_v26 = vadd.f32 %v8134_v1, %v1443_v53 }
 0x2f6   : > { %v1780_v63 = vsel %vm1733_vm1, %v1732_v10, 0  ;;  %v1678_v10 = vadd.f32 %v8136_v13, %v9415_v33  ;;  %v1765_v33 = vsel %vm1733_vm1, %v1727_v37, 0  ;;  %v1726_v14 = vpack.c.bf16 %v1568_v35, %v1566_v36 }
 0x2f7   : > { %1782 = vmatpush.bf16.xpose.msra.mxu3 %v1780_v63 }
 0x2f8   : > { %v1714_v15 = vpop.f32.mrf.mxu2  ;;  %v1983_v63 = vpack.c.bf16 %v1680_v9, %v1678_v10  ;;  %v7949_v9 = vld [vmem:[%s8993_s2 + $0x48] sm:$0xff]  ;;  %v7948_v10 = vld [vmem:[%s8993_s2 + $0x40] sm:$0xff] }
 0x2f9   : > { %v1715_v16 = vadd.f32 %v8136_v13, %v1714_v15  ;;  %v1448_v13 = vpop.f32.mrf.mxu0  ;;  %v1563_v15 = vadd.f32 %v9457_v62, %v9421_v30 }
 0x2fa   : > { %v1449_v60 = vadd.f32 %v8134_v1, %v1448_v13 }
 0x2fb   : > { %v1990_v20 = vpack.c.bf16 %v1715_v16, %v1713_v61  ;;  %v1762_v61 = vsel %vm1733_vm1, %v1726_v14, 0  ;;  %v1725_v17 = vpack.c.bf16 %v1563_v15, %v1561_v11  ;;  %v8828_v14 = vmov -1e+30  }
 0x2fd   : > { %1991 = vmatpush.bf16.msrb.mxu0 %v1990_v20  ;;  %v1759_v19 = vsel %vm1733_vm1, %v1725_v17, 0  ;;  %v1446_v20 = vadd.f32 %v8134_v1, %v1445_v12 }
 0x2ff   : > { %1783 = vmatpush.bf16.xpose.msra.mxu3 %v1777_v25  ;;  %v1717_v58 = vpack.c.bf16 %v1446_v20, %v1444_v26 }
 0x301   : > { %1992 = vmatpush.bf16.msrb.mxu0 %v1989_v57  ;;  %v1450_v16 = vpop.f32.mrf.mxu0 }
 0x302   : > { %v1451_v30 = vadd.f32 %v8134_v1, %v1450_v16 }
 0x304   : > { %v1718_v57 = vpack.c.bf16 %v1451_v30, %v1449_v60 }
 0x305   : > { %1993 = vmatpush.bf16.msrb.mxu0 %v1988_v21 }
 0x307   : > { %1784 = vmatpush.bf16.xpose.msra.mxu3 %v1774_v3 }
 0x309   : > { %1994 = vmatpush.bf16.msrb.mxu0 %v1987_v18  ;;  %v1453_v23 = vpop.f32.mrf.mxu0 }
 0x30a   : > { %v1454_v0 = vadd.f32 %v8134_v1, %v1453_v23 }
 0x30d   : > { %1995 = vmatpush.bf16.msrb.mxu0 %v1986_v8  ;;  %v7953_v8 = vld [vmem:[%s8993_s2 + $0x68] sm:$0xff] }
 0x30f   : > { %1785 = vmatpush.bf16.xpose.msra.mxu3 %v1771_v51 }
 0x311   : > { %1996 = vmatpush.bf16.msrb.mxu0 %v1985_v52  ;;  %v1455_v25 = vpop.f32.mrf.mxu0 }
 0x312   : > { %v1456_v62 = vadd.f32 %v8134_v1, %v1455_v25 }
 0x314   : > { %v1719_v40 = vpack.c.bf16 %v1456_v62, %v1454_v0 }
 0x315   : > { %1997 = vmatpush.bf16.msrb.mxu0 %v1984_v39 }
 0x317   : > { %1786 = vmatpush.bf16.xpose.msra.mxu3 %v1768_v59 }
 0x319   : > { %1998 = vmatpush.bf16.msrb.mxu0 %v1983_v63  ;;  %v1458_v49 = vpop.f32.mrf.mxu0 }
 0x31a   : > { %v1459_v2 = vadd.f32 %v8134_v1, %v1458_v49 }
 0x31f   : > { %1787 = vmatpush.bf16.xpose.msra.mxu3 %v1765_v33  ;;  %v1315_v33 = vlaneseq }
 0x321   : > { %v1460_v27 = vpop.f32.mrf.mxu0  ;;  %v9515_v13 = vshrl.u32 %v1315_v33, 7  ;;  %v9517_v36 = vand.u32 127, %v1315_v33 }
 0x322   : > { %v1461_v21 = vadd.f32 %v8134_v1, %v1460_v27 }
 0x323   : > { %vm1334_vm2 = vcmp.le.s32.totalorder %v9517_v36, %v9515_v13  ;;  %v1319_v23 = vadd.s32 24, %v9515_v13  ;;  %v1320_v60 = vadd.s32 32, %v9515_v13  ;;  %v1321_v62 = vadd.s32 40, %v9515_v13 }
 0x324   : > { %v1720_v3 = vpack.c.bf16 %v1461_v21, %v1459_v2  ;;  %v9523_v15 = vsel %vm1334_vm2, 0.0, %v8828_v14  ;;  %v1322_v21 = vadd.s32 48, %v9515_v13 }
 0x325   : > { %12118 = vst [vmem:[#allocation12_spill] sm:$0xff] %v9523_v15  ;;  %vm1337_vm5 = vcmp.le.s32.totalorder %v9517_v36, %v1319_v23  ;;  %vm1338_vm6 = vcmp.le.s32.totalorder %v9517_v36, %v1320_v60  ;;  %vm1339_vm7 = vcmp.le.s32.totalorder %v9517_v36, %v1321_v62 }
 0x326   : > { %v9551_v30 = vsel %vm1337_vm5, 0.0, %v8828_v14  ;;  %v9561_v27 = vsel %vm1338_vm6, 0.0, %v8828_v14  ;;  %vm1340_vm8 = vcmp.le.s32.totalorder %v9517_v36, %v1322_v21 }
 0x327   : > { %1788 = vmatpush.bf16.xpose.msra.mxu3 %v1762_v61  ;;  %v1317_v61 = vadd.s32 8, %v9515_v13  ;;  %12121 = vst [vmem:[#allocation15_spill] sm:$0xff] %v9551_v30 }
 0x328   : > { %12122 = vst [vmem:[#allocation16_spill] sm:$0xff] %v9561_v27 }
 0x329   : > { %v1463_v32 = vpop.f32.mrf.mxu0  ;;  %vm1335_vm3 = vcmp.le.s32.totalorder %v9517_v36, %v1317_v61  ;;  %v1326_v61 = vadd.s32 80, %v9515_v13 }
 0x32a   : > { %v1464_v44 = vadd.f32 %v8134_v1, %v1463_v32  ;;  %v9532_v17 = vsel %vm1335_vm3, 0.0, %v8828_v14  ;;  %v9570_v32 = vsel %vm1339_vm7, 0.0, %v8828_v14 }
 0x32b   : > { %12119 = vst [vmem:[#allocation13_spill] sm:$0xff] %v9532_v17  ;;  %vm1344_vm12 = vcmp.le.s32.totalorder %v9517_v36, %v1326_v61 }
 0x32c   : > { %12123 = vst [vmem:[#allocation17_spill] sm:$0xff] %v9570_v32 }
 0x32f   : > { %1789 = vmatpush.bf16.xpose.msra.mxu3 %v1759_v19 }
 0x331   : > { %v1465_v4 = vpop.f32.mrf.mxu0 }
 0x332   : > { %v1466_v18 = vadd.f32 %v8134_v1, %v1465_v4 }
 0x334   : > { %v1721_v6 = vpack.c.bf16 %v1466_v18, %v1464_v44 }
 0x336   : > { %7098 = vmatmul.msk.bf16.vlgmr.msra.gmra.mxu3 %vm1733_vm1, %v1717_v58 }
 0x337   : > { %2342 = vmatpush.bf16.msrb.mxu3 %v7955_v42  ;;  %v1324_v42 = vadd.s32 64, %v9515_v13 }
 0x339   : > { %v1468_v38 = vpop.f32.mrf.mxu0  ;;  %vm1342_vm10 = vcmp.le.s32.totalorder %v9517_v36, %v1324_v42 }
 0x33a   : > { %v1469_v54 = vadd.f32 %v8134_v1, %v1468_v38  ;;  %v1323_v38 = vadd.s32 56, %v9515_v13 }
 0x33b   : > { %2343 = vmatpush.bf16.msrb.mxu3 %v7954_v56 }
 0x33c   : > { %vm1341_vm9 = vcmp.le.s32.totalorder %v9517_v36, %v1323_v38 }
 0x33f   : > { %2344 = vmatpush.bf16.msrb.mxu3 %v7953_v8  ;;  %v9599_v8 = vsel %vm1342_vm10, 0.0, %v8828_v14 }
 0x340   : > { %12126 = vst [vmem:[#allocation20_spill] sm:$0xff] %v9599_v8 }
 0x341   : > { %v1470_v53 = vpop.f32.mrf.mxu0 }
 0x342   : > { %v1471_v41 = vadd.f32 %v8134_v1, %v1470_v53 }
 0x343   : > { %2345 = vmatpush.bf16.msrb.mxu3 %v7952_v50 }
 0x344   : > { %v1722_v52 = vpack.c.bf16 %v1471_v41, %v1469_v54 }
 0x346   : > { %7099 = vmatmul.msk.bf16.gmra.mxu3 %vm1733_vm1, %v1718_v57 }
 0x347   : > { %2346 = vmatpush.bf16.msrb.mxu3 %v7951_v45 }
 0x349   : > { %v1473_v51 = vpop.f32.mrf.mxu0 }
 0x34a   : > { %v1474_v12 = vadd.f32 %v8134_v1, %v1473_v51 }
 0x34b   : > { %2347 = vmatpush.bf16.msrb.mxu3 %v7950_v48 }
 0x34f   : > { %2348 = vmatpush.bf16.msrb.mxu3 %v7949_v9 }
 0x351   : > { %v1475_v7 = vpop.f32.mrf.mxu0 }
 0x352   : > { %v1476_v39 = vadd.f32 %v8134_v1, %v1475_v7 }
 0x353   : > { %2349 = vmatpush.bf16.msrb.mxu3 %v7948_v10 }
 0x354   : > { %v1723_v59 = vpack.c.bf16 %v1476_v39, %v1474_v12 }
 0x356   : > { %7100 = vmatmul.msk.bf16.gmra.mxu3 %vm1733_vm1, %v1719_v40 }
 0x359   : > { %v1478_v46 = vpop.f32.mrf.mxu0 }
 0x35a   : > { %v1479_v37 = vadd.f32 %v8134_v1, %v1478_v46 }
 0x361   : > { %v1480_v63 = vpop.f32.mrf.mxu0 }
 0x362   : > { %v1481_v24 = vadd.f32 %v8134_v1, %v1480_v63  ;;  %v1318_v1 = vadd.s32 16, %v9515_v13 }
 0x364   : > { %v1724_v35 = vpack.c.bf16 %v1481_v24, %v1479_v37  ;;  %vm1336_vm4 = vcmp.le.s32.totalorder %v9517_v36, %v1318_v1 }
 0x365   : > { %v9542_v26 = vsel %vm1336_vm4, 0.0, %v8828_v14 }
 0x366   : > { %7101 = vmatmul.msk.bf16.gmra.mxu3 %vm1733_vm1, %v1720_v3  ;;  %12120 = vst [vmem:[#allocation14_spill] sm:$0xff] %v9542_v26  ;;  %v9580_v3 = vsel %vm1340_vm8, 0.0, %v8828_v14 }
 0x367   : > { %12124 = vst [vmem:[#allocation18_spill] sm:$0xff] %v9580_v3 }
 0x376   : > { %7102 = vmatmul.msk.bf16.gmra.mxu3 %vm1733_vm1, %v1721_v6  ;;  %v9589_v6 = vsel %vm1341_vm9, 0.0, %v8828_v14 }
 0x377   : > { %12125 = vst [vmem:[#allocation19_spill] sm:$0xff] %v9589_v6 }
 0x386   : > { %7103 = vmatmul.msk.bf16.gmra.mxu3 %vm1733_vm1, %v1722_v52 }
 0x396   : > { %7104 = vmatmul.msk.bf16.gmra.mxu3 %vm1733_vm1, %v1723_v59  ;;  %v1325_v59 = vadd.s32 72, %v9515_v13 }
 0x398   : > { %vm1343_vm11 = vcmp.le.s32.totalorder %v9517_v36, %v1325_v59 }
 0x399   : > { %v9624_v33 = vsel %vm1343_vm11, 0.0, %v8828_v14 }
 0x39a   : > { %12127 = vst [vmem:[#allocation21_spill] sm:$0xff] %v9624_v33 }
 0x3a6   : > { %7105 = vmatmul.msk.bf16.gmra.mxu3 %vm1733_vm1, %v1724_v35 }
 0x3b6   : > { %2350 = vmatmul.bf16.vlgmr.msrb.gmra.mxu3 %v9269_v5 }
 0x3b9   : > { %v1791_v11 = vpop.f32.mrf.mxu3 }
 0x3ba   : > { %v9527_v16 = vadd.f32 %v1791_v11, %v9523_v15 }
 0x3bc   : > { %1831 = vmax.xlane.f32.xlu2 %v9527_v16 }
 0x3c1   : > { %v1793_v19 = vpop.f32.mrf.mxu3 }
 0x3c2   : > { %v9536_v20 = vadd.f32 %v1793_v19, %v9532_v17 }
 0x3c4   : > { %1833 = vmax.xlane.f32.xlu0 %v9536_v20 }
 0x3c6   : > { %2355 = vmatmul.bf16.gmra.mxu3 %v9306_v34 }
 0x3c9   : > { %v1796_v58 = vpop.f32.mrf.mxu3 }
 0x3ca   : > { %v9546_v25 = vadd.f32 %v1796_v58, %v9542_v26  ;;  %v9639_v58 = vsel %vm1344_vm12, 0.0, %v8828_v14 }
 0x3cb   : > { %12128 = vst [vmem:[#allocation22_spill] sm:$0xff] %v9639_v58 }
 0x3cc   : > { %1835 = vmax.xlane.f32.xlu1 %v9546_v25 }
 0x3d1   : > { %v1798_v57 = vpop.f32.mrf.mxu3 }
 0x3d2   : > { %v9555_v49 = vadd.f32 %v1798_v57, %v9551_v30 }
 0x3d4   : > { %1837 = vmax.xlane.f32.xlu2 %v9555_v49 }
 0x3d6   : > { %2360 = vmatmul.bf16.gmra.mxu3 %v9318_v47 }
 0x3d9   : > { %v1801_v0 = vpop.f32.mrf.mxu3 }
 0x3da   : > { %v9565_v40 = vadd.f32 %v1801_v0, %v9561_v27 }
 0x3dc   : > { %1839 = vmax.xlane.f32.xlu0 %v9565_v40 }
 0x3e1   : > { %v1803_v2 = vpop.f32.mrf.mxu3 }
 0x3e2   : > { %v9574_v4 = vadd.f32 %v1803_v2, %v9570_v32 }
 0x3e4   : > { %1841 = vmax.xlane.f32.xlu1 %v9574_v4 }
 0x3e6   : > { %2365 = vmatmul.bf16.gmra.mxu3 %v9347_v43 }
 0x3e9   : > { %v1806_v18 = vpop.f32.mrf.mxu3 }
 0x3ea   : > { %v9584_v44 = vadd.f32 %v1806_v18, %v9580_v3 }
 0x3ec   : > { %1843 = vmax.xlane.f32.xlu2 %v9584_v44 }
 0x3f1   : > { %v1808_v53 = vpop.f32.mrf.mxu3 }
 0x3f2   : > { %v9593_v56 = vadd.f32 %v1808_v53, %v9589_v6 }
 0x3f4   : > { %1845 = vmax.xlane.f32.xlu0 %v9593_v56 }
 0x3f6   : > { %2370 = vmatmul.bf16.gmra.mxu3 %v9370_v28 }
 0x3f9   : > { %v1811_v41 = vpop.f32.mrf.mxu3 }
 0x3fa   : > { %v9602_v50 = vadd.f32 %v1811_v41, %v9599_v8 }
 0x3fc   : > { %1847 = vmax.xlane.f32.xlu0 %v9602_v50 }
 0x401   : > { %v1813_v51 = vpop.f32.mrf.mxu3 }
 0x402   : > { %v9631_v19 = vadd.f32 %v1813_v51, %v9624_v33 }
 0x406   : > { %2375 = vmatmul.bf16.gmra.mxu3 %v9383_v22 }
 0x409   : > { %v1816_v54 = vpop.f32.mrf.mxu3 }
 0x40a   : > { %v9644_v62 = vadd.f32 %v1816_v54, %v9639_v58 }
 0x411   : > { %v1818_v52 = vpop.f32.mrf.mxu3 }
 0x416   : > { %2380 = vmatmul.bf16.gmra.mxu3 %v9394_v55 }
 0x419   : > { %v1821_v45 = vpop.f32.mrf.mxu3 }
 0x421   : > { %v9607_v48 = vpop.f32.mrf.mxu3 }
 0x426   : > { %2385 = vmatmul.bf16.gmra.mxu3 %v9419_v31 }
 0x429   : > { %v9610_v7 = vpop.f32.mrf.mxu3 }
 0x42f   : > { %v1832_v9 = vpop.xlane.xlu2 %1831 }
 0x430   : > { %v1863_v39 = vsub.f32 %v9527_v16, %v1832_v9 }
 0x431   : > { %v9613_v10 = vpop.f32.mrf.mxu3 }
 0x432   : > { %v1879_v12 = vmul.f32 1.442695, %v1863_v39 }
 0x434   : > { %8188 = vpow2.f32 %v1879_v12 }
 0x437   : > { %v1834_v46 = vpop.xlane.xlu0 %1833 }
 0x438   : > { %v1864_v63 = vsub.f32 %v9536_v20, %v1834_v46 }
 0x439   : > { %v9617_v24 = vpop.f32.mrf.mxu3 }
 0x43a   : > { %v9619_v37 = vpop.eup %8188  ;;  %v1881_v35 = vmul.f32 1.442695, %v1864_v63 }
 0x43b   : > { %1911 = vadd.xlane.f32.xlu1 %v9619_v37 }
 0x43c   : > { %8190 = vpow2.f32 %v1881_v35 }
 0x43f   : > { %v1836_v11 = vpop.xlane.xlu1 %1835 }
 0x440   : > { %v1865_v16 = vsub.f32 %v9546_v25, %v1836_v11  ;;  %v1327_v25 = vadd.s32 88, %v9515_v13 }
 0x441   : > { %v9628_v1 = vpop.f32.mrf.mxu3 }
 0x442   : > { %v9633_v20 = vpop.eup %8190  ;;  %v1883_v23 = vmul.f32 1.442695, %v1865_v16  ;;  %vm1345_vm13 = vcmp.le.s32.totalorder %v9517_v36, %v1327_v25 }
 0x443   : > { %1913 = vadd.xlane.f32.xlu2 %v9633_v20  ;;  %1849 = vmax.xlane.f32.xlu1 %v9631_v19  ;;  %v9654_v38 = vsel %vm1345_vm13, 0.0, %v8828_v14 }
 0x444   : > { %8192 = vpow2.f32 %v1883_v23  ;;  %12129 = vst [vmem:[#allocation23_spill] sm:$0xff] %v9654_v38  ;;  %v9661_v41 = vadd.f32 %v1818_v52, %v9654_v38 }
 0x447   : > { %v1838_v60 = vpop.xlane.xlu2 %1837 }
 0x448   : > { %v1866_v57 = vsub.f32 %v9555_v49, %v1838_v60  ;;  %v1328_v49 = vadd.s32 96, %v9515_v13 }
 0x449   : > { %v9646_v0 = vpop.f32.mrf.mxu3 }
 0x44a   : > { %v9648_v21 = vpop.eup %8192  ;;  %v1885_v2 = vmul.f32 1.442695, %v1866_v57  ;;  %vm1346_vm14 = vcmp.le.s32.totalorder %v9517_v36, %v1328_v49  ;;  %v1331_v57 = vadd.s32 120, %v9515_v13 }
 0x44b   : > { %1915 = vadd.xlane.f32.xlu2 %v9648_v21  ;;  %1851 = vmax.xlane.f32.xlu1 %v9644_v62  ;;  %v9669_v9 = vsel %vm1346_vm14, 0.0, %v8828_v14 }
 0x44c   : > { %8194 = vpow2.f32 %v1885_v2  ;;  %12130 = vst [vmem:[#allocation24_spill] sm:$0xff] %v9669_v9  ;;  %v9674_v52 = vadd.f32 %v1821_v45, %v9669_v9  ;;  %vm1349_vm2 = vcmp.le.s32.totalorder %v9517_v36, %v1331_v57 }
 0x44f   : > { %v1840_v18 = vpop.xlane.xlu0 %1839 }
 0x450   : > { %v1867_v42 = vsub.f32 %v9565_v40, %v1840_v18  ;;  %v1329_v40 = vadd.s32 104, %v9515_v13 }
 0x451   : > { %v9658_v53 = vpop.f32.mrf.mxu3 }
 0x452   : > { %v9663_v51 = vpop.eup %8194  ;;  %v1887_v54 = vmul.f32 1.442695, %v1867_v42  ;;  %vm1347_vm15 = vcmp.le.s32.totalorder %v9517_v36, %v1329_v40 }
 0x453   : > { %1853 = vmax.xlane.f32.xlu2 %v9661_v41  ;;  %1917 = vadd.xlane.f32.xlu0 %v9663_v51  ;;  %v9684_v35 = vsel %vm1347_vm15, 0.0, %v8828_v14 }
 0x454   : > { %8196 = vpow2.f32 %v1887_v54  ;;  %12131 = vst [vmem:[#allocation25_spill] sm:$0xff] %v9684_v35  ;;  %v9692_v16 = vadd.f32 %v9607_v48, %v9684_v35 }
 0x457   : > { %v1842_v39 = vpop.xlane.xlu1 %1841 }
 0x458   : > { %v1868_v12 = vsub.f32 %v9574_v4, %v1842_v39  ;;  %v1330_v4 = vadd.s32 112, %v9515_v13  ;;  %v9716_v13 = vsel %vm1349_vm2, 0.0, %v8828_v14 }
 0x459   : > { %v9676_v46 = vpop.f32.mrf.mxu3  ;;  %12133 = vst [vmem:[#allocation27_spill] sm:$0xff] %v9716_v13  ;;  %v9723_v39 = vadd.f32 %v9613_v10, %v9716_v13  ;;  %v7938_v10 = vld [vmem:[%s9014_s28] sm:$0xff] }
 0x45a   : > { %v9678_v59 = vpop.eup %8196  ;;  %v1889_v63 = vmul.f32 1.442695, %v1868_v12  ;;  %vm1348_vm0 = vcmp.le.s32.totalorder %v9517_v36, %v1330_v4 }
 0x45b   : > { %1855 = vmax.xlane.f32.xlu2 %v9674_v52  ;;  %1919 = vadd.xlane.f32.xlu0 %v9678_v59  ;;  %v9700_v25 = vsel %vm1348_vm0, 0.0, %v8828_v14 }
 0x45c   : > { %8198 = vpow2.f32 %v1889_v63  ;;  %12132 = vst [vmem:[#allocation26_spill] sm:$0xff] %v9700_v25  ;;  %v9706_v48 = vadd.f32 %v9610_v7, %v9700_v25 }
 0x45f   : > { %v1844_v61 = vpop.xlane.xlu2 %1843 }
 0x460   : > { %v1869_v45 = vsub.f32 %v9584_v44, %v1844_v61  ;;  %v7939_v61 = vld [vmem:[%s9014_s28 + $0x8] sm:$0xff] }
 0x461   : > { %v9688_v11 = vpop.f32.mrf.mxu3  ;;  %2094 = vmatpush.bf16.msrb.mxu1 %v7939_v61 }
 0x462   : > { %v9694_v23 = vpop.eup %8198  ;;  %v1891_v60 = vmul.f32 1.442695, %v1869_v45 }
 0x463   : > { %1921 = vadd.xlane.f32.xlu1 %v9694_v23  ;;  %1857 = vmax.xlane.f32.xlu0 %v9692_v16 }
 0x464   : > { %8200 = vpow2.f32 %v1891_v60 }
 0x465   : > { %2095 = vmatpush.bf16.msrb.mxu1 %v7938_v10 }
 0x467   : > { %v1846_v44 = vpop.xlane.xlu0 %1845 }
 0x468   : > { %v1870_v2 = vsub.f32 %v9593_v56, %v1846_v44 }
 0x469   : > { %v9708_v49 = vpop.f32.mrf.mxu3 }
 0x46a   : > { %v9710_v18 = vpop.eup %8200  ;;  %v1893_v42 = vmul.f32 1.442695, %v1870_v2  ;;  %v9735_v2 = vld [vmem:[%s8998_s1 + $0x1] ss:$0 sm:$0xff] }
 0x46b   : > { %1923 = vadd.xlane.f32.xlu1 %v9710_v18  ;;  %1859 = vmax.xlane.f32.xlu0 %v9706_v48 }
 0x46c   : > { %8202 = vpow2.f32 %v1893_v42 }
 0x46f   : > { %v1848_v56 = vpop.xlane.xlu0 %1847 }
 0x470   : > { %v1871_v7 = vsub.f32 %v9602_v50, %v1848_v56 }
 0x471   : > { %v9719_v54 = vpop.f32.mrf.mxu3 }
 0x472   : > { %v9725_v40 = vpop.eup %8202  ;;  %v1895_v12 = vmul.f32 1.442695, %v1871_v7 }
 0x473   : > { %1925 = vadd.xlane.f32.xlu2 %v9725_v40  ;;  %1861 = vmax.xlane.f32.xlu1 %v9723_v39 }
 0x474   : > { %8204 = vpow2.f32 %v1895_v12 }
 0x479   : > { %v2371_v36 = vpop.f32.mrf.mxu3 }
 0x47a   : > { %v9729_v14 = vpop.eup %8204 }
 0x47b   : > { %1927 = vadd.xlane.f32.xlu2 %v9729_v14 }
 0x481   : > { %v2373_v50 = vpop.f32.mrf.mxu3 }
 0x489   : > { %v2376_v63 = vpop.f32.mrf.mxu3 }
 0x491   : > { %v2378_v4 = vpop.f32.mrf.mxu3 }
 0x499   : > { %v2381_v45 = vpop.f32.mrf.mxu3 }
 0x49a   : > { %v2382_v35 = vadd.f32 %v9735_v2, %v2381_v45 }
 0x4a1   : > { %v2383_v60 = vpop.f32.mrf.mxu3 }
 0x4a2   : > { %v2384_v29 = vadd.f32 %v9735_v2, %v2383_v60 }
 0x4a4   : > { %v2524_v38 = vpack.c.bf16 %v2384_v29, %v2382_v35 }
 0x4a6   : > { %v2569_v60 = vsel %vm1733_vm1, %v2524_v38, 0  ;;  %v2374_v38 = vadd.f32 %v9735_v2, %v2373_v50  ;;  %v2369_v50 = vadd.f32 %v9735_v2, %v9719_v54 }
 0x4a9   : > { %v2386_v44 = vpop.f32.mrf.mxu3 }
 0x4aa   : > { %v2387_v56 = vadd.f32 %v9735_v2, %v2386_v44 }
 0x4ae   : > { %v1912_v57 = vpop.xlane.xlu1 %1911 }
 0x4af   : > { %8206 = vrcp.f32 %v1912_v57 }
 0x4b1   : > { %v2388_v42 = vpop.f32.mrf.mxu3 }
 0x4b2   : > { %v2389_v7 = vadd.f32 %v9735_v2, %v2388_v42  ;;  %v2379_v42 = vadd.f32 %v9735_v2, %v2378_v4 }
 0x4b4   : > { %v2525_v12 = vpack.c.bf16 %v2389_v7, %v2387_v56 }
 0x4b5   : > { %v8207_v58 = vpop.eup %8206 }
 0x4b6   : > { %v1850_v13 = vpop.xlane.xlu1 %1849  ;;  %v1914_v25 = vpop.xlane.xlu2 %1913  ;;  %v2572_v61 = vsel %vm1733_vm1, %v2525_v12, 0  ;;  %v1959_v7 = vmul.f32 %v8207_v58, %v9619_v37 }
 0x4b7   : > { %v1872_v10 = vsub.f32 %v9631_v19, %v1850_v13  ;;  %8208 = vrcp.f32 %v1914_v25  ;;  %2574 = vmatpush.bf16.xpose.msra.mxu1 %v2572_v61  ;;  %v2377_v25 = vadd.f32 %v9735_v2, %v2376_v63  ;;  %v2372_v63 = vadd.f32 %v9735_v2, %v2371_v36 }
 0x4b9   : > { %v1897_v9 = vmul.f32 1.442695, %v1872_v10  ;;  %v2523_v35 = vpack.c.bf16 %v2379_v42, %v2377_v25  ;;  %v2522_v61 = vpack.c.bf16 %v2374_v38, %v2372_v63 }
 0x4bb   : > { %8210 = vpow2.f32 %v1897_v9 }
 0x4bd   : > { %v8209_v44 = vpop.eup %8208 }
 0x4be   : > { %v1852_v57 = vpop.xlane.xlu1 %1851  ;;  %v1916_v56 = vpop.xlane.xlu2 %1915  ;;  %v1960_v12 = vmul.f32 %v8209_v44, %v9633_v20  ;;  %v2566_v20 = vsel %vm1733_vm1, %v2523_v35, 0 }
 0x4bf   : > { %v1873_v19 = vsub.f32 %v9644_v62, %v1852_v57  ;;  %2575 = vmatpush.bf16.xpose.msra.mxu1 %v2569_v60 }
 0x4c0   : > { %v1975_v13 = vpack.c.bf16 %v1960_v12, %v1959_v7  ;;  %v2367_v7 = vadd.f32 %v9735_v2, %v9708_v49 }
 0x4c1   : > { %v9749_v29 = vpop.eup %8210  ;;  %v1899_v9 = vmul.f32 1.442695, %v1873_v19 }
 0x4c2   : > { %1999 = vmatmul.bf16.vlgmr.msrb.gmra.mxu0 %v1975_v13  ;;  %1929 = vadd.xlane.f32.xlu0 %v9749_v29  ;;  %v2521_v54 = vpack.c.bf16 %v2369_v50, %v2367_v7 }
 0x4c3   : > { %8212 = vpow2.f32 %v1899_v9  ;;  %v2362_v9 = vadd.f32 %v9735_v2, %v9676_v46 }
 0x4c4   : > { %8214 = vrcp.f32 %v1916_v56  ;;  %v2563_v56 = vsel %vm1733_vm1, %v2522_v61, 0 }
 0x4c6   : > { %v1918_v37 = vpop.xlane.xlu0 %1917  ;;  %v1854_v58 = vpop.xlane.xlu2 %1853 }
 0x4c7   : > { %8216 = vrcp.f32 %v1918_v37  ;;  %v1874_v62 = vsub.f32 %v9661_v41, %v1854_v58  ;;  %2576 = vmatpush.bf16.xpose.msra.mxu1 %v2566_v20  ;;  %v2359_v20 = vadd.f32 %v9735_v2, %v9658_v53 }
 0x4c9   : > { %v9756_v4 = vpop.eup %8212  ;;  %v1901_v45 = vmul.f32 1.442695, %v1874_v62 }
 0x4ca   : > { %1931 = vadd.xlane.f32.xlu1 %v9756_v4  ;;  %v8215_v10 = vpop.eup %8214 }
 0x4cb   : > { %8218 = vpow2.f32 %v1901_v45  ;;  %v1961_v41 = vmul.f32 %v8215_v10, %v9648_v21  ;;  %v2364_v21 = vadd.f32 %v9735_v2, %v9688_v11  ;;  %v2357_v10 = vadd.f32 %v9735_v2, %v9646_v0 }
 0x4cd   : > { %v8217_v44 = vpop.eup %8216  ;;  %v2520_v37 = vpack.c.bf16 %v2364_v21, %v2362_v9  ;;  %v2519_v53 = vpack.c.bf16 %v2359_v20, %v2357_v10 }
 0x4ce   : > { %v1920_v42 = vpop.xlane.xlu0 %1919  ;;  %v1856_v57 = vpop.xlane.xlu2 %1855  ;;  %v1962_v36 = vmul.f32 %v8217_v44, %v9663_v51 }
 0x4cf   : > { %v1875_v60 = vsub.f32 %v9674_v52, %v1856_v57  ;;  %2577 = vmatpush.bf16.xpose.msra.mxu1 %v2563_v56  ;;  %v2560_v52 = vsel %vm1733_vm1, %v2521_v54, 0  ;;  %v2352_v56 = vadd.f32 %v9735_v2, %v9617_v24 }
 0x4d0   : > { %v1976_v12 = vpack.c.bf16 %v1962_v36, %v1961_v41 }
 0x4d1   : > { %v9767_v19 = vpop.eup %8218  ;;  %v1903_v25 = vmul.f32 1.442695, %v1875_v60 }
 0x4d2   : > { %1933 = vadd.xlane.f32.xlu2 %v9767_v19  ;;  %2004 = vmatmul.bf16.gmra.mxu0 %v1976_v12 }
 0x4d3   : > { %8220 = vpow2.f32 %v1903_v25 }
 0x4d4   : > { %8222 = vrcp.f32 %v1920_v42 }
 0x4d6   : > { %v1922_v51 = vpop.xlane.xlu1 %1921  ;;  %v1858_v13 = vpop.xlane.xlu0 %1857 }
 0x4d7   : > { %8224 = vrcp.f32 %v1922_v51  ;;  %v1876_v49 = vsub.f32 %v9692_v16, %v1858_v13  ;;  %2578 = vmatpush.bf16.xpose.msra.mxu1 %v2560_v52  ;;  %v2557_v16 = vsel %vm1733_vm1, %v2520_v37, 0 }
 0x4d9   : > { %v9776_v35 = vpop.eup %8220  ;;  %v1905_v38 = vmul.f32 1.442695, %v1876_v49 }
 0x4da   : > { %1935 = vadd.xlane.f32.xlu0 %v9776_v35  ;;  %v8223_v58 = vpop.eup %8222 }
 0x4db   : > { %8226 = vpow2.f32 %v1905_v38  ;;  %v1963_v45 = vmul.f32 %v8223_v58, %v9678_v59  ;;  %v2354_v59 = vadd.f32 %v9735_v2, %v9628_v1  ;;  %v7963_v38 = vld [vmem:[%s9003_s16 + $0x78] sm:$0xff]  ;;  %v7962_v58 = vld [vmem:[%s9003_s16 + $0x70] sm:$0xff] }
 0x4dc   : > { %2461 = vmatpush.bf16.msra.mxu0 %v7963_v38 }
 0x4dd   : > { %v8225_v11 = vpop.eup %8224  ;;  %v2518_v60 = vpack.c.bf16 %v2354_v59, %v2352_v56 }
 0x4de   : > { %v1924_v62 = vpop.xlane.xlu1 %1923  ;;  %v1860_v63 = vpop.xlane.xlu0 %1859  ;;  %v1964_v46 = vmul.f32 %v8225_v11, %v9694_v23 }
 0x4df   : > { %v1877_v61 = vsub.f32 %v9706_v48, %v1860_v63  ;;  %2579 = vmatpush.bf16.xpose.msra.mxu1 %v2557_v16  ;;  %v2554_v48 = vsel %vm1733_vm1, %v2519_v53, 0  ;;  %v2551_v12 = vsel %vm1733_vm1, %v2518_v60, 0 }
 0x4e0   : > { %v1977_v44 = vpack.c.bf16 %v1964_v46, %v1963_v45  ;;  %2462 = vmatpush.bf16.msra.mxu0 %v7962_v58  ;;  %v7968_v58 = vld [vmem:[%s8982_s30 + $0x90] sm:$0xff] }
 0x4e1   : > { %v9787_v50 = vpop.eup %8226  ;;  %v1907_v42 = vmul.f32 1.442695, %v1877_v61 }
 0x4e2   : > { %2009 = vmatmul.bf16.gmra.mxu0 %v1977_v44  ;;  %1937 = vadd.xlane.f32.xlu1 %v9787_v50  ;;  %v7959_v44 = vld [vmem:[%s9003_s16 + $0x58] sm:$0xff] }
 0x4e3   : > { %8228 = vpow2.f32 %v1907_v42  ;;  %v7958_v42 = vld [vmem:[%s9003_s16 + $0x50] sm:$0xff] }
 0x4e4   : > { %8230 = vrcp.f32 %v1924_v62  ;;  %v7961_v62 = vld [vmem:[%s9003_s16 + $0x68] sm:$0xff] }
 0x4e5   : > { %2463 = vmatpush.bf16.msra.mxu0 %v7961_v62  ;;  %v2232_v62 = vpop.f32.mrf.mxu2 }
 0x4e6   : > { %v1926_v23 = vpop.xlane.xlu2 %1925  ;;  %v1862_v57 = vpop.xlane.xlu1 %1861 }
 0x4e7   : > { %8232 = vrcp.f32 %v1926_v23  ;;  %v1878_v0 = vsub.f32 %v9723_v39, %v1862_v57  ;;  %2580 = vmatpush.bf16.xpose.msra.mxu1 %v2554_v48  ;;  %v7957_v57 = vld [vmem:[%s9003_s16 + $0x48] sm:$0xff] }
 0x4e9   : > { %v9796_v41 = vpop.eup %8228  ;;  %v1909_v36 = vmul.f32 1.442695, %v1878_v0 }
 0x4ea   : > { %1939 = vadd.xlane.f32.xlu2 %v9796_v41  ;;  %v8231_v7 = vpop.eup %8230 }
 0x4eb   : > { %8234 = vpow2.f32 %v1909_v36  ;;  %v1965_v25 = vmul.f32 %v8231_v7, %v9710_v18 }
 0x4ed   : > { %v8233_v1 = vpop.eup %8232 }
 0x4ee   : > { %v1966_v54 = vmul.f32 %v8233_v1, %v9725_v40  ;;  %v1928_v24 = vpop.xlane.xlu2 %1927 }
 0x4ef   : > { %2581 = vmatpush.bf16.xpose.msra.mxu1 %v2551_v12  ;;  %8236 = vrcp.f32 %v1928_v24 }
 0x4f0   : > { %v1978_v39 = vpack.c.bf16 %v1966_v54, %v1965_v25 }
 0x4f1   : > { %v9802_v21 = vpop.eup %8234 }
 0x4f2   : > { %2014 = vmatmul.bf16.gmra.mxu0 %v1978_v39  ;;  %1941 = vadd.xlane.f32.xlu0 %v9802_v21 }
 0x4f5   : > { %v8237_v51 = vpop.eup %8236 }
 0x4f6   : > { %v1967_v18 = vmul.f32 %v8237_v51, %v9729_v14 }
 0x535   : > { %v1930_v2 = vpop.xlane.xlu0 %1929 }
 0x536   : > { %8238 = vrcp.f32 %v1930_v2 }
 0x53c   : > { %v8239_v13 = vpop.eup %8238 }
 0x53d   : > { %v1968_v40 = vmul.f32 %v8239_v13, %v9749_v29  ;;  %v1932_v9 = vpop.xlane.xlu1 %1931  ;;  %v7960_v29 = vld [vmem:[%s9003_s16 + $0x60] sm:$0xff] }
 0x53e   : > { %8240 = vrcp.f32 %v1932_v9  ;;  %2464 = vmatpush.bf16.msra.mxu0 %v7960_v29  ;;  %v7970_v9 = vld [vmem:[%s8982_s30 + $0xa0] sm:$0xff] }
 0x53f   : > { %v2000_v52 = vpop.f32.mrf.mxu0  ;;  %v1979_v49 = vpack.c.bf16 %v1968_v40, %v1967_v18  ;;  %v7972_v18 = vld [vmem:[%s8982_s30 + $0xb0] sm:$0xff]  ;;  %v7966_v29 = vld [vmem:[%s8982_s30 + $0x80] sm:$0xff] }
 0x541   : > { %2019 = vmatmul.bf16.gmra.mxu0 %v1979_v49  ;;  %v7971_v49 = vld [vmem:[%s8982_s30 + $0xa8] sm:$0xff] }
 0x542   : > { %2465 = vmatpush.bf16.msra.mxu0 %v7959_v44 }
 0x544   : > { %v8241_v14 = vpop.eup %8240 }
 0x545   : > { %v1934_v37 = vpop.xlane.xlu2 %1933  ;;  %v1969_v16 = vmul.f32 %v8241_v14, %v9756_v4  ;;  %v7967_v14 = vld [vmem:[%s8982_s30 + $0x88] sm:$0xff] }
 0x546   : > { %8242 = vrcp.f32 %v1934_v37  ;;  %2466 = vmatpush.bf16.msra.mxu0 %v7958_v42  ;;  %v7969_v37 = vld [vmem:[%s8982_s30 + $0x98] sm:$0xff] }
 0x547   : > { %v2002_v11 = vpop.f32.mrf.mxu0 }
 0x548   : > { %v2040_v20 = vpack.c.bf16 %v2002_v11, %v2000_v52 }
 0x54a   : > { %7114 = vmatmul.msk.bf16.vlgmr.msrb.gmra.mxu1 %vm1733_vm1, %v2040_v20  ;;  %2467 = vmatpush.bf16.msra.mxu0 %v7957_v57  ;;  %v9848_v57 = vld [vmem:[%s8988_s26 + $0x1] ss:$0 sm:$0xff] }
 0x54c   : > { %v8243_v63 = vpop.eup %8242 }
 0x54d   : > { %v1970_v45 = vmul.f32 %v8243_v63, %v9767_v19  ;;  %v1936_v10 = vpop.xlane.xlu0 %1935  ;;  %v7956_v19 = vld [vmem:[%s9003_s16 + $0x40] sm:$0xff] }
 0x54e   : > { %8244 = vrcp.f32 %v1936_v10  ;;  %2468 = vmatpush.bf16.msra.mxu0 %v7956_v19 }
 0x54f   : > { %v2005_v46 = vpop.f32.mrf.mxu0  ;;  %v1980_v61 = vpack.c.bf16 %v1970_v45, %v1969_v16  ;;  %v2234_v16 = vpop.f32.mrf.mxu2 }
 0x551   : > { %2024 = vmatmul.bf16.gmra.mxu0 %v1980_v61 }
 0x554   : > { %v8245_v4 = vpop.eup %8244 }
 0x555   : > { %v1938_v53 = vpop.xlane.xlu1 %1937  ;;  %v1971_v0 = vmul.f32 %v8245_v4, %v9776_v35 }
 0x556   : > { %8246 = vrcp.f32 %v1938_v53 }
 0x557   : > { %v2007_v59 = vpop.f32.mrf.mxu0  ;;  %v2237_v61 = vpop.f32.mrf.mxu2 }
 0x558   : > { %v2041_v23 = vpack.c.bf16 %v2007_v59, %v2005_v46 }
 0x55a   : > { %7115 = vmatmul.msk.bf16.gmra.mxu1 %vm1733_vm1, %v2041_v23 }
 0x55c   : > { %v8247_v48 = vpop.eup %8246 }
 0x55d   : > { %v1972_v56 = vmul.f32 %v8247_v48, %v9787_v50  ;;  %v1940_v7 = vpop.xlane.xlu2 %1939  ;;  %v2235_v48 = vadd.f32 %v9848_v57, %v2234_v16 }
 0x55e   : > { %8248 = vrcp.f32 %v1940_v7 }
 0x55f   : > { %v2010_v36 = vpop.f32.mrf.mxu0  ;;  %v1981_v60 = vpack.c.bf16 %v1972_v56, %v1971_v0  ;;  %v2239_v42 = vpop.f32.mrf.mxu2  ;;  %v9855_v0 = vld [vmem:[%s9008_s25 + $0x1] ss:$0 sm:$0xff]  ;;  %v2233_v56 = vadd.f32 %v9848_v57, %v2232_v62 }
 0x561   : > { %2029 = vmatmul.bf16.gmra.mxu0 %v1981_v60  ;;  %v2510_v60 = vpack.c.bf16 %v2235_v48, %v2233_v56 }
 0x564   : > { %v8249_v54 = vpop.eup %8248 }
 0x565   : > { %v1942_v1 = vpop.xlane.xlu0 %1941  ;;  %v1973_v24 = vmul.f32 %v8249_v54, %v9796_v41 }
 0x566   : > { %8250 = vrcp.f32 %v1942_v1 }
 0x567   : > { %v2012_v12 = vpop.f32.mrf.mxu0  ;;  %v2242_v4 = vpop.f32.mrf.mxu2 }
 0x568   : > { %v2042_v25 = vpack.c.bf16 %v2012_v12, %v2010_v36 }
 0x56a   : > { %7116 = vmatmul.msk.bf16.gmra.mxu1 %vm1733_vm1, %v2042_v25 }
 0x56c   : > { %v8251_v39 = vpop.eup %8250 }
 0x56d   : > { %v1974_v35 = vmul.f32 %v8251_v39, %v9802_v21  ;;  %v7973_v21 = vld [vmem:[%s8982_s30 + $0xb8] sm:$0xff] }
 0x56e   : > { %3016 = vmatpush.bf16.msrb.mxu0 %v7973_v21 }
 0x56f   : > { %v2015_v50 = vpop.f32.mrf.mxu0  ;;  %v1982_v2 = vpack.c.bf16 %v1974_v35, %v1973_v24  ;;  %v2244_v25 = vpop.f32.mrf.mxu2  ;;  %v2240_v24 = vadd.f32 %v9848_v57, %v2239_v42  ;;  %v2238_v35 = vadd.f32 %v9848_v57, %v2237_v61 }
 0x571   : > { %2034 = vmatmul.bf16.gmra.mxu0 %v1982_v2 }
 0x572   : > { %3017 = vmatpush.bf16.msrb.mxu0 %v7972_v18 }
 0x576   : > { %3018 = vmatpush.bf16.msrb.mxu0 %v7971_v49 }
 0x577   : > { %v2017_v51 = vpop.f32.mrf.mxu0 }
 0x578   : > { %v2043_v13 = vpack.c.bf16 %v2017_v51, %v2015_v50  ;;  %v2247_v50 = vpop.f32.mrf.mxu2 }
 0x579   : > { %v2248_v61 = vadd.f32 %v9848_v57, %v2247_v50  ;;  %v7981_v50 = vld [vmem:[%s8993_s2 + $0xb8] sm:$0xff] }
 0x57a   : > { %7117 = vmatmul.msk.bf16.gmra.mxu1 %vm1733_vm1, %v2043_v13  ;;  %3019 = vmatpush.bf16.msrb.mxu0 %v7970_v9  ;;  %v2511_v13 = vpack.c.bf16 %v2240_v24, %v2238_v35  ;;  %v2245_v9 = vadd.f32 %v9848_v57, %v2244_v25 }
 0x57b   : > { %3135 = vmatpush.bf16.msrb.mxu1 %v7981_v50  ;;  %v7974_v50 = vld [vmem:[%s8993_s2 + $0x80] sm:$0xff] }
 0x57e   : > { %3020 = vmatpush.bf16.msrb.mxu0 %v7969_v37 }
 0x581   : > { %2469 = vmatmul.bf16.vlgmr.msra.gmra.mxu0 %v9269_v5 }
 0x582   : > { %3021 = vmatpush.bf16.msrb.mxu0 %v7968_v58 }
 0x586   : > { %3022 = vmatpush.bf16.msrb.mxu0 %v7967_v14 }
 0x58a   : > { %3023 = vmatpush.bf16.msrb.mxu0 %v7966_v29 }
 0x591   : > { %2474 = vmatmul.bf16.gmra.mxu0 %v9306_v34 }
 0x5a1   : > { %2479 = vmatmul.bf16.gmra.mxu0 %v9318_v47 }
 0x5b1   : > { %2484 = vmatmul.bf16.gmra.mxu0 %v9347_v43 }
 0x5be   : > { %v2020_v41 = vpop.f32.mrf.mxu0 }
 0x5c1   : > { %2489 = vmatmul.bf16.gmra.mxu0 %v9370_v28 }
 0x5c6   : > { %v2022_v40 = vpop.f32.mrf.mxu0 }
 0x5c7   : > { %v2044_v52 = vpack.c.bf16 %v2022_v40, %v2020_v41  ;;  %v9844_v59 = vpop.f32.mrf.mxu1 }
 0x5c9   : > { %7118 = vmatmul.msk.bf16.gmra.mxu1 %vm1733_vm1, %v2044_v52  ;;  %v2249_v52 = vpop.f32.mrf.mxu2 }
 0x5ca   : > { %v2250_v16 = vadd.f32 %v9848_v57, %v2249_v52 }
 0x5ce   : > { %v2025_v38 = vpop.f32.mrf.mxu0 }
 0x5cf   : > { %v9851_v19 = vpop.f32.mrf.mxu1 }
 0x5d0   : > { %12134 = vst [vmem:[#allocation28_spill] sm:$0xff] %v9851_v19 }
 0x5d1   : > { %2494 = vmatmul.bf16.gmra.mxu0 %v9383_v22  ;;  %v2252_v62 = vpop.f32.mrf.mxu2 }
 0x5d6   : > { %v2027_v11 = vpop.f32.mrf.mxu0 }
 0x5d7   : > { %v2045_v20 = vpack.c.bf16 %v2027_v11, %v2025_v38  ;;  %v9867_v54 = vpop.f32.mrf.mxu1  ;;  %v2243_v38 = vadd.f32 %v9848_v57, %v2242_v4 }
 0x5d9   : > { %7119 = vmatmul.msk.bf16.gmra.mxu1 %vm1733_vm1, %v2045_v20  ;;  %v2512_v58 = vpack.c.bf16 %v2245_v9, %v2243_v38  ;;  %v7979_v9 = vld [vmem:[%s8993_s2 + $0xa8] sm:$0xff] }
 0x5de   : > { %v2030_v63 = vpop.f32.mrf.mxu0 }
 0x5df   : > { %v9872_v2 = vpop.f32.mrf.mxu1 }
 0x5e0   : > { %12135 = vst [vmem:[#allocation29_spill] sm:$0xff] %v9872_v2 }
 0x5e1   : > { %2499 = vmatmul.bf16.gmra.mxu0 %v9394_v55 }
 0x5e6   : > { %v2032_v45 = vpop.f32.mrf.mxu0 }
 0x5e7   : > { %v2046_v46 = vpack.c.bf16 %v2032_v45, %v2030_v63  ;;  %v9883_v49 = vpop.f32.mrf.mxu1  ;;  %v2254_v45 = vpop.f32.mrf.mxu2 }
 0x5e9   : > { %7120 = vmatmul.msk.bf16.gmra.mxu1 %vm1733_vm1, %v2046_v46 }
 0x5ee   : > { %v2035_v10 = vpop.f32.mrf.mxu0 }
 0x5ef   : > { %v9897_v29 = vpop.f32.mrf.mxu1  ;;  %v2257_v4 = vpop.f32.mrf.mxu2 }
 0x5f0   : > { %12136 = vst [vmem:[#allocation30_spill] sm:$0xff] %v9897_v29  ;;  %v12145_v29 = vld [vmem:[#allocation25_spill] sm:$0xff] }
 0x5f1   : > { %2504 = vmatmul.bf16.gmra.mxu0 %v9419_v31 }
 0x5f6   : > { %v2037_v44 = vpop.f32.mrf.mxu0 }
 0x5f7   : > { %v2047_v53 = vpack.c.bf16 %v2037_v44, %v2035_v10  ;;  %v9901_v46 = vpop.f32.mrf.mxu1  ;;  %v2513_v44 = vpack.c.bf16 %v2250_v16, %v2248_v61  ;;  %v2259_v35 = vpop.f32.mrf.mxu2 }
 0x5f8   : > { %v2260_v38 = vadd.f32 %v9848_v57, %v2259_v35 }
 0x5f9   : > { %7121 = vmatmul.msk.bf16.gmra.mxu1 %vm1733_vm1, %v2047_v53 }
 0x5fe   : > { %v2470_v23 = vpop.f32.mrf.mxu0 }
 0x5ff   : > { %v9859_v7 = vadd.f32 %v9855_v0, %v2470_v23  ;;  %v9913_v48 = vpop.f32.mrf.mxu1  ;;  %v2262_v52 = vpop.f32.mrf.mxu2 }
 0x600   : > { %12137 = vst [vmem:[#allocation31_spill] sm:$0xff] %v9913_v48 }
 0x601   : > { %3024 = vmatmul.bf16.vlgmr.msrb.gmra.mxu0 %v9269_v5 }
 0x606   : > { %v2472_v36 = vpop.f32.mrf.mxu0 }
 0x607   : > { %v9862_v1 = vadd.f32 %v9855_v0, %v2472_v36  ;;  %v2255_v36 = vadd.f32 %v9848_v57, %v2254_v45  ;;  %v7977_v45 = vld [vmem:[%s8993_s2 + $0x98] sm:$0xff]  ;;  %v2264_v61 = vpop.f32.mrf.mxu2 }
 0x609   : > { %7269 = vmatmul.msk.bf16.vlgmr.msra.gmra.mxu1 %vm1733_vm1, %v2510_v60  ;;  %v2253_v60 = vadd.f32 %v9848_v57, %v2252_v62 }
 0x60b   : > { %v2514_v24 = vpack.c.bf16 %v2255_v36, %v2253_v60  ;;  %v7975_v60 = vld [vmem:[%s8993_s2 + $0x88] sm:$0xff] }
 0x60e   : > { %v2475_v39 = vpop.f32.mrf.mxu0 }
 0x60f   : > { %v9875_v41 = vadd.f32 %v9855_v0, %v2475_v39  ;;  %v2267_v35 = vpop.f32.mrf.mxu2 }
 0x611   : > { %3029 = vmatmul.bf16.gmra.mxu0 %v9306_v34 }
 0x616   : > { %v2477_v51 = vpop.f32.mrf.mxu0 }
 0x617   : > { %v9878_v21 = vadd.f32 %v9855_v0, %v2477_v51  ;;  %v7980_v51 = vld [vmem:[%s8993_s2 + $0xb0] sm:$0xff] }
 0x618   : > { %3136 = vmatpush.bf16.msrb.mxu1 %v7980_v51 }
 0x619   : > { %7270 = vmatmul.msk.bf16.gmra.mxu1 %vm1733_vm1, %v2511_v13 }
 0x61c   : > { %3137 = vmatpush.bf16.msrb.mxu1 %v7979_v9 }
 0x61e   : > { %v2480_v40 = vpop.f32.mrf.mxu0 }
 0x61f   : > { %v9889_v11 = vadd.f32 %v9855_v0, %v2480_v40 }
 0x621   : > { %3034 = vmatmul.bf16.gmra.mxu0 %v9318_v47 }
 0x626   : > { %v2482_v37 = vpop.f32.mrf.mxu0 }
 0x627   : > { %v9892_v20 = vadd.f32 %v9855_v0, %v2482_v37  ;;  %v2258_v37 = vadd.f32 %v9848_v57, %v2257_v4  ;;  %v2265_v4 = vadd.f32 %v9848_v57, %v2264_v61  ;;  %v2268_v61 = vadd.f32 %v9848_v57, %v2267_v35 }
 0x629   : > { %v2777_v14 = vpack.c.bf16 %v9892_v20, %v9889_v11  ;;  %7271 = vmatmul.msk.bf16.gmra.mxu1 %vm1733_vm1, %v2512_v58  ;;  %v7978_v58 = vld [vmem:[%s8993_s2 + $0xa0] sm:$0xff]  ;;  %v2515_v16 = vpack.c.bf16 %v2260_v38, %v2258_v37 }
 0x62a   : > { %3138 = vmatpush.bf16.msrb.mxu1 %v7978_v58 }
 0x62e   : > { %v2485_v63 = vpop.f32.mrf.mxu0  ;;  %3139 = vmatpush.bf16.msrb.mxu1 %v7977_v45 }
 0x62f   : > { %v9905_v42 = vadd.f32 %v9855_v0, %v2485_v63 }
 0x631   : > { %3039 = vmatmul.bf16.gmra.mxu0 %v9347_v43 }
 0x636   : > { %v2487_v10 = vpop.f32.mrf.mxu0 }
 0x637   : > { %v9908_v53 = vadd.f32 %v9855_v0, %v2487_v10  ;;  %v7976_v10 = vld [vmem:[%s8993_s2 + $0x90] sm:$0xff] }
 0x638   : > { %3140 = vmatpush.bf16.msrb.mxu1 %v7976_v10 }
 0x639   : > { %v2778_v23 = vpack.c.bf16 %v9908_v53, %v9905_v42  ;;  %7272 = vmatmul.msk.bf16.gmra.mxu1 %vm1733_vm1, %v2513_v44 }
 0x63c   : > { %3141 = vmatpush.bf16.msrb.mxu1 %v7975_v60 }
 0x63e   : > { %v9915_v56 = vpop.f32.mrf.mxu0 }
 0x640   : > { %3142 = vmatpush.bf16.msrb.mxu1 %v7974_v50 }
 0x641   : > { %3044 = vmatmul.bf16.gmra.mxu0 %v9370_v28 }
 0x646   : > { %v9920_v25 = vpop.f32.mrf.mxu1  ;;  %v2492_v39 = vpop.f32.mrf.mxu0 }
 0x649   : > { %7273 = vmatmul.msk.bf16.gmra.mxu1 %vm1733_vm1, %v2514_v24  ;;  %v2263_v24 = vadd.f32 %v9848_v57, %v2262_v52 }
 0x64b   : > { %v2516_v38 = vpack.c.bf16 %v2265_v4, %v2263_v24 }
 0x64e   : > { %v9925_v13 = vpop.f32.mrf.mxu1  ;;  %v2495_v40 = vpop.f32.mrf.mxu0 }
 0x64f   : > { %v2496_v35 = vadd.f32 %v9855_v0, %v2495_v40 }
 0x651   : > { %3049 = vmatmul.bf16.gmra.mxu0 %v9383_v22 }
 0x656   : > { %v9932_v62 = vpop.f32.mrf.mxu1  ;;  %v2497_v63 = vpop.f32.mrf.mxu0 }
 0x659   : > { %7274 = vmatmul.msk.bf16.gmra.mxu1 %vm1733_vm1, %v2515_v16  ;;  %v2269_v16 = vpop.f32.mrf.mxu2 }
 0x65a   : > { %v2270_v45 = vadd.f32 %v9848_v57, %v2269_v16  ;;  %v2498_v16 = vadd.f32 %v9855_v0, %v2497_v63  ;;  %v12141_v63 = vpack.c.bf16 %v9862_v1, %v9859_v7 }
 0x65c   : > { %v2517_v60 = vpack.c.bf16 %v2270_v45, %v2268_v61  ;;  %v2780_v45 = vpack.c.bf16 %v2498_v16, %v2496_v35 }
 0x65e   : > { %v9937_v44 = vpop.f32.mrf.mxu1  ;;  %v2500_v36 = vpop.f32.mrf.mxu0 }
 0x661   : > { %3054 = vmatmul.bf16.gmra.mxu0 %v9394_v55 }
 0x666   : > { %v9944_v51 = vpop.f32.mrf.mxu1  ;;  %v2502_v9 = vpop.f32.mrf.mxu0 }
 0x667   : > { %v2503_v24 = vadd.f32 %v9855_v0, %v2502_v9  ;;  %v2491_v9 = vadd.f32 %v9855_v0, %v9915_v56  ;;  %v12140_v56 = vpack.c.bf16 %v9878_v21, %v9875_v41 }
 0x669   : > { %7275 = vmatmul.msk.bf16.gmra.mxu1 %vm1733_vm1, %v2516_v38  ;;  %v2501_v38 = vadd.f32 %v9855_v0, %v2500_v36 }
 0x66b   : > { %v2781_v18 = vpack.c.bf16 %v2503_v24, %v2501_v38 }
 0x66e   : > { %v9947_v37 = vpop.f32.mrf.mxu1  ;;  %v2505_v58 = vpop.f32.mrf.mxu0 }
 0x66f   : > { %v2506_v12 = vadd.f32 %v9855_v0, %v2505_v58  ;;  %v2493_v58 = vadd.f32 %v9855_v0, %v2492_v39 }
 0x671   : > { %3059 = vmatmul.bf16.gmra.mxu0 %v9419_v31 }
 0x676   : > { %v9952_v52 = vpop.f32.mrf.mxu1  ;;  %v2507_v10 = vpop.f32.mrf.mxu0 }
 0x677   : > { %12138 = vst [vmem:[#allocation32_spill] sm:$0xff] %v9952_v52  ;;  %v2508_v4 = vadd.f32 %v9855_v0, %v2507_v10 }
 0x679   : > { %v2782_v50 = vpack.c.bf16 %v2508_v4, %v2506_v12  ;;  %7276 = vmatmul.msk.bf16.gmra.mxu1 %vm1733_vm1, %v2517_v60  ;;  %v2779_v12 = vpack.c.bf16 %v2493_v58, %v2491_v9 }
 0x67b   : > { %2783 = vmatpush.bf16.msra.mxu2 %v2782_v50 }
 0x67e   : > { %v9960_v57 = vpop.f32.mrf.mxu1 }
 0x67f   : > { %12139 = vst [vmem:[#allocation33_spill] sm:$0xff] %v9960_v57  ;;  %2784 = vmatpush.bf16.msra.mxu2 %v2781_v18 }
 0x683   : > { %2785 = vmatpush.bf16.msra.mxu2 %v2780_v45 }
 0x686   : > { %v2583_v61 = vpop.f32.mrf.mxu1 }
 0x687   : > { %v2584_v36 = vadd.f32 %v2583_v61, %v9523_v15  ;;  %2786 = vmatpush.bf16.msra.mxu2 %v2779_v12 }
 0x689   : > { %3143 = vmatmul.bf16.vlgmr.msrb.gmra.mxu1 %v9269_v5  ;;  %2623 = vmax.xlane.f32.xlu1 %v2584_v36 }
 0x68b   : > { %2787 = vmatpush.bf16.msra.mxu2 %v2778_v23 }
 0x68e   : > { %v2585_v18 = vpop.f32.mrf.mxu1 }
 0x68f   : > { %2788 = vmatpush.bf16.msra.mxu2 %v2777_v14  ;;  %v2586_v0 = vadd.f32 %v2585_v18, %v9532_v17 }
 0x691   : > { %2625 = vmax.xlane.f32.xlu2 %v2586_v0 }
 0x693   : > { %2789 = vmatpush.bf16.msra.mxu2 %v12140_v56 }
 0x696   : > { %v2588_v39 = vpop.f32.mrf.mxu1 }
 0x697   : > { %v2589_v40 = vadd.f32 %v2588_v39, %v9542_v26  ;;  %2790 = vmatpush.bf16.msra.mxu2 %v12141_v63 }
 0x699   : > { %3148 = vmatmul.bf16.gmra.mxu1 %v9306_v34  ;;  %2627 = vmax.xlane.f32.xlu0 %v2589_v40 }
 0x69e   : > { %v2590_v42 = vpop.f32.mrf.mxu1 }
 0x69f   : > { %v2591_v11 = vadd.f32 %v2590_v42, %v9551_v30 }
 0x6a1   : > { %2629 = vmax.xlane.f32.xlu1 %v2591_v11 }
 0x6a6   : > { %v2593_v20 = vpop.f32.mrf.mxu1 }
 0x6a7   : > { %v2594_v14 = vadd.f32 %v2593_v20, %v9561_v27 }
 0x6a9   : > { %3153 = vmatmul.bf16.gmra.mxu1 %v9318_v47  ;;  %2631 = vmax.xlane.f32.xlu2 %v2594_v14 }
 0x6ae   : > { %v2595_v41 = vpop.f32.mrf.mxu1 }
 0x6af   : > { %v9987_v21 = vadd.f32 %v2595_v41, %v9570_v32 }
 0x6b1   : > { %2633 = vmax.xlane.f32.xlu0 %v9987_v21 }
 0x6b6   : > { %v2598_v7 = vpop.f32.mrf.mxu1 }
 0x6b7   : > { %v9991_v1 = vadd.f32 %v2598_v7, %v9580_v3 }
 0x6b9   : > { %3158 = vmatmul.bf16.gmra.mxu1 %v9347_v43  ;;  %2635 = vmax.xlane.f32.xlu1 %v9991_v1 }
 0x6be   : > { %v2600_v53 = vpop.f32.mrf.mxu1 }
 0x6bf   : > { %v9996_v23 = vadd.f32 %v2600_v53, %v9589_v6 }
 0x6c1   : > { %2637 = vmax.xlane.f32.xlu2 %v9996_v23 }
 0x6c6   : > { %v2603_v10 = vpop.f32.mrf.mxu1 }
 0x6c7   : > { %v10000_v60 = vadd.f32 %v2603_v10, %v9599_v8  ;;  %v10088_v8 = vld [vmem:[%s8998_s1 + $0x2] ss:$0 sm:$0xff] }
 0x6c9   : > { %3163 = vmatmul.bf16.gmra.mxu1 %v9370_v28  ;;  %2639 = vmax.xlane.f32.xlu2 %v10000_v60 }
 0x6ce   : > { %v2605_v4 = vpop.f32.mrf.mxu1 }
 0x6d6   : > { %v2608_v24 = vpop.f32.mrf.mxu1 }
 0x6d9   : > { %3168 = vmatmul.bf16.gmra.mxu1 %v9383_v22 }
 0x6de   : > { %v2610_v50 = vpop.f32.mrf.mxu1 }
 0x6e6   : > { %v2613_v38 = vpop.f32.mrf.mxu1 }
 0x6e9   : > { %3173 = vmatmul.bf16.gmra.mxu1 %v9394_v55 }
 0x6ee   : > { %v2615_v16 = vpop.f32.mrf.mxu1 }
 0x6f6   : > { %v2618_v35 = vpop.f32.mrf.mxu1 }
 0x6f9   : > { %3178 = vmatmul.bf16.gmra.mxu1 %v9419_v31 }
 0x6fc   : > { %v2624_v58 = vpop.xlane.xlu1 %2623 }
 0x6fd   : > { %v2655_v45 = vsub.f32 %v2584_v36, %v2624_v58  ;;  %v10017_v36 = vadd.f32 %v2605_v4, %v9624_v33  ;;  %v12142_v58 = vld [vmem:[#allocation22_spill] sm:$0xff] }
 0x6fe   : > { %v10007_v9 = vpop.f32.mrf.mxu1 }
 0x6ff   : > { %v2671_v12 = vmul.f32 1.442695, %v2655_v45  ;;  %v10024_v45 = vadd.f32 %v2608_v24, %v12142_v58 }
 0x701   : > { %8252 = vpow2.f32 %v2671_v12 }
 0x704   : > { %v2626_v61 = vpop.xlane.xlu2 %2625 }
 0x705   : > { %v2656_v18 = vsub.f32 %v2586_v0, %v2626_v61 }
 0x706   : > { %v10009_v56 = vpop.f32.mrf.mxu1 }
 0x707   : > { %v10011_v39 = vpop.eup %8252  ;;  %v2673_v63 = vmul.f32 1.442695, %v2656_v18 }
 0x708   : > { %2703 = vadd.xlane.f32.xlu0 %v10011_v39 }
 0x709   : > { %8254 = vpow2.f32 %v2673_v63 }
 0x70c   : > { %v2628_v42 = vpop.xlane.xlu0 %2627 }
 0x70d   : > { %v2657_v20 = vsub.f32 %v2589_v40, %v2628_v42  ;;  %v12143_v42 = vld [vmem:[#allocation23_spill] sm:$0xff] }
 0x70e   : > { %v10014_v41 = vpop.f32.mrf.mxu1 }
 0x70f   : > { %v10019_v7 = vpop.eup %8254  ;;  %v2675_v53 = vmul.f32 1.442695, %v2657_v20  ;;  %v10035_v20 = vadd.f32 %v2610_v50, %v12143_v42  ;;  %v7965_v42 = vld [vmem:[%s9014_s28 + $0x18] sm:$0xff] }
 0x710   : > { %2705 = vadd.xlane.f32.xlu1 %v10019_v7  ;;  %2641 = vmax.xlane.f32.xlu0 %v10017_v36 }
 0x711   : > { %8256 = vpow2.f32 %v2675_v53  ;;  %2887 = vmatpush.bf16.msra.mxu3 %v7965_v42 }
 0x714   : > { %v2630_v0 = vpop.xlane.xlu1 %2629 }
 0x715   : > { %v2658_v10 = vsub.f32 %v2591_v11, %v2630_v0 }
 0x716   : > { %v10026_v12 = vpop.f32.mrf.mxu1 }
 0x717   : > { %v10028_v40 = vpop.eup %8256  ;;  %v2677_v61 = vmul.f32 1.442695, %v2658_v10  ;;  %v12144_v10 = vld [vmem:[#allocation24_spill] sm:$0xff] }
 0x718   : > { %2707 = vadd.xlane.f32.xlu1 %v10028_v40  ;;  %2643 = vmax.xlane.f32.xlu0 %v10024_v45 }
 0x719   : > { %8258 = vpow2.f32 %v2677_v61  ;;  %v10043_v61 = vadd.f32 %v2613_v38, %v12144_v10 }
 0x71c   : > { %v2632_v4 = vpop.xlane.xlu2 %2631 }
 0x71d   : > { %v2659_v18 = vsub.f32 %v2594_v14, %v2632_v4 }
 0x71e   : > { %v10032_v63 = vpop.f32.mrf.mxu1 }
 0x71f   : > { %v10037_v11 = vpop.eup %8258  ;;  %v2679_v24 = vmul.f32 1.442695, %v2659_v18 }
 0x720   : > { %2645 = vmax.xlane.f32.xlu1 %v10035_v20  ;;  %2709 = vadd.xlane.f32.xlu2 %v10037_v11 }
 0x721   : > { %8260 = vpow2.f32 %v2679_v24 }
 0x724   : > { %v2634_v53 = vpop.xlane.xlu0 %2633 }
 0x725   : > { %v2660_v0 = vsub.f32 %v9987_v21, %v2634_v53  ;;  %v10055_v21 = vadd.f32 %v2615_v16, %v12145_v29 }
 0x726   : > { %v10045_v14 = vpop.f32.mrf.mxu1 }
 0x727   : > { %v10047_v4 = vpop.eup %8260  ;;  %v2681_v50 = vmul.f32 1.442695, %v2660_v0 }
 0x728   : > { %2647 = vmax.xlane.f32.xlu1 %v10043_v61  ;;  %2711 = vadd.xlane.f32.xlu2 %v10047_v4 }
 0x729   : > { %8262 = vpow2.f32 %v2681_v50  ;;  %v12146_v50 = vld [vmem:[#allocation26_spill] sm:$0xff] }
 0x72a   : > { %v10063_v19 = vadd.f32 %v2618_v35, %v12146_v50 }
 0x72c   : > { %v2636_v18 = vpop.xlane.xlu1 %2635 }
 0x72d   : > { %v2661_v48 = vsub.f32 %v9991_v1, %v2636_v18 }
 0x72e   : > { %v10052_v24 = vpop.f32.mrf.mxu1 }
 0x72f   : > { %v10057_v38 = vpop.eup %8262  ;;  %v2683_v53 = vmul.f32 1.442695, %v2661_v48 }
 0x730   : > { %2713 = vadd.xlane.f32.xlu0 %v10057_v38  ;;  %2649 = vmax.xlane.f32.xlu2 %v10055_v21 }
 0x731   : > { %8264 = vpow2.f32 %v2683_v53 }
 0x734   : > { %v2638_v0 = vpop.xlane.xlu2 %2637 }
 0x735   : > { %v2662_v2 = vsub.f32 %v9996_v23, %v2638_v0  ;;  %v12147_v23 = vld [vmem:[#allocation27_spill] sm:$0xff] }
 0x736   : > { %v10065_v1 = vpop.f32.mrf.mxu1  ;;  %v10076_v35 = vadd.f32 %v10007_v9, %v12147_v23  ;;  %v7964_v9 = vld [vmem:[%s9014_s28 + $0x10] sm:$0xff] }
 0x737   : > { %v10067_v18 = vpop.eup %8264  ;;  %v2685_v16 = vmul.f32 1.442695, %v2662_v2  ;;  %2888 = vmatpush.bf16.msra.mxu3 %v7964_v9 }
 0x738   : > { %2651 = vmax.xlane.f32.xlu2 %v10063_v19  ;;  %2715 = vadd.xlane.f32.xlu0 %v10067_v18 }
 0x739   : > { %8266 = vpow2.f32 %v2685_v16 }
 0x73c   : > { %v2640_v48 = vpop.xlane.xlu2 %2639 }
 0x73d   : > { %v2663_v53 = vsub.f32 %v10000_v60, %v2640_v48 }
 0x73e   : > { %v10072_v29 = vpop.f32.mrf.mxu1 }
 0x73f   : > { %v10078_v0 = vpop.eup %8266  ;;  %v2687_v50 = vmul.f32 1.442695, %v2663_v53 }
 0x740   : > { %2717 = vadd.xlane.f32.xlu1 %v10078_v0  ;;  %2653 = vmax.xlane.f32.xlu0 %v10076_v35 }
 0x741   : > { %8268 = vpow2.f32 %v2687_v50 }
 0x746   : > { %v3164_v2 = vpop.f32.mrf.mxu1 }
 0x747   : > { %v10082_v16 = vpop.eup %8268 }
 0x748   : > { %2719 = vadd.xlane.f32.xlu1 %v10082_v16 }
 0x74e   : > { %v3166_v60 = vpop.f32.mrf.mxu1 }
 0x756   : > { %v3169_v48 = vpop.f32.mrf.mxu1 }
 0x75e   : > { %v3171_v10 = vpop.f32.mrf.mxu1 }
 0x766   : > { %v3174_v23 = vpop.f32.mrf.mxu1 }
 0x767   : > { %v3175_v17 = vadd.f32 %v10088_v8, %v3174_v23 }
 0x76e   : > { %v3176_v53 = vpop.f32.mrf.mxu1 }
 0x76f   : > { %v3177_v27 = vadd.f32 %v10088_v8, %v3176_v53 }
 0x771   : > { %v3317_v57 = vpack.c.bf16 %v3177_v27, %v3175_v17 }
 0x776   : > { %v3179_v58 = vpop.f32.mrf.mxu1 }
 0x777   : > { %v3180_v50 = vadd.f32 %v10088_v8, %v3179_v58 }
 0x77b   : > { %v2704_v33 = vpop.xlane.xlu0 %2703 }
 0x77c   : > { %8270 = vrcp.f32 %v2704_v33 }
 0x77e   : > { %v3181_v6 = vpop.f32.mrf.mxu1 }
 0x77f   : > { %v3182_v3 = vadd.f32 %v10088_v8, %v3181_v6 }
 0x781   : > { %v3318_v32 = vpack.c.bf16 %v3182_v3, %v3180_v50  ;;  %v3172_v3 = vadd.f32 %v10088_v8, %v3171_v10  ;;  %v3165_v10 = vadd.f32 %v10088_v8, %v3164_v2 }
 0x782   : > { %v8271_v52 = vpop.eup %8270 }
 0x783   : > { %v2642_v30 = vpop.xlane.xlu0 %2641  ;;  %v2706_v26 = vpop.xlane.xlu1 %2705  ;;  %v3365_v42 = vsel %vm1733_vm1, %v3318_v32, 0  ;;  %v2751_v6 = vmul.f32 %v8271_v52, %v10011_v39  ;;  %v3362_v32 = vsel %vm1733_vm1, %v3317_v57, 0  ;;  %v3167_v52 = vadd.f32 %v10088_v8, %v3166_v60 }
 0x784   : > { %v2664_v9 = vsub.f32 %v10017_v36, %v2642_v30  ;;  %8272 = vrcp.f32 %v2706_v26  ;;  %3367 = vmatpush.bf16.xpose.msrb.mxu3 %v3365_v42  ;;  %v3170_v30 = vadd.f32 %v10088_v8, %v3169_v48  ;;  %v3162_v60 = vadd.f32 %v10088_v8, %v10072_v29 }
 0x785   : > { %v3315_v42 = vpack.c.bf16 %v3167_v52, %v3165_v10 }
 0x786   : > { %v2689_v15 = vmul.f32 1.442695, %v2664_v9  ;;  %v3316_v27 = vpack.c.bf16 %v3172_v3, %v3170_v30 }
 0x788   : > { %8274 = vpow2.f32 %v2689_v15  ;;  %v3359_v57 = vsel %vm1733_vm1, %v3316_v27, 0 }
 0x78a   : > { %v8273_v58 = vpop.eup %8272 }
 0x78b   : > { %v2752_v33 = vmul.f32 %v8273_v58, %v10019_v7  ;;  %v2644_v53 = vpop.xlane.xlu0 %2643  ;;  %v2708_v50 = vpop.xlane.xlu1 %2707 }
 0x78c   : > { %v2665_v26 = vsub.f32 %v10024_v45, %v2644_v53  ;;  %3368 = vmatpush.bf16.xpose.msrb.mxu3 %v3362_v32 }
 0x78d   : > { %v2767_v36 = vpack.c.bf16 %v2752_v33, %v2751_v6  ;;  %v3356_v33 = vsel %vm1733_vm1, %v3315_v42, 0 }
 0x78e   : > { %v10102_v17 = vpop.eup %8274  ;;  %v2691_v15 = vmul.f32 1.442695, %v2665_v26 }
 0x78f   : > { %2721 = vadd.xlane.f32.xlu2 %v10102_v17  ;;  %2791 = vmatmul.bf16.vlgmr.msra.gmra.mxu2 %v2767_v36 }
 0x790   : > { %8276 = vpow2.f32 %v2691_v15  ;;  %v3155_v15 = vadd.f32 %v10088_v8, %v10045_v14 }
 0x791   : > { %8278 = vrcp.f32 %v2708_v50  ;;  %v3160_v50 = vadd.f32 %v10088_v8, %v10065_v1 }
 0x793   : > { %v2710_v39 = vpop.xlane.xlu2 %2709  ;;  %v2646_v7 = vpop.xlane.xlu1 %2645  ;;  %v3314_v29 = vpack.c.bf16 %v3162_v60, %v3160_v50 }
 0x794   : > { %8280 = vrcp.f32 %v2710_v39  ;;  %v2666_v45 = vsub.f32 %v10035_v20, %v2646_v7  ;;  %3369 = vmatpush.bf16.xpose.msrb.mxu3 %v3359_v57  ;;  %v3152_v57 = vadd.f32 %v10088_v8, %v10032_v63 }
 0x796   : > { %v10109_v23 = vpop.eup %8276  ;;  %v2693_v48 = vmul.f32 1.442695, %v2666_v45 }
 0x797   : > { %2723 = vadd.xlane.f32.xlu0 %v10109_v23  ;;  %v8279_v9 = vpop.eup %8278 }
 0x798   : > { %8282 = vpow2.f32 %v2693_v48  ;;  %v2753_v20 = vmul.f32 %v8279_v9, %v10028_v40  ;;  %v3157_v40 = vadd.f32 %v10088_v8, %v10052_v24  ;;  %v3150_v9 = vadd.f32 %v10088_v8, %v10026_v12 }
 0x799   : > { %v3145_v12 = vadd.f32 %v10088_v8, %v10009_v56 }
 0x79a   : > { %v8281_v58 = vpop.eup %8280  ;;  %v3313_v39 = vpack.c.bf16 %v3157_v40, %v3155_v15  ;;  %v3312_v63 = vpack.c.bf16 %v3152_v57, %v3150_v9  ;;  %v7989_v15 = vld [vmem:[%s9003_s16 + $0xb8] sm:$0xff] }
 0x79b   : > { %v2712_v3 = vpop.xlane.xlu2 %2711  ;;  %v2648_v6 = vpop.xlane.xlu1 %2647  ;;  %v2754_v2 = vmul.f32 %v8281_v58, %v10037_v11  ;;  %3254 = vmatpush.bf16.msrb.mxu2 %v7989_v15  ;;  %v7985_v9 = vld [vmem:[%s9003_s16 + $0x98] sm:$0xff]  ;;  %v7996_v15 = vld [vmem:[%s8982_s30 + $0xe0] sm:$0xff] }
 0x79c   : > { %v2667_v53 = vsub.f32 %v10043_v61, %v2648_v6  ;;  %3370 = vmatpush.bf16.xpose.msrb.mxu3 %v3356_v33  ;;  %v3353_v61 = vsel %vm1733_vm1, %v3314_v29, 0 }
 0x79d   : > { %v2768_v32 = vpack.c.bf16 %v2754_v2, %v2753_v20 }
 0x79e   : > { %v10120_v26 = vpop.eup %8282  ;;  %v2695_v30 = vmul.f32 1.442695, %v2667_v53 }
 0x79f   : > { %2796 = vmatmul.bf16.gmra.mxu2 %v2768_v32  ;;  %2725 = vadd.xlane.f32.xlu1 %v10120_v26 }
 0x7a0   : > { %8284 = vpow2.f32 %v2695_v30 }
 0x7a1   : > { %8286 = vrcp.f32 %v2712_v3 }
 0x7a3   : > { %v2714_v11 = vpop.xlane.xlu0 %2713  ;;  %v2650_v36 = vpop.xlane.xlu2 %2649 }
 0x7a4   : > { %8288 = vrcp.f32 %v2714_v11  ;;  %v2668_v1 = vsub.f32 %v10055_v21, %v2650_v36  ;;  %3371 = vmatpush.bf16.xpose.msrb.mxu3 %v3353_v61  ;;  %v3350_v21 = vsel %vm1733_vm1, %v3313_v39, 0 }
 0x7a6   : > { %v10129_v27 = vpop.eup %8284  ;;  %v2697_v52 = vmul.f32 1.442695, %v2668_v1 }
 0x7a7   : > { %2727 = vadd.xlane.f32.xlu2 %v10129_v27  ;;  %v8287_v7 = vpop.eup %8286 }
 0x7a8   : > { %8290 = vpow2.f32 %v2697_v52  ;;  %v2755_v48 = vmul.f32 %v8287_v7, %v10047_v4  ;;  %v3147_v4 = vadd.f32 %v10088_v8, %v10014_v41  ;;  %v7988_v7 = vld [vmem:[%s9003_s16 + $0xb0] sm:$0xff] }
 0x7a9   : > { %3255 = vmatpush.bf16.msrb.mxu2 %v7988_v7 }
 0x7aa   : > { %v8289_v24 = vpop.eup %8288  ;;  %v3311_v53 = vpack.c.bf16 %v3147_v4, %v3145_v12 }
 0x7ab   : > { %v2652_v45 = vpop.xlane.xlu2 %2651  ;;  %v2716_v10 = vpop.xlane.xlu0 %2715  ;;  %v2756_v14 = vmul.f32 %v8289_v24, %v10057_v38  ;;  %v7987_v24 = vld [vmem:[%s9003_s16 + $0xa8] sm:$0xff] }
 0x7ac   : > { %v2669_v42 = vsub.f32 %v10063_v19, %v2652_v45  ;;  %3372 = vmatpush.bf16.xpose.msrb.mxu3 %v3350_v21  ;;  %v3347_v19 = vsel %vm1733_vm1, %v3312_v63, 0  ;;  %v3344_v32 = vsel %vm1733_vm1, %v3311_v53, 0  ;;  %v7986_v21 = vld [vmem:[%s9003_s16 + $0xa0] sm:$0xff]  ;;  %v7984_v63 = vld [vmem:[%s9003_s16 + $0x90] sm:$0xff] }
 0x7ad   : > { %v2769_v58 = vpack.c.bf16 %v2756_v14, %v2755_v48  ;;  %3256 = vmatpush.bf16.msrb.mxu2 %v7987_v24 }
 0x7ae   : > { %v10140_v60 = vpop.eup %8290  ;;  %v2699_v3 = vmul.f32 1.442695, %v2669_v42 }
 0x7af   : > { %2729 = vadd.xlane.f32.xlu0 %v10140_v60  ;;  %2801 = vmatmul.bf16.gmra.mxu2 %v2769_v58 }
 0x7b0   : > { %8292 = vpow2.f32 %v2699_v3 }
 0x7b1   : > { %8294 = vrcp.f32 %v2716_v10  ;;  %3257 = vmatpush.bf16.msrb.mxu2 %v7986_v21 }
 0x7b3   : > { %v2654_v38 = vpop.xlane.xlu0 %2653  ;;  %v2718_v6 = vpop.xlane.xlu1 %2717 }
 0x7b4   : > { %v2670_v33 = vsub.f32 %v10076_v35, %v2654_v38  ;;  %8296 = vrcp.f32 %v2718_v6  ;;  %3373 = vmatpush.bf16.xpose.msrb.mxu3 %v3347_v19 }
 0x7b5   : > { %3258 = vmatpush.bf16.msrb.mxu2 %v7985_v9 }
 0x7b6   : > { %v10149_v20 = vpop.eup %8292  ;;  %v2701_v2 = vmul.f32 1.442695, %v2670_v33  ;;  %v7982_v33 = vld [vmem:[%s9003_s16 + $0x80] sm:$0xff] }
 0x7b7   : > { %2731 = vadd.xlane.f32.xlu1 %v10149_v20  ;;  %v8295_v50 = vpop.eup %8294 }
 0x7b8   : > { %8298 = vpow2.f32 %v2701_v2  ;;  %v2757_v30 = vmul.f32 %v8295_v50, %v10067_v18 }
 0x7b9   : > { %3259 = vmatpush.bf16.msrb.mxu2 %v7984_v63 }
 0x7ba   : > { %v8297_v41 = vpop.eup %8296 }
 0x7bb   : > { %v2758_v35 = vmul.f32 %v8297_v41, %v10078_v0  ;;  %v2720_v8 = vpop.xlane.xlu1 %2719 }
 0x7bc   : > { %3374 = vmatpush.bf16.xpose.msrb.mxu3 %v3344_v32  ;;  %8300 = vrcp.f32 %v2720_v8 }
 0x7bd   : > { %v2770_v29 = vpack.c.bf16 %v2758_v35, %v2757_v30 }
 0x7be   : > { %v10155_v40 = vpop.eup %8298 }
 0x7bf   : > { %2733 = vadd.xlane.f32.xlu2 %v10155_v40  ;;  %2806 = vmatmul.bf16.gmra.mxu2 %v2770_v29 }
 0x7c2   : > { %v8301_v11 = vpop.eup %8300 }
 0x7c3   : > { %v2759_v18 = vmul.f32 %v8301_v11, %v10082_v16 }
 0x802   : > { %v2722_v56 = vpop.xlane.xlu2 %2721 }
 0x803   : > { %8302 = vrcp.f32 %v2722_v56 }
 0x809   : > { %v8303_v36 = vpop.eup %8302 }
 0x80a   : > { %v2760_v0 = vmul.f32 %v8303_v36, %v10102_v17  ;;  %v2724_v1 = vpop.xlane.xlu0 %2723 }
 0x80b   : > { %8304 = vrcp.f32 %v2724_v1 }
 0x80c   : > { %v2771_v61 = vpack.c.bf16 %v2760_v0, %v2759_v18  ;;  %v7998_v18 = vld [vmem:[%s8982_s30 + $0xf0] sm:$0xff]  ;;  %v7997_v0 = vld [vmem:[%s8982_s30 + $0xe8] sm:$0xff] }
 0x80e   : > { %2811 = vmatmul.bf16.gmra.mxu2 %v2771_v61 }
 0x811   : > { %v8305_v57 = vpop.eup %8304 }
 0x812   : > { %v2792_v52 = vpop.f32.mrf.mxu2  ;;  %v2726_v39 = vpop.xlane.xlu1 %2725  ;;  %v2761_v17 = vmul.f32 %v8305_v57, %v10109_v23  ;;  %v7983_v23 = vld [vmem:[%s9003_s16 + $0x88] sm:$0xff] }
 0x813   : > { %8306 = vrcp.f32 %v2726_v39  ;;  %3260 = vmatpush.bf16.msrb.mxu2 %v7983_v23  ;;  %v8732_v39 = vld [vmem:[#allocation2 + $0x30] sm:$0xff] }
 0x814   : > { %v2137_v7 = vadd.f32 %v8732_v39, %v9844_v59  ;;  %v8733_v59 = vld [vmem:[#allocation2 + $0x58] sm:$0xff] }
 0x815   : > { %v2139_v9 = vadd.f32 %v8733_v59, %v9867_v54 }
 0x817   : > { %3261 = vmatpush.bf16.msrb.mxu2 %v7982_v33 }
 0x819   : > { %v8307_v45 = vpop.eup %8306 }
 0x81a   : > { %v2794_v16 = vpop.f32.mrf.mxu2  ;;  %v2762_v10 = vmul.f32 %v8307_v45, %v10120_v26  ;;  %v2728_v42 = vpop.xlane.xlu2 %2727 }
 0x81b   : > { %v2832_v48 = vpack.c.bf16 %v2794_v16, %v2792_v52  ;;  %8308 = vrcp.f32 %v2728_v42  ;;  %v7995_v52 = vld [vmem:[%s8982_s30 + $0xd8] sm:$0xff]  ;;  %v7994_v16 = vld [vmem:[%s8982_s30 + $0xd0] sm:$0xff]  ;;  %v3025_v42 = vpop.f32.mrf.mxu0 }
 0x81c   : > { %v2772_v14 = vpack.c.bf16 %v2762_v10, %v2761_v17  ;;  %v7993_v17 = vld [vmem:[%s8982_s30 + $0xc8] sm:$0xff] }
 0x81d   : > { %7289 = vmatmul.msk.bf16.vlgmr.msra.gmra.mxu3 %vm1733_vm1, %v2832_v48 }
 0x81e   : > { %2816 = vmatmul.bf16.gmra.mxu2 %v2772_v14  ;;  %v7992_v14 = vld [vmem:[%s8982_s30 + $0xc0] sm:$0xff] }
 0x821   : > { %v8309_v26 = vpop.eup %8308 }
 0x822   : > { %v2730_v58 = vpop.xlane.xlu0 %2729  ;;  %v2797_v3 = vpop.f32.mrf.mxu2  ;;  %v2763_v6 = vmul.f32 %v8309_v26, %v10129_v27 }
 0x823   : > { %8310 = vrcp.f32 %v2730_v58  ;;  %v3027_v23 = vpop.f32.mrf.mxu0 }
 0x829   : > { %v8311_v4 = vpop.eup %8310 }
 0x82a   : > { %v2799_v38 = vpop.f32.mrf.mxu2  ;;  %v2764_v19 = vmul.f32 %v8311_v4, %v10140_v60  ;;  %v2732_v53 = vpop.xlane.xlu1 %2731 }
 0x82b   : > { %v2833_v12 = vpack.c.bf16 %v2799_v38, %v2797_v3  ;;  %8312 = vrcp.f32 %v2732_v53 }
 0x82c   : > { %v2773_v2 = vpack.c.bf16 %v2764_v19, %v2763_v6  ;;  %v8734_v6 = vld [vmem:[#allocation2 + $0x50] sm:$0xff] }
 0x82d   : > { %7290 = vmatmul.msk.bf16.gmra.mxu3 %vm1733_vm1, %v2833_v12  ;;  %v2141_v19 = vadd.f32 %v8734_v6, %v9883_v49  ;;  %v3030_v12 = vpop.f32.mrf.mxu0 }
 0x82e   : > { %2821 = vmatmul.bf16.gmra.mxu2 %v2773_v2 }
 0x831   : > { %v8313_v32 = vpop.eup %8312 }
 0x832   : > { %v2802_v50 = vpop.f32.mrf.mxu2  ;;  %v2734_v41 = vpop.xlane.xlu2 %2733  ;;  %v2765_v27 = vmul.f32 %v8313_v32, %v10149_v20  ;;  %v7999_v20 = vld [vmem:[%s8982_s30 + $0xf8] sm:$0xff] }
 0x833   : > { %8314 = vrcp.f32 %v2734_v41  ;;  %3809 = vmatpush.bf16.msra.mxu2 %v7999_v20 }
 0x835   : > { %v3032_v32 = vpop.f32.mrf.mxu0 }
 0x837   : > { %3810 = vmatpush.bf16.msra.mxu2 %v7998_v18 }
 0x839   : > { %v8315_v30 = vpop.eup %8314 }
 0x83a   : > { %v2804_v35 = vpop.f32.mrf.mxu2  ;;  %v2766_v60 = vmul.f32 %v8315_v30, %v10155_v40  ;;  %v8735_v30 = vld [vmem:[#allocation2 + $0x8] sm:$0xff] }
 0x83b   : > { %v2834_v29 = vpack.c.bf16 %v2804_v35, %v2802_v50  ;;  %3811 = vmatpush.bf16.msra.mxu2 %v7997_v0  ;;  %v2143_v35 = vadd.f32 %v8735_v30, %v9901_v46 }
 0x83c   : > { %v2774_v8 = vpack.c.bf16 %v2766_v60, %v2765_v27 }
 0x83d   : > { %7291 = vmatmul.msk.bf16.gmra.mxu3 %vm1733_vm1, %v2834_v29  ;;  %v10218_v29 = vld [vmem:[%s8988_s26 + $0x2] ss:$0 sm:$0xff] }
 0x83e   : > { %2826 = vmatmul.bf16.gmra.mxu2 %v2774_v8  ;;  %v3035_v8 = vpop.f32.mrf.mxu0 }
 0x83f   : > { %3812 = vmatpush.bf16.msra.mxu2 %v7996_v15  ;;  %v3033_v15 = vadd.f32 %v10218_v29, %v3032_v32 }
 0x842   : > { %v2807_v56 = vpop.f32.mrf.mxu2 }
 0x843   : > { %3813 = vmatpush.bf16.msra.mxu2 %v7995_v52  ;;  %v3031_v52 = vadd.f32 %v10218_v29, %v3030_v12 }
 0x847   : > { %3814 = vmatpush.bf16.msra.mxu2 %v7994_v16 }
 0x84a   : > { %v2809_v11 = vpop.f32.mrf.mxu2 }
 0x84b   : > { %v2835_v36 = vpack.c.bf16 %v2809_v11, %v2807_v56  ;;  %3815 = vmatpush.bf16.msra.mxu2 %v7993_v17  ;;  %v3028_v56 = vadd.f32 %v10218_v29, %v3027_v23  ;;  %v10222_v11 = vld [vmem:[%s9008_s25 + $0x2] ss:$0 sm:$0xff] }
 0x84d   : > { %7292 = vmatmul.msk.bf16.gmra.mxu3 %vm1733_vm1, %v2835_v36  ;;  %v3026_v36 = vadd.f32 %v10218_v29, %v3025_v42  ;;  %v3036_v42 = vadd.f32 %v10218_v29, %v3035_v8 }
 0x84e   : > { %3262 = vmatmul.bf16.vlgmr.msrb.gmra.mxu2 %v9269_v5 }
 0x84f   : > { %3816 = vmatpush.bf16.msra.mxu2 %v7992_v14 }
 0x85e   : > { %3267 = vmatmul.bf16.gmra.mxu2 %v9306_v34 }
 0x86e   : > { %3272 = vmatmul.bf16.gmra.mxu2 %v9318_v47 }
 0x87e   : > { %3277 = vmatmul.bf16.gmra.mxu2 %v9347_v43 }
 0x88e   : > { %3282 = vmatmul.bf16.gmra.mxu2 %v9370_v28 }
 0x891   : > { %v2812_v40 = vpop.f32.mrf.mxu2 }
 0x899   : > { %v2814_v61 = vpop.f32.mrf.mxu2 }
 0x89a   : > { %v2836_v1 = vpack.c.bf16 %v2814_v61, %v2812_v40  ;;  %v3303_v40 = vpack.c.bf16 %v3028_v56, %v3026_v36  ;;  %v3037_v61 = vpop.f32.mrf.mxu0 }
 0x89b   : > { %v3038_v14 = vadd.f32 %v10218_v29, %v3037_v61  ;;  %v8736_v61 = vld [vmem:[#allocation2 + $0x40] sm:$0xff] }
 0x89c   : > { %7293 = vmatmul.msk.bf16.gmra.mxu3 %vm1733_vm1, %v2836_v1 }
 0x89e   : > { %3287 = vmatmul.bf16.gmra.mxu2 %v9383_v22 }
 0x8a0   : > { %v2890_v24 = vpop.f32.mrf.mxu3 }
 0x8a1   : > { %v10191_v57 = vadd.f32 %v2890_v24, %v2137_v7  ;;  %v2817_v45 = vpop.f32.mrf.mxu2  ;;  %v3304_v24 = vpack.c.bf16 %v3033_v15, %v3031_v52 }
 0x8a2   : > { %v3040_v39 = vpop.f32.mrf.mxu0 }
 0x8a8   : > { %v10195_v10 = vpop.f32.mrf.mxu3 }
 0x8a9   : > { %12148 = vst [vmem:[#allocation34_spill] sm:$0xff] %v10195_v10  ;;  %v2819_v21 = vpop.f32.mrf.mxu2  ;;  %v7991_v10 = vld [vmem:[%s9014_s28 + $0x28] sm:$0xff] }
 0x8aa   : > { %v2837_v48 = vpack.c.bf16 %v2819_v21, %v2817_v45  ;;  %3680 = vmatpush.bf16.msra.mxu1 %v7991_v10 }
 0x8ac   : > { %7294 = vmatmul.msk.bf16.gmra.mxu3 %vm1733_vm1, %v2837_v48  ;;  %v3042_v48 = vpop.f32.mrf.mxu0 }
 0x8ad   : > { %v3043_v6 = vadd.f32 %v10218_v29, %v3042_v48  ;;  %v8737_v48 = vld [vmem:[#allocation2 + $0x20] sm:$0xff] }
 0x8ae   : > { %3292 = vmatmul.bf16.gmra.mxu2 %v9394_v55 }
 0x8b0   : > { %v2895_v58 = vpop.f32.mrf.mxu3 }
 0x8b1   : > { %v10201_v3 = vadd.f32 %v2895_v58, %v2139_v9  ;;  %v2822_v63 = vpop.f32.mrf.mxu2  ;;  %v3305_v9 = vpack.c.bf16 %v3038_v14, %v3036_v42  ;;  %v2146_v14 = vadd.f32 %v8737_v48, %v9925_v13 }
 0x8b8   : > { %v10203_v26 = vpop.f32.mrf.mxu3 }
 0x8b9   : > { %12149 = vst [vmem:[#allocation35_spill] sm:$0xff] %v10203_v26  ;;  %v2824_v4 = vpop.f32.mrf.mxu2 }
 0x8ba   : > { %v2838_v38 = vpack.c.bf16 %v2824_v4, %v2822_v63  ;;  %v3045_v4 = vpop.f32.mrf.mxu0 }
 0x8bb   : > { %v3046_v8 = vadd.f32 %v10218_v29, %v3045_v4  ;;  %v8004_v4 = vld [vmem:[%s8993_s2 + $0xe0] sm:$0xff] }
 0x8bc   : > { %7295 = vmatmul.msk.bf16.gmra.mxu3 %vm1733_vm1, %v2838_v38 }
 0x8be   : > { %3297 = vmatmul.bf16.gmra.mxu2 %v9419_v31 }
 0x8c0   : > { %v2900_v33 = vpop.f32.mrf.mxu3 }
 0x8c1   : > { %v10208_v54 = vadd.f32 %v2900_v33, %v2141_v19  ;;  %v2827_v2 = vpop.f32.mrf.mxu2  ;;  %v3041_v33 = vadd.f32 %v10218_v29, %v3040_v39  ;;  %v8006_v39 = vld [vmem:[%s8993_s2 + $0xf0] sm:$0xff] }
 0x8c2   : > { %v3047_v19 = vpop.f32.mrf.mxu0 }
 0x8c8   : > { %v10210_v53 = vpop.f32.mrf.mxu3 }
 0x8c9   : > { %12150 = vst [vmem:[#allocation36_spill] sm:$0xff] %v10210_v53  ;;  %v2829_v50 = vpop.f32.mrf.mxu2 }
 0x8ca   : > { %v2839_v41 = vpack.c.bf16 %v2829_v50, %v2827_v2  ;;  %v3306_v2 = vpack.c.bf16 %v3043_v6, %v3041_v33  ;;  %v3050_v30 = vpop.f32.mrf.mxu0  ;;  %v8738_v33 = vld [vmem:[#allocation2 + $0x10] sm:$0xff] }
 0x8cb   : > { %v2147_v13 = vadd.f32 %v8738_v33, %v9932_v62 }
 0x8cc   : > { %7296 = vmatmul.msk.bf16.gmra.mxu3 %vm1733_vm1, %v2839_v41 }
 0x8ce   : > { %3817 = vmatmul.bf16.vlgmr.msra.gmra.mxu2 %v9269_v5 }
 0x8d0   : > { %v2905_v49 = vpop.f32.mrf.mxu3 }
 0x8d1   : > { %v10215_v27 = vadd.f32 %v2905_v49, %v2143_v35  ;;  %v3263_v60 = vpop.f32.mrf.mxu2  ;;  %v3048_v49 = vadd.f32 %v10218_v29, %v3047_v19  ;;  %v8003_v19 = vld [vmem:[%s8993_s2 + $0xd8] sm:$0xff] }
 0x8d2   : > { %v10226_v18 = vadd.f32 %v10222_v11, %v3263_v60 }
 0x8d3   : > { %v3307_v36 = vpack.c.bf16 %v3048_v49, %v3046_v8  ;;  %v8002_v49 = vld [vmem:[%s8993_s2 + $0xd0] sm:$0xff] }
 0x8d8   : > { %v10274_v60 = vpop.f32.mrf.mxu3 }
 0x8d9   : > { %v3265_v20 = vpop.f32.mrf.mxu2  ;;  %12151 = vst [vmem:[#allocation37_spill] sm:$0xff] %v10274_v60 }
 0x8da   : > { %v10229_v46 = vadd.f32 %v10222_v11, %v3265_v20  ;;  %v3052_v20 = vpop.f32.mrf.mxu0 }
 0x8db   : > { %v3053_v42 = vadd.f32 %v10218_v29, %v3052_v20  ;;  %v8739_v20 = vld [vmem:[#allocation2 + $0x38] sm:$0xff] }
 0x8dc   : > { %v3568_v0 = vpack.c.bf16 %v10229_v46, %v10226_v18  ;;  %7444 = vmatmul.msk.bf16.vlgmr.msrb.gmra.mxu3 %vm1733_vm1, %v3303_v40  ;;  %v8007_v40 = vld [vmem:[%s8993_s2 + $0xf8] sm:$0xff]  ;;  %v12163_v18 = vld [vmem:[#allocation17_spill] sm:$0xff] }
 0x8dd   : > { %3928 = vmatpush.bf16.msra.mxu3 %v8007_v40  ;;  %v2148_v40 = vadd.f32 %v8739_v20, %v9937_v44 }
 0x8de   : > { %3822 = vmatmul.bf16.gmra.mxu2 %v9306_v34 }
 0x8e1   : > { %v3268_v1 = vpop.f32.mrf.mxu2  ;;  %3929 = vmatpush.bf16.msra.mxu3 %v8006_v39  ;;  %v8000_v39 = vld [vmem:[%s8993_s2 + $0xc0] sm:$0xff] }
 0x8e2   : > { %v10238_v45 = vadd.f32 %v10222_v11, %v3268_v1  ;;  %v2145_v1 = vadd.f32 %v8736_v61, %v9920_v25 }
 0x8e9   : > { %v3270_v7 = vpop.f32.mrf.mxu2 }
 0x8ea   : > { %v10241_v16 = vadd.f32 %v10222_v11, %v3270_v7 }
 0x8ec   : > { %v3569_v17 = vpack.c.bf16 %v10241_v16, %v10238_v45  ;;  %7445 = vmatmul.msk.bf16.gmra.mxu3 %vm1733_vm1, %v3304_v24  ;;  %v8005_v24 = vld [vmem:[%s8993_s2 + $0xe8] sm:$0xff] }
 0x8ed   : > { %3930 = vmatpush.bf16.msra.mxu3 %v8005_v24  ;;  %v12162_v16 = vld [vmem:[#allocation16_spill] sm:$0xff] }
 0x8ee   : > { %3827 = vmatmul.bf16.gmra.mxu2 %v9318_v47 }
 0x8f1   : > { %v3273_v21 = vpop.f32.mrf.mxu2  ;;  %3931 = vmatpush.bf16.msra.mxu3 %v8004_v4 }
 0x8f2   : > { %v10250_v58 = vadd.f32 %v10222_v11, %v3273_v21  ;;  %v3055_v21 = vpop.f32.mrf.mxu0 }
 0x8f3   : > { %v3056_v62 = vadd.f32 %v10218_v29, %v3055_v21  ;;  %v8741_v21 = vld [vmem:[#allocation2 + $0x70] sm:$0xff] }
 0x8f5   : > { %3932 = vmatpush.bf16.msra.mxu3 %v8003_v19  ;;  %v2150_v19 = vadd.f32 %v8741_v21, %v9947_v37  ;;  %v12155_v37 = vld [vmem:[#allocation32_spill] sm:$0xff] }
 0x8f9   : > { %v3275_v59 = vpop.f32.mrf.mxu2  ;;  %3933 = vmatpush.bf16.msra.mxu3 %v8002_v49 }
 0x8fa   : > { %v10253_v63 = vadd.f32 %v10222_v11, %v3275_v59  ;;  %v3051_v59 = vadd.f32 %v10218_v29, %v3050_v30 }
 0x8fc   : > { %v3570_v23 = vpack.c.bf16 %v10253_v63, %v10250_v58  ;;  %7446 = vmatmul.msk.bf16.gmra.mxu3 %vm1733_vm1, %v3305_v9  ;;  %v3308_v6 = vpack.c.bf16 %v3053_v42, %v3051_v59  ;;  %v8740_v42 = vld [vmem:[#allocation2 + $0x60] sm:$0xff] }
 0x8fd   : > { %v12161_v63 = vld [vmem:[#allocation15_spill] sm:$0xff] }
 0x8fe   : > { %3832 = vmatmul.bf16.gmra.mxu2 %v9347_v43 }
 0x901   : > { %v3278_v38 = vpop.f32.mrf.mxu2 }
 0x902   : > { %v10262_v50 = vadd.f32 %v10222_v11, %v3278_v38 }
 0x909   : > { %v3280_v12 = vpop.f32.mrf.mxu2 }
 0x90a   : > { %v10265_v41 = vadd.f32 %v10222_v11, %v3280_v12  ;;  %v3057_v12 = vpop.f32.mrf.mxu0 }
 0x90b   : > { %v3058_v61 = vadd.f32 %v10218_v29, %v3057_v12 }
 0x90c   : > { %v3571_v32 = vpack.c.bf16 %v10265_v41, %v10262_v50  ;;  %7447 = vmatmul.msk.bf16.gmra.mxu3 %vm1733_vm1, %v3306_v2  ;;  %v12160_v41 = vld [vmem:[#allocation14_spill] sm:$0xff] }
 0x90e   : > { %3837 = vmatmul.bf16.gmra.mxu2 %v9370_v28 }
 0x911   : > { %v10271_v35 = vpop.f32.mrf.mxu2 }
 0x912   : > { %v3060_v24 = vpop.f32.mrf.mxu0 }
 0x913   : > { %v3061_v12 = vadd.f32 %v10218_v29, %v3060_v24 }
 0x919   : > { %v10277_v56 = vpop.f32.mrf.mxu2 }
 0x91c   : > { %7448 = vmatmul.msk.bf16.gmra.mxu3 %vm1733_vm1, %v3307_v36  ;;  %v8001_v36 = vld [vmem:[%s8993_s2 + $0xc8] sm:$0xff]  ;;  %s12188_s2 = scalar_lea.vmem %s12012_s10, %s8963_s23  ;;  %s12202_s23 = sld [smem:[#allocation10_spill]] }
 0x91d   : > { %3934 = vmatpush.bf16.msra.mxu3 %v8001_v36 }
 0x91e   : > { %3842 = vmatmul.bf16.gmra.mxu2 %v9383_v22 }
 0x91f   : > { %v2910_v15 = vpop.f32.mrf.mxu3 }
 0x920   : > { %v10283_v52 = vadd.f32 %v2910_v15, %v2145_v1 }
 0x921   : > { %v10286_v7 = vpop.f32.mrf.mxu2  ;;  %3935 = vmatpush.bf16.msra.mxu3 %v8000_v39 }
 0x927   : > { %v2912_v25 = vpop.f32.mrf.mxu3 }
 0x928   : > { %v10292_v9 = vadd.f32 %v2912_v25, %v2146_v14  ;;  %v3309_v14 = vpack.c.bf16 %v3058_v61, %v3056_v62  ;;  %v2149_v25 = vadd.f32 %v8740_v42, %v9944_v51 }
 0x929   : > { %v3290_v38 = vpop.f32.mrf.mxu2 }
 0x92a   : > { %12152 = vst [vmem:[#allocation38_spill] sm:$0xff] %v10292_v9  ;;  %v3291_v24 = vadd.f32 %v10222_v11, %v3290_v38 }
 0x92c   : > { %7449 = vmatmul.msk.bf16.gmra.mxu3 %vm1733_vm1, %v3308_v6  ;;  %v3062_v6 = vpop.f32.mrf.mxu0 }
 0x92d   : > { %v3063_v33 = vadd.f32 %v10218_v29, %v3062_v6  ;;  %v12156_v6 = vld [vmem:[#allocation33_spill] sm:$0xff] }
 0x92e   : > { %3847 = vmatmul.bf16.gmra.mxu2 %v9394_v55 }
 0x92f   : > { %v2915_v2 = vpop.f32.mrf.mxu3  ;;  %v3310_v36 = vpack.c.bf16 %v3063_v33, %v3061_v12 }
 0x930   : > { %v10299_v30 = vadd.f32 %v2915_v2, %v2147_v13 }
 0x931   : > { %v3293_v8 = vpop.f32.mrf.mxu2 }
 0x932   : > { %v3294_v39 = vadd.f32 %v10222_v11, %v3293_v8  ;;  %v3284_v8 = vadd.f32 %v10222_v11, %v10271_v35  ;;  %v12159_v35 = vld [vmem:[#allocation13_spill] sm:$0xff] }
 0x937   : > { %v2917_v1 = vpop.f32.mrf.mxu3 }
 0x938   : > { %v10306_v15 = vadd.f32 %v2917_v1, %v2148_v40  ;;  %v8742_v1 = vld [vmem:[#allocation2 + $0x78] sm:$0xff] }
 0x939   : > { %v3295_v48 = vpop.f32.mrf.mxu2  ;;  %v2151_v62 = vadd.f32 %v8742_v1, %v12155_v37  ;;  %v12166_v37 = vld [vmem:[#allocation20_spill] sm:$0xff] }
 0x93a   : > { %12153 = vst [vmem:[#allocation39_spill] sm:$0xff] %v10306_v15  ;;  %v3296_v40 = vadd.f32 %v10222_v11, %v3295_v48  ;;  %v3286_v48 = vadd.f32 %v10222_v11, %v10277_v56 }
 0x93c   : > { %7450 = vmatmul.msk.bf16.gmra.mxu3 %vm1733_vm1, %v3309_v14  ;;  %v3574_v14 = vpack.c.bf16 %v3296_v40, %v3294_v39  ;;  %v3572_v38 = vpack.c.bf16 %v3286_v48, %v3284_v8  ;;  %v12165_v40 = vld [vmem:[#allocation19_spill] sm:$0xff] }
 0x93e   : > { %3852 = vmatmul.bf16.gmra.mxu2 %v9419_v31 }
 0x93f   : > { %v2920_v44 = vpop.f32.mrf.mxu3 }
 0x940   : > { %v10312_v59 = vadd.f32 %v2920_v44, %v2149_v25  ;;  %v3289_v25 = vadd.f32 %v10222_v11, %v10286_v7  ;;  %v12158_v7 = vld [vmem:[#allocation12_spill] sm:$0xff] }
 0x941   : > { %v3298_v4 = vpop.f32.mrf.mxu2 }
 0x942   : > { %v3299_v51 = vadd.f32 %v10222_v11, %v3298_v4  ;;  %v3573_v44 = vpack.c.bf16 %v3291_v24, %v3289_v25  ;;  %v8743_v4 = vld [vmem:[#allocation2 + $0x28] sm:$0xff] }
 0x943   : > { %v2152_v21 = vadd.f32 %v8743_v4, %v12156_v6 }
 0x947   : > { %v2922_v13 = vpop.f32.mrf.mxu3 }
 0x948   : > { %v10317_v2 = vadd.f32 %v2922_v13, %v2150_v19 }
 0x949   : > { %v3300_v49 = vpop.f32.mrf.mxu2 }
 0x94a   : > { %12154 = vst [vmem:[#allocation40_spill] sm:$0xff] %v10317_v2  ;;  %v3301_v20 = vadd.f32 %v10222_v11, %v3300_v49  ;;  %v12171_v2 = vld [vmem:[#allocation25_spill] sm:$0xff] }
 0x94c   : > { %v3575_v61 = vpack.c.bf16 %v3301_v20, %v3299_v51  ;;  %7451 = vmatmul.msk.bf16.gmra.mxu3 %vm1733_vm1, %v3310_v36  ;;  %v12164_v36 = vld [vmem:[#allocation18_spill] sm:$0xff] }
 0x94e   : > { %3576 = vmatpush.bf16.msra.mxu0 %v3575_v61 }
 0x94f   : > { %v2925_v29 = vpop.f32.mrf.mxu3 }
 0x950   : > { %v10326_v42 = vadd.f32 %v2925_v29, %v2151_v62 }
 0x952   : > { %3577 = vmatpush.bf16.msra.mxu0 %v3574_v14 }
 0x956   : > { %3578 = vmatpush.bf16.msra.mxu0 %v3573_v44 }
 0x957   : > { %v2927_v19 = vpop.f32.mrf.mxu3 }
 0x958   : > { %v10335_v33 = vadd.f32 %v2927_v19, %v2152_v21 }
 0x95a   : > { %12157 = vst [vmem:[#allocation32_spill] sm:$0xff] %v10335_v33  ;;  %3579 = vmatpush.bf16.msra.mxu0 %v3572_v38 }
 0x95c   : > { %3936 = vmatmul.bf16.vlgmr.msra.gmra.mxu3 %v9269_v5 }
 0x95e   : > { %3580 = vmatpush.bf16.msra.mxu0 %v3571_v32 }
 0x95f   : > { %v3376_v56 = vpop.f32.mrf.mxu3 }
 0x960   : > { %v3377_v13 = vadd.f32 %v3376_v56, %v12158_v7 }
 0x962   : > { %3581 = vmatpush.bf16.msra.mxu0 %v3570_v23  ;;  %3416 = vmax.xlane.f32.xlu0 %v3377_v13 }
 0x966   : > { %3582 = vmatpush.bf16.msra.mxu0 %v3569_v17 }
 0x967   : > { %v3378_v11 = vpop.f32.mrf.mxu3 }
 0x968   : > { %v3379_v12 = vadd.f32 %v3378_v11, %v12159_v35 }
 0x96a   : > { %3583 = vmatpush.bf16.msra.mxu0 %v3568_v0  ;;  %3418 = vmax.xlane.f32.xlu1 %v3379_v12 }
 0x96c   : > { %3941 = vmatmul.bf16.gmra.mxu3 %v9306_v34 }
 0x96f   : > { %v3381_v50 = vpop.f32.mrf.mxu3 }
 0x970   : > { %v3382_v32 = vadd.f32 %v3381_v50, %v12160_v41 }
 0x972   : > { %3420 = vmax.xlane.f32.xlu2 %v3382_v32 }
 0x977   : > { %v3383_v58 = vpop.f32.mrf.mxu3 }
 0x978   : > { %v3384_v23 = vadd.f32 %v3383_v58, %v12161_v63 }
 0x97a   : > { %3422 = vmax.xlane.f32.xlu0 %v3384_v23 }
 0x97c   : > { %3946 = vmatmul.bf16.gmra.mxu3 %v9318_v47 }
 0x97f   : > { %v3386_v45 = vpop.f32.mrf.mxu3 }
 0x980   : > { %v3387_v17 = vadd.f32 %v3386_v45, %v12162_v16 }
 0x982   : > { %3424 = vmax.xlane.f32.xlu1 %v3387_v17 }
 0x987   : > { %v3388_v49 = vpop.f32.mrf.mxu3 }
 0x988   : > { %v10358_v46 = vadd.f32 %v3388_v49, %v12163_v18  ;;  %v12167_v49 = vld [vmem:[#allocation21_spill] sm:$0xff] }
 0x98a   : > { %3426 = vmax.xlane.f32.xlu2 %v10358_v46 }
 0x98c   : > { %3951 = vmatmul.bf16.gmra.mxu3 %v9347_v43 }
 0x98f   : > { %v3391_v0 = vpop.f32.mrf.mxu3 }
 0x990   : > { %v10363_v51 = vadd.f32 %v3391_v0, %v12164_v36 }
 0x992   : > { %3428 = vmax.xlane.f32.xlu0 %v10363_v51 }
 0x997   : > { %v3393_v20 = vpop.f32.mrf.mxu3 }
 0x998   : > { %v10367_v61 = vadd.f32 %v3393_v20, %v12165_v40 }
 0x99a   : > { %3430 = vmax.xlane.f32.xlu1 %v10367_v61 }
 0x99c   : > { %3956 = vmatmul.bf16.gmra.mxu3 %v9370_v28 }
 0x99f   : > { %v3396_v1 = vpop.f32.mrf.mxu3 }
 0x9a0   : > { %v10372_v62 = vadd.f32 %v3396_v1, %v12166_v37 }
 0x9a2   : > { %3432 = vmax.xlane.f32.xlu1 %v10372_v62 }
 0x9a7   : > { %v3398_v39 = vpop.f32.mrf.mxu3 }
 0x9ac   : > { %3961 = vmatmul.bf16.gmra.mxu3 %v9383_v22 }
 0x9af   : > { %v3401_v29 = vpop.f32.mrf.mxu3 }
 0x9b7   : > { %v3403_v24 = vpop.f32.mrf.mxu3 }
 0x9bc   : > { %3966 = vmatmul.bf16.gmra.mxu3 %v9394_v55 }
 0x9bf   : > { %v3406_v14 = vpop.f32.mrf.mxu3 }
 0x9c7   : > { %v3408_v25 = vpop.f32.mrf.mxu3 }
 0x9cc   : > { %3971 = vmatmul.bf16.gmra.mxu3 %v9419_v31 }
 0x9cf   : > { %v3411_v48 = vpop.f32.mrf.mxu3 }
 0x9d5   : > { %v3417_v44 = vpop.xlane.xlu0 %3416 }
 0x9d6   : > { %v3448_v4 = vsub.f32 %v3377_v13, %v3417_v44  ;;  %v10388_v13 = vadd.f32 %v3398_v39, %v12167_v49  ;;  %v12168_v44 = vld [vmem:[#allocation22_spill] sm:$0xff] }
 0x9d7   : > { %v10378_v6 = vpop.f32.mrf.mxu3 }
 0x9d8   : > { %v3464_v21 = vmul.f32 1.442695, %v3448_v4  ;;  %v10395_v4 = vadd.f32 %v3401_v29, %v12168_v44 }
 0x9da   : > { %8316 = vpow2.f32 %v3464_v21 }
 0x9dd   : > { %v3419_v8 = vpop.xlane.xlu1 %3418 }
 0x9de   : > { %v3449_v19 = vsub.f32 %v3379_v12, %v3419_v8 }
 0x9df   : > { %v10380_v38 = vpop.f32.mrf.mxu3 }
 0x9e0   : > { %v10382_v56 = vpop.eup %8316  ;;  %v3466_v11 = vmul.f32 1.442695, %v3449_v19 }
 0x9e1   : > { %3496 = vadd.xlane.f32.xlu2 %v10382_v56 }
 0x9e2   : > { %8318 = vpow2.f32 %v3466_v11 }
 0x9e5   : > { %v3421_v50 = vpop.xlane.xlu2 %3420 }
 0x9e6   : > { %v3450_v58 = vsub.f32 %v3382_v32, %v3421_v50  ;;  %v12169_v50 = vld [vmem:[#allocation23_spill] sm:$0xff] }
 0x9e7   : > { %v10385_v45 = vpop.f32.mrf.mxu3 }
 0x9e8   : > { %v10390_v0 = vpop.eup %8318  ;;  %v3468_v20 = vmul.f32 1.442695, %v3450_v58  ;;  %v10406_v58 = vadd.f32 %v3403_v24, %v12169_v50 }
 0x9e9   : > { %3498 = vadd.xlane.f32.xlu0 %v10390_v0  ;;  %3434 = vmax.xlane.f32.xlu2 %v10388_v13 }
 0x9ea   : > { %8320 = vpow2.f32 %v3468_v20 }
 0x9ed   : > { %v3423_v12 = vpop.xlane.xlu0 %3422 }
 0x9ee   : > { %v3451_v1 = vsub.f32 %v3384_v23, %v3423_v12 }
 0x9ef   : > { %v10397_v21 = vpop.f32.mrf.mxu3 }
 0x9f0   : > { %v10399_v32 = vpop.eup %8320  ;;  %v3470_v8 = vmul.f32 1.442695, %v3451_v1  ;;  %v12170_v1 = vld [vmem:[#allocation24_spill] sm:$0xff] }
 0x9f1   : > { %3500 = vadd.xlane.f32.xlu0 %v10399_v32  ;;  %3436 = vmax.xlane.f32.xlu2 %v10395_v4 }
 0x9f2   : > { %8322 = vpow2.f32 %v3470_v8  ;;  %v10414_v8 = vadd.f32 %v3406_v14, %v12170_v1  ;;  %v10459_v1 = vld [vmem:[%s8998_s1 + $0x3] ss:$0 sm:$0xff]  ;;  %s12207_s1 = sld [smem:[#allocation3_spill]] }
 0x9f5   : > { %v3425_v39 = vpop.xlane.xlu1 %3424 }
 0x9f6   : > { %v3452_v19 = vsub.f32 %v3387_v17, %v3425_v39 }
 0x9f7   : > { %v10403_v11 = vpop.f32.mrf.mxu3 }
 0x9f8   : > { %v10408_v23 = vpop.eup %8322  ;;  %v3472_v29 = vmul.f32 1.442695, %v3452_v19  ;;  %p7903_p8 = scmp.ne.s32.totalorder %s12207_s1, 1 }
 0x9f9   : > { %3438 = vmax.xlane.f32.xlu0 %v10406_v58  ;;  %3502 = vadd.xlane.f32.xlu1 %v10408_v23  ;;  %s12210_s3 = sld [smem:[#allocation57_spill]] (!%p7903_p8) }
 0x9fa   : > { %8324 = vpow2.f32 %v3472_v29 }
 0x9fd   : > { %v3427_v20 = vpop.xlane.xlu2 %3426 }
 0x9fe   : > { %v3453_v12 = vsub.f32 %v10358_v46, %v3427_v20  ;;  %v10426_v46 = vadd.f32 %v3408_v25, %v12171_v2 }
 0x9ff   : > { %v10416_v17 = vpop.f32.mrf.mxu3 }
 0xa00   : > { %v10418_v39 = vpop.eup %8324  ;;  %v3474_v24 = vmul.f32 1.442695, %v3453_v12 }
 0xa01   : > { %3440 = vmax.xlane.f32.xlu0 %v10414_v8  ;;  %3504 = vadd.xlane.f32.xlu1 %v10418_v39 }
 0xa02   : > { %8326 = vpow2.f32 %v3474_v24  ;;  %v12172_v24 = vld [vmem:[#allocation26_spill] sm:$0xff] }
 0xa03   : > { %v10434_v9 = vadd.f32 %v3411_v48, %v12172_v24 }
 0xa05   : > { %v3429_v19 = vpop.xlane.xlu0 %3428 }
 0xa06   : > { %v3454_v33 = vsub.f32 %v10363_v51, %v3429_v19 }
 0xa07   : > { %v10423_v29 = vpop.f32.mrf.mxu3 }
 0xa08   : > { %v10428_v14 = vpop.eup %8326  ;;  %v3476_v20 = vmul.f32 1.442695, %v3454_v33 }
 0xa09   : > { %3506 = vadd.xlane.f32.xlu2 %v10428_v14  ;;  %3442 = vmax.xlane.f32.xlu1 %v10426_v46 }
 0xa0a   : > { %8328 = vpow2.f32 %v3476_v20 }
 0xa0d   : > { %v3431_v12 = vpop.xlane.xlu1 %3430 }
 0xa0e   : > { %v3455_v15 = vsub.f32 %v10367_v61, %v3431_v12  ;;  %v12173_v61 = vld [vmem:[#allocation27_spill] sm:$0xff] }
 0xa0f   : > { %v10436_v51 = vpop.f32.mrf.mxu3  ;;  %v10447_v48 = vadd.f32 %v10378_v6, %v12173_v61  ;;  %v7990_v6 = vld [vmem:[%s9014_s28 + $0x20] sm:$0xff] }
 0xa10   : > { %v10438_v19 = vpop.eup %8328  ;;  %v3478_v25 = vmul.f32 1.442695, %v3455_v15  ;;  %3681 = vmatpush.bf16.msra.mxu1 %v7990_v6 }
 0xa11   : > { %3444 = vmax.xlane.f32.xlu1 %v10434_v9  ;;  %3508 = vadd.xlane.f32.xlu2 %v10438_v19 }
 0xa12   : > { %8330 = vpow2.f32 %v3478_v25 }
 0xa15   : > { %v3433_v33 = vpop.xlane.xlu1 %3432 }
 0xa16   : > { %v3456_v20 = vsub.f32 %v10372_v62, %v3433_v33 }
 0xa17   : > { %v10443_v60 = vpop.f32.mrf.mxu3 }
 0xa18   : > { %v10449_v12 = vpop.eup %8330  ;;  %v3480_v53 = vmul.f32 1.442695, %v3456_v20 }
 0xa19   : > { %3510 = vadd.xlane.f32.xlu0 %v10449_v12  ;;  %3446 = vmax.xlane.f32.xlu2 %v10447_v48 }
 0xa1a   : > { %8332 = vpow2.f32 %v3480_v53 }
 0xa1f   : > { %v3957_v15 = vpop.f32.mrf.mxu3 }
 0xa20   : > { %v10453_v25 = vpop.eup %8332 }
 0xa21   : > { %3512 = vadd.xlane.f32.xlu0 %v10453_v25 }
 0xa27   : > { %v3959_v62 = vpop.f32.mrf.mxu3 }
 0xa2f   : > { %v3962_v33 = vpop.f32.mrf.mxu3 }
 0xa37   : > { %v3964_v26 = vpop.f32.mrf.mxu3 }
 0xa3f   : > { %v3967_v61 = vpop.f32.mrf.mxu3 }
 0xa40   : > { %v3968_v18 = vadd.f32 %v10459_v1, %v3967_v61 }
 0xa47   : > { %v3969_v20 = vpop.f32.mrf.mxu3 }
 0xa48   : > { %v3970_v37 = vadd.f32 %v10459_v1, %v3969_v20 }
 0xa4a   : > { %v4110_v63 = vpack.c.bf16 %v3970_v37, %v3968_v18 }
 0xa4f   : > { %v3972_v24 = vpop.f32.mrf.mxu3 }
 0xa50   : > { %v3973_v53 = vadd.f32 %v10459_v1, %v3972_v24 }
 0xa54   : > { %v3497_v2 = vpop.xlane.xlu2 %3496 }
 0xa55   : > { %8334 = vrcp.f32 %v3497_v2 }
 0xa57   : > { %v3974_v50 = vpop.f32.mrf.mxu3 }
 0xa58   : > { %v3975_v44 = vadd.f32 %v10459_v1, %v3974_v50 }
 0xa5a   : > { %v4111_v49 = vpack.c.bf16 %v3975_v44, %v3973_v53  ;;  %v3965_v44 = vadd.f32 %v10459_v1, %v3964_v26 }
 0xa5b   : > { %v8335_v41 = vpop.eup %8334 }
 0xa5c   : > { %v3435_v40 = vpop.xlane.xlu2 %3434  ;;  %v3499_v36 = vpop.xlane.xlu0 %3498  ;;  %v4158_v10 = vsel %vm1733_vm1, %v4111_v49, 0  ;;  %v3544_v2 = vmul.f32 %v8335_v41, %v10382_v56  ;;  %v4155_v49 = vsel %vm1733_vm1, %v4110_v63, 0  ;;  %v3960_v41 = vadd.f32 %v10459_v1, %v3959_v62 }
 0xa5d   : > { %v3457_v6 = vsub.f32 %v10388_v13, %v3435_v40  ;;  %8336 = vrcp.f32 %v3499_v36  ;;  %4160 = vmatpush.bf16.xpose.msrb.mxu1 %v4158_v10  ;;  %v3963_v40 = vadd.f32 %v10459_v1, %v3962_v33  ;;  %v3955_v62 = vadd.f32 %v10459_v1, %v10443_v60 }
 0xa5f   : > { %v3482_v16 = vmul.f32 1.442695, %v3457_v6  ;;  %v4109_v26 = vpack.c.bf16 %v3965_v44, %v3963_v40 }
 0xa61   : > { %8338 = vpow2.f32 %v3482_v16  ;;  %v4152_v63 = vsel %vm1733_vm1, %v4109_v26, 0 }
 0xa63   : > { %v8337_v24 = vpop.eup %8336 }
 0xa64   : > { %v3545_v50 = vmul.f32 %v8337_v24, %v10390_v0  ;;  %v3437_v20 = vpop.xlane.xlu2 %3436  ;;  %v3501_v53 = vpop.xlane.xlu0 %3500 }
 0xa65   : > { %v3458_v36 = vsub.f32 %v10395_v4, %v3437_v20  ;;  %4161 = vmatpush.bf16.xpose.msrb.mxu1 %v4155_v49  ;;  %v3958_v4 = vadd.f32 %v10459_v1, %v3957_v15 }
 0xa66   : > { %v3560_v13 = vpack.c.bf16 %v3545_v50, %v3544_v2 }
 0xa67   : > { %v10473_v18 = vpop.eup %8338  ;;  %v3484_v16 = vmul.f32 1.442695, %v3458_v36  ;;  %v4108_v10 = vpack.c.bf16 %v3960_v41, %v3958_v4 }
 0xa68   : > { %3514 = vadd.xlane.f32.xlu1 %v10473_v18  ;;  %3584 = vmatmul.bf16.vlgmr.msra.gmra.mxu0 %v3560_v13 }
 0xa69   : > { %8340 = vpow2.f32 %v3484_v16  ;;  %v4149_v50 = vsel %vm1733_vm1, %v4108_v10, 0  ;;  %v3948_v16 = vadd.f32 %v10459_v1, %v10416_v17 }
 0xa6a   : > { %8342 = vrcp.f32 %v3501_v53  ;;  %v3953_v53 = vadd.f32 %v10459_v1, %v10436_v51 }
 0xa6c   : > { %v3503_v37 = vpop.xlane.xlu1 %3502  ;;  %v3439_v56 = vpop.xlane.xlu0 %3438  ;;  %v4107_v60 = vpack.c.bf16 %v3955_v62, %v3953_v53 }
 0xa6d   : > { %8344 = vrcp.f32 %v3503_v37  ;;  %v3459_v0 = vsub.f32 %v10406_v58, %v3439_v56  ;;  %4162 = vmatpush.bf16.xpose.msrb.mxu1 %v4152_v63  ;;  %v3945_v63 = vadd.f32 %v10459_v1, %v10403_v11 }
 0xa6f   : > { %v10480_v61 = vpop.eup %8340  ;;  %v3486_v33 = vmul.f32 1.442695, %v3459_v0 }
 0xa70   : > { %3516 = vadd.xlane.f32.xlu2 %v10480_v61  ;;  %v8343_v6 = vpop.eup %8342 }
 0xa71   : > { %8346 = vpow2.f32 %v3486_v33  ;;  %v3546_v58 = vmul.f32 %v8343_v6, %v10399_v32  ;;  %v3950_v32 = vadd.f32 %v10459_v1, %v10423_v29  ;;  %v3943_v6 = vadd.f32 %v10459_v1, %v10397_v21 }
 0xa72   : > { %v3938_v21 = vadd.f32 %v10459_v1, %v10380_v38 }
 0xa73   : > { %v8345_v24 = vpop.eup %8344  ;;  %v4106_v37 = vpack.c.bf16 %v3950_v32, %v3948_v16  ;;  %v4105_v11 = vpack.c.bf16 %v3945_v63, %v3943_v6 }
 0xa74   : > { %v3505_v44 = vpop.xlane.xlu1 %3504  ;;  %v3441_v2 = vpop.xlane.xlu0 %3440  ;;  %v3547_v15 = vmul.f32 %v8345_v24, %v10408_v23 }
 0xa75   : > { %v3460_v20 = vsub.f32 %v10414_v8, %v3441_v2  ;;  %4163 = vmatpush.bf16.xpose.msrb.mxu1 %v4149_v50  ;;  %v4146_v8 = vsel %vm1733_vm1, %v4107_v60, 0 }
 0xa76   : > { %v3561_v49 = vpack.c.bf16 %v3547_v15, %v3546_v58 }
 0xa77   : > { %v10491_v36 = vpop.eup %8346  ;;  %v3488_v40 = vmul.f32 1.442695, %v3460_v20 }
 0xa78   : > { %3589 = vmatmul.bf16.gmra.mxu0 %v3561_v49  ;;  %3518 = vadd.xlane.f32.xlu0 %v10491_v36 }
 0xa79   : > { %8348 = vpow2.f32 %v3488_v40 }
 0xa7a   : > { %8350 = vrcp.f32 %v3505_v44 }
 0xa7c   : > { %v3507_v23 = vpop.xlane.xlu2 %3506  ;;  %v3443_v13 = vpop.xlane.xlu1 %3442 }
 0xa7d   : > { %8352 = vrcp.f32 %v3507_v23  ;;  %v3461_v51 = vsub.f32 %v10426_v46, %v3443_v13  ;;  %4164 = vmatpush.bf16.xpose.msrb.mxu1 %v4146_v8  ;;  %v4143_v46 = vsel %vm1733_vm1, %v4106_v37, 0 }
 0xa7f   : > { %v10500_v26 = vpop.eup %8348  ;;  %v3490_v41 = vmul.f32 1.442695, %v3461_v51 }
 0xa80   : > { %3520 = vadd.xlane.f32.xlu1 %v10500_v26  ;;  %v8351_v56 = vpop.eup %8350 }
 0xa81   : > { %8354 = vpow2.f32 %v3490_v41  ;;  %v3548_v33 = vmul.f32 %v8351_v56, %v10418_v39  ;;  %v3940_v39 = vadd.f32 %v10459_v1, %v10385_v45  ;;  %v8015_v41 = vld [vmem:[%s9003_s16 + $0xf8] sm:$0xff]  ;;  %v8014_v56 = vld [vmem:[%s9003_s16 + $0xf0] sm:$0xff] }
 0xa82   : > { %4047 = vmatpush.bf16.msrb.mxu0 %v8015_v41 }
 0xa83   : > { %v8353_v29 = vpop.eup %8352  ;;  %v4104_v20 = vpack.c.bf16 %v3940_v39, %v3938_v21 }
 0xa84   : > { %v3445_v0 = vpop.xlane.xlu1 %3444  ;;  %v3509_v4 = vpop.xlane.xlu2 %3508  ;;  %v3549_v17 = vmul.f32 %v8353_v29, %v10428_v14 }
 0xa85   : > { %v3462_v10 = vsub.f32 %v10434_v9, %v3445_v0  ;;  %4165 = vmatpush.bf16.xpose.msrb.mxu1 %v4143_v46  ;;  %v4140_v9 = vsel %vm1733_vm1, %v4105_v11, 0  ;;  %v4137_v49 = vsel %vm1733_vm1, %v4104_v20, 0  ;;  %v8013_v0 = vld [vmem:[%s9003_s16 + $0xe8] sm:$0xff] }
 0xa86   : > { %v3562_v24 = vpack.c.bf16 %v3549_v17, %v3548_v33  ;;  %4048 = vmatpush.bf16.msrb.mxu0 %v8014_v56 }
 0xa87   : > { %v10511_v62 = vpop.eup %8354  ;;  %v3492_v44 = vmul.f32 1.442695, %v3462_v10 }
 0xa88   : > { %3522 = vadd.xlane.f32.xlu2 %v10511_v62  ;;  %3594 = vmatmul.bf16.gmra.mxu0 %v3562_v24  ;;  %v8011_v24 = vld [vmem:[%s9003_s16 + $0xd8] sm:$0xff] }
 0xa89   : > { %8356 = vpow2.f32 %v3492_v44  ;;  %v8010_v44 = vld [vmem:[%s9003_s16 + $0xd0] sm:$0xff] }
 0xa8a   : > { %8358 = vrcp.f32 %v3509_v4  ;;  %4049 = vmatpush.bf16.msrb.mxu0 %v8013_v0 }
 0xa8c   : > { %v3447_v14 = vpop.xlane.xlu2 %3446  ;;  %v3511_v2 = vpop.xlane.xlu0 %3510 }
 0xa8d   : > { %v3463_v50 = vsub.f32 %v10447_v48, %v3447_v14  ;;  %8360 = vrcp.f32 %v3511_v2  ;;  %4166 = vmatpush.bf16.xpose.msrb.mxu1 %v4140_v9  ;;  %v8009_v2 = vld [vmem:[%s9003_s16 + $0xc8] sm:$0xff] }
 0xa8f   : > { %v10520_v58 = vpop.eup %8356  ;;  %v3494_v15 = vmul.f32 1.442695, %v3463_v50 }
 0xa90   : > { %3524 = vadd.xlane.f32.xlu0 %v10520_v58  ;;  %v8359_v53 = vpop.eup %8358 }
 0xa91   : > { %8362 = vpow2.f32 %v3494_v15  ;;  %v3550_v40 = vmul.f32 %v8359_v53, %v10438_v19 }
 0xa93   : > { %v8361_v45 = vpop.eup %8360 }
 0xa94   : > { %v3551_v48 = vmul.f32 %v8361_v45, %v10449_v12  ;;  %v3513_v38 = vpop.xlane.xlu0 %3512 }
 0xa95   : > { %4167 = vmatpush.bf16.xpose.msrb.mxu1 %v4137_v49  ;;  %8364 = vrcp.f32 %v3513_v38 }
 0xa96   : > { %v3563_v60 = vpack.c.bf16 %v3551_v48, %v3550_v40 }
 0xa97   : > { %v10526_v32 = vpop.eup %8362 }
 0xa98   : > { %3526 = vadd.xlane.f32.xlu1 %v10526_v32  ;;  %3599 = vmatmul.bf16.gmra.mxu0 %v3563_v60 }
 0xa9b   : > { %v8365_v23 = vpop.eup %8364 }
 0xa9c   : > { %v3552_v19 = vmul.f32 %v8365_v23, %v10453_v25 }
 0xadb   : > { %v3515_v1 = vpop.xlane.xlu1 %3514 }
 0xadc   : > { %8366 = vrcp.f32 %v3515_v1 }
 0xae2   : > { %v8367_v13 = vpop.eup %8366 }
 0xae3   : > { %v3553_v12 = vmul.f32 %v8367_v13, %v10473_v18  ;;  %v3517_v16 = vpop.xlane.xlu2 %3516  ;;  %v8012_v18 = vld [vmem:[%s9003_s16 + $0xe0] sm:$0xff] }
 0xae4   : > { %8368 = vrcp.f32 %v3517_v16  ;;  %4050 = vmatpush.bf16.msrb.mxu0 %v8012_v18 }
 0xae5   : > { %v3585_v8 = vpop.f32.mrf.mxu0  ;;  %v3564_v51 = vpack.c.bf16 %v3553_v12, %v3552_v19 }
 0xae7   : > { %3604 = vmatmul.bf16.gmra.mxu0 %v3564_v51 }
 0xae8   : > { %4051 = vmatpush.bf16.msrb.mxu0 %v8011_v24 }
 0xaea   : > { %v8369_v25 = vpop.eup %8368 }
 0xaeb   : > { %v3519_v37 = vpop.xlane.xlu0 %3518  ;;  %v3554_v46 = vmul.f32 %v8369_v25, %v10480_v61 }
 0xaec   : > { %8370 = vrcp.f32 %v3519_v37  ;;  %4052 = vmatpush.bf16.msrb.mxu0 %v8010_v44 }
 0xaed   : > { %v3587_v29 = vpop.f32.mrf.mxu0 }
 0xaee   : > { %v3625_v63 = vpack.c.bf16 %v3587_v29, %v3585_v8 }
 0xaf0   : > { %7464 = vmatmul.msk.bf16.vlgmr.msra.gmra.mxu1 %vm1733_vm1, %v3625_v63  ;;  %4053 = vmatpush.bf16.msrb.mxu0 %v8009_v2 }
 0xaf2   : > { %v8371_v4 = vpop.eup %8370 }
 0xaf3   : > { %v3555_v33 = vmul.f32 %v8371_v4, %v10491_v36  ;;  %v3521_v6 = vpop.xlane.xlu1 %3520  ;;  %v8008_v36 = vld [vmem:[%s9003_s16 + $0xc0] sm:$0xff] }
 0xaf4   : > { %8372 = vrcp.f32 %v3521_v6  ;;  %4054 = vmatpush.bf16.msrb.mxu0 %v8008_v36 }
 0xaf5   : > { %v3590_v17 = vpop.f32.mrf.mxu0  ;;  %v3565_v10 = vpack.c.bf16 %v3555_v33, %v3554_v46 }
 0xaf7   : > { %3609 = vmatmul.bf16.gmra.mxu0 %v3565_v10 }
 0xafa   : > { %v8373_v61 = vpop.eup %8372 }
 0xafb   : > { %v3523_v11 = vpop.xlane.xlu2 %3522  ;;  %v3556_v50 = vmul.f32 %v8373_v61, %v10500_v26 }
 0xafc   : > { %8374 = vrcp.f32 %v3523_v11 }
 0xafd   : > { %v3592_v39 = vpop.f32.mrf.mxu0 }
 0xafe   : > { %v3626_v14 = vpack.c.bf16 %v3592_v39, %v3590_v17 }
 0xb00   : > { %7465 = vmatmul.msk.bf16.gmra.mxu1 %vm1733_vm1, %v3626_v14 }
 0xb02   : > { %v8375_v9 = vpop.eup %8374 }
 0xb03   : > { %v3557_v21 = vmul.f32 %v8375_v9, %v10511_v62  ;;  %v3525_v53 = vpop.xlane.xlu0 %3524 }
 0xb04   : > { %8376 = vrcp.f32 %v3525_v53 }
 0xb05   : > { %v3595_v15 = vpop.f32.mrf.mxu0  ;;  %v3566_v20 = vpack.c.bf16 %v3557_v21, %v3556_v50 }
 0xb07   : > { %3614 = vmatmul.bf16.gmra.mxu0 %v3566_v20 }
 0xb0a   : > { %v8377_v48 = vpop.eup %8376 }
 0xb0b   : > { %v3527_v45 = vpop.xlane.xlu1 %3526  ;;  %v3558_v38 = vmul.f32 %v8377_v48, %v10520_v58 }
 0xb0c   : > { %8378 = vrcp.f32 %v3527_v45 }
 0xb0d   : > { %v3597_v49 = vpop.f32.mrf.mxu0 }
 0xb0e   : > { %v3627_v40 = vpack.c.bf16 %v3597_v49, %v3595_v15 }
 0xb10   : > { %7466 = vmatmul.msk.bf16.gmra.mxu1 %vm1733_vm1, %v3627_v40 }
 0xb12   : > { %v8379_v60 = vpop.eup %8378 }
 0xb13   : > { %v3559_v26 = vmul.f32 %v8379_v60, %v10526_v32 }
 0xb15   : > { %v3600_v1 = vpop.f32.mrf.mxu0  ;;  %v3567_v62 = vpack.c.bf16 %v3559_v26, %v3558_v38 }
 0xb17   : > { %3619 = vmatmul.bf16.gmra.mxu0 %v3567_v62 }
 0xb1d   : > { %v3602_v23 = vpop.f32.mrf.mxu0 }
 0xb1e   : > { %v3628_v13 = vpack.c.bf16 %v3602_v23, %v3600_v1 }
 0xb20   : > { %7467 = vmatmul.msk.bf16.gmra.mxu1 %vm1733_vm1, %v3628_v13 }
 0xb27   : > { %4055 = vmatmul.bf16.vlgmr.msrb.gmra.mxu0 %v9269_v5 }
 0xb37   : > { %4060 = vmatmul.bf16.gmra.mxu0 %v9306_v34 }
 0xb47   : > { %4065 = vmatmul.bf16.gmra.mxu0 %v9318_v47 }
 0xb57   : > { %4070 = vmatmul.bf16.gmra.mxu0 %v9347_v43 }
 0xb64   : > { %v3605_v19 = vpop.f32.mrf.mxu0 }
 0xb67   : > { %4075 = vmatmul.bf16.gmra.mxu0 %v9370_v28  ;;  %v3818_v28 = vpop.f32.mrf.mxu2 }
 0xb6c   : > { %v3607_v58 = vpop.f32.mrf.mxu0 }
 0xb6d   : > { %v3629_v32 = vpack.c.bf16 %v3607_v58, %v3605_v19  ;;  %v3683_v12 = vpop.f32.mrf.mxu1 }
 0xb6e   : > { %v10555_v8 = vadd.f32 %v3683_v12, %v10191_v57 }
 0xb6f   : > { %7468 = vmatmul.msk.bf16.gmra.mxu1 %vm1733_vm1, %v3629_v32  ;;  %v3820_v57 = vpop.f32.mrf.mxu2 }
 0xb74   : > { %v3610_v51 = vpop.f32.mrf.mxu0 }
 0xb75   : > { %v10558_v16 = vpop.f32.mrf.mxu1 }
 0xb77   : > { %4080 = vmatmul.bf16.gmra.mxu0 %v9383_v22 }
 0xb7c   : > { %v3612_v5 = vpop.f32.mrf.mxu0 }
 0xb7d   : > { %v3630_v34 = vpack.c.bf16 %v3612_v5, %v3610_v51  ;;  %v3688_v47 = vpop.f32.mrf.mxu1 }
 0xb7e   : > { %v10562_v43 = vadd.f32 %v3688_v47, %v10201_v3  ;;  %v3823_v3 = vpop.f32.mrf.mxu2 }
 0xb7f   : > { %7469 = vmatmul.msk.bf16.gmra.mxu1 %vm1733_vm1, %v3630_v34 }
 0xb84   : > { %v3615_v41 = vpop.f32.mrf.mxu0 }
 0xb85   : > { %v10565_v37 = vpop.f32.mrf.mxu1 }
 0xb86   : > { %v3825_v4 = vpop.f32.mrf.mxu2 }
 0xb87   : > { %4085 = vmatmul.bf16.gmra.mxu0 %v9394_v55 }
 0xb8c   : > { %v3617_v56 = vpop.f32.mrf.mxu0 }
 0xb8d   : > { %v3631_v29 = vpack.c.bf16 %v3617_v56, %v3615_v41  ;;  %v3693_v63 = vpop.f32.mrf.mxu1 }
 0xb8e   : > { %v10569_v22 = vadd.f32 %v3693_v63, %v10208_v54  ;;  %v10582_v54 = vld [vmem:[%s8988_s26 + $0x3] ss:$0 sm:$0xff]  ;;  %v3828_v10 = vpop.f32.mrf.mxu2 }
 0xb8f   : > { %7470 = vmatmul.msk.bf16.gmra.mxu1 %vm1733_vm1, %v3631_v29  ;;  %v3821_v6 = vadd.f32 %v10582_v54, %v3820_v57  ;;  %v3819_v24 = vadd.f32 %v10582_v54, %v3818_v28  ;;  %v3824_v14 = vadd.f32 %v10582_v54, %v3823_v3  ;;  %v3829_v15 = vadd.f32 %v10582_v54, %v3828_v10 }
 0xb94   : > { %v3620_v0 = vpop.f32.mrf.mxu0 }
 0xb95   : > { %v10572_v25 = vpop.f32.mrf.mxu1 }
 0xb96   : > { %v3830_v11 = vpop.f32.mrf.mxu2 }
 0xb97   : > { %4090 = vmatmul.bf16.gmra.mxu0 %v9419_v31  ;;  %v4096_v31 = vpack.c.bf16 %v3821_v6, %v3819_v24  ;;  %v3831_v21 = vadd.f32 %v10582_v54, %v3830_v11 }
 0xb99   : > { %v4098_v53 = vpack.c.bf16 %v3831_v21, %v3829_v15 }
 0xb9c   : > { %v3622_v18 = vpop.f32.mrf.mxu0 }
 0xb9d   : > { %v3632_v46 = vpack.c.bf16 %v3622_v18, %v3620_v0  ;;  %v3698_v55 = vpop.f32.mrf.mxu1 }
 0xb9e   : > { %v10576_v33 = vadd.f32 %v3698_v55, %v10215_v27  ;;  %v3826_v27 = vadd.f32 %v10582_v54, %v3825_v4  ;;  %v3833_v2 = vpop.f32.mrf.mxu2 }
 0xb9f   : > { %7471 = vmatmul.msk.bf16.gmra.mxu1 %vm1733_vm1, %v3632_v46  ;;  %v3834_v60 = vadd.f32 %v10582_v54, %v3833_v2 }
 0xba0   : > { %v4097_v36 = vpack.c.bf16 %v3826_v27, %v3824_v14 }
 0xba4   : > { %v10579_v17 = vpop.f32.mrf.mxu0 }
 0xba5   : > { %v10608_v62 = vpop.f32.mrf.mxu1 }
 0xba6   : > { %v3835_v50 = vpop.f32.mrf.mxu2 }
 0xba7   : > { %v3836_v40 = vadd.f32 %v10582_v54, %v3835_v50 }
 0xba9   : > { %v4099_v26 = vpack.c.bf16 %v3836_v40, %v3834_v60 }
 0xbac   : > { %v10586_v44 = vpop.f32.mrf.mxu0 }
 0xbae   : > { %v3838_v45 = vpop.f32.mrf.mxu2 }
 0xbaf   : > { %7619 = vmatmul.msk.bf16.vlgmr.msrb.gmra.mxu1 %vm1733_vm1, %v4096_v31  ;;  %v3839_v19 = vadd.f32 %v10582_v54, %v3838_v45 }
 0xbb4   : > { %v10589_v39 = vpop.f32.mrf.mxu0 }
 0xbb6   : > { %v3840_v48 = vpop.f32.mrf.mxu2 }
 0xbb7   : > { %v3841_v13 = vadd.f32 %v10582_v54, %v3840_v48 }
 0xbb9   : > { %v4100_v12 = vpack.c.bf16 %v3841_v13, %v3839_v19 }
 0xbbc   : > { %v10593_v61 = vpop.f32.mrf.mxu0 }
 0xbbe   : > { %v3843_v1 = vpop.f32.mrf.mxu2 }
 0xbbf   : > { %7620 = vmatmul.msk.bf16.gmra.mxu1 %vm1733_vm1, %v4097_v36  ;;  %v3844_v57 = vadd.f32 %v10582_v54, %v3843_v1  ;;  %v8145_v36 = vld [vmem:[%s9008_s25 + $0x3] ss:$0 sm:$0xff] }
 0xbc4   : > { %v10596_v9 = vpop.f32.mrf.mxu0 }
 0xbc6   : > { %v3845_v51 = vpop.f32.mrf.mxu2 }
 0xbc7   : > { %v3846_v41 = vadd.f32 %v10582_v54, %v3845_v51 }
 0xbc9   : > { %v4101_v63 = vpack.c.bf16 %v3846_v41, %v3844_v57 }
 0xbcc   : > { %v10600_v20 = vpop.f32.mrf.mxu0 }
 0xbce   : > { %v3848_v28 = vpop.f32.mrf.mxu2 }
 0xbcf   : > { %7621 = vmatmul.msk.bf16.gmra.mxu1 %vm1733_vm1, %v4098_v53  ;;  %v3849_v46 = vadd.f32 %v10582_v54, %v3848_v28 }
 0xbd4   : > { %v10603_v49 = vpop.f32.mrf.mxu0 }
 0xbd5   : > { %v4072_v41 = vadd.f32 %v8145_v36, %v10603_v49  ;;  %v4059_v49 = vadd.f32 %v8145_v36, %v10586_v44 }
 0xbdc   : > { %v4073_v38 = vpop.f32.mrf.mxu0 }
 0xbdd   : > { %v4074_v51 = vadd.f32 %v8145_v36, %v4073_v38  ;;  %v4062_v38 = vadd.f32 %v8145_v36, %v10589_v39 }
 0xbdf   : > { %7622 = vmatmul.msk.bf16.gmra.mxu1 %vm1733_vm1, %v4099_v26 }
 0xbe4   : > { %v4076_v23 = vpop.f32.mrf.mxu0 }
 0xbec   : > { %v3703_v58 = vpop.f32.mrf.mxu1  ;;  %v4078_v32 = vpop.f32.mrf.mxu0 }
 0xbed   : > { %v10613_v5 = vadd.f32 %v3703_v58, %v10283_v52  ;;  %v3850_v52 = vpop.f32.mrf.mxu2  ;;  %v4079_v19 = vadd.f32 %v8145_v36, %v4078_v32  ;;  %v4064_v32 = vadd.f32 %v8145_v36, %v10593_v61 }
 0xbee   : > { %v3851_v4 = vadd.f32 %v10582_v54, %v3850_v52 }
 0xbef   : > { %7623 = vmatmul.msk.bf16.gmra.mxu1 %vm1733_vm1, %v4100_v12  ;;  %v4077_v12 = vadd.f32 %v8145_v36, %v4076_v23 }
 0xbf0   : > { %v4102_v24 = vpack.c.bf16 %v3851_v4, %v3849_v46 }
 0xbf4   : > { %v10616_v34 = vpop.f32.mrf.mxu1  ;;  %v4081_v47 = vpop.f32.mrf.mxu0 }
 0xbf5   : > { %v3853_v55 = vpop.f32.mrf.mxu2 }
 0xbf6   : > { %v3854_v2 = vadd.f32 %v10582_v54, %v3853_v55  ;;  %v12175_v55 = vld [vmem:[#allocation15_spill] sm:$0xff] }
 0xbfc   : > { %v3708_v56 = vpop.f32.mrf.mxu1  ;;  %v4083_v29 = vpop.f32.mrf.mxu0 }
 0xbfd   : > { %v10621_v3 = vadd.f32 %v3708_v56, %v10299_v30  ;;  %v3855_v27 = vpop.f32.mrf.mxu2  ;;  %v4084_v26 = vadd.f32 %v8145_v36, %v4083_v29  ;;  %v4069_v56 = vadd.f32 %v8145_v36, %v10600_v20  ;;  %v4364_v29 = vpack.c.bf16 %v4074_v51, %v4072_v41 }
 0xbfe   : > { %v3856_v14 = vadd.f32 %v10582_v54, %v3855_v27  ;;  %v4082_v54 = vadd.f32 %v8145_v36, %v4081_v47  ;;  %v4057_v20 = vadd.f32 %v8145_v36, %v10579_v17  ;;  %v12178_v27 = vld [vmem:[#allocation18_spill] sm:$0xff] }
 0xbff   : > { %7624 = vmatmul.msk.bf16.gmra.mxu1 %vm1733_vm1, %v4101_v63  ;;  %v4067_v63 = vadd.f32 %v8145_v36, %v10596_v9  ;;  %v12174_v9 = vld [vmem:[#allocation14_spill] sm:$0xff] }
 0xc00   : > { %v4103_v15 = vpack.c.bf16 %v3856_v14, %v3854_v2  ;;  %v4366_v58 = vpack.c.bf16 %v4084_v26, %v4082_v54 }
 0xc01   : > { %v4363_v47 = vpack.c.bf16 %v4069_v56, %v4067_v63 }
 0xc04   : > { %v10624_v0 = vpop.f32.mrf.mxu1  ;;  %v4086_v18 = vpop.f32.mrf.mxu0 }
 0xc05   : > { %v4087_v60 = vadd.f32 %v8145_v36, %v4086_v18  ;;  %v4361_v18 = vpack.c.bf16 %v4059_v49, %v4057_v20  ;;  %v12183_v20 = vld [vmem:[#allocation23_spill] sm:$0xff] }
 0xc0c   : > { %v3713_v10 = vpop.f32.mrf.mxu1  ;;  %v4088_v6 = vpop.f32.mrf.mxu0 }
 0xc0d   : > { %v10629_v31 = vadd.f32 %v3713_v10, %v10312_v59  ;;  %v4089_v40 = vadd.f32 %v8145_v36, %v4088_v6  ;;  %v12176_v6 = vld [vmem:[#allocation16_spill] sm:$0xff] }
 0xc0f   : > { %7625 = vmatmul.msk.bf16.gmra.mxu1 %vm1733_vm1, %v4102_v24  ;;  %v4367_v1 = vpack.c.bf16 %v4089_v40, %v4087_v60  ;;  %v12177_v24 = vld [vmem:[#allocation17_spill] sm:$0xff] }
 0xc14   : > { %v10632_v30 = vpop.f32.mrf.mxu1  ;;  %v4091_v11 = vpop.f32.mrf.mxu0 }
 0xc15   : > { %v4092_v53 = vadd.f32 %v8145_v36, %v4091_v11 }
 0xc1c   : > { %v3718_v50 = vpop.f32.mrf.mxu1  ;;  %v4093_v21 = vpop.f32.mrf.mxu0 }
 0xc1d   : > { %v10638_v45 = vadd.f32 %v3718_v50, %v10326_v42  ;;  %v4094_v59 = vadd.f32 %v8145_v36, %v4093_v21  ;;  %v4365_v42 = vpack.c.bf16 %v4079_v19, %v4077_v12  ;;  %v12179_v36 = vld [vmem:[#allocation19_spill] sm:$0xff] }
 0xc1f   : > { %v4368_v48 = vpack.c.bf16 %v4094_v59, %v4092_v53  ;;  %7626 = vmatmul.msk.bf16.gmra.mxu1 %vm1733_vm1, %v4103_v15  ;;  %v12180_v15 = vld [vmem:[#allocation20_spill] sm:$0xff] }
 0xc21   : > { %4369 = vmatpush.bf16.msrb.mxu2 %v4368_v48 }
 0xc24   : > { %v10641_v13 = vpop.f32.mrf.mxu1 }
 0xc25   : > { %4370 = vmatpush.bf16.msrb.mxu2 %v4367_v1 }
 0xc29   : > { %4371 = vmatpush.bf16.msrb.mxu2 %v4366_v58 }
 0xc2c   : > { %v4169_v28 = vpop.f32.mrf.mxu1 }
 0xc2d   : > { %v4170_v57 = vadd.f32 %v4169_v28, %v12158_v7  ;;  %4372 = vmatpush.bf16.msrb.mxu2 %v4365_v42  ;;  %v4362_v7 = vpack.c.bf16 %v4064_v32, %v4062_v38  ;;  %v12181_v42 = vld [vmem:[#allocation21_spill] sm:$0xff]  ;;  %v12182_v32 = vld [vmem:[#allocation22_spill] sm:$0xff] }
 0xc2f   : > { %4209 = vmax.xlane.f32.xlu2 %v4170_v57 }
 0xc31   : > { %4373 = vmatpush.bf16.msrb.mxu2 %v4364_v29 }
 0xc34   : > { %v4171_v23 = vpop.f32.mrf.mxu1 }
 0xc35   : > { %4374 = vmatpush.bf16.msrb.mxu2 %v4363_v47  ;;  %v4172_v52 = vadd.f32 %v4171_v23, %v12159_v35 }
 0xc37   : > { %4211 = vmax.xlane.f32.xlu0 %v4172_v52 }
 0xc39   : > { %4375 = vmatpush.bf16.msrb.mxu2 %v4362_v7 }
 0xc3c   : > { %v4174_v4 = vpop.f32.mrf.mxu1 }
 0xc3d   : > { %v4175_v46 = vadd.f32 %v4174_v4, %v12174_v9  ;;  %4376 = vmatpush.bf16.msrb.mxu2 %v4361_v18 }
 0xc3f   : > { %4213 = vmax.xlane.f32.xlu1 %v4175_v46 }
 0xc44   : > { %v4176_v61 = vpop.f32.mrf.mxu1 }
 0xc45   : > { %v4177_v10 = vadd.f32 %v4176_v61, %v12175_v55  ;;  %v12184_v55 = vld [vmem:[#allocation24_spill] sm:$0xff] }
 0xc47   : > { %4215 = vmax.xlane.f32.xlu2 %v4177_v10 }
 0xc4c   : > { %v4179_v39 = vpop.f32.mrf.mxu1 }
 0xc4d   : > { %v4180_v35 = vadd.f32 %v4179_v39, %v12176_v6 }
 0xc4f   : > { %4217 = vmax.xlane.f32.xlu0 %v4180_v35 }
 0xc54   : > { %v4181_v44 = vpop.f32.mrf.mxu1 }
 0xc55   : > { %v4182_v11 = vadd.f32 %v4181_v44, %v12177_v24 }
 0xc57   : > { %4219 = vmax.xlane.f32.xlu1 %v4182_v11 }
 0xc5c   : > { %v4184_v17 = vpop.f32.mrf.mxu1 }
 0xc5d   : > { %v4185_v14 = vadd.f32 %v4184_v17, %v12178_v27  ;;  %v12185_v17 = vld [vmem:[#allocation25_spill] sm:$0xff] }
 0xc5f   : > { %4221 = vmax.xlane.f32.xlu2 %v4185_v14 }
 0xc64   : > { %v4186_v2 = vpop.f32.mrf.mxu1 }
 0xc65   : > { %v10658_v50 = vadd.f32 %v4186_v2, %v12179_v36 }
 0xc67   : > { %4223 = vmax.xlane.f32.xlu0 %v10658_v50 }
 0xc6c   : > { %v4189_v21 = vpop.f32.mrf.mxu1 }
 0xc6d   : > { %v10662_v53 = vadd.f32 %v4189_v21, %v12180_v15 }
 0xc6f   : > { %4225 = vmax.xlane.f32.xlu0 %v10662_v53 }
 0xc74   : > { %v4191_v48 = vpop.f32.mrf.mxu1 }
 0xc75   : > { %v10669_v28 = vadd.f32 %v4191_v48, %v12181_v42 }
 0xc7c   : > { %v4194_v58 = vpop.f32.mrf.mxu1 }
 0xc7d   : > { %v10676_v47 = vadd.f32 %v4194_v58, %v12182_v32 }
 0xc84   : > { %v4196_v56 = vpop.f32.mrf.mxu1 }
 0xc85   : > { %v10683_v18 = vadd.f32 %v4196_v56, %v12183_v20 }
 0xc8c   : > { %v4199_v49 = vpop.f32.mrf.mxu1 }
 0xc94   : > { %v4201_v6 = vpop.f32.mrf.mxu1 }
 0xc95   : > { %v10697_v27 = vadd.f32 %v4201_v6, %v12185_v17 }
 0xc9c   : > { %v4204_v36 = vpop.f32.mrf.mxu1 }
 0xca2   : > { %v4210_v59 = vpop.xlane.xlu2 %4209 }
 0xca3   : > { %v4241_v40 = vsub.f32 %v4170_v57, %v4210_v59  ;;  %v12186_v59 = vld [vmem:[#allocation26_spill] sm:$0xff] }
 0xca5   : > { %v4257_v60 = vmul.f32 1.442695, %v4241_v40  ;;  %v10705_v40 = vadd.f32 %v4204_v36, %v12186_v59 }
 0xca7   : > { %8380 = vpow2.f32 %v4257_v60  ;;  %v4206_v60 = vpop.f32.mrf.mxu1 }
 0xcaa   : > { %v4212_v26 = vpop.xlane.xlu0 %4211 }
 0xcab   : > { %v4242_v1 = vsub.f32 %v4172_v52, %v4212_v26 }
 0xcad   : > { %v10665_v54 = vpop.eup %8380  ;;  %v4259_v19 = vmul.f32 1.442695, %v4242_v1 }
 0xcae   : > { %4289 = vadd.xlane.f32.xlu1 %v10665_v54 }
 0xcaf   : > { %8382 = vpow2.f32 %v4259_v19  ;;  %v12187_v19 = vld [vmem:[#allocation27_spill] sm:$0xff] }
 0xcb0   : > { %v10713_v58 = vadd.f32 %v4206_v60, %v12187_v19 }
 0xcb2   : > { %v4214_v12 = vpop.xlane.xlu1 %4213 }
 0xcb3   : > { %v4243_v51 = vsub.f32 %v4175_v46, %v4214_v12 }
 0xcb5   : > { %v10671_v41 = vpop.eup %8382  ;;  %v4261_v57 = vmul.f32 1.442695, %v4243_v51 }
 0xcb6   : > { %4291 = vadd.xlane.f32.xlu2 %v10671_v41  ;;  %4227 = vmax.xlane.f32.xlu1 %v10669_v28 }
 0xcb7   : > { %8384 = vpow2.f32 %v4261_v57  ;;  %v8017_v57 = vld [vmem:[%s9014_s28 + $0x38] sm:$0xff] }
 0xcb8   : > { %4473 = vmatpush.bf16.msrb.mxu3 %v8017_v57 }
 0xcba   : > { %v4216_v29 = vpop.xlane.xlu2 %4215 }
 0xcbb   : > { %v4244_v63 = vsub.f32 %v4177_v10, %v4216_v29  ;;  %v10690_v10 = vadd.f32 %v4199_v49, %v12184_v55 }
 0xcbd   : > { %v10678_v23 = vpop.eup %8384  ;;  %v4263_v38 = vmul.f32 1.442695, %v4244_v63 }
 0xcbe   : > { %4293 = vadd.xlane.f32.xlu2 %v10678_v23  ;;  %4229 = vmax.xlane.f32.xlu1 %v10676_v47 }
 0xcbf   : > { %8386 = vpow2.f32 %v4263_v38 }
 0xcc2   : > { %v4218_v52 = vpop.xlane.xlu0 %4217 }
 0xcc3   : > { %v4245_v7 = vsub.f32 %v4180_v35, %v4218_v52 }
 0xcc5   : > { %v10685_v4 = vpop.eup %8386  ;;  %v4265_v9 = vmul.f32 1.442695, %v4245_v7 }
 0xcc6   : > { %4231 = vmax.xlane.f32.xlu2 %v10683_v18  ;;  %4295 = vadd.xlane.f32.xlu0 %v10685_v4 }
 0xcc7   : > { %8388 = vpow2.f32 %v4265_v9 }
 0xcca   : > { %v4220_v46 = vpop.xlane.xlu1 %4219 }
 0xccb   : > { %v4246_v61 = vsub.f32 %v4182_v11, %v4220_v46 }
 0xccd   : > { %v10692_v39 = vpop.eup %8388  ;;  %v4267_v35 = vmul.f32 1.442695, %v4246_v61 }
 0xcce   : > { %4233 = vmax.xlane.f32.xlu2 %v10690_v10  ;;  %4297 = vadd.xlane.f32.xlu0 %v10692_v39 }
 0xccf   : > { %8390 = vpow2.f32 %v4267_v35 }
 0xcd2   : > { %v4222_v44 = vpop.xlane.xlu2 %4221 }
 0xcd3   : > { %v4247_v24 = vsub.f32 %v4185_v14, %v4222_v44 }
 0xcd5   : > { %v10699_v2 = vpop.eup %8390  ;;  %v4269_v11 = vmul.f32 1.442695, %v4247_v24 }
 0xcd6   : > { %4299 = vadd.xlane.f32.xlu1 %v10699_v2  ;;  %4235 = vmax.xlane.f32.xlu0 %v10697_v27 }
 0xcd7   : > { %8392 = vpow2.f32 %v4269_v11 }
 0xcda   : > { %v4224_v21 = vpop.xlane.xlu0 %4223 }
 0xcdb   : > { %v4248_v15 = vsub.f32 %v10658_v50, %v4224_v21 }
 0xcdd   : > { %v10707_v48 = vpop.eup %8392  ;;  %v4271_v14 = vmul.f32 1.442695, %v4248_v15 }
 0xcde   : > { %4237 = vmax.xlane.f32.xlu0 %v10705_v40  ;;  %4301 = vadd.xlane.f32.xlu1 %v10707_v48 }
 0xcdf   : > { %8394 = vpow2.f32 %v4271_v14  ;;  %v8016_v14 = vld [vmem:[%s9014_s28 + $0x30] sm:$0xff]  ;;  %s12209_s28 = sld [smem:[#allocation56_spill]] (!%p7903_p8) }
 0xce0   : > { %4474 = vmatpush.bf16.msrb.mxu3 %v8016_v14 }
 0xce2   : > { %v4226_v26 = vpop.xlane.xlu0 %4225 }
 0xce3   : > { %v4249_v1 = vsub.f32 %v10662_v53, %v4226_v26 }
 0xce5   : > { %v10715_v50 = vpop.eup %8394  ;;  %v4273_v12 = vmul.f32 1.442695, %v4249_v1 }
 0xce6   : > { %4303 = vadd.xlane.f32.xlu2 %v10715_v50  ;;  %4239 = vmax.xlane.f32.xlu1 %v10713_v58 }
 0xce7   : > { %8396 = vpow2.f32 %v4273_v12 }
 0xced   : > { %v10719_v51 = vpop.eup %8396 }
 0xcee   : > { %4305 = vadd.xlane.f32.xlu2 %v10719_v51 }
 0xd21   : > { %v4290_v42 = vpop.xlane.xlu1 %4289 }
 0xd22   : > { %8398 = vrcp.f32 %v4290_v42 }
 0xd28   : > { %v8399_v32 = vpop.eup %8398 }
 0xd29   : > { %v4228_v53 = vpop.xlane.xlu1 %4227  ;;  %v4292_v56 = vpop.xlane.xlu2 %4291  ;;  %v4337_v52 = vmul.f32 %v8399_v32, %v10665_v54 }
 0xd2a   : > { %v4250_v29 = vsub.f32 %v10669_v28, %v4228_v53  ;;  %8400 = vrcp.f32 %v4292_v56 }
 0xd2c   : > { %v4275_v63 = vmul.f32 1.442695, %v4250_v29 }
 0xd2e   : > { %8402 = vpow2.f32 %v4275_v63 }
 0xd30   : > { %v8401_v38 = vpop.eup %8400 }
 0xd31   : > { %v4338_v49 = vmul.f32 %v8401_v38, %v10671_v41  ;;  %v4230_v7 = vpop.xlane.xlu1 %4229  ;;  %v4294_v20 = vpop.xlane.xlu2 %4293 }
 0xd32   : > { %v4251_v9 = vsub.f32 %v10676_v47, %v4230_v7 }
 0xd33   : > { %v4353_v46 = vpack.c.bf16 %v4338_v49, %v4337_v52 }
 0xd34   : > { %v10727_v61 = vpop.eup %8402  ;;  %v4277_v55 = vmul.f32 1.442695, %v4251_v9 }
 0xd35   : > { %4307 = vadd.xlane.f32.xlu0 %v10727_v61  ;;  %4377 = vmatmul.bf16.vlgmr.msrb.gmra.mxu2 %v4353_v46 }
 0xd36   : > { %8404 = vpow2.f32 %v4277_v55 }
 0xd37   : > { %8406 = vrcp.f32 %v4294_v20 }
 0xd39   : > { %v4296_v28 = vpop.xlane.xlu0 %4295  ;;  %v4232_v6 = vpop.xlane.xlu2 %4231 }
 0xd3a   : > { %8408 = vrcp.f32 %v4296_v28  ;;  %v4252_v54 = vsub.f32 %v10683_v18, %v4232_v6 }
 0xd3c   : > { %v10731_v35 = vpop.eup %8404  ;;  %v4279_v41 = vmul.f32 1.442695, %v4252_v54 }
 0xd3d   : > { %4309 = vadd.xlane.f32.xlu1 %v10731_v35  ;;  %v8407_v47 = vpop.eup %8406 }
 0xd3e   : > { %8410 = vpow2.f32 %v4279_v41  ;;  %v4339_v11 = vmul.f32 %v8407_v47, %v10678_v23 }
 0xd40   : > { %v8409_v44 = vpop.eup %8408 }
 0xd41   : > { %v4298_v24 = vpop.xlane.xlu0 %4297  ;;  %v4234_v17 = vpop.xlane.xlu2 %4233  ;;  %v4340_v36 = vmul.f32 %v8409_v44, %v10685_v4 }
 0xd42   : > { %v4253_v21 = vsub.f32 %v10690_v10, %v4234_v17 }
 0xd43   : > { %v4354_v15 = vpack.c.bf16 %v4340_v36, %v4339_v11 }
 0xd44   : > { %v10737_v59 = vpop.eup %8410  ;;  %v4281_v18 = vmul.f32 1.442695, %v4253_v21 }
 0xd45   : > { %4382 = vmatmul.bf16.gmra.mxu2 %v4354_v15  ;;  %4311 = vadd.xlane.f32.xlu2 %v10737_v59 }
 0xd46   : > { %8412 = vpow2.f32 %v4281_v18 }
 0xd47   : > { %8414 = vrcp.f32 %v4298_v24 }
 0xd49   : > { %v4300_v60 = vpop.xlane.xlu1 %4299  ;;  %v4236_v26 = vpop.xlane.xlu0 %4235 }
 0xd4a   : > { %8416 = vrcp.f32 %v4300_v60  ;;  %v4254_v23 = vsub.f32 %v10697_v27, %v4236_v26 }
 0xd4c   : > { %v10742_v1 = vpop.eup %8412  ;;  %v4283_v4 = vmul.f32 1.442695, %v4254_v23 }
 0xd4d   : > { %4313 = vadd.xlane.f32.xlu0 %v10742_v1  ;;  %v8415_v10 = vpop.eup %8414 }
 0xd4e   : > { %8418 = vpow2.f32 %v4283_v4  ;;  %v4341_v57 = vmul.f32 %v8415_v10, %v10692_v39 }
 0xd50   : > { %v8417_v19 = vpop.eup %8416 }
 0xd51   : > { %v4238_v12 = vpop.xlane.xlu0 %4237  ;;  %v4302_v42 = vpop.xlane.xlu1 %4301  ;;  %v4342_v53 = vmul.f32 %v8417_v19, %v10699_v2 }
 0xd52   : > { %v4255_v56 = vsub.f32 %v10705_v40, %v4238_v12 }
 0xd53   : > { %v4355_v29 = vpack.c.bf16 %v4342_v53, %v4341_v57 }
 0xd54   : > { %v8419_v63 = vpop.eup %8418  ;;  %v4285_v32 = vmul.f32 1.442695, %v4255_v56 }
 0xd55   : > { %4315 = vadd.xlane.f32.xlu1 %v8419_v63  ;;  %4387 = vmatmul.bf16.gmra.mxu2 %v4355_v29 }
 0xd56   : > { %8420 = vpow2.f32 %v4285_v32 }
 0xd57   : > { %8422 = vrcp.f32 %v4302_v42 }
 0xd59   : > { %v4240_v27 = vpop.xlane.xlu1 %4239  ;;  %v4304_v38 = vpop.xlane.xlu2 %4303 }
 0xd5a   : > { %v4256_v52 = vsub.f32 %v10713_v58, %v4240_v27  ;;  %8424 = vrcp.f32 %v4304_v38 }
 0xd5c   : > { %v8421_v49 = vpop.eup %8420  ;;  %v4287_v7 = vmul.f32 1.442695, %v4256_v52 }
 0xd5d   : > { %4317 = vadd.xlane.f32.xlu2 %v8421_v49  ;;  %v8423_v39 = vpop.eup %8422 }
 0xd5e   : > { %8426 = vpow2.f32 %v4287_v7  ;;  %v4343_v40 = vmul.f32 %v8423_v39, %v10707_v48 }
 0xd60   : > { %v8425_v2 = vpop.eup %8424 }
 0xd61   : > { %v4344_v20 = vmul.f32 %v8425_v2, %v10715_v50  ;;  %v4306_v55 = vpop.xlane.xlu2 %4305 }
 0xd62   : > { %8428 = vrcp.f32 %v4306_v55  ;;  %v12189_v55 = vld [vmem:[#allocation28_spill] sm:$0xff] }
 0xd63   : > { %v4356_v9 = vpack.c.bf16 %v4344_v20, %v4343_v40 }
 0xd64   : > { %v8427_v46 = vpop.eup %8426 }
 0xd65   : > { %4319 = vadd.xlane.f32.xlu0 %v8427_v46  ;;  %4392 = vmatmul.bf16.gmra.mxu2 %v4356_v9 }
 0xd68   : > { %v8429_v58 = vpop.eup %8428 }
 0xd69   : > { %v4345_v54 = vmul.f32 %v8429_v58, %v10719_v51 }
 0xda8   : > { %v4308_v28 = vpop.xlane.xlu0 %4307 }
 0xda9   : > { %8430 = vrcp.f32 %v4308_v28 }
 0xdaf   : > { %v8431_v6 = vpop.eup %8430 }
 0xdb0   : > { %v4346_v41 = vmul.f32 %v8431_v6, %v10727_v61  ;;  %v4310_v44 = vpop.xlane.xlu1 %4309  ;;  %v12190_v6 = vld [vmem:[#allocation34_spill] sm:$0xff] }
 0xdb1   : > { %8432 = vrcp.f32 %v4310_v44 }
 0xdb2   : > { %v4357_v47 = vpack.c.bf16 %v4346_v41, %v4345_v54 }
 0xdb4   : > { %4397 = vmatmul.bf16.gmra.mxu2 %v4357_v47 }
 0xdb7   : > { %v8433_v24 = vpop.eup %8432 }
 0xdb8   : > { %v4378_v48 = vpop.f32.mrf.mxu2  ;;  %v4312_v50 = vpop.xlane.xlu2 %4311  ;;  %v4347_v36 = vmul.f32 %v8433_v24, %v10731_v35 }
 0xdb9   : > { %8434 = vrcp.f32 %v4312_v50 }
 0xdbf   : > { %v8435_v17 = vpop.eup %8434 }
 0xdc0   : > { %v4380_v11 = vpop.f32.mrf.mxu2  ;;  %v4348_v21 = vmul.f32 %v8435_v17, %v10737_v59  ;;  %v4314_v51 = vpop.xlane.xlu0 %4313 }
 0xdc1   : > { %v4418_v15 = vpack.c.bf16 %v4380_v11, %v4378_v48  ;;  %8436 = vrcp.f32 %v4314_v51 }
 0xdc2   : > { %v4358_v18 = vpack.c.bf16 %v4348_v21, %v4347_v36  ;;  %v8745_v36 = vld [vmem:[#allocation2 + $0x18] sm:$0xff]  ;;  %v12191_v21 = vld [vmem:[#allocation29_spill] sm:$0xff] }
 0xdc3   : > { %7639 = vmatmul.msk.bf16.vlgmr.msrb.gmra.mxu3 %vm1733_vm1, %v4418_v15  ;;  %v2140_v15 = vadd.f32 %v8745_v36, %v12191_v21 }
 0xdc4   : > { %4402 = vmatmul.bf16.gmra.mxu2 %v4358_v18  ;;  %v12192_v18 = vld [vmem:[#allocation35_spill] sm:$0xff] }
 0xdc5   : > { %v2933_v51 = vadd.f32 %v12192_v18, %v2140_v15  ;;  %v12198_v18 = vld [vmem:[#allocation38_spill] sm:$0xff] }
 0xdc7   : > { %v8437_v60 = vpop.eup %8436 }
 0xdc8   : > { %v4316_v61 = vpop.xlane.xlu1 %4315  ;;  %v4383_v14 = vpop.f32.mrf.mxu2  ;;  %v4349_v4 = vmul.f32 %v8437_v60, %v10742_v1 }
 0xdc9   : > { %8438 = vrcp.f32 %v4316_v61  ;;  %v3726_v61 = vadd.f32 %v10565_v37, %v2933_v51  ;;  %v3732_v51 = vadd.f32 %v10616_v34, %v12198_v18  ;;  %v8040_v18 = vld [vmem:[%s9035_s22 + $0xd0] sm:$0xf0] }
 0xdcf   : > { %v8439_v26 = vpop.eup %8438 }
 0xdd0   : > { %v4385_v23 = vpop.f32.mrf.mxu2  ;;  %v4350_v10 = vmul.f32 %v8439_v26, %v8419_v63  ;;  %v4318_v59 = vpop.xlane.xlu2 %4317 }
 0xdd1   : > { %v4419_v19 = vpack.c.bf16 %v4385_v23, %v4383_v14  ;;  %8440 = vrcp.f32 %v4318_v59  ;;  %v12193_v59 = vld [vmem:[#allocation30_spill] sm:$0xff] }
 0xdd2   : > { %v4359_v35 = vpack.c.bf16 %v4350_v10, %v4349_v4 }
 0xdd3   : > { %7640 = vmatmul.msk.bf16.gmra.mxu3 %vm1733_vm1, %v4419_v19 }
 0xdd4   : > { %4407 = vmatmul.bf16.gmra.mxu2 %v4359_v35  ;;  %v8746_v35 = vld [vmem:[#allocation2 + $0x68] sm:$0xff] }
 0xdd7   : > { %v8441_v57 = vpop.eup %8440 }
 0xdd8   : > { %v4388_v12 = vpop.f32.mrf.mxu2  ;;  %v4320_v42 = vpop.xlane.xlu0 %4319  ;;  %v4351_v29 = vmul.f32 %v8441_v57, %v8421_v49  ;;  %v10766_v49 = vld [vmem:[%s12188_s2] ss:$0 sm:$0xff] }
 0xdd9   : > { %8442 = vrcp.f32 %v4320_v42  ;;  %v12194_v42 = vld [vmem:[#allocation36_spill] sm:$0xff] }
 0xddf   : > { %v8443_v53 = vpop.eup %8442 }
 0xde0   : > { %v4390_v56 = vpop.f32.mrf.mxu2  ;;  %v4352_v32 = vmul.f32 %v8443_v53, %v8427_v46  ;;  %v8744_v46 = vld [vmem:[#allocation2] sm:$0xff] }
 0xde1   : > { %v4420_v27 = vpack.c.bf16 %v4390_v56, %v4388_v12  ;;  %v2138_v28 = vadd.f32 %v8744_v46, %v12189_v55  ;;  %v2142_v12 = vadd.f32 %v8746_v35, %v12193_v59  ;;  %v12197_v46 = vld [vmem:[#allocation37_spill] sm:$0xff] }
 0xde2   : > { %v4360_v38 = vpack.c.bf16 %v4352_v32, %v4351_v29 }
 0xde3   : > { %7641 = vmatmul.msk.bf16.gmra.mxu3 %vm1733_vm1, %v4420_v27  ;;  %v2931_v54 = vadd.f32 %v12190_v6, %v2138_v28  ;;  %v2935_v57 = vadd.f32 %v12194_v42, %v2142_v12 }
 0xde4   : > { %4412 = vmatmul.bf16.gmra.mxu2 %v4360_v38 }
 0xde5   : > { %v3724_v41 = vadd.f32 %v10558_v16, %v2931_v54  ;;  %v3728_v53 = vadd.f32 %v10572_v25, %v2935_v57  ;;  %v12199_v57 = vld [vmem:[#allocation39_spill] sm:$0xff] }
 0xde8   : > { %v4393_v1 = vpop.f32.mrf.mxu2 }
 0xdf0   : > { %v4395_v63 = vpop.f32.mrf.mxu2 }
 0xdf1   : > { %v4421_v52 = vpack.c.bf16 %v4395_v63, %v4393_v1 }
 0xdf3   : > { %7642 = vmatmul.msk.bf16.gmra.mxu3 %vm1733_vm1, %v4421_v52 }
 0xe37   : > { %v4398_v7 = vpop.f32.mrf.mxu2 }
 0xe3f   : > { %v4400_v39 = vpop.f32.mrf.mxu2 }
 0xe40   : > { %v4422_v2 = vpack.c.bf16 %v4400_v39, %v4398_v7  ;;  %v12195_v7 = vld [vmem:[#allocation11_spill] sm:$0xff] }
 0xe42   : > { %7643 = vmatmul.msk.bf16.gmra.mxu3 %vm1733_vm1, %v4422_v2  ;;  %v8747_v2 = vld [vmem:[#allocation2 + $0x48] sm:$0xff] }
 0xe46   : > { %v4476_v40 = vpop.f32.mrf.mxu3 }
 0xe47   : > { %v4516_v20 = vadd.f32 %v4476_v40, %v10555_v8  ;;  %v4403_v9 = vpop.f32.mrf.mxu2  ;;  %v12196_v40 = vld [vmem:[#allocation31_spill] sm:$0xff] }
 0xe49   : > { %v10771_v58 = vadd.f32 %v10766_v49, %v4516_v20  ;;  %v2144_v20 = vadd.f32 %v8747_v2, %v12196_v40 }
 0xe4b   : > { %4554 = vadd.xlane.f32.xlu1 %v10771_v58  ;;  %v2937_v55 = vadd.f32 %v12197_v46, %v2144_v20  ;;  %v12200_v46 = vld [vmem:[#allocation40_spill] sm:$0xff] }
 0xe4d   : > { %v3730_v28 = vadd.f32 %v10608_v62, %v2937_v55  ;;  %v3736_v55 = vadd.f32 %v10632_v30, %v12200_v46  ;;  %v7677_v30 = vld [vmem:[%s9035_s22 + $0xe0] sm:$0xf]  ;;  %v8036_v46 = vld [vmem:[%s9035_s22 + $0x50] sm:$0xf0] }
 0xe4e   : > { %v4478_v47 = vpop.f32.mrf.mxu3 }
 0xe4f   : > { %v4517_v44 = vadd.f32 %v4478_v47, %v3724_v41  ;;  %v4405_v48 = vpop.f32.mrf.mxu2 }
 0xe50   : > { %v4423_v50 = vpack.c.bf16 %v4405_v48, %v4403_v9 }
 0xe51   : > { %v10777_v24 = vadd.f32 %v10766_v49, %v4517_v44 }
 0xe52   : > { %7644 = vmatmul.msk.bf16.gmra.mxu3 %vm1733_vm1, %v4423_v50 }
 0xe53   : > { %4556 = vadd.xlane.f32.xlu2 %v10777_v24 }
 0xe56   : > { %v4481_v8 = vpop.f32.mrf.mxu3 }
 0xe57   : > { %v4518_v17 = vadd.f32 %v4481_v8, %v10562_v43  ;;  %v4408_v11 = vpop.f32.mrf.mxu2 }
 0xe59   : > { %v10784_v16 = vadd.f32 %v10766_v49, %v4518_v17 }
 0xe5b   : > { %4558 = vadd.xlane.f32.xlu0 %v10784_v16 }
 0xe5e   : > { %v4483_v14 = vpop.f32.mrf.mxu3 }
 0xe5f   : > { %v4519_v60 = vadd.f32 %v4483_v14, %v3726_v61  ;;  %v4410_v26 = vpop.f32.mrf.mxu2 }
 0xe60   : > { %v4424_v23 = vpack.c.bf16 %v4410_v26, %v4408_v11 }
 0xe61   : > { %v10790_v4 = vadd.f32 %v10766_v49, %v4519_v60 }
 0xe62   : > { %7645 = vmatmul.msk.bf16.gmra.mxu3 %vm1733_vm1, %v4424_v23 }
 0xe63   : > { %4560 = vadd.xlane.f32.xlu1 %v10790_v4 }
 0xe66   : > { %v4486_v43 = vpop.f32.mrf.mxu3 }
 0xe67   : > { %v4520_v10 = vadd.f32 %v4486_v43, %v10569_v22  ;;  %v4413_v19 = vpop.f32.mrf.mxu2 }
 0xe69   : > { %v10797_v37 = vadd.f32 %v10766_v49, %v4520_v10 }
 0xe6b   : > { %4562 = vadd.xlane.f32.xlu2 %v10797_v37 }
 0xe6e   : > { %v4488_v56 = vpop.f32.mrf.mxu3 }
 0xe6f   : > { %v4521_v29 = vadd.f32 %v4488_v56, %v3728_v53  ;;  %v4415_v32 = vpop.f32.mrf.mxu2  ;;  %v3734_v53 = vadd.f32 %v10624_v0, %v12199_v57  ;;  %v8038_v57 = vld [vmem:[%s9035_s22 + $0x90] sm:$0xf0] }
 0xe70   : > { %v4425_v27 = vpack.c.bf16 %v4415_v32, %v4413_v19 }
 0xe71   : > { %v10803_v38 = vadd.f32 %v10766_v49, %v4521_v29 }
 0xe72   : > { %7646 = vmatmul.msk.bf16.gmra.mxu3 %vm1733_vm1, %v4425_v27 }
 0xe73   : > { %4564 = vadd.xlane.f32.xlu0 %v10803_v38 }
 0xe76   : > { %v4491_v22 = vpop.f32.mrf.mxu3 }
 0xe77   : > { %v4522_v1 = vadd.f32 %v4491_v22, %v10576_v33 }
 0xe79   : > { %v10809_v63 = vadd.f32 %v10766_v49, %v4522_v1 }
 0xe7b   : > { %4566 = vadd.xlane.f32.xlu0 %v10809_v63 }
 0xe7e   : > { %v4493_v25 = vpop.f32.mrf.mxu3 }
 0xe7f   : > { %v4523_v41 = vadd.f32 %v4493_v25, %v3730_v28 }
 0xe81   : > { %v10826_v48 = vadd.f32 %v10766_v49, %v4523_v41  ;;  %v8025_v41 = vld [vmem:[%s9035_s22 + $0xec] sm:$0xf0] }
 0xebe   : > { %v4555_v52 = vpop.xlane.xlu1 %4554 }
 0xebf   : > { %v4586_v39 = vmul.f32 %v4555_v52, %v12195_v7 }
 0xec1   : > { %v10815_v9 = vsub.f32 %v10771_v58, %v4586_v39 }
 0xec3   : > { %v4618_v33 = vmul.f32 %v10815_v9, %v10815_v9 }
 0xec5   : > { %4634 = vadd.xlane.f32.xlu1 %v4618_v33  ;;  %v4496_v6 = vpop.f32.mrf.mxu3 }
 0xec6   : > { %v4557_v54 = vpop.xlane.xlu2 %4556  ;;  %v4524_v17 = vadd.f32 %v4496_v6, %v10613_v5 }
 0xec7   : > { %v4587_v47 = vmul.f32 %v4557_v54, %v12195_v7 }
 0xec8   : > { %v10837_v21 = vadd.f32 %v10766_v49, %v4524_v17  ;;  %v7673_v17 = vld [vmem:[%s9035_s22 + $0xc0] sm:$0xf] }
 0xec9   : > { %v10823_v44 = vsub.f32 %v10777_v24, %v4587_v47  ;;  %v7741_v47 = vld [vmem:[%s9035_s22 + $0xe4] sm:$0xf] }
 0xecb   : > { %v4619_v50 = vmul.f32 %v10823_v44, %v10823_v44 }
 0xecd   : > { %4568 = vadd.xlane.f32.xlu1 %v10826_v48  ;;  %v4498_v8 = vpop.f32.mrf.mxu3  ;;  %4636 = vadd.xlane.f32.xlu2 %v4619_v50  ;;  %v7678_v50 = vor.u32 %v8025_v41, %v7677_v30  ;;  %v8035_v41 = vld [vmem:[%s9035_s22 + $0x30] sm:$0xf0] }
 0xece   : > { %v4559_v62 = vpop.xlane.xlu0 %4558  ;;  %v4525_v5 = vadd.f32 %v4498_v8, %v3732_v51  ;;  %v8041_v8 = vld [vmem:[%s9035_s22 + $0xf0] sm:$0xf0] }
 0xecf   : > { %v4588_v11 = vmul.f32 %v4559_v62, %v12195_v7  ;;  %v7742_v62 = vor.u32 %v8041_v8, %v7741_v47  ;;  %5008 = vmatpush.bf16.msra.mxu0 %v7678_v50 }
 0xed0   : > { %v10849_v23 = vadd.f32 %v10766_v49, %v4525_v5  ;;  %v7733_v5 = vld [vmem:[%s9035_s22 + $0xa4] sm:$0xf] }
 0xed1   : > { %v10834_v36 = vsub.f32 %v10784_v16, %v4588_v11  ;;  %5358 = vmatpush.bf16.msra.mxu2 %v7742_v62  ;;  %v7737_v11 = vld [vmem:[%s9035_s22 + $0xc4] sm:$0xf]  ;;  %v7649_v62 = vld [vmem:[%s9035_s22] sm:$0xf] }
 0xed2   : > { %v7738_v51 = vor.u32 %v8040_v18, %v7737_v11  ;;  %v8034_v18 = vld [vmem:[%s9035_s22 + $0x10] sm:$0xf0] }
 0xed3   : > { %v4620_v15 = vmul.f32 %v10834_v36, %v10834_v36 }
 0xed5   : > { %4570 = vadd.xlane.f32.xlu1 %v10837_v21  ;;  %v4501_v61 = vpop.f32.mrf.mxu3  ;;  %4638 = vadd.xlane.f32.xlu2 %v4620_v15 }
 0xed6   : > { %v4561_v14 = vpop.xlane.xlu1 %4560  ;;  %v4526_v19 = vadd.f32 %v4501_v61, %v10621_v3  ;;  %5359 = vmatpush.bf16.msra.mxu2 %v7738_v51  ;;  %v7669_v61 = vld [vmem:[%s9035_s22 + $0xa0] sm:$0xf] }
 0xed7   : > { %v4589_v60 = vmul.f32 %v4561_v14, %v12195_v7  ;;  %v8023_v14 = vld [vmem:[%s9035_s22 + $0xac] sm:$0xf0] }
 0xed8   : > { %v10860_v12 = vadd.f32 %v10766_v49, %v4526_v19  ;;  %v8022_v19 = vld [vmem:[%s9035_s22 + $0x8c] sm:$0xf0] }
 0xed9   : > { %v10846_v26 = vsub.f32 %v10790_v4, %v4589_v60  ;;  %v7670_v60 = vor.u32 %v8023_v14, %v7669_v61 }
 0xedb   : > { %v4621_v43 = vmul.f32 %v10846_v26, %v10846_v26 }
 0xedd   : > { %4640 = vadd.xlane.f32.xlu0 %v4621_v43  ;;  %4572 = vadd.xlane.f32.xlu2 %v10849_v23  ;;  %v4503_v34 = vpop.f32.mrf.mxu3  ;;  %v8039_v43 = vld [vmem:[%s9035_s22 + $0xb0] sm:$0xf0] }
 0xede   : > { %v4563_v10 = vpop.xlane.xlu2 %4562  ;;  %v4527_v29 = vadd.f32 %v4503_v34, %v3734_v53  ;;  %v7734_v34 = vor.u32 %v8039_v43, %v7733_v5 }
 0xedf   : > { %v4590_v35 = vmul.f32 %v4563_v10, %v12195_v7  ;;  %v7665_v10 = vld [vmem:[%s9035_s22 + $0x80] sm:$0xf] }
 0xee0   : > { %v10872_v22 = vadd.f32 %v10766_v49, %v4527_v29  ;;  %5360 = vmatpush.bf16.msra.mxu2 %v7734_v34  ;;  %v8021_v29 = vld [vmem:[%s9035_s22 + $0x6c] sm:$0xf0] }
 0xee1   : > { %v10857_v59 = vsub.f32 %v10797_v37, %v4590_v35  ;;  %v7729_v35 = vld [vmem:[%s9035_s22 + $0x84] sm:$0xf] }
 0xee2   : > { %v7730_v53 = vor.u32 %v8038_v57, %v7729_v35 }
 0xee3   : > { %v4622_v42 = vmul.f32 %v10857_v59, %v10857_v59 }
 0xee4   : > { %5361 = vmatpush.bf16.msra.mxu2 %v7730_v53 }
 0xee5   : > { %4574 = vadd.xlane.f32.xlu2 %v10860_v12  ;;  %4642 = vadd.xlane.f32.xlu0 %v4622_v42  ;;  %v4506_v32 = vpop.f32.mrf.mxu3  ;;  %v7666_v42 = vor.u32 %v8022_v19, %v7665_v10 }
 0xee6   : > { %v4565_v56 = vpop.xlane.xlu0 %4564  ;;  %v4528_v25 = vadd.f32 %v4506_v32, %v10629_v31 }
 0xee7   : > { %v4591_v3 = vmul.f32 %v4565_v56, %v12195_v7  ;;  %v7661_v56 = vld [vmem:[%s9035_s22 + $0x60] sm:$0xf] }
 0xee8   : > { %v10883_v40 = vadd.f32 %v10766_v49, %v4528_v25  ;;  %v7662_v32 = vor.u32 %v8021_v29, %v7661_v56  ;;  %v7657_v25 = vld [vmem:[%s9035_s22 + $0x40] sm:$0xf] }
 0xee9   : > { %v10869_v27 = vsub.f32 %v10803_v38, %v4591_v3  ;;  %v7725_v3 = vld [vmem:[%s9035_s22 + $0x64] sm:$0xf] }
 0xeeb   : > { %v4623_v1 = vmul.f32 %v10869_v27, %v10869_v27 }
 0xeed   : > { %4644 = vadd.xlane.f32.xlu1 %v4623_v1  ;;  %4576 = vadd.xlane.f32.xlu0 %v10872_v22  ;;  %v4508_v2 = vpop.f32.mrf.mxu3  ;;  %v8037_v1 = vld [vmem:[%s9035_s22 + $0x70] sm:$0xf0] }
 0xeee   : > { %v4567_v0 = vpop.xlane.xlu0 %4566  ;;  %v4529_v31 = vadd.f32 %v4508_v2, %v3736_v55  ;;  %v7721_v2 = vld [vmem:[%s9035_s22 + $0x44] sm:$0xf] }
 0xeef   : > { %v4592_v52 = vmul.f32 %v4567_v0, %v12195_v7  ;;  %v7726_v0 = vor.u32 %v8037_v1, %v7725_v3  ;;  %v7722_v55 = vor.u32 %v8036_v46, %v7721_v2 }
 0xef0   : > { %v10891_v33 = vadd.f32 %v10766_v49, %v4529_v31  ;;  %v7653_v31 = vld [vmem:[%s9035_s22 + $0x20] sm:$0xf] }
 0xef1   : > { %v10880_v39 = vsub.f32 %v10809_v63, %v4592_v52  ;;  %5362 = vmatpush.bf16.msra.mxu2 %v7726_v0  ;;  %v8020_v52 = vld [vmem:[%s9035_s22 + $0x4c] sm:$0xf0] }
 0xef3   : > { %v4624_v20 = vmul.f32 %v10880_v39, %v10880_v39 }
 0xef5   : > { %4646 = vadd.xlane.f32.xlu1 %v4624_v20  ;;  %4578 = vadd.xlane.f32.xlu0 %v10883_v40  ;;  %v4511_v28 = vpop.f32.mrf.mxu3  ;;  %v7658_v20 = vor.u32 %v8020_v52, %v7657_v25 }
 0xef6   : > { %v4530_v6 = vadd.f32 %v4511_v28, %v10638_v45  ;;  %v8024_v45 = vld [vmem:[%s9035_s22 + $0xcc] sm:$0xf0]  ;;  %5363 = vmatpush.bf16.msra.mxu2 %v7722_v55 }
 0xef7   : > { %v7674_v15 = vor.u32 %v8024_v45, %v7673_v17  ;;  %v8019_v28 = vld [vmem:[%s9035_s22 + $0x2c] sm:$0xf0]  ;;  %v7713_v45 = vld [vmem:[%s9035_s22 + $0x4] sm:$0xf] }
 0xef8   : > { %v10896_v54 = vadd.f32 %v10766_v49, %v4530_v6  ;;  %v7717_v6 = vld [vmem:[%s9035_s22 + $0x24] sm:$0xf]  ;;  %v7654_v30 = vor.u32 %v8019_v28, %v7653_v31  ;;  %v8018_v17 = vld [vmem:[%s9035_s22 + $0xc] sm:$0xf0]  ;;  %v7714_v51 = vor.u32 %v8034_v18, %v7713_v45  ;;  %v12201_v31 = vld [vmem:[#allocation32_spill] sm:$0xff] }
 0xef9   : > { %5009 = vmatpush.bf16.msra.mxu0 %v7674_v15  ;;  %v7718_v50 = vor.u32 %v8035_v41, %v7717_v6  ;;  %v7650_v15 = vor.u32 %v8018_v17, %v7649_v62  ;;  %v3738_v28 = vadd.f32 %v10641_v13, %v12201_v31 }
 0xefb   : > { %5364 = vmatpush.bf16.msra.mxu2 %v7718_v50 }
 0xefd   : > { %4580 = vadd.xlane.f32.xlu1 %v10891_v33  ;;  %5010 = vmatpush.bf16.msra.mxu0 %v7670_v60  ;;  %v4513_v46 = vpop.f32.mrf.mxu3 }
 0xefe   : > { %v4531_v50 = vadd.f32 %v4513_v46, %v3738_v28 }
 0xeff   : > { %5365 = vmatpush.bf16.msra.mxu2 %v7714_v51 }
 0xf01   : > { %5011 = vmatpush.bf16.msra.mxu0 %v7666_v42 }
 0xf05   : > { %4582 = vadd.xlane.f32.xlu1 %v10896_v54  ;;  %5012 = vmatpush.bf16.msra.mxu0 %v7662_v32 }
 0xf09   : > { %5013 = vmatpush.bf16.msra.mxu0 %v7658_v20 }
 0xf0d   : > { %5014 = vmatpush.bf16.msra.mxu0 %v7654_v30 }
 0xf11   : > { %5015 = vmatpush.bf16.msra.mxu0 %v7650_v15 }
 0xf38   : > { %v4635_v47 = vpop.xlane.xlu1 %4634 }
 0xf39   : > { %v4666_v8 = vmul.f32 %v4635_v47, %v12195_v7 }
 0xf3b   : > { %v4682_v11 = vadd.f32 1e-05, %v4666_v8 }
 0xf3d   : > { %8444 = vrsqrt.f32 %v4682_v11  ;;  %vm4704_vm3 = vweird.f32 %v4682_v11 }
 0xf40   : > { %v4569_v61 = vpop.xlane.xlu1 %4568  ;;  %v4637_v14 = vpop.xlane.xlu2 %4636 }
 0xf41   : > { %v4593_v5 = vmul.f32 %v4569_v61, %v12195_v7  ;;  %v4667_v60 = vmul.f32 %v4637_v14, %v12195_v7  ;;  %v10958_v14 = vadd.f32 %v10766_v49, %v4531_v50 }
 0xf43   : > { %v8445_v43 = vpop.eup %8444  ;;  %v10935_v34 = vsub.f32 %v10826_v48, %v4593_v5  ;;  %v4683_v10 = vadd.f32 1e-05, %v4667_v60 }
 0xf44   : > { %v4699_v19 = vmul.f32 %v8445_v43, %v4682_v11  ;;  %vm4705_vm1 = vweird.f32 %v8445_v43  ;;  %v10951_v11 = vld [vmem:[%s9024_s19] ss:$0 sm:$0xff] }
 0xf45   : > { %8446 = vrsqrt.f32 %v4683_v10  ;;  %v4625_v35 = vmul.f32 %v10935_v34, %v10935_v34  ;;  %vm4706_vm4 = vmor %vm4704_vm3, %vm4705_vm1  ;;  %vm4714_vm6 = vweird.f32 %v4683_v10 }
 0xf46   : > { %v4700_v42 = vmul.f32 %v8445_v43, %v4699_v19  ;;  %v10963_v19 = vld [vmem:[%s12202_s23] ss:$0 sm:$0xff] }
 0xf47   : > { %4648 = vadd.xlane.f32.xlu2 %v4625_v35 }
 0xf48   : > { %v4701_v57 = vmul.f32 0.5, %v4700_v42  ;;  %v4571_v53 = vpop.xlane.xlu1 %4570  ;;  %v4639_v56 = vpop.xlane.xlu2 %4638 }
 0xf49   : > { %v4594_v29 = vmul.f32 %v4571_v53, %v12195_v7  ;;  %v4668_v3 = vmul.f32 %v4639_v56, %v12195_v7 }
 0xf4a   : > { %v4702_v32 = vsub.f32 1.5, %v4701_v57 }
 0xf4b   : > { %v8447_v1 = vpop.eup %8446  ;;  %v10942_v0 = vsub.f32 %v10837_v21, %v4594_v29  ;;  %v4684_v25 = vadd.f32 1e-05, %v4668_v3 }
 0xf4c   : > { %v4703_v52 = vmul.f32 %v8445_v43, %v4702_v32  ;;  %v4709_v2 = vmul.f32 %v8447_v1, %v4683_v10  ;;  %vm4715_vm5 = vweird.f32 %v8447_v1 }
 0xf4d   : > { %8448 = vrsqrt.f32 %v4684_v25  ;;  %v4626_v20 = vmul.f32 %v10942_v0, %v10942_v0  ;;  %vm4716_vm7 = vmor %vm4714_vm6, %vm4715_vm5  ;;  %vm4724_vm9 = vweird.f32 %v4684_v25 }
 0xf4e   : > { %v4710_v55 = vmul.f32 %v8447_v1, %v4709_v2  ;;  %v4707_v6 = vsel %vm4706_vm4, %v8445_v43, %v4703_v52 }
 0xf4f   : > { %4650 = vadd.xlane.f32.xlu2 %v4626_v20  ;;  %v4858_v15 = vmul.f32 %v4707_v6, %v10815_v9 }
 0xf50   : > { %v4711_v30 = vmul.f32 0.5, %v4710_v55  ;;  %v4641_v41 = vpop.xlane.xlu0 %4640  ;;  %v4573_v47 = vpop.xlane.xlu2 %4572 }
 0xf51   : > { %v4669_v8 = vmul.f32 %v4641_v41, %v12195_v7  ;;  %v4595_v62 = vmul.f32 %v4573_v47, %v12195_v7  ;;  %v4877_v9 = vmul.f32 %v10951_v11, %v4858_v15 }
 0xf52   : > { %v4712_v17 = vsub.f32 1.5, %v4711_v30 }
 0xf53   : > { %v8449_v45 = vpop.eup %8448  ;;  %v4685_v13 = vadd.f32 1e-05, %v4669_v8  ;;  %v10955_v18 = vsub.f32 %v10849_v23, %v4595_v62  ;;  %v4896_v32 = vadd.f32 %v10963_v19, %v4877_v9 }
 0xf54   : > { %v4713_v51 = vmul.f32 %v8447_v1, %v4712_v17  ;;  %v4719_v61 = vmul.f32 %v8449_v45, %v4684_v25  ;;  %vm4725_vm8 = vweird.f32 %v8449_v45 }
 0xf55   : > { %8450 = vrsqrt.f32 %v4685_v13  ;;  %v4627_v5 = vmul.f32 %v10955_v18, %v10955_v18  ;;  %vm4726_vm10 = vmor %vm4724_vm9, %vm4725_vm8  ;;  %vm4734_vm12 = vweird.f32 %v4685_v13 }
 0xf56   : > { %v4717_v60 = vsel %vm4716_vm7, %v8447_v1, %v4713_v51  ;;  %v4720_v43 = vmul.f32 %v8449_v45, %v4719_v61 }
 0xf57   : > { %v4859_v35 = vmul.f32 %v4717_v60, %v10823_v44  ;;  %4652 = vadd.xlane.f32.xlu0 %v4627_v5  ;;  %4584 = vadd.xlane.f32.xlu2 %v10958_v14 }
 0xf58   : > { %v4721_v10 = vmul.f32 0.5, %v4720_v43  ;;  %v4643_v42 = vpop.xlane.xlu0 %4642  ;;  %v4575_v49 = vpop.xlane.xlu2 %4574 }
 0xf59   : > { %v4878_v57 = vmul.f32 %v10951_v11, %v4859_v35  ;;  %v4670_v53 = vmul.f32 %v4643_v42, %v12195_v7  ;;  %v4596_v56 = vmul.f32 %v4575_v49, %v12195_v7 }
 0xf5a   : > { %v4722_v29 = vsub.f32 1.5, %v4721_v10 }
 0xf5b   : > { %v8451_v3 = vpop.eup %8450  ;;  %v4897_v1 = vadd.f32 %v10963_v19, %v4878_v57  ;;  %v4686_v52 = vadd.f32 1e-05, %v4670_v53  ;;  %v10974_v44 = vsub.f32 %v10860_v12, %v4596_v56 }
 0xf5c   : > { %v4723_v2 = vmul.f32 %v8449_v45, %v4722_v29  ;;  %v4729_v20 = vmul.f32 %v8451_v3, %v4685_v13  ;;  %vm4735_vm11 = vweird.f32 %v8451_v3 }
 0xf5d   : > { %8452 = vrsqrt.f32 %v4686_v52  ;;  %v10976_v46 = vpack.c.bf16 %v4897_v1, %v4896_v32  ;;  %v4628_v55 = vmul.f32 %v10974_v44, %v10974_v44  ;;  %vm4736_vm13 = vmor %vm4734_vm12, %vm4735_vm11  ;;  %vm4744_vm15 = vweird.f32 %v4686_v52 }
 0xf5e   : > { %v4730_v31 = vmul.f32 %v8451_v3, %v4729_v20  ;;  %v4727_v28 = vsel %vm4726_vm10, %v8449_v45, %v4723_v2 }
 0xf5f   : > { %5016 = vmatmul.bf16.vlgmr.msra.gmra.mxu0 %v10976_v46  ;;  %5366 = vmatmul.bf16.vlgmr.msra.gmra.mxu2 %v10976_v46  ;;  %v4860_v25 = vmul.f32 %v4727_v28, %v10834_v36 }
 0xf60   : > { %v4731_v6 = vmul.f32 0.5, %v4730_v31  ;;  %4654 = vadd.xlane.f32.xlu0 %v4628_v55  ;;  %v4645_v30 = vpop.xlane.xlu1 %4644  ;;  %v4577_v41 = vpop.xlane.xlu0 %4576 }
 0xf61   : > { %v4671_v47 = vmul.f32 %v4645_v30, %v12195_v7  ;;  %v4597_v50 = vmul.f32 %v4577_v41, %v12195_v7  ;;  %v4879_v9 = vmul.f32 %v10951_v11, %v4860_v25 }
 0xf62   : > { %v4732_v8 = vsub.f32 1.5, %v4731_v6 }
 0xf63   : > { %v8453_v62 = vpop.eup %8452  ;;  %v4687_v17 = vadd.f32 1e-05, %v4671_v47  ;;  %v10986_v15 = vsub.f32 %v10872_v22, %v4597_v50  ;;  %v4898_v56 = vadd.f32 %v10963_v19, %v4879_v9 }
 0xf64   : > { %v4733_v51 = vmul.f32 %v8451_v3, %v4732_v8  ;;  %v4739_v45 = vmul.f32 %v8453_v62, %v4686_v52  ;;  %vm4745_vm14 = vweird.f32 %v8453_v62 }
 0xf65   : > { %8454 = vrsqrt.f32 %v4687_v17  ;;  %v4629_v61 = vmul.f32 %v10986_v15, %v10986_v15  ;;  %vm4746_vm0 = vmor %vm4744_vm15, %vm4745_vm14  ;;  %vm4754_vm1 = vweird.f32 %v4687_v17 }
 0xf66   : > { %v4737_v5 = vsel %vm4736_vm13, %v8451_v3, %v4733_v51  ;;  %v4740_v60 = vmul.f32 %v8453_v62, %v4739_v45 }
 0xf67   : > { %v4861_v43 = vmul.f32 %v4737_v5, %v10846_v26  ;;  %4656 = vadd.xlane.f32.xlu1 %v4629_v61 }
 0xf68   : > { %v4741_v36 = vmul.f32 0.5, %v4740_v60  ;;  %v4647_v35 = vpop.xlane.xlu1 %4646  ;;  %v4579_v10 = vpop.xlane.xlu0 %4578 }
 0xf69   : > { %v4598_v42 = vmul.f32 %v4579_v10, %v12195_v7  ;;  %v4880_v13 = vmul.f32 %v10951_v11, %v4861_v43  ;;  %v4672_v60 = vmul.f32 %v4647_v35, %v12195_v7 }
 0xf6a   : > { %v4742_v49 = vsub.f32 1.5, %v4741_v36 }
 0xf6b   : > { %v8455_v57 = vpop.eup %8454  ;;  %v10995_v53 = vsub.f32 %v10883_v40, %v4598_v42  ;;  %v4899_v29 = vadd.f32 %v10963_v19, %v4880_v13  ;;  %v4688_v43 = vadd.f32 1e-05, %v4672_v60 }
 0xf6c   : > { %v4743_v26 = vmul.f32 %v8453_v62, %v4742_v49  ;;  %v4749_v3 = vmul.f32 %v8455_v57, %v4687_v17  ;;  %vm4755_vm2 = vweird.f32 %v8455_v57 }
 0xf6d   : > { %v10999_v32 = vpack.c.bf16 %v4899_v29, %v4898_v56  ;;  %v4630_v1 = vmul.f32 %v10995_v53, %v10995_v53  ;;  %vm4756_vm3 = vmor %vm4754_vm1, %vm4755_vm2  ;;  %8456 = vrsqrt.f32 %v4688_v43  ;;  %v8033_v56 = vld [vmem:[%s9045_s6 + $0x38] sm:$0xff]  ;;  %vm4764_vm5 = vweird.f32 %v4688_v43 }
 0xf6e   : > { %v4750_v2 = vmul.f32 %v8455_v57, %v4749_v3  ;;  %v4747_v20 = vsel %vm4746_vm0, %v8453_v62, %v4743_v26  ;;  %5225 = vmatpush.bf16.msra.mxu1 %v8033_v56  ;;  %v8032_v3 = vld [vmem:[%s9045_s6 + $0x30] sm:$0xff] }
 0xf6f   : > { %5021 = vmatmul.bf16.gmra.mxu0 %v10999_v32  ;;  %5371 = vmatmul.bf16.gmra.mxu2 %v10999_v32  ;;  %v4862_v30 = vmul.f32 %v4747_v20, %v10857_v59  ;;  %v8049_v20 = vld [vmem:[%s9045_s6 + $0x78] sm:$0xff] }
 0xf70   : > { %v4751_v55 = vmul.f32 0.5, %v4750_v2  ;;  %4658 = vadd.xlane.f32.xlu2 %v4630_v1  ;;  %v4581_v31 = vpop.xlane.xlu1 %4580  ;;  %5575 = vmatpush.bf16.msra.mxu3 %v8049_v20 }
 0xf71   : > { %v4599_v28 = vmul.f32 %v4581_v31, %v12195_v7  ;;  %v4881_v62 = vmul.f32 %v10951_v11, %v4862_v30  ;;  %v8048_v30 = vld [vmem:[%s9045_s6 + $0x70] sm:$0xff] }
 0xf72   : > { %v4752_v6 = vsub.f32 1.5, %v4751_v55  ;;  %5226 = vmatpush.bf16.msra.mxu1 %v8032_v3 }
 0xf73   : > { %v11008_v41 = vsub.f32 %v10891_v33, %v4599_v28  ;;  %v4900_v17 = vadd.f32 %v10963_v19, %v4881_v62  ;;  %v8457_v9 = vpop.eup %8456  ;;  %v8031_v28 = vld [vmem:[%s9045_s6 + $0x28] sm:$0xff] }
 0xf74   : > { %v4753_v52 = vmul.f32 %v8455_v57, %v4752_v6  ;;  %v4759_v36 = vmul.f32 %v8457_v9, %v4688_v43  ;;  %vm4765_vm4 = vweird.f32 %v8457_v9  ;;  %5576 = vmatpush.bf16.msra.mxu3 %v8048_v30 }
 0xf75   : > { %v4631_v47 = vmul.f32 %v11008_v41, %v11008_v41  ;;  %vm4766_vm6 = vmor %vm4764_vm5, %vm4765_vm4 }
 0xf76   : > { %v4757_v50 = vsel %vm4756_vm3, %v8455_v57, %v4753_v52  ;;  %v4760_v10 = vmul.f32 %v8457_v9, %v4759_v36  ;;  %5227 = vmatpush.bf16.msra.mxu1 %v8031_v28  ;;  %v8047_v36 = vld [vmem:[%s9045_s6 + $0x68] sm:$0xff] }
 0xf77   : > { %v4863_v8 = vmul.f32 %v4757_v50, %v10869_v27  ;;  %4660 = vadd.xlane.f32.xlu0 %v4631_v47 }
 0xf78   : > { %v4583_v25 = vpop.xlane.xlu1 %4582  ;;  %v4761_v57 = vmul.f32 0.5, %v4760_v10  ;;  %5577 = vmatpush.bf16.msra.mxu3 %v8047_v36 }
 0xf79   : > { %v4600_v51 = vmul.f32 %v4583_v25, %v12195_v7  ;;  %v4882_v59 = vmul.f32 %v10951_v11, %v4863_v8 }
 0xf7a   : > { %v4762_v29 = vsub.f32 1.5, %v4761_v57 }
 0xf7b   : > { %v11017_v45 = vsub.f32 %v10896_v54, %v4600_v51  ;;  %v4901_v61 = vadd.f32 %v10963_v19, %v4882_v59  ;;  %v8030_v59 = vld [vmem:[%s9045_s6 + $0x20] sm:$0xff] }
 0xf7c   : > { %v4763_v55 = vmul.f32 %v8457_v9, %v4762_v29  ;;  %5228 = vmatpush.bf16.msra.mxu1 %v8030_v59  ;;  %v8046_v29 = vld [vmem:[%s9045_s6 + $0x60] sm:$0xff] }
 0xf7d   : > { %v4632_v5 = vmul.f32 %v11017_v45, %v11017_v45  ;;  %v11023_v27 = vpack.c.bf16 %v4901_v61, %v4900_v17  ;;  %5578 = vmatpush.bf16.msra.mxu3 %v8046_v29 }
 0xf7e   : > { %v4767_v52 = vsel %vm4766_vm6, %v8457_v9, %v4763_v55 }
 0xf7f   : > { %4662 = vadd.xlane.f32.xlu1 %v4632_v5  ;;  %5026 = vmatmul.bf16.gmra.mxu0 %v11023_v27  ;;  %v4864_v61 = vmul.f32 %v4767_v52, %v10880_v39  ;;  %v8045_v52 = vld [vmem:[%s9045_s6 + $0x58] sm:$0xff] }
 0xf80   : > { %5376 = vmatmul.bf16.gmra.mxu2 %v11023_v27 }
 0xf81   : > { %5579 = vmatpush.bf16.msra.mxu3 %v8045_v52 }
 0xfba   : > { %v4649_v42 = vpop.xlane.xlu2 %4648 }
 0xfbb   : > { %v4673_v13 = vmul.f32 %v4649_v42, %v12195_v7 }
 0xfbd   : > { %v4689_v49 = vadd.f32 1e-05, %v4673_v13  ;;  %v8029_v13 = vld [vmem:[%s9045_s6 + $0x18] sm:$0xff] }
 0xfbe   : > { %5229 = vmatpush.bf16.msra.mxu1 %v8029_v13 }
 0xfbf   : > { %8458 = vrsqrt.f32 %v4689_v49  ;;  %vm4774_vm8 = vweird.f32 %v4689_v49 }
 0xfc2   : > { %v4651_v26 = vpop.xlane.xlu2 %4650 }
 0xfc3   : > { %v4674_v35 = vmul.f32 %v4651_v26, %v12195_v7 }
 0xfc5   : > { %v8459_v1 = vpop.eup %8458  ;;  %v11032_v2 = vadd.f32 1e-05, %v4674_v35 }
 0xfc6   : > { %v4769_v31 = vmul.f32 %v8459_v1, %v4689_v49  ;;  %vm4775_vm7 = vweird.f32 %v8459_v1  ;;  %v4883_v49 = vmul.f32 %v10951_v11, %v4864_v61 }
 0xfc7   : > { %8460 = vrsqrt.f32 %v11032_v2  ;;  %vm4776_vm9 = vmor %vm4774_vm8, %vm4775_vm7  ;;  %vm4784_vm11 = vweird.f32 %v11032_v2 }
 0xfc8   : > { %v4770_v6 = vmul.f32 %v8459_v1, %v4769_v31 }
 0xfca   : > { %v4771_v47 = vmul.f32 0.5, %v4770_v6  ;;  %v4653_v50 = vpop.xlane.xlu0 %4652  ;;  %v4585_v8 = vpop.xlane.xlu2 %4584 }
 0xfcb   : > { %v4675_v62 = vmul.f32 %v4653_v50, %v12195_v7  ;;  %v4601_v25 = vmul.f32 %v4585_v8, %v12195_v7  ;;  %v8027_v8 = vld [vmem:[%s9045_s6 + $0x8] sm:$0xff] }
 0xfcc   : > { %v4772_v51 = vsub.f32 1.5, %v4771_v47 }
 0xfcd   : > { %v8461_v17 = vpop.eup %8460  ;;  %v11042_v5 = vadd.f32 1e-05, %v4675_v62  ;;  %v11045_v60 = vsub.f32 %v10958_v14, %v4601_v25  ;;  %v11073_v25 = vld [vmem:[%s9040_s4] ss:$0 sm:$0xff] }
 0xfce   : > { %v4773_v43 = vmul.f32 %v8459_v1, %v4772_v51  ;;  %v4779_v9 = vmul.f32 %v8461_v17, %v11032_v2  ;;  %vm4785_vm10 = vweird.f32 %v8461_v17  ;;  %v8044_v2 = vld [vmem:[%s9045_s6 + $0x50] sm:$0xff] }
 0xfcf   : > { %8462 = vrsqrt.f32 %v11042_v5  ;;  %v4633_v10 = vmul.f32 %v11045_v60, %v11045_v60  ;;  %vm4786_vm12 = vmor %vm4784_vm11, %vm4785_vm10  ;;  %5580 = vmatpush.bf16.msra.mxu3 %v8044_v2  ;;  %vm4794_vm14 = vweird.f32 %v11042_v5 }
 0xfd0   : > { %v4777_v39 = vsel %vm4776_vm9, %v8459_v1, %v4773_v43  ;;  %v4780_v42 = vmul.f32 %v8461_v17, %v4779_v9  ;;  %v8028_v1 = vld [vmem:[%s9045_s6 + $0x10] sm:$0xff] }
 0xfd1   : > { %v4865_v57 = vmul.f32 %v4777_v39, %v10935_v34  ;;  %4664 = vadd.xlane.f32.xlu2 %v4633_v10  ;;  %v4902_v34 = vadd.f32 %v10963_v19, %v4883_v49  ;;  %5230 = vmatpush.bf16.msra.mxu1 %v8028_v1  ;;  %v11092_v49 = vld [vmem:[%s9040_s4 + $0x1] ss:$0 sm:$0xff] }
 0xfd2   : > { %v4781_v56 = vmul.f32 0.5, %v4780_v42  ;;  %v8042_v1 = vld [vmem:[%s9045_s6 + $0x40] sm:$0xff] }
 0xfd3   : > { %v4655_v26 = vpop.xlane.xlu0 %4654  ;;  %v4884_v35 = vmul.f32 %v10951_v11, %v4865_v57  ;;  %v8043_v57 = vld [vmem:[%s9045_s6 + $0x48] sm:$0xff] }
 0xfd4   : > { %v4782_v3 = vsub.f32 1.5, %v4781_v56  ;;  %v4676_v20 = vmul.f32 %v4655_v26, %v12195_v7  ;;  %5581 = vmatpush.bf16.msra.mxu3 %v8043_v57 }
 0xfd5   : > { %v8463_v55 = vpop.eup %8462  ;;  %v4903_v31 = vadd.f32 %v10963_v19, %v4884_v35  ;;  %5231 = vmatpush.bf16.msra.mxu1 %v8027_v8 }
 0xfd6   : > { %v4783_v28 = vmul.f32 %v8461_v17, %v4782_v3  ;;  %v4789_v6 = vmul.f32 %v8463_v55, %v11042_v5  ;;  %v11062_v30 = vadd.f32 1e-05, %v4676_v20  ;;  %vm4795_vm13 = vweird.f32 %v8463_v55 }
 0xfd7   : > { %v11066_v47 = vpack.c.bf16 %v4903_v31, %v4902_v34  ;;  %vm4796_vm15 = vmor %vm4794_vm14, %vm4795_vm13 }
 0xfd8   : > { %v4790_v50 = vmul.f32 %v8463_v55, %v4789_v6  ;;  %8464 = vrsqrt.f32 %v11062_v30  ;;  %v4787_v62 = vsel %vm4786_vm12, %v8461_v17, %v4783_v28  ;;  %v8026_v17 = vld [vmem:[%s9045_s6] sm:$0xff]  ;;  %5582 = vmatpush.bf16.msra.mxu3 %v8042_v1  ;;  %vm4804_vm2 = vweird.f32 %v11062_v30 }
 0xfd9   : > { %5031 = vmatmul.bf16.gmra.mxu0 %v11066_v47  ;;  %5381 = vmatmul.bf16.gmra.mxu2 %v11066_v47  ;;  %v4866_v43 = vmul.f32 %v4787_v62, %v10942_v0 }
 0xfda   : > { %v4791_v51 = vmul.f32 0.5, %v4790_v50  ;;  %v4657_v59 = vpop.xlane.xlu1 %4656  ;;  %5232 = vmatpush.bf16.msra.mxu1 %v8026_v17 }
 0xfdb   : > { %v4677_v61 = vmul.f32 %v4657_v59, %v12195_v7  ;;  %v4885_v26 = vmul.f32 %v10951_v11, %v4866_v43 }
 0xfdc   : > { %v4792_v9 = vsub.f32 1.5, %v4791_v51  ;;  %v5017_v36 = vpop.f32.mrf.mxu0 }
 0xfdd   : > { %v11079_v10 = vadd.f32 1e-05, %v4677_v61  ;;  %v11082_v39 = vadd.f32 %v11073_v25, %v5017_v36  ;;  %v4904_v50 = vadd.f32 %v10963_v19, %v4885_v26 }
 0xfde   : > { %v11084_v42 = vpop.eup %8464  ;;  %v4793_v13 = vmul.f32 %v8463_v55, %v4792_v9 }
 0xfdf   : > { %v4799_v0 = vmul.f32 %v11084_v42, %v11062_v30  ;;  %8466 = vrsqrt.f32 %v11079_v10  ;;  %v5057_v29 = vmul.f32 -1.702, %v11082_v39  ;;  %vm4805_vm0 = vweird.f32 %v11084_v42 }
 0xfe0   : > { %v4797_v56 = vsel %vm4796_vm15, %v8463_v55, %v4793_v13  ;;  %vm11120_vm1 = vmor %vm4804_vm2, %vm4805_vm0  ;;  %vm4814_vm4 = vweird.f32 %v11079_v10 }
 0xfe1   : > { %v4867_v35 = vmul.f32 %v4797_v56, %v10955_v18  ;;  %v4800_v5 = vmul.f32 %v11084_v42, %v4799_v0  ;;  %v5073_v3 = vmul.f32 1.442695, %v5057_v29  ;;  %v7869_v56 = vld [vmem:[%s9035_s22 + $0xec] sm:$0xf]  ;;  %v8073_v29 = vld [vmem:[%s9035_s22 + $0xf8] sm:$0xf0] }
 0xfe2   : > { %v5367_v20 = vpop.f32.mrf.mxu2 }
 0xfe3   : > { %v4801_v34 = vmul.f32 0.5, %v4800_v5  ;;  %v11100_v31 = vadd.f32 %v11092_v49, %v5367_v20  ;;  %v4659_v28 = vpop.xlane.xlu2 %4658  ;;  %v4886_v6 = vmul.f32 %v10951_v11, %v4867_v35  ;;  %8468 = vpow2.f32 %v5073_v3 }
 0xfe4   : > { %v4678_v55 = vmul.f32 %v4659_v28, %v12195_v7  ;;  %v5019_v52 = vpop.f32.mrf.mxu0  ;;  %v7870_v20 = vor.u32 %v8073_v29, %v7869_v56 }
 0xfe5   : > { %v8467_v18 = vpop.eup %8466  ;;  %v4802_v8 = vsub.f32 1.5, %v4801_v34  ;;  %v5407_v62 = vmul.f32 -1.702, %v11100_v31  ;;  %v11107_v51 = vadd.f32 %v11073_v25, %v5019_v52  ;;  %v4905_v59 = vadd.f32 %v10963_v19, %v4886_v6 }
 0xfe6   : > { %v4809_v2 = vmul.f32 %v8467_v18, %v11079_v10  ;;  %v11112_v61 = vadd.f32 1e-05, %v4678_v55  ;;  %vm4815_vm3 = vweird.f32 %v8467_v18  ;;  %6058 = vmatpush.bf16.msrb.mxu2 %v7870_v20  ;;  %v8057_v20 = vld [vmem:[%s9035_s22 + $0xf4] sm:$0xf0] }
 0xfe7   : > { %v4803_v43 = vmul.f32 %v11084_v42, %v4802_v8  ;;  %v5423_v9 = vmul.f32 1.442695, %v5407_v62  ;;  %v5058_v36 = vmul.f32 -1.702, %v11107_v51  ;;  %v11116_v17 = vpack.c.bf16 %v4905_v59, %v4904_v50  ;;  %vm4816_vm5 = vmor %vm4814_vm4, %vm4815_vm3 }
 0xfe8   : > { %v4810_v13 = vmul.f32 %v8467_v18, %v4809_v2  ;;  %8470 = vrsqrt.f32 %v11112_v61  ;;  %vm4824_vm7 = vweird.f32 %v11112_v61 }
 0xfe9   : > { %v5075_v0 = vmul.f32 1.442695, %v5058_v36  ;;  %5036 = vmatmul.bf16.gmra.mxu0 %v11116_v17  ;;  %5386 = vmatmul.bf16.gmra.mxu2 %v11116_v17  ;;  %v8469_v26 = vpop.eup %8468  ;;  %v4807_v35 = vsel %vm11120_vm1, %v11084_v42, %v4803_v43  ;;  %8472 = vpow2.f32 %v5423_v9 }
 0xfea   : > { %v4811_v30 = vmul.f32 0.5, %v4810_v13  ;;  %v5369_v5 = vpop.f32.mrf.mxu2  ;;  %v4661_v3 = vpop.xlane.xlu0 %4660  ;;  %v4868_v55 = vmul.f32 %v4807_v35, %v10974_v44  ;;  %v5105_v59 = vadd.f32 1.0, %v8469_v26 }
 0xfeb   : > { %8474 = vpow2.f32 %v5075_v0  ;;  %v11132_v1 = vadd.f32 %v11092_v49, %v5369_v5  ;;  %v4679_v34 = vmul.f32 %v4661_v3, %v12195_v7  ;;  %v7805_v3 = vld [vmem:[%s9035_s22 + $0xe8] sm:$0xf] }
 0xfec   : > { %v4812_v28 = vsub.f32 1.5, %v4811_v30  ;;  %v5022_v6 = vpop.f32.mrf.mxu0  ;;  %v4887_v10 = vmul.f32 %v10951_v11, %v4868_v55 }
 0xfed   : > { %v5408_v52 = vmul.f32 -1.702, %v11132_v1  ;;  %v11137_v42 = vadd.f32 1e-05, %v4679_v34  ;;  %v11140_v50 = vadd.f32 %v11073_v25, %v5022_v6  ;;  %v7806_v34 = vor.u32 %v8057_v20, %v7805_v3 }
 0xfee   : > { %v11142_v8 = vpop.eup %8470  ;;  %v4813_v62 = vmul.f32 %v8467_v18, %v4812_v28 }
 0xfef   : > { %v4819_v2 = vmul.f32 %v11142_v8, %v11112_v61  ;;  %v5425_v43 = vmul.f32 1.442695, %v5408_v52  ;;  %8476 = vrsqrt.f32 %v11137_v42  ;;  %v8473_v44 = vpop.eup %8472  ;;  %v5059_v36 = vmul.f32 -1.702, %v11140_v50  ;;  %5708 = vmatpush.bf16.msrb.mxu0 %v7806_v34  ;;  %v8072_v34 = vld [vmem:[%s9035_s22 + $0xd8] sm:$0xf0] }
 0xff0   : > { %v4817_v9 = vsel %vm4816_vm5, %v8467_v18, %v4813_v62  ;;  %v5455_v35 = vadd.f32 1.0, %v8473_v44  ;;  %vm4825_vm6 = vweird.f32 %v11142_v8  ;;  %v4906_v52 = vadd.f32 %v10963_v19, %v4887_v10 }
 0xff1   : > { %v8475_v13 = vpop.eup %8474  ;;  %v4869_v57 = vmul.f32 %v4817_v9, %v10986_v15  ;;  %v4820_v0 = vmul.f32 %v11142_v8, %v4819_v2  ;;  %8478 = vpow2.f32 %v5425_v43  ;;  %v5077_v29 = vmul.f32 1.442695, %v5059_v36  ;;  %vm11173_vm8 = vmor %vm4824_vm7, %vm4825_vm6 }
 0xff2   : > { %8480 = vrcp.f32 %v5105_v59  ;;  %v5106_v56 = vadd.f32 1.0, %v8475_v13  ;;  %v5372_v26 = vpop.f32.mrf.mxu2  ;;  %vm4834_vm10 = vweird.f32 %v11137_v42 }
 0xff3   : > { %v4821_v30 = vmul.f32 0.5, %v4820_v0  ;;  %v11153_v5 = vadd.f32 %v11092_v49, %v5372_v26  ;;  %v4888_v18 = vmul.f32 %v10951_v11, %v4869_v57 }
 0xff4   : > { %8482 = vrcp.f32 %v5106_v56  ;;  %v5024_v15 = vpop.f32.mrf.mxu0 }
 0xff5   : > { %v8477_v28 = vpop.eup %8476  ;;  %v4822_v6 = vsub.f32 1.5, %v4821_v30  ;;  %v5409_v55 = vmul.f32 -1.702, %v11153_v5  ;;  %8484 = vpow2.f32 %v5077_v29  ;;  %v11163_v59 = vadd.f32 %v11073_v25, %v5024_v15  ;;  %v7865_v15 = vld [vmem:[%s9035_s22 + $0xcc] sm:$0xf] }
 0xff6   : > { %v4829_v62 = vmul.f32 %v8477_v28, %v11137_v42  ;;  %v4907_v2 = vadd.f32 %v10963_v19, %v4888_v18  ;;  %8486 = vrcp.f32 %v5455_v35  ;;  %vm4835_vm9 = vweird.f32 %v8477_v28 }
 0xff7   : > { %v8479_v43 = vpop.eup %8478  ;;  %v4823_v44 = vmul.f32 %v11142_v8, %v4822_v6  ;;  %v5427_v9 = vmul.f32 1.442695, %v5409_v55  ;;  %v5060_v0 = vmul.f32 -1.702, %v11163_v59  ;;  %vm4836_vm11 = vmor %vm4834_vm10, %vm4835_vm9 }
 0xff8   : > { %v8481_v36 = vpop.eup %8480  ;;  %v5456_v13 = vadd.f32 1.0, %v8479_v43  ;;  %v4830_v57 = vmul.f32 %v8477_v28, %v4829_v62  ;;  %v11169_v10 = vpack.c.bf16 %v4907_v2, %v4906_v52  ;;  %v7866_v52 = vor.u32 %v8072_v34, %v7865_v15  ;;  %v8071_v34 = vld [vmem:[%s9035_s22 + $0xb8] sm:$0xf0] }
 0xff9   : > { %v4827_v61 = vsel %vm11173_vm8, %v11142_v8, %v4823_v44  ;;  %v5079_v35 = vmul.f32 1.442695, %v5060_v0  ;;  %v5137_v18 = vmul.f32 %v8481_v36, %v11082_v39 }
 0xffa   : > { %v8483_v29 = vpop.eup %8482  ;;  %8488 = vrcp.f32 %v5456_v13  ;;  %v4831_v26 = vmul.f32 0.5, %v4830_v57  ;;  %5041 = vmatmul.bf16.gmra.mxu0 %v11169_v10  ;;  %5391 = vmatmul.bf16.gmra.mxu2 %v11169_v10  ;;  %v5374_v30 = vpop.f32.mrf.mxu2  ;;  %v4870_v2 = vmul.f32 %v4827_v61, %v10995_v53 }
 0xffb   : > { %v5138_v3 = vmul.f32 %v8483_v29, %v11107_v51  ;;  %8490 = vpow2.f32 %v5427_v9  ;;  %v11185_v20 = vadd.f32 %v11092_v49, %v5374_v30  ;;  %v8485_v6 = vpop.eup %8484  ;;  %6059 = vmatpush.bf16.msrb.mxu2 %v7866_v52  ;;  %v7801_v30 = vld [vmem:[%s9035_s22 + $0xc8] sm:$0xf] }
 0xffc   : > { %v4832_v8 = vsub.f32 1.5, %v4831_v26  ;;  %8492 = vpow2.f32 %v5079_v35  ;;  %v5027_v55 = vpop.f32.mrf.mxu0  ;;  %v8487_v62 = vpop.eup %8486  ;;  %v5107_v9 = vadd.f32 1.0, %v8485_v6  ;;  %v4889_v61 = vmul.f32 %v10951_v11, %v4870_v2  ;;  %v8055_v2 = vld [vmem:[%s9035_s22 + $0xb4] sm:$0xf0] }
 0xffd   : > { %v5153_v43 = vpack.c.bf16 %v5138_v3, %v5137_v18  ;;  %v5410_v39 = vmul.f32 -1.702, %v11185_v20  ;;  %v11192_v51 = vadd.f32 %v11073_v25, %v5027_v55  ;;  %v5487_v53 = vmul.f32 %v8487_v62, %v11100_v31  ;;  %v8056_v18 = vld [vmem:[%s9035_s22 + $0xd4] sm:$0xf0]  ;;  %v7797_v62 = vld [vmem:[%s9035_s22 + $0xa8] sm:$0xf] }
 0xffe   : > { %v4833_v44 = vmul.f32 %v8477_v28, %v4832_v8  ;;  %v7802_v55 = vor.u32 %v8056_v18, %v7801_v30  ;;  %v8069_v30 = vld [vmem:[%s9035_s22 + $0x78] sm:$0xf0] }
 0xfff   : > { %v5429_v36 = vmul.f32 1.442695, %v5410_v39  ;;  %v5061_v13 = vmul.f32 -1.702, %v11192_v51  ;;  %5233 = vmatmul.bf16.vlgmr.msra.gmra.mxu1 %v5153_v43 }
0x1000   : > { %v8489_v57 = vpop.eup %8488  ;;  %v4837_v0 = vsel %vm4836_vm11, %v8477_v28, %v4833_v44  ;;  %v7857_v44 = vld [vmem:[%s9035_s22 + $0x8c] sm:$0xf]  ;;  %5709 = vmatpush.bf16.msrb.mxu0 %v7802_v55 }
0x1001   : > { %v8491_v56 = vpop.eup %8490  ;;  %v5488_v29 = vmul.f32 %v8489_v57, %v11132_v1  ;;  %v4871_v42 = vmul.f32 %v4837_v0, %v11008_v41  ;;  %8494 = vpow2.f32 %v5429_v36  ;;  %v5081_v35 = vmul.f32 1.442695, %v5061_v13  ;;  %v7861_v1 = vld [vmem:[%s9035_s22 + $0xac] sm:$0xf]  ;;  %v7793_v13 = vld [vmem:[%s9035_s22 + $0x88] sm:$0xf] }
0x1002   : > { %v8493_v26 = vpop.eup %8492  ;;  %8496 = vrcp.f32 %v5107_v9  ;;  %v5457_v41 = vadd.f32 1.0, %v8491_v56  ;;  %v7862_v52 = vor.u32 %v8071_v34, %v7861_v1  ;;  %v8070_v9 = vld [vmem:[%s9035_s22 + $0x98] sm:$0xf0]  ;;  %v7798_v56 = vor.u32 %v8055_v2, %v7797_v62  ;;  %v7789_v1 = vld [vmem:[%s9035_s22 + $0x68] sm:$0xf] }
0x1003   : > { %v5503_v3 = vpack.c.bf16 %v5488_v29, %v5487_v53  ;;  %v5108_v31 = vadd.f32 1.0, %v8493_v26  ;;  %v5377_v15 = vpop.f32.mrf.mxu2  ;;  %v4890_v28 = vmul.f32 %v10951_v11, %v4871_v42  ;;  %v4908_v11 = vadd.f32 %v10963_v19, %v4889_v61  ;;  %v8054_v42 = vld [vmem:[%s9035_s22 + $0x94] sm:$0xf0]  ;;  %v7853_v61 = vld [vmem:[%s9035_s22 + $0x6c] sm:$0xf] }
0x1004   : > { %v11206_v6 = vadd.f32 %v11092_v49, %v5377_v15  ;;  %v5029_v8 = vpop.f32.mrf.mxu0  ;;  %6060 = vmatpush.bf16.msrb.mxu2 %v7862_v52  ;;  %v7858_v29 = vor.u32 %v8070_v9, %v7857_v44  ;;  %5710 = vmatpush.bf16.msrb.mxu0 %v7798_v56  ;;  %v7794_v15 = vor.u32 %v8054_v42, %v7793_v13  ;;  %v8053_v52 = vld [vmem:[%s9035_s22 + $0x74] sm:$0xf0]  ;;  %v7849_v62 = vld [vmem:[%s9035_s22 + $0x4c] sm:$0xf]  ;;  %v8068_v2 = vld [vmem:[%s9035_s22 + $0x58] sm:$0xf0] }
0x1005   : > { %8498 = vrcp.f32 %v5108_v31  ;;  %v11211_v43 = vadd.f32 %v11073_v25, %v5029_v8  ;;  %5583 = vmatmul.bf16.vlgmr.msra.gmra.mxu3 %v5503_v3  ;;  %v4909_v39 = vadd.f32 %v10963_v19, %v4890_v28  ;;  %v7854_v28 = vor.u32 %v8069_v30, %v7853_v61 }
0x1006   : > { %8500 = vpow2.f32 %v5081_v35  ;;  %v5411_v36 = vmul.f32 -1.702, %v11206_v6  ;;  %v7790_v9 = vor.u32 %v8053_v52, %v7789_v1 }
0x1007   : > { %v8495_v57 = vpop.eup %8494  ;;  %v5062_v53 = vmul.f32 -1.702, %v11211_v43  ;;  %v11220_v0 = vpack.c.bf16 %v4909_v39, %v4908_v11  ;;  %8502 = vrcp.f32 %v5457_v41 }
0x1008   : > { %v5458_v19 = vadd.f32 1.0, %v8495_v57  ;;  %v5431_v26 = vmul.f32 1.442695, %v5411_v36  ;;  %v8497_v35 = vpop.eup %8496  ;;  %6061 = vmatpush.bf16.msrb.mxu2 %v7858_v29  ;;  %5711 = vmatpush.bf16.msrb.mxu0 %v7794_v15  ;;  %v7850_v36 = vor.u32 %v8068_v2, %v7849_v62  ;;  %v7785_v62 = vld [vmem:[%s9035_s22 + $0x48] sm:$0xf] }
0x1009   : > { %v5083_v18 = vmul.f32 1.442695, %v5062_v53  ;;  %v5139_v41 = vmul.f32 %v8497_v35, %v11140_v50  ;;  %v7845_v2 = vld [vmem:[%s9035_s22 + $0x2c] sm:$0xf] }
0x100a   : > { %8504 = vrcp.f32 %v5458_v19  ;;  %5046 = vmatmul.bf16.gmra.mxu0 %v11220_v0  ;;  %5396 = vmatmul.bf16.gmra.mxu2 %v11220_v0 }
0x100b   : > { %v8499_v3 = vpop.eup %8498  ;;  %v5379_v31 = vpop.f32.mrf.mxu2  ;;  %8506 = vpow2.f32 %v5431_v26 }
0x100c   : > { %v8501_v34 = vpop.eup %8500  ;;  %v5140_v8 = vmul.f32 %v8499_v3, %v11163_v59  ;;  %v5380_v55 = vadd.f32 %v11092_v49, %v5379_v31  ;;  %8508 = vpow2.f32 %v5083_v18  ;;  %6062 = vmatpush.bf16.msrb.mxu2 %v7854_v28  ;;  %5712 = vmatpush.bf16.msrb.mxu0 %v7790_v9 }
0x100d   : > { %v8503_v11 = vpop.eup %8502  ;;  %v5109_v57 = vadd.f32 1.0, %v8501_v34 }
0x100e   : > { %v5412_v39 = vmul.f32 -1.702, %v5380_v55  ;;  %v5154_v44 = vpack.c.bf16 %v5140_v8, %v5139_v41  ;;  %v5489_v50 = vmul.f32 %v8503_v11, %v11153_v5  ;;  %v4663_v41 = vpop.xlane.xlu1 %4662 }
0x100f   : > { %v4680_v8 = vmul.f32 %v4663_v41, %v12195_v7 }
0x1010   : > { %v8505_v13 = vpop.eup %8504  ;;  %v5433_v53 = vmul.f32 1.442695, %v5412_v39  ;;  %5238 = vmatmul.bf16.gmra.mxu1 %v5154_v44  ;;  %6063 = vmatpush.bf16.msrb.mxu2 %v7850_v36  ;;  %v8067_v39 = vld [vmem:[%s9035_s22 + $0x38] sm:$0xf0] }
0x1011   : > { %v5490_v59 = vmul.f32 %v8505_v13, %v11185_v20  ;;  %v8507_v56 = vpop.eup %8506  ;;  %v4696_v52 = vadd.f32 1e-05, %v4680_v8  ;;  %v7846_v44 = vor.u32 %v8067_v39, %v7845_v2 }
0x1012   : > { %8510 = vpow2.f32 %v5433_v53  ;;  %v8509_v29 = vpop.eup %8508  ;;  %v5459_v19 = vadd.f32 1.0, %v8507_v56 }
0x1013   : > { %v5504_v42 = vpack.c.bf16 %v5490_v59, %v5489_v50  ;;  %8512 = vrcp.f32 %v5109_v57  ;;  %v5110_v61 = vadd.f32 1.0, %v8509_v29  ;;  %v7781_v50 = vld [vmem:[%s9035_s22 + $0x28] sm:$0xf]  ;;  %v8051_v59 = vld [vmem:[%s9035_s22 + $0x34] sm:$0xf0]  ;;  %vm4844_vm13 = vweird.f32 %v4696_v52 }
0x1014   : > { %6064 = vmatpush.bf16.msrb.mxu2 %v7846_v44  ;;  %v7782_v56 = vor.u32 %v8051_v59, %v7781_v50  ;;  %v8749_v44 = vld [vmem:[%s12202_s23] ss:$0 sm:$0xff] }
0x1015   : > { %5588 = vmatmul.bf16.gmra.mxu3 %v5504_v42  ;;  %8514 = vrcp.f32 %v5110_v61  ;;  %v7841_v61 = vld [vmem:[%s9035_s22 + $0xc] sm:$0xf] }
0x1016   : > { %8516 = vrcp.f32 %v5459_v19  ;;  %v8066_v19 = vld [vmem:[%s9035_s22 + $0x18] sm:$0xf0] }
0x1018   : > { %v8511_v26 = vpop.eup %8510 }
0x1019   : > { %v5460_v30 = vadd.f32 1.0, %v8511_v26  ;;  %v8513_v35 = vpop.eup %8512  ;;  %v7777_v26 = vld [vmem:[%s9035_s22 + $0x8] sm:$0xf] }
0x101a   : > { %v5141_v20 = vmul.f32 %v8513_v35, %v11192_v51  ;;  %v8052_v51 = vld [vmem:[%s9035_s22 + $0x54] sm:$0xf0]  ;;  %v7842_v35 = vor.u32 %v8066_v19, %v7841_v61 }
0x101b   : > { %8518 = vrcp.f32 %v5460_v30  ;;  %v8515_v5 = vpop.eup %8514  ;;  %v7786_v11 = vor.u32 %v8052_v51, %v7785_v62 }
0x101c   : > { %v5142_v18 = vmul.f32 %v8515_v5, %v11211_v43  ;;  %v8517_v3 = vpop.eup %8516  ;;  %8520 = vrsqrt.f32 %v4696_v52  ;;  %v8050_v5 = vld [vmem:[%s9035_s22 + $0x14] sm:$0xf0]  ;;  %6065 = vmatpush.bf16.msrb.mxu2 %v7842_v35 }
0x101d   : > { %v5491_v28 = vmul.f32 %v8517_v3, %v11206_v6  ;;  %5713 = vmatpush.bf16.msrb.mxu0 %v7786_v11 }
0x101e   : > { %v5155_v31 = vpack.c.bf16 %v5142_v18, %v5141_v20 }
0x1020   : > { %5243 = vmatmul.bf16.gmra.mxu1 %v5155_v31 }
0x1021   : > { %v8519_v15 = vpop.eup %8518  ;;  %5714 = vmatpush.bf16.msrb.mxu0 %v7782_v56 }
0x1022   : > { %v5492_v1 = vmul.f32 %v8519_v15, %v5380_v55  ;;  %v8521_v43 = vpop.eup %8520 }
0x1023   : > { %v4839_v9 = vmul.f32 %v8521_v43, %v4696_v52  ;;  %vm4845_vm12 = vweird.f32 %v8521_v43  ;;  %v8748_v52 = vld [vmem:[%s9024_s19] ss:$0 sm:$0xff] }
0x1024   : > { %v5505_v34 = vpack.c.bf16 %v5492_v1, %v5491_v28  ;;  %vm4846_vm14 = vmor %vm4844_vm13, %vm4845_vm12 }
0x1025   : > { %v4840_v6 = vmul.f32 %v8521_v43, %v4839_v9 }
0x1026   : > { %5593 = vmatmul.bf16.gmra.mxu3 %v5505_v34 }
0x1027   : > { %v4841_v13 = vmul.f32 0.5, %v4840_v6 }
0x1029   : > { %v4842_v53 = vsub.f32 1.5, %v4841_v13 }
0x102b   : > { %v4843_v42 = vmul.f32 %v8521_v43, %v4842_v53 }
0x102d   : > { %v4847_v18 = vsel %vm4846_vm14, %v8521_v43, %v4843_v42 }
0x102e   : > { %v4872_v31 = vmul.f32 %v4847_v18, %v11017_v45 }
0x1030   : > { %v4891_v62 = vmul.f32 %v8748_v52, %v4872_v31 }
0x1032   : > { %v4910_v9 = vadd.f32 %v8749_v44, %v4891_v62 }
0x1044   : > { %v4665_v55 = vpop.xlane.xlu2 %4664 }
0x1045   : > { %v4681_v36 = vmul.f32 %v4665_v55, %v12195_v7  ;;  %v7778_v7 = vor.u32 %v8050_v5, %v7777_v26 }
0x1047   : > { %v4697_v57 = vadd.f32 1e-05, %v4681_v36  ;;  %5715 = vmatpush.bf16.msrb.mxu0 %v7778_v7 }
0x1049   : > { %8522 = vrsqrt.f32 %v4697_v57  ;;  %vm4854_vm0 = vweird.f32 %v4697_v57 }
0x104f   : > { %v8523_v29 = vpop.eup %8522 }
0x1050   : > { %v4849_v30 = vmul.f32 %v8523_v29, %v4697_v57  ;;  %vm4855_vm15 = vweird.f32 %v8523_v29 }
0x1051   : > { %vm4856_vm2 = vmor %vm4854_vm0, %vm4855_vm15 }
0x1052   : > { %v4850_v20 = vmul.f32 %v8523_v29, %v4849_v30 }
0x1054   : > { %v4851_v3 = vmul.f32 0.5, %v4850_v20 }
0x1056   : > { %v4852_v15 = vsub.f32 1.5, %v4851_v3  ;;  %v5032_v28 = vpop.f32.mrf.mxu0 }
0x1057   : > { %v11253_v1 = vadd.f32 %v11073_v25, %v5032_v28 }
0x1058   : > { %v4853_v34 = vmul.f32 %v8523_v29, %v4852_v15 }
0x1059   : > { %v5063_v41 = vmul.f32 -1.702, %v11253_v1 }
0x105a   : > { %v4857_v8 = vsel %vm4856_vm2, %v8523_v29, %v4853_v34 }
0x105b   : > { %v4873_v51 = vmul.f32 %v4857_v8, %v11045_v60  ;;  %v5085_v2 = vmul.f32 1.442695, %v5063_v41 }
0x105c   : > { %v5382_v43 = vpop.f32.mrf.mxu2 }
0x105d   : > { %v11259_v45 = vadd.f32 %v11092_v49, %v5382_v43  ;;  %v4892_v11 = vmul.f32 %v8748_v52, %v4873_v51  ;;  %8524 = vpow2.f32 %v5085_v2 }
0x105e   : > { %v5034_v39 = vpop.f32.mrf.mxu0 }
0x105f   : > { %v5413_v6 = vmul.f32 -1.702, %v11259_v45  ;;  %v5035_v55 = vadd.f32 %v11073_v25, %v5034_v39  ;;  %v4911_v36 = vadd.f32 %v8749_v44, %v4892_v11 }
0x1061   : > { %v5435_v13 = vmul.f32 1.442695, %v5413_v6  ;;  %v5064_v57 = vmul.f32 -1.702, %v5035_v55  ;;  %v11264_v53 = vpack.c.bf16 %v4911_v36, %v4910_v9 }
0x1063   : > { %v5087_v60 = vmul.f32 1.442695, %v5064_v57  ;;  %5051 = vmatmul.bf16.gmra.mxu0 %v11264_v53  ;;  %5401 = vmatmul.bf16.gmra.mxu2 %v11264_v53  ;;  %8526 = vpow2.f32 %v5435_v13  ;;  %v8525_v59 = vpop.eup %8524 }
0x1064   : > { %v5384_v50 = vpop.f32.mrf.mxu2  ;;  %v5111_v19 = vadd.f32 1.0, %v8525_v59 }
0x1065   : > { %8528 = vpow2.f32 %v5087_v60  ;;  %v5385_v56 = vadd.f32 %v11092_v49, %v5384_v50 }
0x1066   : > { %v5037_v29 = vpop.f32.mrf.mxu0 }
0x1067   : > { %v5414_v42 = vmul.f32 -1.702, %v5385_v56  ;;  %v11270_v61 = vadd.f32 %v11073_v25, %v5037_v29 }
0x1069   : > { %v5437_v26 = vmul.f32 1.442695, %v5414_v42  ;;  %v5065_v30 = vmul.f32 -1.702, %v11270_v61  ;;  %v8527_v35 = vpop.eup %8526 }
0x106a   : > { %v5461_v31 = vadd.f32 1.0, %v8527_v35 }
0x106b   : > { %v8529_v5 = vpop.eup %8528  ;;  %8530 = vpow2.f32 %v5437_v26  ;;  %v5089_v7 = vmul.f32 1.442695, %v5065_v30 }
0x106c   : > { %8532 = vrcp.f32 %v5111_v19  ;;  %v5112_v20 = vadd.f32 1.0, %v8529_v5  ;;  %v5387_v18 = vpop.f32.mrf.mxu2 }
0x106d   : > { %v11274_v3 = vadd.f32 %v11092_v49, %v5387_v18 }
0x106e   : > { %8534 = vrcp.f32 %v5112_v20  ;;  %v5039_v15 = vpop.f32.mrf.mxu0 }
0x106f   : > { %8536 = vpow2.f32 %v5089_v7  ;;  %v5415_v28 = vmul.f32 -1.702, %v11274_v3  ;;  %v5040_v34 = vadd.f32 %v11073_v25, %v5039_v15 }
0x1070   : > { %8538 = vrcp.f32 %v5461_v31 }
0x1071   : > { %v8531_v41 = vpop.eup %8530  ;;  %v5439_v8 = vmul.f32 1.442695, %v5415_v28  ;;  %v5066_v52 = vmul.f32 -1.702, %v5040_v34 }
0x1072   : > { %v8533_v62 = vpop.eup %8532  ;;  %v5462_v51 = vadd.f32 1.0, %v8531_v41  ;;  %v11298_v41 = vld [vmem:[%s9051_s0] ss:$0 sm:$0xff] }
0x1073   : > { %8540 = vpow2.f32 %v5439_v8  ;;  %v5091_v2 = vmul.f32 1.442695, %v5066_v52  ;;  %5716 = vmatmul.bf16.vlgmr.msrb.gmra.mxu0 %v10976_v46  ;;  %6066 = vmatmul.bf16.vlgmr.msrb.gmra.mxu2 %v10976_v46  ;;  %v5143_v44 = vmul.f32 %v8533_v62, %v11253_v1 }
0x1074   : > { %v8535_v43 = vpop.eup %8534  ;;  %8542 = vrcp.f32 %v5462_v51  ;;  %v5389_v11 = vpop.f32.mrf.mxu2 }
0x1075   : > { %v8537_v39 = vpop.eup %8536  ;;  %v5144_v9 = vmul.f32 %v8535_v43, %v5035_v55  ;;  %8544 = vpow2.f32 %v5091_v2  ;;  %v11282_v6 = vadd.f32 %v11092_v49, %v5389_v11 }
0x1076   : > { %v8539_v60 = vpop.eup %8538  ;;  %v5113_v50 = vadd.f32 1.0, %v8537_v39 }
0x1077   : > { %v5416_v36 = vmul.f32 -1.702, %v11282_v6  ;;  %v5042_v13 = vpop.f32.mrf.mxu0  ;;  %v5156_v57 = vpack.c.bf16 %v5144_v9, %v5143_v44  ;;  %v5493_v19 = vmul.f32 %v8539_v60, %v11259_v45  ;;  %v4924_v44 = vadd.f32 %v11298_v41, %v10771_v58 }
0x1078   : > { %v11286_v59 = vadd.f32 %v11073_v25, %v5042_v13 }
0x1079   : > { %v8541_v46 = vpop.eup %8540  ;;  %v5441_v29 = vmul.f32 1.442695, %v5416_v36  ;;  %5248 = vmatmul.bf16.gmra.mxu1 %v5156_v57 }
0x107a   : > { %v8543_v42 = vpop.eup %8542  ;;  %v5067_v1 = vmul.f32 -1.702, %v11286_v59  ;;  %v5463_v18 = vadd.f32 1.0, %v8541_v46 }
0x107b   : > { %v8545_v55 = vpop.eup %8544  ;;  %v5494_v26 = vmul.f32 %v8543_v42, %v5385_v56  ;;  %8546 = vpow2.f32 %v5441_v29 }
0x107c   : > { %8548 = vrcp.f32 %v5113_v50  ;;  %v5114_v30 = vadd.f32 1.0, %v8545_v55  ;;  %v5093_v35 = vmul.f32 1.442695, %v5067_v1  ;;  %v5234_v5 = vpop.f32.mrf.mxu1 }
0x107d   : > { %v5392_v7 = vpop.f32.mrf.mxu2  ;;  %v5506_v20 = vpack.c.bf16 %v5494_v26, %v5493_v19  ;;  %v5274_v57 = vadd.f32 %v5234_v5, %v4924_v44 }
0x107e   : > { %8550 = vrcp.f32 %v5114_v30  ;;  %v11291_v31 = vadd.f32 %v11092_v49, %v5392_v7 }
0x107f   : > { %v5044_v15 = vpop.f32.mrf.mxu0  ;;  %5598 = vmatmul.bf16.gmra.mxu3 %v5506_v20  ;;  %8552 = vpow2.f32 %v5093_v35  ;;  %v8065_v20 = vld [vmem:[%s9045_s6 + $0xb8] sm:$0xff] }
0x1080   : > { %v5417_v28 = vmul.f32 -1.702, %v11291_v31  ;;  %v11295_v45 = vadd.f32 %v11073_v25, %v5044_v15  ;;  %8554 = vrcp.f32 %v5463_v18  ;;  %v8081_v18 = vld [vmem:[%s9045_s6 + $0xf8] sm:$0xff]  ;;  %5925 = vmatpush.bf16.msrb.mxu1 %v8065_v20 }
0x1081   : > { %v8547_v56 = vpop.eup %8546  ;;  %8082 = vmatpush.bf16.msrb.mxu3 %v8081_v18  ;;  %6275 = vmatpush.bf16.msra.mxu0 %v8081_v18 }
0x1082   : > { %v8549_v8 = vpop.eup %8548  ;;  %v5464_v52 = vadd.f32 1.0, %v8547_v56  ;;  %v5443_v62 = vmul.f32 1.442695, %v5417_v28  ;;  %v5068_v51 = vmul.f32 -1.702, %v11295_v45 }
0x1083   : > { %5721 = vmatmul.bf16.gmra.mxu0 %v10999_v32  ;;  %6071 = vmatmul.bf16.gmra.mxu2 %v10999_v32  ;;  %v5145_v11 = vmul.f32 %v8549_v8, %v11270_v61 }
0x1084   : > { %v8551_v2 = vpop.eup %8550  ;;  %8556 = vrcp.f32 %v5464_v52  ;;  %v5095_v43 = vmul.f32 1.442695, %v5068_v51  ;;  %v11309_v60 = vpop.f32.mrf.mxu1  ;;  %v8064_v52 = vld [vmem:[%s9045_s6 + $0xb0] sm:$0xff] }
0x1085   : > { %v5146_v39 = vmul.f32 %v8551_v2, %v5040_v34  ;;  %8558 = vpow2.f32 %v5443_v62  ;;  %v5394_v9 = vpop.f32.mrf.mxu2  ;;  %v8553_v36 = vpop.eup %8552  ;;  %5926 = vmatpush.bf16.msrb.mxu1 %v8064_v52 }
0x1086   : > { %8560 = vpow2.f32 %v5095_v43  ;;  %v11307_v13 = vadd.f32 %v11092_v49, %v5394_v9  ;;  %v8555_v46 = vpop.eup %8554  ;;  %v5115_v29 = vadd.f32 1.0, %v8553_v36 }
0x1087   : > { %v5047_v32 = vpop.f32.mrf.mxu0  ;;  %v5157_v50 = vpack.c.bf16 %v5146_v39, %v5145_v11  ;;  %v5495_v30 = vmul.f32 %v8555_v46, %v11274_v3  ;;  %v4926_v46 = vadd.f32 %v11298_v41, %v10784_v16 }
0x1088   : > { %v5418_v61 = vmul.f32 -1.702, %v11307_v13  ;;  %v11313_v34 = vadd.f32 %v11073_v25, %v5047_v32  ;;  %v5584_v58 = vpop.f32.mrf.mxu3  ;;  %v8063_v32 = vld [vmem:[%s9045_s6 + $0xa8] sm:$0xff] }
0x1089   : > { %v11315_v42 = vadd.f32 %v5584_v58, %v5274_v57  ;;  %5253 = vmatmul.bf16.gmra.mxu1 %v5157_v50  ;;  %v8080_v57 = vld [vmem:[%s9045_s6 + $0xf0] sm:$0xff] }
0x108a   : > { %v8557_v1 = vpop.eup %8556  ;;  %v5445_v55 = vmul.f32 1.442695, %v5418_v61  ;;  %v5069_v19 = vmul.f32 -1.702, %v11313_v34  ;;  %8083 = vmatpush.bf16.msrb.mxu3 %v8080_v57  ;;  %6276 = vmatpush.bf16.msra.mxu0 %v8080_v57 }
0x108b   : > { %v8559_v26 = vpop.eup %8558  ;;  %v5496_v35 = vmul.f32 %v8557_v1, %v11282_v6  ;;  %5927 = vmatpush.bf16.msrb.mxu1 %v8063_v32 }
0x108c   : > { %v8561_v5 = vpop.eup %8560  ;;  %8562 = vpow2.f32 %v5445_v55  ;;  %v5097_v7 = vmul.f32 1.442695, %v5069_v19  ;;  %v5465_v62 = vadd.f32 1.0, %v8559_v26 }
0x108d   : > { %8564 = vrcp.f32 %v5115_v29  ;;  %v5116_v15 = vadd.f32 1.0, %v8561_v5  ;;  %v5397_v28 = vpop.f32.mrf.mxu2  ;;  %v5507_v56 = vpack.c.bf16 %v5496_v35, %v5495_v30  ;;  %v5239_v43 = vpop.f32.mrf.mxu1 }
0x108e   : > { %v11323_v8 = vadd.f32 %v11092_v49, %v5397_v28  ;;  %v5276_v55 = vadd.f32 %v5239_v43, %v4926_v46 }
0x108f   : > { %8566 = vrcp.f32 %v5116_v15  ;;  %v5049_v3 = vpop.f32.mrf.mxu0  ;;  %5603 = vmatmul.bf16.gmra.mxu3 %v5507_v56 }
0x1090   : > { %8568 = vpow2.f32 %v5097_v7  ;;  %v5419_v6 = vmul.f32 -1.702, %v11323_v8  ;;  %v11328_v51 = vadd.f32 %v11073_v25, %v5049_v3  ;;  %v11330_v2 = vpop.f32.mrf.mxu3 }
0x1091   : > { %8570 = vrcp.f32 %v5465_v62 }
0x1092   : > { %v8563_v11 = vpop.eup %8562  ;;  %v5447_v39 = vmul.f32 1.442695, %v5419_v6  ;;  %v5070_v44 = vmul.f32 -1.702, %v11328_v51 }
0x1093   : > { %v8565_v9 = vpop.eup %8564  ;;  %v5466_v36 = vadd.f32 1.0, %v8563_v11  ;;  %5726 = vmatmul.bf16.gmra.mxu0 %v11023_v27  ;;  %6076 = vmatmul.bf16.gmra.mxu2 %v11023_v27 }
0x1094   : > { %8572 = vpow2.f32 %v5447_v39  ;;  %v5099_v25 = vmul.f32 1.442695, %v5070_v44  ;;  %v5147_v29 = vmul.f32 %v8565_v9, %v11286_v59 }
0x1095   : > { %v8567_v50 = vpop.eup %8566  ;;  %8574 = vrcp.f32 %v5466_v36  ;;  %v5399_v61 = vpop.f32.mrf.mxu2  ;;  %v4928_v36 = vadd.f32 %v11298_v41, %v10797_v37  ;;  %v8078_v37 = vld [vmem:[%s9045_s6 + $0xe0] sm:$0xff] }
0x1096   : > { %v8569_v58 = vpop.eup %8568  ;;  %v5148_v1 = vmul.f32 %v8567_v50, %v11295_v45  ;;  %8576 = vpow2.f32 %v5099_v25  ;;  %v5400_v27 = vadd.f32 %v11092_v49, %v5399_v61  ;;  %v11344_v15 = vpop.f32.mrf.mxu1 }
0x1097   : > { %v8571_v35 = vpop.eup %8570  ;;  %v5117_v5 = vadd.f32 1.0, %v8569_v58  ;;  %v8061_v58 = vld [vmem:[%s9045_s6 + $0x98] sm:$0xff] }
0x1098   : > { %v5420_v19 = vmul.f32 -1.702, %v5400_v27  ;;  %v5589_v26 = vpop.f32.mrf.mxu3  ;;  %v5158_v30 = vpack.c.bf16 %v5148_v1, %v5147_v29  ;;  %v5497_v45 = vmul.f32 %v8571_v35, %v11291_v31  ;;  %v8079_v31 = vld [vmem:[%s9045_s6 + $0xe8] sm:$0xff]  ;;  %v8060_v29 = vld [vmem:[%s9045_s6 + $0x90] sm:$0xff] }
0x1099   : > { %v11342_v7 = vadd.f32 %v5589_v26, %v5276_v55  ;;  %8084 = vmatpush.bf16.msrb.mxu3 %v8079_v31  ;;  %6277 = vmatpush.bf16.msra.mxu0 %v8079_v31  ;;  %v8058_v31 = vld [vmem:[%s9045_s6 + $0x80] sm:$0xff] }
0x109a   : > { %v8573_v16 = vpop.eup %8572  ;;  %v5449_v20 = vmul.f32 1.442695, %v5420_v19  ;;  %5258 = vmatmul.bf16.gmra.mxu1 %v5158_v30 }
0x109b   : > { %v8575_v18 = vpop.eup %8574  ;;  %v5467_v52 = vadd.f32 1.0, %v8573_v16 }
0x109c   : > { %v8577_v59 = vpop.eup %8576  ;;  %v5498_v49 = vmul.f32 %v8575_v18, %v11307_v13  ;;  %8578 = vpow2.f32 %v5449_v20  ;;  %v8062_v13 = vld [vmem:[%s9045_s6 + $0xa0] sm:$0xff] }
0x109d   : > { %8580 = vrcp.f32 %v5117_v5  ;;  %v5118_v28 = vadd.f32 1.0, %v8577_v59  ;;  %5928 = vmatpush.bf16.msrb.mxu1 %v8062_v13  ;;  %8085 = vmatpush.bf16.msrb.mxu3 %v8078_v37  ;;  %v11382_v59 = vld [vmem:[%s9040_s4 + $0x2] ss:$0 sm:$0xff] }
0x109e   : > { %v5508_v56 = vpack.c.bf16 %v5498_v49, %v5497_v45  ;;  %v5244_v39 = vpop.f32.mrf.mxu1  ;;  %6278 = vmatpush.bf16.msra.mxu0 %v8078_v37  ;;  %v8059_v45 = vld [vmem:[%s9045_s6 + $0x88] sm:$0xff] }
0x109f   : > { %8582 = vrcp.f32 %v5118_v28  ;;  %v5278_v57 = vadd.f32 %v5244_v39, %v4928_v36 }
0x10a0   : > { %5608 = vmatmul.bf16.gmra.mxu3 %v5508_v56  ;;  %v11348_v62 = vpop.f32.mrf.mxu3  ;;  %8584 = vrcp.f32 %v5467_v52  ;;  %v8076_v52 = vld [vmem:[%s9045_s6 + $0xd0] sm:$0xff] }
0x10a1   : > { %5929 = vmatpush.bf16.msrb.mxu1 %v8061_v58 }
0x10a2   : > { %v8579_v3 = vpop.eup %8578 }
0x10a3   : > { %v8581_v6 = vpop.eup %8580  ;;  %v5468_v43 = vadd.f32 1.0, %v8579_v3  ;;  %5731 = vmatmul.bf16.gmra.mxu0 %v11066_v47  ;;  %6081 = vmatmul.bf16.gmra.mxu2 %v11066_v47 }
0x10a4   : > { %v5149_v44 = vmul.f32 %v8581_v6, %v11313_v34 }
0x10a5   : > { %v8583_v11 = vpop.eup %8582  ;;  %8586 = vrcp.f32 %v5468_v43  ;;  %5930 = vmatpush.bf16.msrb.mxu1 %v8060_v29 }
0x10a6   : > { %v5150_v9 = vmul.f32 %v8583_v11, %v11328_v51  ;;  %v8585_v47 = vpop.eup %8584  ;;  %v11396_v11 = vld [vmem:[%s9040_s4 + $0x3] ss:$0 sm:$0xff] }
0x10a7   : > { %v5499_v61 = vmul.f32 %v8585_v47, %v11323_v8  ;;  %v8077_v8 = vld [vmem:[%s9045_s6 + $0xd8] sm:$0xff] }
0x10a8   : > { %v5159_v32 = vpack.c.bf16 %v5150_v9, %v5149_v44  ;;  %8086 = vmatpush.bf16.msrb.mxu3 %v8077_v8  ;;  %6279 = vmatpush.bf16.msra.mxu0 %v8077_v8  ;;  %v8075_v9 = vld [vmem:[%s9045_s6 + $0xc8] sm:$0xff] }
0x10a9   : > { %v5594_v25 = vpop.f32.mrf.mxu3  ;;  %5931 = vmatpush.bf16.msrb.mxu1 %v8059_v45 }
0x10aa   : > { %v11358_v50 = vadd.f32 %v5594_v25, %v5278_v57  ;;  %5263 = vmatmul.bf16.gmra.mxu1 %v5159_v32 }
0x10ab   : > { %v8587_v46 = vpop.eup %8586 }
0x10ac   : > { %v5500_v34 = vmul.f32 %v8587_v46, %v5400_v27  ;;  %v8750_v27 = vld [vmem:[%s9040_s4] ss:$0 sm:$0xff]  ;;  %8087 = vmatpush.bf16.msrb.mxu3 %v8076_v52  ;;  %6280 = vmatpush.bf16.msra.mxu0 %v8076_v52 }
0x10ad   : > { %5932 = vmatpush.bf16.msrb.mxu1 %v8058_v31 }
0x10ae   : > { %v5509_v51 = vpack.c.bf16 %v5500_v34, %v5499_v61  ;;  %v8074_v34 = vld [vmem:[%s9045_s6 + $0xc0] sm:$0xff] }
0x10b0   : > { %5613 = vmatmul.bf16.gmra.mxu3 %v5509_v51  ;;  %6281 = vmatpush.bf16.msra.mxu0 %v8075_v9 }
0x10b1   : > { %8088 = vmatpush.bf16.msrb.mxu3 %v8075_v9  ;;  %v11408_v29 = vpop.f32.mrf.mxu3 }
0x10b3   : > { %5736 = vmatmul.bf16.gmra.mxu0 %v11116_v17  ;;  %6086 = vmatmul.bf16.gmra.mxu2 %v11116_v17 }
0x10b4   : > { %6282 = vmatpush.bf16.msra.mxu0 %v8074_v34 }
0x10b5   : > { %8089 = vmatpush.bf16.msrb.mxu3 %v8074_v34 }
0x10c3   : > { %5741 = vmatmul.bf16.gmra.mxu0 %v11169_v10  ;;  %6091 = vmatmul.bf16.gmra.mxu2 %v11169_v10 }
0x10d3   : > { %5746 = vmatmul.bf16.gmra.mxu0 %v11220_v0  ;;  %6096 = vmatmul.bf16.gmra.mxu2 %v11220_v0  ;;  %v8751_v0 = vld [vmem:[%s9040_s4 + $0x1] ss:$0 sm:$0xff] }
0x10e0   : > { %v5052_v1 = vpop.f32.mrf.mxu0 }
0x10e1   : > { %v11372_v55 = vadd.f32 %v8750_v27, %v5052_v1 }
0x10e3   : > { %v5071_v17 = vmul.f32 -1.702, %v11372_v55  ;;  %5751 = vmatmul.bf16.gmra.mxu0 %v11264_v53  ;;  %6101 = vmatmul.bf16.gmra.mxu2 %v11264_v53  ;;  %v11385_v53 = vpop.f32.mrf.mxu1 }
0x10e5   : > { %v5101_v10 = vmul.f32 1.442695, %v5071_v17 }
0x10e6   : > { %v5402_v19 = vpop.f32.mrf.mxu2 }
0x10e7   : > { %v11378_v26 = vadd.f32 %v8751_v0, %v5402_v19  ;;  %8588 = vpow2.f32 %v5101_v10 }
0x10e8   : > { %v5054_v30 = vpop.f32.mrf.mxu0 }
0x10e9   : > { %v5421_v35 = vmul.f32 -1.702, %v11378_v26  ;;  %v5055_v5 = vadd.f32 %v8750_v27, %v5054_v30 }
0x10eb   : > { %v5451_v16 = vmul.f32 1.442695, %v5421_v35  ;;  %v5072_v20 = vmul.f32 -1.702, %v5055_v5  ;;  %v4930_v35 = vadd.f32 %v11298_v41, %v10809_v63 }
0x10ed   : > { %v5103_v18 = vmul.f32 1.442695, %v5072_v20  ;;  %8590 = vpow2.f32 %v5451_v16  ;;  %v8589_v28 = vpop.eup %8588 }
0x10ee   : > { %v5404_v49 = vpop.f32.mrf.mxu2  ;;  %v5119_v13 = vadd.f32 1.0, %v8589_v28 }
0x10ef   : > { %8592 = vpow2.f32 %v5103_v18  ;;  %v11387_v56 = vadd.f32 %v8751_v0, %v5404_v49 }
0x10f0   : > { %v5717_v3 = vpop.f32.mrf.mxu0 }
0x10f1   : > { %v5422_v6 = vmul.f32 -1.702, %v11387_v56  ;;  %v11392_v43 = vadd.f32 %v11382_v59, %v5717_v3 }
0x10f3   : > { %v5453_v39 = vmul.f32 1.442695, %v5422_v6  ;;  %v5757_v44 = vmul.f32 -1.702, %v11392_v43  ;;  %v8591_v36 = vpop.eup %8590 }
0x10f4   : > { %v5469_v51 = vadd.f32 1.0, %v8591_v36 }
0x10f5   : > { %v8593_v57 = vpop.eup %8592  ;;  %8594 = vpow2.f32 %v5453_v39  ;;  %v5773_v32 = vmul.f32 1.442695, %v5757_v44 }
0x10f6   : > { %8596 = vrcp.f32 %v5119_v13  ;;  %v5120_v47 = vadd.f32 1.0, %v8593_v57  ;;  %v5249_v25 = vpop.f32.mrf.mxu1  ;;  %v6067_v46 = vpop.f32.mrf.mxu2 }
0x10f7   : > { %v11401_v61 = vadd.f32 %v11396_v11, %v6067_v46  ;;  %v5280_v3 = vadd.f32 %v5249_v25, %v4930_v35 }
0x10f8   : > { %8598 = vrcp.f32 %v5120_v47  ;;  %v5719_v37 = vpop.f32.mrf.mxu0 }
0x10f9   : > { %8600 = vpow2.f32 %v5773_v32  ;;  %v6107_v58 = vmul.f32 -1.702, %v11401_v61  ;;  %v11406_v8 = vadd.f32 %v11382_v59, %v5719_v37 }
0x10fa   : > { %8602 = vrcp.f32 %v5469_v51 }
0x10fb   : > { %v8595_v1 = vpop.eup %8594  ;;  %v6123_v27 = vmul.f32 1.442695, %v6107_v58  ;;  %v5758_v17 = vmul.f32 -1.702, %v11406_v8 }
0x10fc   : > { %v8597_v10 = vpop.eup %8596  ;;  %v5470_v19 = vadd.f32 1.0, %v8595_v1 }
0x10fd   : > { %8604 = vpow2.f32 %v6123_v27  ;;  %v5775_v0 = vmul.f32 1.442695, %v5758_v17  ;;  %v5151_v45 = vmul.f32 %v8597_v10, %v11372_v55 }
0x10fe   : > { %v8599_v30 = vpop.eup %8598  ;;  %8606 = vrcp.f32 %v5470_v19  ;;  %v11413_v16 = vpop.f32.mrf.mxu1 }
0x10ff   : > { %v6069_v20 = vpop.f32.mrf.mxu2  ;;  %v8601_v18 = vpop.eup %8600  ;;  %v5152_v49 = vmul.f32 %v8599_v30, %v5055_v5  ;;  %8608 = vpow2.f32 %v5775_v0 }
0x1100   : > { %v11417_v28 = vadd.f32 %v11396_v11, %v6069_v20  ;;  %v5722_v52 = vpop.f32.mrf.mxu0  ;;  %v8603_v63 = vpop.eup %8602  ;;  %v5805_v39 = vadd.f32 1.0, %v8601_v18 }
0x1101   : > { %v11421_v31 = vadd.f32 %v11382_v59, %v5722_v52  ;;  %v5160_v13 = vpack.c.bf16 %v5152_v49, %v5151_v45  ;;  %v5501_v46 = vmul.f32 %v8603_v63, %v11378_v26  ;;  %v4932_v49 = vadd.f32 %v11298_v41, %v10837_v21 }
0x1102   : > { %v6108_v6 = vmul.f32 -1.702, %v11417_v28  ;;  %v5599_v44 = vpop.f32.mrf.mxu3 }
0x1103   : > { %v8605_v9 = vpop.eup %8604  ;;  %v5759_v55 = vmul.f32 -1.702, %v11421_v31  ;;  %v11424_v5 = vadd.f32 %v5599_v44, %v5280_v3  ;;  %5268 = vmatmul.bf16.gmra.mxu1 %v5160_v13 }
0x1104   : > { %v6125_v36 = vmul.f32 1.442695, %v6108_v6  ;;  %v8607_v57 = vpop.eup %8606  ;;  %v6155_v1 = vadd.f32 1.0, %v8605_v9 }
0x1105   : > { %v8609_v32 = vpop.eup %8608  ;;  %v5502_v47 = vmul.f32 %v8607_v57, %v11387_v56  ;;  %v5777_v25 = vmul.f32 1.442695, %v5759_v55 }
0x1106   : > { %8610 = vpow2.f32 %v6125_v36  ;;  %v5806_v34 = vadd.f32 1.0, %v8609_v32  ;;  %v5254_v37 = vpop.f32.mrf.mxu1 }
0x1107   : > { %8612 = vrcp.f32 %v5805_v39  ;;  %v6072_v51 = vpop.f32.mrf.mxu2  ;;  %v5510_v17 = vpack.c.bf16 %v5502_v47, %v5501_v46  ;;  %v5282_v9 = vadd.f32 %v5254_v37, %v4932_v49 }
0x1108   : > { %v11429_v58 = vadd.f32 %v11396_v11, %v6072_v51  ;;  %8614 = vrcp.f32 %v5806_v34  ;;  %v5724_v27 = vpop.f32.mrf.mxu0 }
0x1109   : > { %8616 = vpow2.f32 %v5777_v25  ;;  %v11433_v56 = vadd.f32 %v11382_v59, %v5724_v27  ;;  %5618 = vmatmul.bf16.gmra.mxu3 %v5510_v17 }
0x110a   : > { %v6109_v10 = vmul.f32 -1.702, %v11429_v58  ;;  %v11435_v19 = vpop.f32.mrf.mxu3  ;;  %8618 = vrcp.f32 %v6155_v1 }
0x110b   : > { %v5760_v30 = vmul.f32 -1.702, %v11433_v56 }
0x110c   : > { %v8611_v26 = vpop.eup %8610  ;;  %v6127_v0 = vmul.f32 1.442695, %v6109_v10 }
0x110d   : > { %v8613_v35 = vpop.eup %8612  ;;  %v6156_v20 = vadd.f32 1.0, %v8611_v26  ;;  %v5779_v18 = vmul.f32 1.442695, %v5760_v30 }
0x110e   : > { %8620 = vpow2.f32 %v6127_v0  ;;  %v8615_v45 = vpop.eup %8614  ;;  %v5837_v6 = vmul.f32 %v8613_v35, %v11392_v43  ;;  %v5256_v36 = vpop.f32.mrf.mxu1  ;;  %v4933_v0 = vadd.f32 %v11298_v41, %v10849_v23 }
0x110f   : > { %8622 = vrcp.f32 %v6156_v20  ;;  %v6074_v52 = vpop.f32.mrf.mxu2  ;;  %v8617_v3 = vpop.eup %8616  ;;  %v5838_v13 = vmul.f32 %v8615_v45, %v11406_v8 }
0x1110   : > { %8624 = vpow2.f32 %v5779_v18  ;;  %v11443_v63 = vadd.f32 %v11396_v11, %v6074_v52  ;;  %v5727_v39 = vpop.f32.mrf.mxu0  ;;  %v8619_v21 = vpop.eup %8618  ;;  %v5807_v32 = vadd.f32 1.0, %v8617_v3  ;;  %v5283_v18 = vadd.f32 %v5256_v36, %v4933_v0 }
0x1111   : > { %v5853_v44 = vpack.c.bf16 %v5838_v13, %v5837_v6  ;;  %v11447_v57 = vadd.f32 %v11382_v59, %v5727_v39  ;;  %v6187_v37 = vmul.f32 %v8619_v21, %v11401_v61 }
0x1112   : > { %v6110_v55 = vmul.f32 -1.702, %v11443_v63  ;;  %v5604_v47 = vpop.f32.mrf.mxu3 }
0x1113   : > { %v5761_v8 = vmul.f32 -1.702, %v11447_v57  ;;  %v11450_v46 = vadd.f32 %v5604_v47, %v5282_v9  ;;  %5933 = vmatmul.bf16.vlgmr.msrb.gmra.mxu1 %v5853_v44 }
0x1114   : > { %v8621_v25 = vpop.eup %8620  ;;  %v6129_v43 = vmul.f32 1.442695, %v6110_v55 }
0x1115   : > { %v8623_v34 = vpop.eup %8622  ;;  %v5781_v27 = vmul.f32 1.442695, %v5761_v8  ;;  %v6157_v35 = vadd.f32 1.0, %v8621_v25  ;;  %v4934_v25 = vadd.f32 %v11298_v41, %v10860_v12 }
0x1116   : > { %v8625_v51 = vpop.eup %8624  ;;  %v6188_v1 = vmul.f32 %v8623_v34, %v11417_v28  ;;  %8626 = vpow2.f32 %v6129_v43 }
0x1117   : > { %8628 = vrcp.f32 %v5807_v32  ;;  %v5808_v17 = vadd.f32 1.0, %v8625_v51  ;;  %v6077_v10 = vpop.f32.mrf.mxu2  ;;  %v5259_v52 = vpop.f32.mrf.mxu1 }
0x1118   : > { %v6203_v26 = vpack.c.bf16 %v6188_v1, %v6187_v37  ;;  %v11457_v30 = vadd.f32 %v11396_v11, %v6077_v10  ;;  %v5729_v20 = vpop.f32.mrf.mxu0 }
0x1119   : > { %8630 = vrcp.f32 %v5808_v17  ;;  %v11461_v28 = vadd.f32 %v11382_v59, %v5729_v20 }
0x111a   : > { %8632 = vpow2.f32 %v5781_v27  ;;  %v6111_v61 = vmul.f32 -1.702, %v11457_v30  ;;  %6283 = vmatmul.bf16.vlgmr.msra.gmra.mxu0 %v6203_v26  ;;  %v5606_v45 = vpop.f32.mrf.mxu3  ;;  %v5284_v27 = vadd.f32 %v5259_v52, %v4934_v25 }
0x111b   : > { %v5762_v23 = vmul.f32 -1.702, %v11461_v28  ;;  %v11464_v6 = vadd.f32 %v5606_v45, %v5283_v18  ;;  %8634 = vrcp.f32 %v6157_v35 }
0x111c   : > { %v8627_v49 = vpop.eup %8626  ;;  %v6131_v3 = vmul.f32 1.442695, %v6111_v61 }
0x111d   : > { %v8629_v13 = vpop.eup %8628  ;;  %v6158_v39 = vadd.f32 1.0, %v8627_v49  ;;  %v5783_v44 = vmul.f32 1.442695, %v5762_v23 }
0x111e   : > { %8636 = vpow2.f32 %v6131_v3  ;;  %v5839_v21 = vmul.f32 %v8629_v13, %v11421_v31  ;;  %v4935_v13 = vadd.f32 %v11298_v41, %v10872_v22 }
0x111f   : > { %v8631_v9 = vpop.eup %8630  ;;  %8638 = vrcp.f32 %v6158_v39  ;;  %v6079_v36 = vpop.f32.mrf.mxu2 }
0x1120   : > { %v8633_v55 = vpop.eup %8632  ;;  %v5840_v32 = vmul.f32 %v8631_v9, %v11433_v56  ;;  %8640 = vpow2.f32 %v5783_v44  ;;  %v11469_v47 = vadd.f32 %v11396_v11, %v6079_v36  ;;  %v5732_v43 = vpop.f32.mrf.mxu0 }
0x1121   : > { %v11475_v34 = vadd.f32 %v11382_v59, %v5732_v43  ;;  %v8635_v37 = vpop.eup %8634  ;;  %v5809_v1 = vadd.f32 1.0, %v8633_v55  ;;  %v5261_v18 = vpop.f32.mrf.mxu1 }
0x1122   : > { %v6112_v8 = vmul.f32 -1.702, %v11469_v47  ;;  %v5854_v51 = vpack.c.bf16 %v5840_v32, %v5839_v21  ;;  %v6189_v35 = vmul.f32 %v8635_v37, %v11429_v58  ;;  %v5285_v44 = vadd.f32 %v5261_v18, %v4935_v13 }
0x1123   : > { %v5763_v56 = vmul.f32 -1.702, %v11475_v34  ;;  %v5609_v10 = vpop.f32.mrf.mxu3 }
0x1124   : > { %v8637_v31 = vpop.eup %8636  ;;  %v6133_v17 = vmul.f32 1.442695, %v6112_v8  ;;  %5938 = vmatmul.bf16.gmra.mxu1 %v5854_v51  ;;  %v11478_v0 = vadd.f32 %v5609_v10, %v5284_v27 }
0x1125   : > { %v8639_v26 = vpop.eup %8638  ;;  %v5785_v61 = vmul.f32 1.442695, %v5763_v56  ;;  %v6159_v23 = vadd.f32 1.0, %v8637_v31  ;;  %v4936_v56 = vadd.f32 %v11298_v41, %v10883_v40 }
0x1126   : > { %v8641_v12 = vpop.eup %8640  ;;  %v6190_v20 = vmul.f32 %v8639_v26, %v11443_v63  ;;  %8642 = vpow2.f32 %v6133_v17 }
0x1127   : > { %8644 = vrcp.f32 %v5809_v1  ;;  %v5810_v45 = vadd.f32 1.0, %v8641_v12  ;;  %v6082_v49 = vpop.f32.mrf.mxu2 }
0x1128   : > { %v6204_v52 = vpack.c.bf16 %v6190_v20, %v6189_v35  ;;  %v11483_v3 = vadd.f32 %v11396_v11, %v6082_v49  ;;  %v5734_v39 = vpop.f32.mrf.mxu0 }
0x1129   : > { %8646 = vrcp.f32 %v5810_v45  ;;  %v11489_v63 = vadd.f32 %v11382_v59, %v5734_v39  ;;  %v5264_v31 = vpop.f32.mrf.mxu1 }
0x112a   : > { %8648 = vpow2.f32 %v5785_v61  ;;  %v6113_v58 = vmul.f32 -1.702, %v11483_v3  ;;  %6288 = vmatmul.bf16.vlgmr.msrb.gmra.mxu3 %v6204_v52  ;;  %v5286_v61 = vadd.f32 %v5264_v31, %v4936_v56 }
0x112b   : > { %v5764_v55 = vmul.f32 -1.702, %v11489_v63  ;;  %v5611_v21 = vpop.f32.mrf.mxu3  ;;  %8650 = vrcp.f32 %v6159_v23 }
0x112c   : > { %v8643_v9 = vpop.eup %8642  ;;  %v6135_v36 = vmul.f32 1.442695, %v6113_v58  ;;  %v11492_v43 = vadd.f32 %v5611_v21, %v5285_v44 }
0x112d   : > { %v8645_v32 = vpop.eup %8644  ;;  %v6160_v25 = vadd.f32 1.0, %v8643_v9  ;;  %v5787_v22 = vmul.f32 1.442695, %v5764_v55 }
0x112e   : > { %8652 = vpow2.f32 %v6135_v36  ;;  %v5841_v1 = vmul.f32 %v8645_v32, %v11447_v57 }
0x112f   : > { %v8647_v8 = vpop.eup %8646  ;;  %8654 = vrcp.f32 %v6160_v25  ;;  %v6084_v51 = vpop.f32.mrf.mxu2 }
0x1130   : > { %v8649_v37 = vpop.eup %8648  ;;  %v5842_v27 = vmul.f32 %v8647_v8, %v11461_v28  ;;  %8656 = vpow2.f32 %v5787_v22  ;;  %v6085_v17 = vadd.f32 %v11396_v11, %v6084_v51  ;;  %v5737_v10 = vpop.f32.mrf.mxu0 }
0x1131   : > { %v11500_v12 = vadd.f32 %v11382_v59, %v5737_v10  ;;  %v8651_v20 = vpop.eup %8650  ;;  %v5811_v18 = vadd.f32 1.0, %v8649_v37 }
0x1132   : > { %v6114_v26 = vmul.f32 -1.702, %v6085_v17  ;;  %v5855_v35 = vpack.c.bf16 %v5842_v27, %v5841_v1  ;;  %v6191_v40 = vmul.f32 %v8651_v20, %v11457_v30 }
0x1133   : > { %v5765_v28 = vmul.f32 -1.702, %v11500_v12  ;;  %v5614_v49 = vpop.f32.mrf.mxu3 }
0x1134   : > { %v8653_v45 = vpop.eup %8652  ;;  %v6137_v57 = vmul.f32 1.442695, %v6114_v26  ;;  %5943 = vmatmul.bf16.gmra.mxu1 %v5855_v35  ;;  %v11503_v23 = vadd.f32 %v5614_v49, %v5286_v61 }
0x1135   : > { %v8655_v52 = vpop.eup %8654  ;;  %v5789_v39 = vmul.f32 1.442695, %v5765_v28  ;;  %v6161_v55 = vadd.f32 1.0, %v8653_v45 }
0x1136   : > { %v8657_v13 = vpop.eup %8656  ;;  %v6192_v41 = vmul.f32 %v8655_v52, %v11469_v47  ;;  %8658 = vpow2.f32 %v6137_v57 }
0x1137   : > { %8660 = vrcp.f32 %v5811_v18  ;;  %v5812_v58 = vadd.f32 1.0, %v8657_v13  ;;  %v6087_v44 = vpop.f32.mrf.mxu2 }
0x1138   : > { %v11508_v9 = vadd.f32 %v11396_v11, %v6087_v44  ;;  %v6205_v36 = vpack.c.bf16 %v6192_v41, %v6191_v40  ;;  %v5739_v21 = vpop.f32.mrf.mxu0 }
0x1139   : > { %8662 = vrcp.f32 %v5812_v58  ;;  %v5740_v25 = vadd.f32 %v11382_v59, %v5739_v21 }
0x113a   : > { %8664 = vpow2.f32 %v5789_v39  ;;  %v6115_v32 = vmul.f32 -1.702, %v11508_v9  ;;  %6293 = vmatmul.bf16.gmra.mxu3 %v6205_v36 }
0x113b   : > { %v5766_v22 = vmul.f32 -1.702, %v5740_v25  ;;  %8666 = vrcp.f32 %v6161_v55 }
0x113c   : > { %v8659_v30 = vpop.eup %8658  ;;  %v6139_v47 = vmul.f32 1.442695, %v6115_v32 }
0x113d   : > { %v8661_v8 = vpop.eup %8660  ;;  %v6162_v51 = vadd.f32 1.0, %v8659_v30  ;;  %v5791_v37 = vmul.f32 1.442695, %v5766_v22 }
0x113e   : > { %8668 = vpow2.f32 %v6139_v47  ;;  %v5843_v56 = vmul.f32 %v8661_v8, %v11475_v34 }
0x113f   : > { %v8663_v1 = vpop.eup %8662  ;;  %8670 = vrcp.f32 %v6162_v51  ;;  %v6089_v27 = vpop.f32.mrf.mxu2 }
0x1140   : > { %v8665_v31 = vpop.eup %8664  ;;  %v5844_v10 = vmul.f32 %v8663_v1, %v11489_v63  ;;  %8672 = vpow2.f32 %v5791_v37  ;;  %v6090_v26 = vadd.f32 %v11396_v11, %v6089_v27  ;;  %v5742_v35 = vpop.f32.mrf.mxu0 }
0x1141   : > { %v11516_v18 = vadd.f32 %v11382_v59, %v5742_v35  ;;  %v8667_v45 = vpop.eup %8666  ;;  %v5813_v57 = vadd.f32 1.0, %v8665_v31 }
0x1142   : > { %v6116_v20 = vmul.f32 -1.702, %v6090_v26  ;;  %v5856_v61 = vpack.c.bf16 %v5844_v10, %v5843_v56  ;;  %v6193_v63 = vmul.f32 %v8667_v45, %v11483_v3 }
0x1143   : > { %v5767_v52 = vmul.f32 -1.702, %v11516_v18 }
0x1144   : > { %v8669_v28 = vpop.eup %8668  ;;  %v6141_v49 = vmul.f32 1.442695, %v6116_v20  ;;  %5948 = vmatmul.bf16.gmra.mxu1 %v5856_v61 }
0x1145   : > { %v8671_v13 = vpop.eup %8670  ;;  %v5793_v41 = vmul.f32 1.442695, %v5767_v52  ;;  %v6163_v55 = vadd.f32 1.0, %v8669_v28 }
0x1146   : > { %v8673_v34 = vpop.eup %8672  ;;  %v6194_v40 = vmul.f32 %v8671_v13, %v6085_v17  ;;  %8674 = vpow2.f32 %v6141_v49 }
0x1147   : > { %8676 = vrcp.f32 %v5813_v57  ;;  %v5814_v39 = vadd.f32 1.0, %v8673_v34  ;;  %v6092_v58 = vpop.f32.mrf.mxu2 }
0x1148   : > { %v11521_v44 = vadd.f32 %v11396_v11, %v6092_v58  ;;  %v6206_v36 = vpack.c.bf16 %v6194_v40, %v6193_v63  ;;  %v5744_v21 = vpop.f32.mrf.mxu0 }
0x1149   : > { %8678 = vrcp.f32 %v5814_v39  ;;  %v5745_v30 = vadd.f32 %v11382_v59, %v5744_v21 }
0x114a   : > { %8680 = vpow2.f32 %v5793_v41  ;;  %v6117_v32 = vmul.f32 -1.702, %v11521_v44  ;;  %6298 = vmatmul.bf16.gmra.mxu3 %v6206_v36 }
0x114b   : > { %v5768_v47 = vmul.f32 -1.702, %v5745_v30  ;;  %8682 = vrcp.f32 %v6163_v55 }
0x114c   : > { %v8675_v3 = vpop.eup %8674  ;;  %v6143_v17 = vmul.f32 1.442695, %v6117_v32 }
0x114d   : > { %v8677_v22 = vpop.eup %8676  ;;  %v6164_v8 = vadd.f32 1.0, %v8675_v3  ;;  %v5795_v51 = vmul.f32 1.442695, %v5768_v47 }
0x114e   : > { %8684 = vpow2.f32 %v6143_v17  ;;  %v5845_v31 = vmul.f32 %v8677_v22, %v11500_v12 }
0x114f   : > { %v8679_v37 = vpop.eup %8678  ;;  %8686 = vrcp.f32 %v6164_v8  ;;  %v6094_v1 = vpop.f32.mrf.mxu2 }
0x1150   : > { %v8681_v27 = vpop.eup %8680  ;;  %v5846_v56 = vmul.f32 %v8679_v37, %v5740_v25  ;;  %8688 = vpow2.f32 %v5795_v51  ;;  %v6095_v10 = vadd.f32 %v11396_v11, %v6094_v1  ;;  %v5747_v35 = vpop.f32.mrf.mxu0 }
0x1151   : > { %v11528_v61 = vadd.f32 %v11382_v59, %v5747_v35  ;;  %v8683_v57 = vpop.eup %8682  ;;  %v5815_v28 = vadd.f32 1.0, %v8681_v27 }
0x1152   : > { %v6118_v20 = vmul.f32 -1.702, %v6095_v10  ;;  %v5857_v45 = vpack.c.bf16 %v5846_v56, %v5845_v31  ;;  %v6195_v12 = vmul.f32 %v8683_v57, %v11508_v9 }
0x1153   : > { %v5769_v13 = vmul.f32 -1.702, %v11528_v61 }
0x1154   : > { %v8685_v49 = vpop.eup %8684  ;;  %v6145_v52 = vmul.f32 1.442695, %v6118_v20  ;;  %5953 = vmatmul.bf16.gmra.mxu1 %v5857_v45 }
0x1155   : > { %v8687_v34 = vpop.eup %8686  ;;  %v5797_v40 = vmul.f32 1.442695, %v5769_v13  ;;  %v6165_v55 = vadd.f32 1.0, %v8685_v49 }
0x1156   : > { %v8689_v63 = vpop.eup %8688  ;;  %v6196_v25 = vmul.f32 %v8687_v34, %v6090_v26  ;;  %8690 = vpow2.f32 %v6145_v52 }
0x1157   : > { %8692 = vrcp.f32 %v5815_v28  ;;  %v5816_v41 = vadd.f32 1.0, %v8689_v63  ;;  %v6097_v39 = vpop.f32.mrf.mxu2 }
0x1158   : > { %v11533_v58 = vadd.f32 %v11396_v11, %v6097_v39  ;;  %v6207_v36 = vpack.c.bf16 %v6196_v25, %v6195_v12  ;;  %v5749_v21 = vpop.f32.mrf.mxu0 }
0x1159   : > { %8694 = vrcp.f32 %v5816_v41  ;;  %v5750_v3 = vadd.f32 %v11382_v59, %v5749_v21 }
0x115a   : > { %8696 = vpow2.f32 %v5797_v40  ;;  %v6119_v32 = vmul.f32 -1.702, %v11533_v58  ;;  %6303 = vmatmul.bf16.gmra.mxu3 %v6207_v36 }
0x115b   : > { %v5770_v17 = vmul.f32 -1.702, %v5750_v3  ;;  %8698 = vrcp.f32 %v6165_v55 }
0x115c   : > { %v8691_v9 = vpop.eup %8690  ;;  %v6147_v26 = vmul.f32 1.442695, %v6119_v32 }
0x115d   : > { %v8693_v47 = vpop.eup %8692  ;;  %v6166_v22 = vadd.f32 1.0, %v8691_v9  ;;  %v5799_v8 = vmul.f32 1.442695, %v5770_v17 }
0x115e   : > { %8700 = vpow2.f32 %v6147_v26  ;;  %v5847_v27 = vmul.f32 %v8693_v47, %v11516_v18 }
0x115f   : > { %v8695_v51 = vpop.eup %8694  ;;  %8702 = vrcp.f32 %v6166_v22  ;;  %v6099_v37 = vpop.f32.mrf.mxu2 }
0x1160   : > { %v8697_v1 = vpop.eup %8696  ;;  %v5848_v31 = vmul.f32 %v8695_v51, %v5745_v30  ;;  %8704 = vpow2.f32 %v5799_v8  ;;  %v6100_v56 = vadd.f32 %v11396_v11, %v6099_v37  ;;  %v5752_v35 = vpop.f32.mrf.mxu0 }
0x1161   : > { %v11540_v45 = vadd.f32 %v11382_v59, %v5752_v35  ;;  %v8699_v28 = vpop.eup %8698  ;;  %v5817_v49 = vadd.f32 1.0, %v8697_v1 }
0x1162   : > { %v6120_v20 = vmul.f32 -1.702, %v6100_v56  ;;  %v5858_v57 = vpack.c.bf16 %v5848_v31, %v5847_v27  ;;  %v6197_v18 = vmul.f32 %v8699_v28, %v11521_v44 }
0x1163   : > { %v5771_v34 = vmul.f32 -1.702, %v11540_v45 }
0x1164   : > { %v8701_v52 = vpop.eup %8700  ;;  %v6149_v13 = vmul.f32 1.442695, %v6120_v20  ;;  %5958 = vmatmul.bf16.gmra.mxu1 %v5858_v57 }
0x1165   : > { %v8703_v63 = vpop.eup %8702  ;;  %v5801_v25 = vmul.f32 1.442695, %v5771_v34  ;;  %v6167_v55 = vadd.f32 1.0, %v8701_v52 }
0x1166   : > { %v8705_v12 = vpop.eup %8704  ;;  %v6198_v30 = vmul.f32 %v8703_v63, %v6095_v10  ;;  %8706 = vpow2.f32 %v6149_v13 }
0x1167   : > { %8708 = vrcp.f32 %v5817_v49  ;;  %v5818_v40 = vadd.f32 1.0, %v8705_v12  ;;  %v6102_v41 = vpop.f32.mrf.mxu2 }
0x1168   : > { %v6103_v39 = vadd.f32 %v11396_v11, %v6102_v41  ;;  %v6208_v36 = vpack.c.bf16 %v6198_v30, %v6197_v18  ;;  %v5754_v21 = vpop.f32.mrf.mxu0 }
0x1169   : > { %8710 = vrcp.f32 %v5818_v40  ;;  %v5755_v9 = vadd.f32 %v11382_v59, %v5754_v21 }
0x116a   : > { %8712 = vpow2.f32 %v5801_v25  ;;  %v6121_v32 = vmul.f32 -1.702, %v6103_v39  ;;  %6308 = vmatmul.bf16.gmra.mxu3 %v6208_v36 }
0x116b   : > { %v5772_v44 = vmul.f32 -1.702, %v5755_v9  ;;  %8714 = vrcp.f32 %v6167_v55 }
0x116c   : > { %v8707_v26 = vpop.eup %8706  ;;  %v6151_v17 = vmul.f32 1.442695, %v6121_v32  ;;  %v11552_v32 = vpop.f32.mrf.mxu3 }
0x116d   : > { %v8709_v10 = vpop.eup %8708  ;;  %v6168_v47 = vadd.f32 1.0, %v8707_v26  ;;  %v5803_v22 = vmul.f32 1.442695, %v5772_v44 }
0x116e   : > { %8716 = vpow2.f32 %v6151_v17  ;;  %v5849_v1 = vmul.f32 %v8709_v10, %v11528_v61 }
0x116f   : > { %v8711_v8 = vpop.eup %8710  ;;  %8718 = vrcp.f32 %v6168_v47  ;;  %v6104_v51 = vpop.f32.mrf.mxu2  ;;  %v11555_v47 = vld [vmem:[%s9051_s0] ss:$0 sm:$0xff] }
0x1170   : > { %v8713_v37 = vpop.eup %8712  ;;  %v5850_v27 = vmul.f32 %v8711_v8, %v5750_v3  ;;  %8720 = vpow2.f32 %v5803_v22  ;;  %v6105_v31 = vadd.f32 %v11396_v11, %v6104_v51  ;;  %v11549_v3 = vpop.f32.mrf.mxu1  ;;  %v4938_v22 = vadd.f32 %v11555_v47, %v10896_v54 }
0x1171   : > { %v8715_v20 = vpop.eup %8714  ;;  %v5819_v57 = vadd.f32 1.0, %v8713_v37  ;;  %v4939_v37 = vadd.f32 %v11555_v47, %v10958_v14 }
0x1172   : > { %v6122_v59 = vmul.f32 -1.702, %v6105_v31  ;;  %v5859_v35 = vpack.c.bf16 %v5850_v27, %v5849_v1  ;;  %v6199_v34 = vmul.f32 %v8715_v20, %v11533_v58 }
0x1174   : > { %v8717_v28 = vpop.eup %8716  ;;  %v6153_v49 = vmul.f32 1.442695, %v6122_v59  ;;  %5963 = vmatmul.bf16.gmra.mxu1 %v5859_v35  ;;  %v4925_v35 = vadd.f32 %v11555_v47, %v10777_v24 }
0x1175   : > { %v8719_v52 = vpop.eup %8718  ;;  %v6169_v18 = vadd.f32 1.0, %v8717_v28 }
0x1176   : > { %v8721_v13 = vpop.eup %8720  ;;  %v6200_v63 = vmul.f32 %v8719_v52, %v6100_v56  ;;  %8722 = vpow2.f32 %v6153_v49 }
0x1177   : > { %8724 = vrcp.f32 %v5819_v57  ;;  %v5820_v12 = vadd.f32 1.0, %v8721_v13  ;;  %v5275_v57 = vadd.f32 %v11309_v60, %v4925_v35 }
0x1178   : > { %v6209_v61 = vpack.c.bf16 %v6200_v63, %v6199_v34  ;;  %v4927_v63 = vadd.f32 %v11555_v47, %v10790_v4  ;;  %v4929_v4 = vadd.f32 %v11555_v47, %v10803_v38  ;;  %v4931_v38 = vadd.f32 %v11555_v47, %v10826_v48 }
0x1179   : > { %8726 = vrcp.f32 %v5820_v12  ;;  %v5625_v28 = vadd.f32 %v11330_v2, %v5275_v57 }
0x117a   : > { %6313 = vmatmul.bf16.gmra.mxu3 %v6209_v61  ;;  %8728 = vrcp.f32 %v6169_v18  ;;  %v5277_v60 = vadd.f32 %v11344_v15, %v4927_v63  ;;  %v5279_v15 = vadd.f32 %v11385_v53, %v4929_v4  ;;  %v5281_v53 = vadd.f32 %v11413_v16, %v4931_v38 }
0x117c   : > { %v8723_v11 = vpop.eup %8722  ;;  %v5627_v61 = vadd.f32 %v11348_v62, %v5277_v60 }
0x117d   : > { %v8725_v30 = vpop.eup %8724  ;;  %v6170_v25 = vadd.f32 1.0, %v8723_v11 }
0x117e   : > { %v5851_v41 = vmul.f32 %v8725_v30, %v11540_v45 }
0x117f   : > { %v8727_v40 = vpop.eup %8726  ;;  %8730 = vrcp.f32 %v6170_v25 }
0x1180   : > { %v5852_v58 = vmul.f32 %v8727_v40, %v5755_v9  ;;  %v5269_v56 = vpop.f32.mrf.mxu1  ;;  %v8729_v55 = vpop.eup %8728 }
0x1181   : > { %v6201_v26 = vmul.f32 %v8729_v55, %v6103_v39  ;;  %v5288_v8 = vadd.f32 %v5269_v56, %v4938_v22 }
0x1182   : > { %v5860_v36 = vpack.c.bf16 %v5852_v58, %v5851_v41  ;;  %v5629_v58 = vadd.f32 %v11408_v29, %v5279_v15 }
0x1184   : > { %5968 = vmatmul.bf16.gmra.mxu1 %v5860_v36 }
0x1185   : > { %v8731_v21 = vpop.eup %8730 }
0x1186   : > { %v6202_v17 = vmul.f32 %v8731_v21, %v6105_v31 }
0x1188   : > { %v6210_v44 = vpack.c.bf16 %v6202_v17, %v6201_v26  ;;  %v5271_v10 = vpop.f32.mrf.mxu1 }
0x1189   : > { %v5289_v1 = vadd.f32 %v5271_v10, %v4939_v37 }
0x118a   : > { %6318 = vmatmul.bf16.gmra.mxu3 %v6210_v44  ;;  %v5631_v44 = vadd.f32 %v11435_v19, %v5281_v53 }
0x118c   : > { %v5619_v45 = vpop.f32.mrf.mxu3 }
0x118d   : > { %v11559_v9 = vadd.f32 %v5619_v45, %v5288_v8 }
0x1190   : > { %v5934_v51 = vpop.f32.mrf.mxu1 }
0x1191   : > { %v5974_v39 = vadd.f32 %v5934_v51, %v11315_v42 }
0x1194   : > { %v5621_v27 = vpop.f32.mrf.mxu3 }
0x1195   : > { %v11564_v31 = vadd.f32 %v5621_v27, %v5289_v1 }
0x1197   : > { %v6284_v59 = vpop.f32.mrf.mxu0 }
0x1198   : > { %v11568_v20 = vadd.f32 %v6284_v59, %v5974_v39  ;;  %v5936_v54 = vpop.f32.mrf.mxu1 }
0x1199   : > { %v5975_v14 = vadd.f32 %v5936_v54, %v5625_v28 }
0x119a   : > { %6340 = vst [vmem:[#allocation2 + $0x30] sm:$0xff] %v11568_v20 }
0x119f   : > { %v6286_v49 = vpop.f32.mrf.mxu0 }
0x11a0   : > { %v11573_v52 = vadd.f32 %v6286_v49, %v5975_v14 }
0x11a1   : > { %v5939_v42 = vpop.f32.mrf.mxu1 }
0x11a2   : > { %6341 = vst [vmem:[#allocation2] sm:$0xff] %v11573_v52  ;;  %v5976_v34 = vadd.f32 %v5939_v42, %v11342_v7 }
0x11a9   : > { %v5941_v13 = vpop.f32.mrf.mxu1 }
0x11aa   : > { %v5977_v18 = vadd.f32 %v5941_v13, %v5627_v61 }
0x11ad   : > { %v6289_v24 = vpop.f32.mrf.mxu3 }
0x11ae   : > { %v11579_v12 = vadd.f32 %v6289_v24, %v5976_v34 }
0x11b0   : > { %6342 = vst [vmem:[#allocation2 + $0x58] sm:$0xff] %v11579_v12 }
0x11b1   : > { %v5944_v2 = vpop.f32.mrf.mxu1 }
0x11b2   : > { %v5978_v25 = vadd.f32 %v5944_v2, %v11358_v50 }
0x11b5   : > { %v6291_v11 = vpop.f32.mrf.mxu3 }
0x11b6   : > { %v11584_v30 = vadd.f32 %v6291_v11, %v5977_v18 }
0x11b8   : > { %6343 = vst [vmem:[#allocation2 + $0x18] sm:$0xff] %v11584_v30 }
0x11b9   : > { %v5946_v7 = vpop.f32.mrf.mxu1 }
0x11ba   : > { %v5979_v56 = vadd.f32 %v5946_v7, %v5629_v58 }
0x11bd   : > { %v6294_v40 = vpop.f32.mrf.mxu3 }
0x11be   : > { %v11590_v41 = vadd.f32 %v6294_v40, %v5978_v25 }
0x11c0   : > { %6344 = vst [vmem:[#allocation2 + $0x50] sm:$0xff] %v11590_v41 }
0x11c1   : > { %v5949_v62 = vpop.f32.mrf.mxu1 }
0x11c2   : > { %v5980_v21 = vadd.f32 %v5949_v62, %v11424_v5 }
0x11c5   : > { %v6296_v36 = vpop.f32.mrf.mxu3 }
0x11c6   : > { %v11595_v55 = vadd.f32 %v6296_v36, %v5979_v56 }
0x11c8   : > { %6345 = vst [vmem:[#allocation2 + $0x68] sm:$0xff] %v11595_v55 }
0x11c9   : > { %v5951_v50 = vpop.f32.mrf.mxu1 }
0x11ca   : > { %v5981_v10 = vadd.f32 %v5951_v50, %v5631_v44 }
0x11cd   : > { %v6299_v26 = vpop.f32.mrf.mxu3 }
0x11ce   : > { %v11601_v17 = vadd.f32 %v6299_v26, %v5980_v21 }
0x11d0   : > { %6346 = vst [vmem:[#allocation2 + $0x8] sm:$0xff] %v11601_v17 }
0x11d1   : > { %v5954_v29 = vpop.f32.mrf.mxu1 }
0x11d2   : > { %v5982_v45 = vadd.f32 %v5954_v29, %v11450_v46 }
0x11d5   : > { %v6301_v22 = vpop.f32.mrf.mxu3 }
0x11d6   : > { %v11606_v8 = vadd.f32 %v6301_v22, %v5981_v10 }
0x11d8   : > { %6347 = vst [vmem:[#allocation2 + $0x48] sm:$0xff] %v11606_v8 }
0x11d9   : > { %v5956_v5 = vpop.f32.mrf.mxu1 }
0x11da   : > { %v5983_v37 = vadd.f32 %v5956_v5, %v11464_v6 }
0x11dd   : > { %v6304_v51 = vpop.f32.mrf.mxu3 }
0x11de   : > { %v11610_v48 = vadd.f32 %v6304_v51, %v5982_v45 }
0x11e0   : > { %6348 = vst [vmem:[#allocation2 + $0x40] sm:$0xff] %v11610_v48 }
0x11e1   : > { %v5959_v16 = vpop.f32.mrf.mxu1 }
0x11e2   : > { %v5984_v27 = vadd.f32 %v5959_v16, %v11478_v0  ;;  %v4937_v0 = vadd.f32 %v11555_v47, %v10891_v33 }
0x11e4   : > { %v5287_v13 = vadd.f32 %v11549_v3, %v4937_v0 }
0x11e5   : > { %v6306_v1 = vpop.f32.mrf.mxu3 }
0x11e6   : > { %v11614_v39 = vadd.f32 %v6306_v1, %v5983_v37 }
0x11e8   : > { %6349 = vst [vmem:[#allocation2 + $0x20] sm:$0xff] %v11614_v39 }
0x11e9   : > { %v5961_v19 = vpop.f32.mrf.mxu1 }
0x11ea   : > { %v5985_v54 = vadd.f32 %v5961_v19, %v11492_v43  ;;  %v5637_v43 = vadd.f32 %v11552_v32, %v5287_v13 }
0x11ed   : > { %v6309_v59 = vpop.f32.mrf.mxu3 }
0x11ee   : > { %v11618_v35 = vadd.f32 %v6309_v59, %v5984_v27 }
0x11f0   : > { %6350 = vst [vmem:[#allocation2 + $0x10] sm:$0xff] %v11618_v35 }
0x11f1   : > { %v5964_v46 = vpop.f32.mrf.mxu1 }
0x11f2   : > { %v5986_v6 = vadd.f32 %v5964_v46, %v11503_v23 }
0x11f5   : > { %v6311_v57 = vpop.f32.mrf.mxu3 }
0x11f6   : > { %v11622_v28 = vadd.f32 %v6311_v57, %v5985_v54 }
0x11f8   : > { %6351 = vst [vmem:[#allocation2 + $0x38] sm:$0xff] %v11622_v28 }
0x11f9   : > { %v5966_v14 = vpop.f32.mrf.mxu1 }
0x11fa   : > { %v5987_v34 = vadd.f32 %v5966_v14, %v5637_v43 }
0x11fd   : > { %v6314_v49 = vpop.f32.mrf.mxu3 }
0x11fe   : > { %v11628_v42 = vadd.f32 %v6314_v49, %v5986_v6 }
0x1200   : > { %6352 = vst [vmem:[#allocation2 + $0x60] sm:$0xff] %v11628_v42 }
0x1201   : > { %v5969_v60 = vpop.f32.mrf.mxu1 }
0x1202   : > { %v5988_v23 = vadd.f32 %v5969_v60, %v11559_v9 }
0x1205   : > { %v6316_v24 = vpop.f32.mrf.mxu3 }
0x1206   : > { %v11633_v63 = vadd.f32 %v6316_v24, %v5987_v34 }
0x1208   : > { %6353 = vst [vmem:[#allocation2 + $0x70] sm:$0xff] %v11633_v63 }
0x1209   : > { %v5971_v33 = vpop.f32.mrf.mxu1 }
0x120a   : > { %v5989_v3 = vadd.f32 %v5971_v33, %v11564_v31 }
0x120d   : > { %v6319_v2 = vpop.f32.mrf.mxu3 }
0x120e   : > { %v11637_v61 = vadd.f32 %v6319_v2, %v5988_v23 }
0x1210   : > { %6354 = vst [vmem:[#allocation2 + $0x78] sm:$0xff] %v11637_v61 }
0x1214   : > { %6359 = sbr.rel (%p7903_p8) target bundleno = 4949 (0x1355), region = 104 }
0x1215   : > { %v6321_v47 = vpop.f32.mrf.mxu3 }
0x1216   : > { %v11641_v18 = vadd.f32 %v6321_v47, %v5989_v3 }
0x1218   : > { %6355 = vst [vmem:[#allocation2 + $0x28] sm:$0xff] %v11641_v18 }
0x1219   : > { %6370 = vadd.xlane.f32.xlu2 %v11590_v41  ;;  %6366 = vadd.xlane.f32.xlu1 %v11579_v12  ;;  %v12208_v31 = vld [vmem:[#allocation11_spill] sm:$0xff] }
0x121a   : > { %6362 = vadd.xlane.f32.xlu0 %v11568_v20 }
0x1221   : > { %6372 = vadd.xlane.f32.xlu2 %v11595_v55  ;;  %6368 = vadd.xlane.f32.xlu1 %v11584_v30 }
0x1222   : > { %6364 = vadd.xlane.f32.xlu0 %v11573_v52 }
0x1229   : > { %6378 = vadd.xlane.f32.xlu2 %v11610_v48  ;;  %6376 = vadd.xlane.f32.xlu1 %v11606_v8 }
0x122a   : > { %6374 = vadd.xlane.f32.xlu0 %v11601_v17 }
0x1231   : > { %6384 = vadd.xlane.f32.xlu2 %v11622_v28  ;;  %6382 = vadd.xlane.f32.xlu1 %v11618_v35 }
0x1232   : > { %6380 = vadd.xlane.f32.xlu0 %v11614_v39 }
0x1239   : > { %6390 = vadd.xlane.f32.xlu2 %v11637_v61  ;;  %6388 = vadd.xlane.f32.xlu1 %v11633_v63 }
0x123a   : > { %6386 = vadd.xlane.f32.xlu0 %v11628_v42 }
0x1242   : > { %6392 = vadd.xlane.f32.xlu0 %v11641_v18 }
0x128c   : > { %v6371_v32 = vpop.xlane.xlu2 %6370  ;;  %v6367_v9 = vpop.xlane.xlu1 %6366 }
0x128d   : > { %v6396_v11 = vmul.f32 %v6367_v9, %v12208_v31  ;;  %v6363_v7 = vpop.xlane.xlu0 %6362  ;;  %v6398_v44 = vmul.f32 %v6371_v32, %v12208_v31 }
0x128e   : > { %v6394_v25 = vmul.f32 %v6363_v7, %v12208_v31 }
0x128f   : > { %v11664_v40 = vsub.f32 %v11579_v12, %v6396_v11  ;;  %v11694_v5 = vsub.f32 %v11590_v41, %v6398_v44 }
0x1290   : > { %v11667_v4 = vsub.f32 %v11568_v20, %v6394_v25 }
0x1291   : > { %v6428_v15 = vmul.f32 %v11664_v40, %v11664_v40  ;;  %v6430_v19 = vmul.f32 %v11694_v5, %v11694_v5 }
0x1292   : > { %v6426_v62 = vmul.f32 %v11667_v4, %v11667_v4 }
0x1293   : > { %6446 = vadd.xlane.f32.xlu0 %v6428_v15 }
0x1294   : > { %6442 = vadd.xlane.f32.xlu1 %v6426_v62  ;;  %v6373_v58 = vpop.xlane.xlu2 %6372  ;;  %v6369_v56 = vpop.xlane.xlu1 %6368 }
0x1295   : > { %v6399_v36 = vmul.f32 %v6373_v58, %v12208_v31  ;;  %v6397_v50 = vmul.f32 %v6369_v56, %v12208_v31  ;;  %v6365_v21 = vpop.xlane.xlu0 %6364 }
0x1296   : > { %v6395_v12 = vmul.f32 %v6365_v21, %v12208_v31 }
0x1297   : > { %v11677_v20 = vsub.f32 %v11595_v55, %v6399_v36  ;;  %v11680_v26 = vsub.f32 %v11584_v30, %v6397_v50 }
0x1298   : > { %v11683_v38 = vsub.f32 %v11573_v52, %v6395_v12 }
0x1299   : > { %v6431_v53 = vmul.f32 %v11677_v20, %v11677_v20  ;;  %v6429_v29 = vmul.f32 %v11680_v26, %v11680_v26 }
0x129a   : > { %v6427_v10 = vmul.f32 %v11683_v38, %v11683_v38 }
0x129b   : > { %6452 = vadd.xlane.f32.xlu0 %v6431_v53 }
0x129c   : > { %6448 = vadd.xlane.f32.xlu1 %v6429_v29  ;;  %6444 = vadd.xlane.f32.xlu2 %v6427_v10  ;;  %v6379_v55 = vpop.xlane.xlu2 %6378  ;;  %v6377_v30 = vpop.xlane.xlu1 %6376 }
0x129d   : > { %v6402_v22 = vmul.f32 %v6379_v55, %v12208_v31  ;;  %v6375_v52 = vpop.xlane.xlu0 %6374  ;;  %v6401_v37 = vmul.f32 %v6377_v30, %v12208_v31 }
0x129e   : > { %v6400_v45 = vmul.f32 %v6375_v52, %v12208_v31 }
0x129f   : > { %v11698_v51 = vsub.f32 %v11610_v48, %v6402_v22  ;;  %v11711_v48 = vsub.f32 %v11606_v8, %v6401_v37 }
0x12a0   : > { %v11701_v16 = vsub.f32 %v11601_v17, %v6400_v45 }
0x12a1   : > { %v6434_v1 = vmul.f32 %v11698_v51, %v11698_v51  ;;  %v6433_v14 = vmul.f32 %v11711_v48, %v11711_v48 }
0x12a2   : > { %v6432_v41 = vmul.f32 %v11701_v16, %v11701_v16 }
0x12a3   : > { %6458 = vadd.xlane.f32.xlu0 %v6434_v1 }
0x12a4   : > { %6450 = vadd.xlane.f32.xlu2 %v6430_v19  ;;  %6454 = vadd.xlane.f32.xlu1 %v6432_v41  ;;  %v6385_v27 = vpop.xlane.xlu2 %6384  ;;  %v6383_v17 = vpop.xlane.xlu1 %6382 }
0x12a5   : > { %v6405_v59 = vmul.f32 %v6385_v27, %v12208_v31  ;;  %v6381_v46 = vpop.xlane.xlu0 %6380  ;;  %v6404_v49 = vmul.f32 %v6383_v17, %v12208_v31 }
0x12a6   : > { %v6403_v54 = vmul.f32 %v6381_v46, %v12208_v31 }
0x12a7   : > { %v11716_v57 = vsub.f32 %v11622_v28, %v6405_v59  ;;  %v11729_v28 = vsub.f32 %v11618_v35, %v6404_v49 }
0x12a8   : > { %v11719_v6 = vsub.f32 %v11614_v39, %v6403_v54 }
0x12a9   : > { %v6437_v8 = vmul.f32 %v11716_v57, %v11716_v57  ;;  %v6436_v2 = vmul.f32 %v11729_v28, %v11729_v28 }
0x12aa   : > { %v6435_v0 = vmul.f32 %v11719_v6, %v11719_v6 }
0x12ab   : > { %6464 = vadd.xlane.f32.xlu0 %v6437_v8 }
0x12ac   : > { %6456 = vadd.xlane.f32.xlu2 %v6433_v14  ;;  %6460 = vadd.xlane.f32.xlu1 %v6435_v0  ;;  %v6391_v13 = vpop.xlane.xlu2 %6390  ;;  %v6389_v34 = vpop.xlane.xlu1 %6388 }
0x12ad   : > { %v6408_v39 = vmul.f32 %v6391_v13, %v12208_v31  ;;  %v6387_v43 = vpop.xlane.xlu0 %6386  ;;  %v6407_v33 = vmul.f32 %v6389_v34, %v12208_v31 }
0x12ae   : > { %v6406_v24 = vmul.f32 %v6387_v43, %v12208_v31 }
0x12af   : > { %v11734_v60 = vsub.f32 %v11637_v61, %v6408_v39  ;;  %v11747_v61 = vsub.f32 %v11633_v63, %v6407_v33 }
0x12b0   : > { %v11737_v23 = vsub.f32 %v11628_v42, %v6406_v24  ;;  %v11787_v24 = vld [vmem:[%s12209_s28] ss:$0 sm:$0xff] }
0x12b1   : > { %v6440_v35 = vmul.f32 %v11734_v60, %v11734_v60  ;;  %v6439_v9 = vmul.f32 %v11747_v61, %v11747_v61 }
0x12b2   : > { %v6438_v3 = vmul.f32 %v11737_v23, %v11737_v23 }
0x12b3   : > { %6470 = vadd.xlane.f32.xlu0 %v6440_v35 }
0x12b4   : > { %6462 = vadd.xlane.f32.xlu2 %v6436_v2  ;;  %6466 = vadd.xlane.f32.xlu1 %v6438_v3 }
0x12b5   : > { %v6393_v47 = vpop.xlane.xlu0 %6392 }
0x12b6   : > { %v6409_v42 = vmul.f32 %v6393_v47, %v12208_v31 }
0x12b8   : > { %v11751_v32 = vsub.f32 %v11641_v18, %v6409_v42 }
0x12ba   : > { %v6441_v11 = vmul.f32 %v11751_v32, %v11751_v32 }
0x12bc   : > { %6468 = vadd.xlane.f32.xlu2 %v6439_v9  ;;  %6472 = vadd.xlane.f32.xlu1 %v6441_v11  ;;  %v11802_v11 = vld [vmem:[%s12210_s3] ss:$0 sm:$0xff] }
0x1306   : > { %v6447_v7 = vpop.xlane.xlu0 %6446 }
0x1307   : > { %v6443_v25 = vpop.xlane.xlu1 %6442  ;;  %v6476_v15 = vmul.f32 %v6447_v7, %v12208_v31 }
0x1308   : > { %v6474_v63 = vmul.f32 %v6443_v25, %v12208_v31 }
0x1309   : > { %v6492_v62 = vadd.f32 1e-05, %v6476_v15 }
0x130a   : > { %v6490_v58 = vadd.f32 1e-05, %v6474_v63 }
0x130b   : > { %8755 = vrsqrt.f32 %v6492_v62  ;;  %vm6532_vm4 = vweird.f32 %v6492_v62 }
0x130c   : > { %8757 = vrsqrt.f32 %v6490_v58  ;;  %vm6512_vm5 = vweird.f32 %v6490_v58 }
0x130e   : > { %v6453_v18 = vpop.xlane.xlu0 %6452 }
0x130f   : > { %v6449_v56 = vpop.xlane.xlu1 %6448  ;;  %v6445_v36 = vpop.xlane.xlu2 %6444  ;;  %v6479_v50 = vmul.f32 %v6453_v18, %v12208_v31 }
0x1310   : > { %v6477_v21 = vmul.f32 %v6449_v56, %v12208_v31  ;;  %v6475_v12 = vmul.f32 %v6445_v36, %v12208_v31 }
0x1311   : > { %v8756_v53 = vpop.eup %8755  ;;  %v11762_v29 = vadd.f32 1e-05, %v6479_v50 }
0x1312   : > { %v8758_v44 = vpop.eup %8757  ;;  %v6527_v10 = vmul.f32 %v8756_v53, %v6492_v62  ;;  %v11764_v55 = vadd.f32 1e-05, %v6477_v21  ;;  %v11766_v30 = vadd.f32 1e-05, %v6475_v12  ;;  %vm6533_vm1 = vweird.f32 %v8756_v53 }
0x1313   : > { %v6507_v22 = vmul.f32 %v8758_v44, %v6490_v58  ;;  %8759 = vrsqrt.f32 %v11762_v29  ;;  %vm6513_vm3 = vweird.f32 %v8758_v44  ;;  %vm6534_vm6 = vmor %vm6532_vm4, %vm6533_vm1  ;;  %vm6562_vm8 = vweird.f32 %v11762_v29 }
0x1314   : > { %v6528_v52 = vmul.f32 %v8756_v53, %v6527_v10  ;;  %8761 = vrsqrt.f32 %v11764_v55  ;;  %vm6514_vm7 = vmor %vm6512_vm5, %vm6513_vm3  ;;  %vm6542_vm12 = vweird.f32 %v11764_v55  ;;  %vm6522_vm13 = vweird.f32 %v11766_v30 }
0x1315   : > { %v6508_v45 = vmul.f32 %v8758_v44, %v6507_v22  ;;  %8763 = vrsqrt.f32 %v11766_v30 }
0x1316   : > { %v6529_v37 = vmul.f32 0.5, %v6528_v52  ;;  %v6459_v1 = vpop.xlane.xlu0 %6458 }
0x1317   : > { %v6509_v19 = vmul.f32 0.5, %v6508_v45  ;;  %v6451_v41 = vpop.xlane.xlu2 %6450  ;;  %v6455_v27 = vpop.xlane.xlu1 %6454  ;;  %v6482_v54 = vmul.f32 %v6459_v1, %v12208_v31 }
0x1318   : > { %v6530_v17 = vsub.f32 1.5, %v6529_v37  ;;  %v6478_v59 = vmul.f32 %v6451_v41, %v12208_v31  ;;  %v6480_v46 = vmul.f32 %v6455_v27, %v12208_v31 }
0x1319   : > { %v11774_v14 = vpop.eup %8759  ;;  %v6510_v49 = vsub.f32 1.5, %v6509_v19  ;;  %v11797_v42 = vadd.f32 1e-05, %v6482_v54 }
0x131a   : > { %v11776_v8 = vpop.eup %8761  ;;  %v6531_v0 = vmul.f32 %v8756_v53, %v6530_v17  ;;  %v6557_v13 = vmul.f32 %v11774_v14, %v11762_v29  ;;  %v11780_v39 = vadd.f32 1e-05, %v6478_v59  ;;  %v11792_v33 = vadd.f32 1e-05, %v6480_v46 }
0x131b   : > { %v11782_v43 = vpop.eup %8763  ;;  %v6511_v34 = vmul.f32 %v8758_v44, %v6510_v49  ;;  %v6537_v2 = vmul.f32 %v11776_v8, %v11764_v55  ;;  %vm6563_vm9 = vweird.f32 %v11774_v14  ;;  %vm6543_vm10 = vweird.f32 %v11776_v8 }
0x131c   : > { %v6535_v35 = vsel %vm6534_vm6, %v8756_v53, %v6531_v0  ;;  %v6517_v3 = vmul.f32 %v11782_v43, %v11766_v30  ;;  %v6558_v47 = vmul.f32 %v11774_v14, %v6557_v13  ;;  %8765 = vrsqrt.f32 %v11780_v39  ;;  %vm6564_vm14 = vmor %vm6562_vm8, %vm6563_vm9 }
0x131d   : > { %v6515_v9 = vsel %vm6514_vm7, %v8758_v44, %v6511_v34  ;;  %v6668_v7 = vmul.f32 %v6535_v35, %v11664_v40  ;;  %v6538_v25 = vmul.f32 %v11776_v8, %v6537_v2  ;;  %8767 = vrsqrt.f32 %v11792_v33  ;;  %vm6544_vm15 = vmor %vm6542_vm12, %vm6543_vm10 }
0x131e   : > { %v6666_v15 = vmul.f32 %v6515_v9, %v11667_v4  ;;  %v6518_v63 = vmul.f32 %v11782_v43, %v6517_v3  ;;  %v6559_v62 = vmul.f32 0.5, %v6558_v47  ;;  %8769 = vrsqrt.f32 %v11797_v42  ;;  %v6465_v52 = vpop.xlane.xlu0 %6464 }
0x131f   : > { %v6687_v58 = vmul.f32 %v11787_v24, %v6668_v7  ;;  %v6539_v18 = vmul.f32 0.5, %v6538_v25  ;;  %v6457_v56 = vpop.xlane.xlu2 %6456  ;;  %v6461_v53 = vpop.xlane.xlu1 %6460  ;;  %vm6523_vm11 = vweird.f32 %v11782_v43  ;;  %vm6552_vm0 = vweird.f32 %v11780_v39 }
0x1320   : > { %v6685_v40 = vmul.f32 %v11787_v24, %v6666_v15  ;;  %v6519_v36 = vmul.f32 0.5, %v6518_v63  ;;  %v6560_v50 = vsub.f32 1.5, %v6559_v62  ;;  %v6481_v12 = vmul.f32 %v6457_v56, %v12208_v31  ;;  %vm6524_vm2 = vmor %vm6522_vm13, %vm6523_vm11 }
0x1321   : > { %v6706_v4 = vadd.f32 %v11802_v11, %v6687_v58  ;;  %v6540_v21 = vsub.f32 1.5, %v6539_v18  ;;  %v6483_v30 = vmul.f32 %v6461_v53, %v12208_v31  ;;  %v6485_v59 = vmul.f32 %v6465_v52, %v12208_v31 }
0x1322   : > { %v6704_v44 = vadd.f32 %v11802_v11, %v6685_v40  ;;  %v6520_v10 = vsub.f32 1.5, %v6519_v36  ;;  %v6561_v22 = vmul.f32 %v11774_v14, %v6560_v50  ;;  %v11821_v45 = vpop.eup %8765  ;;  %v11831_v1 = vadd.f32 1e-05, %v6481_v12 }
0x1323   : > { %6722 = vst [vmem:[%s9056_s29 + $0x10] sm:$0xff] %v6706_v4  ;;  %v6541_v37 = vmul.f32 %v11776_v8, %v6540_v21  ;;  %v6547_v55 = vmul.f32 %v11821_v45, %v11780_v39  ;;  %v11842_v27 = vpop.eup %8767  ;;  %vm6572_vm1 = vweird.f32 %v11792_v33  ;;  %vm6553_vm3 = vweird.f32 %v11821_v45 }
0x1324   : > { %6720 = vst [vmem:[%s9056_s29] sm:$0xff] %v6704_v44  ;;  %v6521_v19 = vmul.f32 %v11782_v43, %v6520_v10  ;;  %v6565_v41 = vsel %vm6564_vm14, %v11774_v14, %v6561_v22  ;;  %8771 = vrsqrt.f32 %v11831_v1  ;;  %v8770_v46 = vpop.eup %8769  ;;  %v6567_v0 = vmul.f32 %v11842_v27, %v11792_v33  ;;  %vm6554_vm6 = vmor %vm6552_vm0, %vm6553_vm3 }
0x1325   : > { %v6545_v29 = vsel %vm6544_vm15, %v11776_v8, %v6541_v37  ;;  %v6671_v17 = vmul.f32 %v6565_v41, %v11677_v20  ;;  %v6548_v49 = vmul.f32 %v11821_v45, %v6547_v55  ;;  %v6587_v20 = vmul.f32 %v8770_v46, %v11797_v42 }
0x1326   : > { %v6669_v54 = vmul.f32 %v6545_v29, %v11680_v26  ;;  %v6525_v14 = vsel %vm6524_vm2, %v11782_v43, %v6521_v19  ;;  %v6568_v43 = vmul.f32 %v11842_v27, %v6567_v0  ;;  %v11864_v47 = vadd.f32 1e-05, %v6483_v30  ;;  %v6471_v21 = vpop.xlane.xlu0 %6470 }
0x1327   : > { %v6667_v8 = vmul.f32 %v6525_v14, %v11683_v38  ;;  %v6690_v13 = vmul.f32 %v11787_v24, %v6671_v17  ;;  %v6463_v34 = vpop.xlane.xlu2 %6462  ;;  %v6549_v26 = vmul.f32 0.5, %v6548_v49  ;;  %v6588_v3 = vmul.f32 %v8770_v46, %v6587_v20  ;;  %v6467_v18 = vpop.xlane.xlu1 %6466 }
0x1328   : > { %v6688_v2 = vmul.f32 %v11787_v24, %v6669_v54  ;;  %v6569_v25 = vmul.f32 0.5, %v6568_v43  ;;  %v11867_v15 = vadd.f32 1e-05, %v6485_v59  ;;  %vm6592_vm4 = vweird.f32 %v11797_v42 }
0x1329   : > { %v6686_v35 = vmul.f32 %v11787_v24, %v6667_v8  ;;  %v6709_v38 = vadd.f32 %v11802_v11, %v6690_v13  ;;  %v6550_v7 = vsub.f32 1.5, %v6549_v26  ;;  %v6589_v58 = vmul.f32 0.5, %v6588_v3 }
0x132a   : > { %v6707_v9 = vadd.f32 %v11802_v11, %v6688_v2  ;;  %v11869_v63 = vpop.eup %8771  ;;  %8773 = vrsqrt.f32 %v11864_v47  ;;  %v6570_v40 = vsub.f32 1.5, %v6569_v25  ;;  %vm6573_vm5 = vweird.f32 %v11842_v27 }
0x132b   : > { %v6705_v62 = vadd.f32 %v11802_v11, %v6686_v35  ;;  %6725 = vst [vmem:[%s9056_s29 + $0x28] sm:$0xff] %v6709_v38  ;;  %v6551_v56 = vmul.f32 %v11821_v45, %v6550_v7  ;;  %v6577_v36 = vmul.f32 %v11869_v63, %v11831_v1  ;;  %v6590_v50 = vsub.f32 1.5, %v6589_v58  ;;  %vm6574_vm8 = vmor %vm6572_vm1, %vm6573_vm5 }
0x132c   : > { %6723 = vst [vmem:[%s9056_s29 + $0x18] sm:$0xff] %v6707_v9  ;;  %vm6593_vm7 = vweird.f32 %v8770_v46  ;;  %8775 = vrsqrt.f32 %v11867_v15  ;;  %v6484_v4 = vmul.f32 %v6463_v34, %v12208_v31  ;;  %v6571_v53 = vmul.f32 %v11842_v27, %v6570_v40 }
0x132d   : > { %6721 = vst [vmem:[%s9056_s29 + $0x8] sm:$0xff] %v6705_v62  ;;  %v6555_v12 = vsel %vm6554_vm6, %v11821_v45, %v6551_v56  ;;  %v6578_v44 = vmul.f32 %v11869_v63, %v6577_v36  ;;  %v6486_v10 = vmul.f32 %v6467_v18, %v12208_v31  ;;  %v6591_v39 = vmul.f32 %v8770_v46, %v6590_v50  ;;  %vm6594_vm10 = vmor %vm6592_vm4, %vm6593_vm7 }
0x132e   : > { %v6670_v22 = vmul.f32 %v6555_v12, %v11694_v5  ;;  %vm6582_vm9 = vweird.f32 %v11831_v1  ;;  %v11895_v52 = vadd.f32 1e-05, %v6484_v4  ;;  %v6575_v37 = vsel %vm6574_vm8, %v11842_v27, %v6571_v53 }
0x132f   : > { %v6579_v45 = vmul.f32 0.5, %v6578_v44  ;;  %v11900_v19 = vadd.f32 1e-05, %v6486_v10  ;;  %v6488_v41 = vmul.f32 %v6471_v21, %v12208_v31  ;;  %v6469_v55 = vpop.xlane.xlu2 %6468  ;;  %v6672_v30 = vmul.f32 %v6575_v37, %v11701_v16  ;;  %v6473_v43 = vpop.xlane.xlu1 %6472 }
0x1330   : > { %v8774_v5 = vpop.eup %8773  ;;  %v6689_v33 = vmul.f32 %v11787_v24, %v6670_v22  ;;  %v6595_v29 = vsel %vm6594_vm10, %v8770_v46, %v6591_v39  ;;  %8777 = vrsqrt.f32 %v11895_v52  ;;  %vm6583_vm11 = vweird.f32 %v11869_v63 }
0x1331   : > { %v6674_v27 = vmul.f32 %v6595_v29, %v11698_v51  ;;  %v6580_v17 = vsub.f32 1.5, %v6579_v45  ;;  %v6597_v42 = vmul.f32 %v8774_v5, %v11864_v47  ;;  %v6691_v14 = vmul.f32 %v11787_v24, %v6672_v30  ;;  %vm6584_vm12 = vmor %vm6582_vm9, %vm6583_vm11 }
0x1332   : > { %v8776_v59 = vpop.eup %8775  ;;  %v6708_v54 = vadd.f32 %v11802_v11, %v6689_v33  ;;  %8779 = vrsqrt.f32 %v11900_v19  ;;  %v6487_v16 = vmul.f32 %v6469_v55, %v12208_v31  ;;  %vm6602_vm13 = vweird.f32 %v11864_v47 }
0x1333   : > { %v6693_v46 = vmul.f32 %v11787_v24, %v6674_v27  ;;  %v6581_v49 = vmul.f32 %v11869_v63, %v6580_v17  ;;  %v6598_v51 = vmul.f32 %v8774_v5, %v6597_v42  ;;  %v6617_v0 = vmul.f32 %v8776_v59, %v11867_v15 }
0x1334   : > { %6724 = vst [vmem:[%s9056_s29 + $0x20] sm:$0xff] %v6708_v54  ;;  %v6710_v8 = vadd.f32 %v11802_v11, %v6691_v14  ;;  %v11921_v13 = vadd.f32 1e-05, %v6488_v41  ;;  %vm6622_vm14 = vweird.f32 %v11867_v15  ;;  %v11929_v1 = vadd.f32 1e-05, %v6487_v16 }
0x1335   : > { %v6712_v20 = vadd.f32 %v11802_v11, %v6693_v46  ;;  %v6585_v34 = vsel %vm6584_vm12, %v11869_v63, %v6581_v49  ;;  %v6599_v2 = vmul.f32 0.5, %v6598_v51  ;;  %v6618_v26 = vmul.f32 %v8776_v59, %v6617_v0 }
0x1336   : > { %v8778_v35 = vpop.eup %8777  ;;  %6726 = vst [vmem:[%s9056_s29 + $0x30] sm:$0xff] %v6710_v8  ;;  %v6673_v38 = vmul.f32 %v6585_v34, %v11711_v48  ;;  %8781 = vrsqrt.f32 %v11921_v13  ;;  %vm6603_vm15 = vweird.f32 %v8774_v5  ;;  %vm6623_vm0 = vweird.f32 %v8776_v59 }
0x1337   : > { %6728 = vst [vmem:[%s9056_s29 + $0x40] sm:$0xff] %v6712_v20  ;;  %v6600_v3 = vsub.f32 1.5, %v6599_v2  ;;  %v6619_v9 = vmul.f32 0.5, %v6618_v26  ;;  %v6607_v7 = vmul.f32 %v8778_v35, %v11895_v52  ;;  %8783 = vrsqrt.f32 %v11929_v1  ;;  %vm6604_vm2 = vmor %vm6602_vm13, %vm6603_vm15 }
0x1338   : > { %v8780_v25 = vpop.eup %8779  ;;  %v6692_v63 = vmul.f32 %v11787_v24, %v6673_v38  ;;  %v6489_v48 = vmul.f32 %v6473_v43, %v12208_v31  ;;  %vm6624_vm1 = vmor %vm6622_vm14, %vm6623_vm0  ;;  %vm6613_vm3 = vweird.f32 %v8778_v35  ;;  %vm6612_vm4 = vweird.f32 %v11895_v52 }
0x1339   : > { %v6601_v62 = vmul.f32 %v8774_v5, %v6600_v3  ;;  %v6620_v58 = vsub.f32 1.5, %v6619_v9  ;;  %v6608_v18 = vmul.f32 %v8778_v35, %v6607_v7  ;;  %v6627_v56 = vmul.f32 %v8780_v25, %v11900_v19  ;;  %vm6614_vm6 = vmor %vm6612_vm4, %vm6613_vm3 }
0x133a   : > { %v6711_v40 = vadd.f32 %v11802_v11, %v6692_v63  ;;  %v11940_v36 = vadd.f32 1e-05, %v6489_v48  ;;  %vm6633_vm5 = vweird.f32 %v8780_v25  ;;  %vm6632_vm7 = vweird.f32 %v11900_v19 }
0x133b   : > { %v6605_v50 = vsel %vm6604_vm2, %v8774_v5, %v6601_v62  ;;  %v6621_v4 = vmul.f32 %v8776_v59, %v6620_v58  ;;  %v6609_v21 = vmul.f32 0.5, %v6608_v18  ;;  %v6628_v12 = vmul.f32 %v8780_v25, %v6627_v56  ;;  %vm6634_vm8 = vmor %vm6632_vm7, %vm6633_vm5 }
0x133c   : > { %v8782_v53 = vpop.eup %8781  ;;  %6727 = vst [vmem:[%s9056_s29 + $0x38] sm:$0xff] %v6711_v40  ;;  %v6675_v31 = vmul.f32 %v6605_v50, %v11719_v6  ;;  %8785 = vrsqrt.f32 %v11940_v36  ;;  %vm6652_vm9 = vweird.f32 %v11921_v13  ;;  %vm6642_vm13 = vweird.f32 %v11929_v1 }
0x133d   : > { %v6625_v44 = vsel %vm6624_vm1, %v8776_v59, %v6621_v4  ;;  %v6610_v47 = vsub.f32 1.5, %v6609_v21  ;;  %v6629_v10 = vmul.f32 0.5, %v6628_v12  ;;  %v6647_v22 = vmul.f32 %v8782_v53, %v11921_v13  ;;  %v8784_v39 = vpop.eup %8783 }
0x133e   : > { %v6694_v37 = vmul.f32 %v11787_v24, %v6675_v31  ;;  %v6677_v45 = vmul.f32 %v6625_v44, %v11716_v57  ;;  %v6637_v55 = vmul.f32 %v8784_v39, %v11929_v1  ;;  %vm6653_vm10 = vweird.f32 %v8782_v53 }
0x133f   : > { %v6611_v6 = vmul.f32 %v8778_v35, %v6610_v47  ;;  %v6630_v15 = vsub.f32 1.5, %v6629_v10  ;;  %v6648_v41 = vmul.f32 %v8782_v53, %v6647_v22  ;;  %vm6643_vm11 = vweird.f32 %v8784_v39  ;;  %vm6654_vm12 = vmor %vm6652_vm9, %vm6653_vm10 }
0x1340   : > { %v6713_v5 = vadd.f32 %v11802_v11, %v6694_v37  ;;  %v6696_v33 = vmul.f32 %v11787_v24, %v6677_v45  ;;  %v6638_v27 = vmul.f32 %v8784_v39, %v6637_v55  ;;  %vm6644_vm14 = vmor %vm6642_vm13, %vm6643_vm11  ;;  %vm6662_vm0 = vweird.f32 %v11940_v36 }
0x1341   : > { %v6615_v30 = vsel %vm6614_vm6, %v8778_v35, %v6611_v6  ;;  %v6631_v57 = vmul.f32 %v8780_v25, %v6630_v15  ;;  %v6649_v29 = vmul.f32 0.5, %v6648_v41 }
0x1342   : > { %v8786_v52 = vpop.eup %8785  ;;  %6729 = vst [vmem:[%s9056_s29 + $0x48] sm:$0xff] %v6713_v5  ;;  %v6715_v17 = vadd.f32 %v11802_v11, %v6696_v33  ;;  %v6676_v42 = vmul.f32 %v6615_v30, %v11729_v28  ;;  %v6639_v14 = vmul.f32 0.5, %v6638_v27 }
0x1343   : > { %v6635_v59 = vsel %vm6634_vm8, %v8780_v25, %v6631_v57  ;;  %v6650_v54 = vsub.f32 1.5, %v6649_v29  ;;  %v6657_v19 = vmul.f32 %v8786_v52, %v11940_v36  ;;  %vm6663_vm15 = vweird.f32 %v8786_v52 }
0x1344   : > { %6731 = vst [vmem:[%s9056_s29 + $0x58] sm:$0xff] %v6715_v17  ;;  %v6695_v16 = vmul.f32 %v11787_v24, %v6676_v42  ;;  %v6678_v46 = vmul.f32 %v6635_v59, %v11737_v23  ;;  %v6640_v51 = vsub.f32 1.5, %v6639_v14  ;;  %vm6664_vm2 = vmor %vm6662_vm0, %vm6663_vm15 }
0x1345   : > { %v6651_v49 = vmul.f32 %v8782_v53, %v6650_v54  ;;  %v6658_v28 = vmul.f32 %v8786_v52, %v6657_v19 }
0x1346   : > { %v6714_v0 = vadd.f32 %v11802_v11, %v6695_v16  ;;  %v6697_v8 = vmul.f32 %v11787_v24, %v6678_v46  ;;  %v6641_v34 = vmul.f32 %v8784_v39, %v6640_v51 }
0x1347   : > { %v6655_v20 = vsel %vm6654_vm12, %v8782_v53, %v6651_v49  ;;  %v6659_v2 = vmul.f32 0.5, %v6658_v28 }
0x1348   : > { %6730 = vst [vmem:[%s9056_s29 + $0x50] sm:$0xff] %v6714_v0  ;;  %v6716_v23 = vadd.f32 %v11802_v11, %v6697_v8  ;;  %v6680_v26 = vmul.f32 %v6655_v20, %v11734_v60  ;;  %v6645_v43 = vsel %vm6644_vm14, %v8784_v39, %v6641_v34 }
0x1349   : > { %v6660_v35 = vsub.f32 1.5, %v6659_v2  ;;  %v6679_v38 = vmul.f32 %v6645_v43, %v11747_v61 }
0x134a   : > { %6732 = vst [vmem:[%s9056_s29 + $0x60] sm:$0xff] %v6716_v23  ;;  %v6699_v13 = vmul.f32 %v11787_v24, %v6680_v26 }
0x134b   : > { %v6661_v3 = vmul.f32 %v8786_v52, %v6660_v35  ;;  %v6698_v9 = vmul.f32 %v11787_v24, %v6679_v38 }
0x134c   : > { %v6718_v1 = vadd.f32 %v11802_v11, %v6699_v13 }
0x134d   : > { %v6665_v60 = vsel %vm6664_vm2, %v8786_v52, %v6661_v3  ;;  %v6717_v7 = vadd.f32 %v11802_v11, %v6698_v9 }
0x134e   : > { %6734 = vst [vmem:[%s9056_s29 + $0x70] sm:$0xff] %v6718_v1  ;;  %v6681_v25 = vmul.f32 %v6665_v60, %v11751_v32 }
0x134f   : > { %6733 = vst [vmem:[%s9056_s29 + $0x68] sm:$0xff] %v6717_v7 }
0x1350   : > { %v6700_v63 = vmul.f32 %v11787_v24, %v6681_v25 }
0x1352   : > { %v6719_v48 = vadd.f32 %v11802_v11, %v6700_v63 }
0x1354   : > { %6735 = vst [vmem:[%s9056_s29 + $0x78] sm:$0xff] %v6719_v48 }
0x1355 PF: > { %s12211_s27 = sld [smem:[#allocation6_spill]] }
0x1356   : > { %s12212_s0 = sld [smem:[#allocation4_spill]] }
0x1357   : > { %s12213_s30 = sld [smem:[#allocation5_spill]] }
0x1358   : > { %s12214_s20 = sld [smem:[#allocation7_spill]] }
0x1359   : > { %s12215_s21 = sld [smem:[#allocation8_spill]] }
0x135b   : > { %s29_s1 = sadd.s32 1, %s12211_s27  }
0x135c   : > { %p26_p9 = scmp.ge.s32.totalorder %s29_s1, 6  }
0x135e   :  { %28 = sbr.rel (!%p26_p9) target bundleno = 19 (0x13), region = 203 }

</bundles_post_ra>
